<compile_context>
chip_gen: v7x
topology: tpu7x:2x2x1
jax: 0.10.0
libtpu: 0.0.40
codegen_flags: <defaults>
</compile_context>

<pallas_src>
import jax
import jax.numpy as jnp
from jax import lax
from jax.experimental import pallas as pl
from jax.experimental.pallas import tpu as pltpu


def _round_up(x, m):
    return (x + m - 1) // m * m


# ----------------------------------------------------------------------------- kernel
def _res_block_kernel(x_ref, xa_ref, xb_ref, w1_ref, b1_ref, w2_ref, b2_ref,
                      o_ref, xp_ref, st_ref):
    # x_ref  : (nb, TH,   W, C) f32   this tile's input rows (also the residual)
    # xa_ref : (nb, 2,    W, C) f32   the 2 input rows just above the tile (clamped)
    # xb_ref : (nb, 2,    W, C) f32   the 2 input rows just below the tile (clamped)
    # w*_ref : (3, 3C, C)       bf16  kw-concatenated HWIO weights
    # b*_ref : (1, C)           f32   biases
    # o_ref  : (nb, TH,   W, C) f32
    # xp_ref : (nb, TH+4, Wp, C) bf16  shared halo scratch (conv1 input, then conv2 input)
    # st_ref : (nb, TH+4, W, 3C) bf16  kw-concat staging scratch (shared by both convs)
    nb, TH, W, C = x_ref.shape
    Wp = xp_ref.shape[2]
    h = pl.program_id(1)
    n_h = pl.num_programs(1)
    bf16 = jnp.bfloat16

    # ---- border-only zeroing (left pad column + right pad columns), every step -------
    xp_ref[:, :, 0:1, :] = jnp.zeros((nb, TH + 4, 1, C), bf16)
    xp_ref[:, :, W + 1:Wp, :] = jnp.zeros((nb, TH + 4, Wp - W - 1, C), bf16)

    # ---- top / bottom 2-row halos: neighbor rows, or zeros at the true image edge ----
    @pl.when(h == 0)
    def _():
        xp_ref[:, 0:2, 1:W + 1, :] = jnp.zeros((nb, 2, W, C), bf16)

    @pl.when(h > 0)
    def _():
        xp_ref[:, 0:2, 1:W + 1, :] = xa_ref[...].astype(bf16)

    @pl.when(h == n_h - 1)
    def _():
        xp_ref[:, TH + 2:TH + 4, 1:W + 1, :] = jnp.zeros((nb, 2, W, C), bf16)

    @pl.when(h < n_h - 1)
    def _():
        xp_ref[:, TH + 2:TH + 4, 1:W + 1, :] = xb_ref[...].astype(bf16)

    # ---- interior rows: this tile's input (bf16 in scratch; f32 kept for residual) ---
    x = x_ref[...]
    xp_ref[:, 2:TH + 2, 1:W + 1, :] = x.astype(bf16)

    def conv3x3(lo, n_out, wcat_ref, b_ref):
        """3x3 conv over xp rows [lo, lo + n_out + 2); returns (nb*n_out*W, C) f32."""
        n_rows = n_out + 2
        # kw-concat staging (bf16): st[:, r, c, j*C:(j+1)*C] = xp[:, lo+r, c+j, :]
        for j in range(3):
            st_ref[:, 0:n_rows, :, j * C:(j + 1) * C] = \
                xp_ref[:, lo:lo + n_rows, j:j + W, :]
        M = nb * n_out * W
        acc = jnp.broadcast_to(b_ref[...], (M, C))            # bias folded into init
        for i in range(3):                                    # kh taps: cheap row views
            slab = st_ref[:, i:i + n_out, :, :].reshape(M, 3 * C)
            acc = acc + jnp.dot(slab, wcat_ref[i],
                                preferred_element_type=jnp.float32)
        return acc

    # ---- conv1 -> ReLU, written back into the (reused) halo scratch rows 1..TH+2 -----
    # conv1 is evaluated on TH+2 rows (one extra row above/below the tile) so conv2
    # sees real neighbor data at interior tile boundaries.
    t = jnp.maximum(conv3x3(0, TH + 2, w1_ref, b1_ref), 0.0)
    xp_ref[:, 1:TH + 3, 1:W + 1, :] = t.reshape(nb, TH + 2, W, C).astype(bf16)

    # conv2's padding=1 along H exists only at the true image border.
    @pl.when(h == 0)
    def _():
        xp_ref[:, 1:2, 1:W + 1, :] = jnp.zeros((nb, 1, W, C), bf16)

    @pl.when(h == n_h - 1)
    def _():
        xp_ref[:, TH + 2:TH + 3, 1:W + 1, :] = jnp.zeros((nb, 1, W, C), bf16)

    # ---- conv2 -> + residual -> final ReLU -------------------------------------------
    out = conv3x3(1, TH, w2_ref, b2_ref).reshape(nb, TH, W, C) + x
    o_ref[...] = jnp.maximum(out, 0.0).astype(o_ref.dtype)


# ----------------------------------------------------------------------- tile chooser
def _vmem_estimate(nb, th, W, C):
    Wp = _round_up(W + 2, 8)
    halo = nb * (th + 4) * Wp * C * 2                       # bf16 halo scratch
    stage = nb * (th + 4) * W * 3 * C * 2                   # bf16 staging scratch
    io = 2 * 2 * nb * th * W * C * 4                        # in + out tiles, 2x buffered
    io += 2 * 2 * nb * 2 * W * C * 4 * 2                    # above/below halo rows
    wts = 2 * 2 * (3 * 3 * C * C * 2 + C * 4)               # weights + biases, 2x buffered
    tmp = 3 * nb * (th + 2) * W * C * 4                     # f32 temps (t, acc, relayout)
    return halo + stage + io + wts + tmp


def _choose_tiles(N, H, W, C, budget=28 * 1024 * 1024):
    best = None
    for nb in range(1, N + 1):
        if N % nb:
            continue
        for th in range(2, H + 1, 2):                       # tile_h must be even
            if H % th:
                continue
            if _vmem_estimate(nb, th, W, C) > budget:
                continue
            steps = (N // nb) * (H // th)
            m = nb * th * W                                 # matmul M dimension
            key = (steps >= 2, min(m, 4096), th)
            if best is None or key > best[1]:
                best = ((nb, th), key)
    return best[0] if best is not None else (1, 2)


# --------------------------------------------------------------------------- wrappers
def conv_relu_res_relu_block_nhwc(x_nhwc, w1, b1, w2, b2, *, nb=None, tile_h=None):
    """x_nhwc: (N, H, W, C) f32; w*: (3, 3, C, C) HWIO; b*: (C,).  Returns NHWC f32."""
    N, H, W, C = x_nhwc.shape
    assert C % 128 == 0
    assert H % 2 == 0 and H >= 2  # TODO(synk): odd H needs a 1-row-halo spec variant.
    auto_nb, auto_th = _choose_tiles(N, H, W, C)
    nb = auto_nb if nb is None else nb
    tile_h = auto_th if tile_h is None else tile_h
    assert N % nb == 0 and H % tile_h == 0 and tile_h % 2 == 0

    TH = tile_h
    Wp = _round_up(W + 2, 8)
    half = TH // 2

    # bf16 weights in kw-concatenated layout (kh, kw*Cin, Cout).
    w1c = w1.astype(jnp.bfloat16).reshape(3, 3 * C, C)
    w2c = w2.astype(jnp.bfloat16).reshape(3, 3 * C, C)
    b1r = b1.astype(jnp.float32).reshape(1, C)
    b2r = b2.astype(jnp.float32).reshape(1, C)

    def x_map(n, h):
        return (n, h, 0, 0)

    def xa_map(n, h):        # 2 rows above the tile (block of 2 rows; clamped at top)
        return (n, jnp.maximum(h * half - 1, 0), 0, 0)

    def xb_map(n, h):        # 2 rows below the tile (clamped at bottom)
        return (n, jnp.minimum((h + 1) * half, H // 2 - 1), 0, 0)

    def w_map(n, h):
        return (0, 0, 0)

    def b_map(n, h):
        return (0, 0)

    est = _vmem_estimate(nb, TH, W, C)
    vmem_limit = int(min(48 * 1024 * 1024, max(32 * 1024 * 1024, est * 1.6)))

    flops = 2 * 2 * 9 * C * C * N * H * W
    bytes_accessed = int(x_nhwc.size * 4 * 2.3 + 2 * 9 * C * C * 2 + 2 * C * 4)

    return pl.pallas_call(
        _res_block_kernel,
        out_shape=jax.ShapeDtypeStruct((N, H, W, C), x_nhwc.dtype),
        grid=(N // nb, H // TH),
        in_specs=[
            pl.BlockSpec((nb, TH, W, C), x_map),
            pl.BlockSpec((nb, 2, W, C), xa_map),
            pl.BlockSpec((nb, 2, W, C), xb_map),
            pl.BlockSpec((3, 3 * C, C), w_map),
            pl.BlockSpec((1, C), b_map),
            pl.BlockSpec((3, 3 * C, C), w_map),
            pl.BlockSpec((1, C), b_map),
        ],
        out_specs=pl.BlockSpec((nb, TH, W, C), x_map),
        scratch_shapes=[
            pltpu.VMEM((nb, TH + 4, Wp, C), jnp.bfloat16),       # shared halo scratch
            pltpu.VMEM((nb, TH + 4, W, 3 * C), jnp.bfloat16),    # kw-concat staging
        ],
        compiler_params=pltpu.CompilerParams(
            dimension_semantics=("parallel", "parallel"),
            vmem_limit_bytes=vmem_limit,
        ),
        cost_estimate=pl.CostEstimate(
            flops=int(flops), transcendentals=0, bytes_accessed=bytes_accessed),
    )(x_nhwc, x_nhwc, x_nhwc, w1c, b1r, w2c, b2r)


def conv_relu_res_relu_block_nchw(x_nchw, w1, b1, w2, b2, **kw):
    """PyTorch-facing wrapper: NCHW in, NCHW out (prefer the NHWC entry point)."""
    x_nhwc = jnp.transpose(x_nchw, (0, 2, 3, 1))
    out = conv_relu_res_relu_block_nhwc(x_nhwc, w1, b1, w2, b2, **kw)
    return jnp.transpose(out, (0, 3, 1, 2))


# -------------------------------------------------------------------------- reference
def _reference_nhwc(x, w1, b1, w2, b2):
    """Pure-JAX reference matching the kernel's bf16-operand / f32-accumulate numerics."""
    dn = ("NHWC", "HWIO", "NHWC")
    o = lax.conv_general_dilated(
        x.astype(jnp.bfloat16), w1.astype(jnp.bfloat16), (1, 1), "SAME",
        dimension_numbers=dn, preferred_element_type=jnp.float32) + b1
    o = jnp.maximum(o, 0.0)
    o = lax.conv_general_dilated(
        o.astype(jnp.bfloat16), w2.astype(jnp.bfloat16), (1, 1), "SAME",
        dimension_numbers=dn, preferred_element_type=jnp.float32) + b2
    return jnp.maximum(o + x, 0.0)   # residual add + final ReLU (relu2)


if __name__ == "__main__":
    key = jax.random.PRNGKey(0)
    kx, kw1, kb1, kw2, kb2 = jax.random.split(key, 5)

    N, CH, H, W = 2, 256, 16, 16     # channels fixed at 256 by the module
    x_nchw = jax.random.normal(kx, (N, CH, H, W), dtype=jnp.float32)

    # deterministic "kaiming-uniform-like" init (fan_in = C*3*3), HWIO layout
    fan_in = CH * 3 * 3
    bound = 1.0 / (fan_in ** 0.5)
    w1 = jax.random.uniform(kw1, (3, 3, CH, CH), jnp.float32, -bound, bound)
    b1 = jax.random.uniform(kb1, (CH,), jnp.float32, -bound, bound)
    w2 = jax.random.uniform(kw2, (3, 3, CH, CH), jnp.float32, -bound, bound)
    b2 = jax.random.uniform(kb2, (CH,), jnp.float32, -bound, bound)

    ref_nhwc = _reference_nhwc(jnp.transpose(x_nchw, (0, 2, 3, 1)), w1, b1, w2, b2)
    ref_nchw = jnp.transpose(ref_nhwc, (0, 3, 1, 2))

    # (a) default tiling (PyTorch-facing NCHW wrapper)
    out = conv_relu_res_relu_block_nchw(x_nchw, w1, b1, w2, b2)
    out = jax.block_until_ready(out)
    assert out.shape == (N, CH, H, W)
    assert jnp.allclose(out, ref_nchw, atol=2e-2, rtol=2e-2), "mismatch (default tiling)"

    # (b) forced multi-row-tile config: exercises the 2-row halo exchange including
    #     interior tiles (both halos taken from real neighbor rows).
    x_nhwc = jnp.transpose(x_nchw, (0, 2, 3, 1))
    out2 = conv_relu_res_relu_block_nhwc(x_nhwc, w1, b1, w2, b2, nb=1, tile_h=4)
    out2 = jax.block_until_ready(out2)
    assert jnp.allclose(out2, ref_nhwc, atol=2e-2, rtol=2e-2), "mismatch (row-tiled)"

    print("KERNEL_OK")
</pallas_src>

<mosaic_0001>
module attributes {stable_mosaic.version = 11 : i64} {
  func.func @_res_block_kernel(%arg0: i32, %arg1: i32, %arg2: memref<1x16x16x256xf32, #tpu.memory_space<vmem>>, %arg3: memref<1x2x16x256xf32, #tpu.memory_space<vmem>>, %arg4: memref<1x2x16x256xf32, #tpu.memory_space<vmem>>, %arg5: memref<3x768x256xbf16, #tpu.memory_space<vmem>>, %arg6: memref<1x256xf32, #tpu.memory_space<vmem>>, %arg7: memref<3x768x256xbf16, #tpu.memory_space<vmem>>, %arg8: memref<1x256xf32, #tpu.memory_space<vmem>>, %arg9: memref<1x16x16x256xf32, #tpu.memory_space<vmem>>, %arg10: memref<1x20x24x256xbf16, #tpu.memory_space<vmem>>, %arg11: memref<1x20x16x768xbf16, #tpu.memory_space<vmem>>) attributes {dimension_semantics = [#tpu.dimension_semantics<parallel>, #tpu.dimension_semantics<parallel>], iteration_bounds = array<i64: 2, 1>, scalar_prefetch = 0 : i64, scratch_operands = 2 : i64, tpu.core_type = #tpu.core_type<tc>, window_params = [{transform_indices = @transform_0, window_bounds = array<i64: 1, 16, 16, 256>}, {transform_indices = @transform_1, window_bounds = array<i64: 1, 2, 16, 256>}, {transform_indices = @transform_2, window_bounds = array<i64: 1, 2, 16, 256>}, {pipeline_mode = #tpu.pipeline_mode<synchronous>, transform_indices = @transform_3, window_bounds = array<i64: 3, 768, 256>}, {pipeline_mode = #tpu.pipeline_mode<synchronous>, transform_indices = @transform_4, window_bounds = array<i64: 1, 256>}, {pipeline_mode = #tpu.pipeline_mode<synchronous>, transform_indices = @transform_5, window_bounds = array<i64: 3, 768, 256>}, {pipeline_mode = #tpu.pipeline_mode<synchronous>, transform_indices = @transform_6, window_bounds = array<i64: 1, 256>}, {transform_indices = @transform_7, window_bounds = array<i64: 1, 16, 16, 256>}]} {
    %cst = arith.constant 0.000000e+00 : bf16
    %0 = vector.broadcast %cst : bf16 to vector<1x20x1x256xbf16>
    %c0 = arith.constant 0 : index
    %c0_0 = arith.constant 0 : index
    %c0_1 = arith.constant 0 : index
    %c0_2 = arith.constant 0 : index
    %1 = vector.load %arg10[%c0, %c0_0, %c0_1, %c0_2] : memref<1x20x24x256xbf16, #tpu.memory_space<vmem>>, vector<1x20x1x256xbf16>
    tpu.vector_store %arg10[%c0, %c0_0, %c0_1, %c0_2], %0 {strides = array<i32>} : memref<1x20x24x256xbf16, #tpu.memory_space<vmem>>, vector<1x20x1x256xbf16>,
    %cst_3 = arith.constant 0.000000e+00 : bf16
    %2 = vector.broadcast %cst_3 : bf16 to vector<1x20x7x256xbf16>
    %c0_4 = arith.constant 0 : index
    %c0_5 = arith.constant 0 : index
    %c17 = arith.constant 17 : index
    %c0_6 = arith.constant 0 : index
    %3 = vector.load %arg10[%c0_4, %c0_5, %c17, %c0_6] : memref<1x20x24x256xbf16, #tpu.memory_space<vmem>>, vector<1x20x7x256xbf16>
    tpu.vector_store %arg10[%c0_4, %c0_5, %c17, %c0_6], %2 {strides = array<i32>} : memref<1x20x24x256xbf16, #tpu.memory_space<vmem>>, vector<1x20x7x256xbf16>,
    %c0_i32 = arith.constant 0 : i32
    %4 = arith.cmpi eq, %arg1, %c0_i32 : i32
    %5 = arith.extui %4 : i1 to i32
    %c0_i32_7 = arith.constant 0 : i32
    %6 = arith.cmpi ne, %5, %c0_i32_7 : i32
    scf.if %6 {
      %cst_132 = arith.constant 0.000000e+00 : bf16
      %89 = vector.broadcast %cst_132 : bf16 to vector<1x2x16x256xbf16>
      %c0_133 = arith.constant 0 : index
      %c0_134 = arith.constant 0 : index
      %c1_135 = arith.constant 1 : index
      %c0_136 = arith.constant 0 : index
      %90 = vector.load %arg10[%c0_133, %c0_134, %c1_135, %c0_136] : memref<1x20x24x256xbf16, #tpu.memory_space<vmem>>, vector<1x2x16x256xbf16>
      tpu.vector_store %arg10[%c0_133, %c0_134, %c1_135, %c0_136], %89 {strides = array<i32>} : memref<1x20x24x256xbf16, #tpu.memory_space<vmem>>, vector<1x2x16x256xbf16>,
    } else {
    }
    %c0_i32_8 = arith.constant 0 : i32
    %7 = arith.cmpi sgt, %arg1, %c0_i32_8 : i32
    %8 = arith.extui %7 : i1 to i32
    %c0_i32_9 = arith.constant 0 : i32
    %9 = arith.cmpi ne, %8, %c0_i32_9 : i32
    scf.if %9 {
      %c0_132 = arith.constant 0 : index
      %c0_133 = arith.constant 0 : index
      %c0_134 = arith.constant 0 : index
      %c0_135 = arith.constant 0 : index
      %89 = vector.load %arg3[%c0_132, %c0_133, %c0_134, %c0_135] : memref<1x2x16x256xf32, #tpu.memory_space<vmem>>, vector<1x2x16x256xf32>
      %90 = arith.truncf %89 : vector<1x2x16x256xf32> to vector<1x2x16x256xbf16>
      %c0_136 = arith.constant 0 : index
      %c0_137 = arith.constant 0 : index
      %c1_138 = arith.constant 1 : index
      %c0_139 = arith.constant 0 : index
      %91 = vector.load %arg10[%c0_136, %c0_137, %c1_138, %c0_139] : memref<1x20x24x256xbf16, #tpu.memory_space<vmem>>, vector<1x2x16x256xbf16>
      tpu.vector_store %arg10[%c0_136, %c0_137, %c1_138, %c0_139], %90 {strides = array<i32>} : memref<1x20x24x256xbf16, #tpu.memory_space<vmem>>, vector<1x2x16x256xbf16>,
    } else {
    }
    %c0_i32_10 = arith.constant 0 : i32
    %10 = arith.cmpi eq, %arg1, %c0_i32_10 : i32
    %11 = arith.extui %10 : i1 to i32
    %c0_i32_11 = arith.constant 0 : i32
    %12 = arith.cmpi ne, %11, %c0_i32_11 : i32
    scf.if %12 {
      %cst_132 = arith.constant 0.000000e+00 : bf16
      %89 = vector.broadcast %cst_132 : bf16 to vector<1x2x16x256xbf16>
      %c0_133 = arith.constant 0 : index
      %c18 = arith.constant 18 : index
      %c1_134 = arith.constant 1 : index
      %c0_135 = arith.constant 0 : index
      %90 = vector.load %arg10[%c0_133, %c18, %c1_134, %c0_135] : memref<1x20x24x256xbf16, #tpu.memory_space<vmem>>, vector<1x2x16x256xbf16>
      tpu.vector_store %arg10[%c0_133, %c18, %c1_134, %c0_135], %89 {strides = array<i32>} : memref<1x20x24x256xbf16, #tpu.memory_space<vmem>>, vector<1x2x16x256xbf16>,
    } else {
    }
    %c0_i32_12 = arith.constant 0 : i32
    %13 = arith.cmpi slt, %arg1, %c0_i32_12 : i32
    %14 = arith.extui %13 : i1 to i32
    %c0_i32_13 = arith.constant 0 : i32
    %15 = arith.cmpi ne, %14, %c0_i32_13 : i32
    scf.if %15 {
      %c0_132 = arith.constant 0 : index
      %c0_133 = arith.constant 0 : index
      %c0_134 = arith.constant 0 : index
      %c0_135 = arith.constant 0 : index
      %89 = vector.load %arg4[%c0_132, %c0_133, %c0_134, %c0_135] : memref<1x2x16x256xf32, #tpu.memory_space<vmem>>, vector<1x2x16x256xf32>
      %90 = arith.truncf %89 : vector<1x2x16x256xf32> to vector<1x2x16x256xbf16>
      %c0_136 = arith.constant 0 : index
      %c18 = arith.constant 18 : index
      %c1_137 = arith.constant 1 : index
      %c0_138 = arith.constant 0 : index
      %91 = vector.load %arg10[%c0_136, %c18, %c1_137, %c0_138] : memref<1x20x24x256xbf16, #tpu.memory_space<vmem>>, vector<1x2x16x256xbf16>
      tpu.vector_store %arg10[%c0_136, %c18, %c1_137, %c0_138], %90 {strides = array<i32>} : memref<1x20x24x256xbf16, #tpu.memory_space<vmem>>, vector<1x2x16x256xbf16>,
    } else {
    }
    %c0_14 = arith.constant 0 : index
    %c0_15 = arith.constant 0 : index
    %c0_16 = arith.constant 0 : index
    %c0_17 = arith.constant 0 : index
    %16 = vector.load %arg2[%c0_14, %c0_15, %c0_16, %c0_17] : memref<1x16x16x256xf32, #tpu.memory_space<vmem>>, vector<1x16x16x256xf32>
    %17 = arith.truncf %16 : vector<1x16x16x256xf32> to vector<1x16x16x256xbf16>
    %c0_18 = arith.constant 0 : index
    %c2 = arith.constant 2 : index
    %c1 = arith.constant 1 : index
    %c0_19 = arith.constant 0 : index
    %18 = vector.load %arg10[%c0_18, %c2, %c1, %c0_19] : memref<1x20x24x256xbf16, #tpu.memory_space<vmem>>, vector<1x16x16x256xbf16>
    tpu.vector_store %arg10[%c0_18, %c2, %c1, %c0_19], %17 {strides = array<i32>} : memref<1x20x24x256xbf16, #tpu.memory_space<vmem>>, vector<1x16x16x256xbf16>,
    %c0_20 = arith.constant 0 : index
    %c0_21 = arith.constant 0 : index
    %c0_22 = arith.constant 0 : index
    %c0_23 = arith.constant 0 : index
    %19 = vector.load %arg10[%c0_20, %c0_21, %c0_22, %c0_23] : memref<1x20x24x256xbf16, #tpu.memory_space<vmem>>, vector<1x20x16x256xbf16>
    %c0_24 = arith.constant 0 : index
    %c0_25 = arith.constant 0 : index
    %c0_26 = arith.constant 0 : index
    %c0_27 = arith.constant 0 : index
    %20 = vector.load %arg11[%c0_24, %c0_25, %c0_26, %c0_27] : memref<1x20x16x768xbf16, #tpu.memory_space<vmem>>, vector<1x20x16x256xbf16>
    tpu.vector_store %arg11[%c0_24, %c0_25, %c0_26, %c0_27], %19 {strides = array<i32>} : memref<1x20x16x768xbf16, #tpu.memory_space<vmem>>, vector<1x20x16x256xbf16>,
    %c0_28 = arith.constant 0 : index
    %c0_29 = arith.constant 0 : index
    %c1_30 = arith.constant 1 : index
    %c0_31 = arith.constant 0 : index
    %21 = vector.load %arg10[%c0_28, %c0_29, %c1_30, %c0_31] : memref<1x20x24x256xbf16, #tpu.memory_space<vmem>>, vector<1x20x16x256xbf16>
    %c0_32 = arith.constant 0 : index
    %c0_33 = arith.constant 0 : index
    %c0_34 = arith.constant 0 : index
    %c256 = arith.constant 256 : index
    %22 = vector.load %arg11[%c0_32, %c0_33, %c0_34, %c256] : memref<1x20x16x768xbf16, #tpu.memory_space<vmem>>, vector<1x20x16x256xbf16>
    tpu.vector_store %arg11[%c0_32, %c0_33, %c0_34, %c256], %21 {strides = array<i32>} : memref<1x20x16x768xbf16, #tpu.memory_space<vmem>>, vector<1x20x16x256xbf16>,
    %c0_35 = arith.constant 0 : index
    %c0_36 = arith.constant 0 : index
    %c2_37 = arith.constant 2 : index
    %c0_38 = arith.constant 0 : index
    %23 = vector.load %arg10[%c0_35, %c0_36, %c2_37, %c0_38] : memref<1x20x24x256xbf16, #tpu.memory_space<vmem>>, vector<1x20x16x256xbf16>
    %c0_39 = arith.constant 0 : index
    %c0_40 = arith.constant 0 : index
    %c0_41 = arith.constant 0 : index
    %c512 = arith.constant 512 : index
    %24 = vector.load %arg11[%c0_39, %c0_40, %c0_41, %c512] : memref<1x20x16x768xbf16, #tpu.memory_space<vmem>>, vector<1x20x16x256xbf16>
    tpu.vector_store %arg11[%c0_39, %c0_40, %c0_41, %c512], %23 {strides = array<i32>} : memref<1x20x16x768xbf16, #tpu.memory_space<vmem>>, vector<1x20x16x256xbf16>,
    %c0_42 = arith.constant 0 : index
    %c0_43 = arith.constant 0 : index
    %25 = vector.load %arg6[%c0_42, %c0_43] : memref<1x256xf32, #tpu.memory_space<vmem>>, vector<1x256xf32>
    %26 = vector.shape_cast %25 : vector<1x256xf32> to vector<1x256xf32>
    %27 = vector.broadcast %26 : vector<1x256xf32> to vector<288x256xf32>
    %c0_44 = arith.constant 0 : index
    %c0_45 = arith.constant 0 : index
    %c0_46 = arith.constant 0 : index
    %c0_47 = arith.constant 0 : index
    %28 = vector.load %arg11[%c0_44, %c0_45, %c0_46, %c0_47] : memref<1x20x16x768xbf16, #tpu.memory_space<vmem>>, vector<1x18x16x768xbf16>
    %29 = vector.shape_cast %28 : vector<1x18x16x768xbf16> to vector<288x768xbf16>
    %c0_48 = arith.constant 0 : index
    %c0_49 = arith.constant 0 : index
    %c0_50 = arith.constant 0 : index
    %30 = vector.load %arg5[%c0_48, %c0_49, %c0_50] : memref<3x768x256xbf16, #tpu.memory_space<vmem>>, vector<1x768x256xbf16>
    %31 = vector.shape_cast %30 : vector<1x768x256xbf16> to vector<768x256xbf16>
    %cst_51 = arith.constant dense<0.000000e+00> : vector<288x256xf32>
    %32 = tpu.matmul %29, %31, %cst_51 {dimension_numbers = #tpu.dot_dimension_numbers<[1], [0], [0], [1], [0, 0, 1, 1], [], []>} : vector<288x768xbf16>, vector<768x256xbf16>, vector<288x256xf32> -> vector<288x256xf32>
    %33 = arith.addf %27, %32 : vector<288x256xf32>
    %c0_52 = arith.constant 0 : index
    %c1_53 = arith.constant 1 : index
    %c0_54 = arith.constant 0 : index
    %c0_55 = arith.constant 0 : index
    %34 = vector.load %arg11[%c0_52, %c1_53, %c0_54, %c0_55] : memref<1x20x16x768xbf16, #tpu.memory_space<vmem>>, vector<1x18x16x768xbf16>
    %35 = vector.shape_cast %34 : vector<1x18x16x768xbf16> to vector<288x768xbf16>
    %c1_56 = arith.constant 1 : index
    %c0_57 = arith.constant 0 : index
    %c0_58 = arith.constant 0 : index
    %36 = vector.load %arg5[%c1_56, %c0_57, %c0_58] : memref<3x768x256xbf16, #tpu.memory_space<vmem>>, vector<1x768x256xbf16>
    %37 = vector.shape_cast %36 : vector<1x768x256xbf16> to vector<768x256xbf16>
    %cst_59 = arith.constant dense<0.000000e+00> : vector<288x256xf32>
    %38 = tpu.matmul %35, %37, %cst_59 {dimension_numbers = #tpu.dot_dimension_numbers<[1], [0], [0], [1], [0, 0, 1, 1], [], []>} : vector<288x768xbf16>, vector<768x256xbf16>, vector<288x256xf32> -> vector<288x256xf32>
    %39 = arith.addf %33, %38 : vector<288x256xf32>
    %c0_60 = arith.constant 0 : index
    %c2_61 = arith.constant 2 : index
    %c0_62 = arith.constant 0 : index
    %c0_63 = arith.constant 0 : index
    %40 = vector.load %arg11[%c0_60, %c2_61, %c0_62, %c0_63] : memref<1x20x16x768xbf16, #tpu.memory_space<vmem>>, vector<1x18x16x768xbf16>
    %41 = vector.shape_cast %40 : vector<1x18x16x768xbf16> to vector<288x768xbf16>
    %c2_64 = arith.constant 2 : index
    %c0_65 = arith.constant 0 : index
    %c0_66 = arith.constant 0 : index
    %42 = vector.load %arg5[%c2_64, %c0_65, %c0_66] : memref<3x768x256xbf16, #tpu.memory_space<vmem>>, vector<1x768x256xbf16>
    %43 = vector.shape_cast %42 : vector<1x768x256xbf16> to vector<768x256xbf16>
    %cst_67 = arith.constant dense<0.000000e+00> : vector<288x256xf32>
    %44 = tpu.matmul %41, %43, %cst_67 {dimension_numbers = #tpu.dot_dimension_numbers<[1], [0], [0], [1], [0, 0, 1, 1], [], []>} : vector<288x768xbf16>, vector<768x256xbf16>, vector<288x256xf32> -> vector<288x256xf32>
    %45 = arith.addf %39, %44 : vector<288x256xf32>
    %cst_68 = arith.constant 0.000000e+00 : f32
    %46 = vector.broadcast %cst_68 : f32 to vector<288x256xf32>
    %47 = arith.maximumf %45, %46 : vector<288x256xf32>
    %48 = vector.shape_cast %47 : vector<288x256xf32> to vector<1x18x16x256xf32>
    %49 = arith.truncf %48 : vector<1x18x16x256xf32> to vector<1x18x16x256xbf16>
    %c0_69 = arith.constant 0 : index
    %c1_70 = arith.constant 1 : index
    %c1_71 = arith.constant 1 : index
    %c0_72 = arith.constant 0 : index
    %50 = vector.load %arg10[%c0_69, %c1_70, %c1_71, %c0_72] : memref<1x20x24x256xbf16, #tpu.memory_space<vmem>>, vector<1x18x16x256xbf16>
    tpu.vector_store %arg10[%c0_69, %c1_70, %c1_71, %c0_72], %49 {strides = array<i32>} : memref<1x20x24x256xbf16, #tpu.memory_space<vmem>>, vector<1x18x16x256xbf16>,
    %c0_i32_73 = arith.constant 0 : i32
    %51 = arith.cmpi eq, %arg1, %c0_i32_73 : i32
    %52 = arith.extui %51 : i1 to i32
    %c0_i32_74 = arith.constant 0 : i32
    %53 = arith.cmpi ne, %52, %c0_i32_74 : i32
    scf.if %53 {
      %cst_132 = arith.constant 0.000000e+00 : bf16
      %89 = vector.broadcast %cst_132 : bf16 to vector<1x1x16x256xbf16>
      %c0_133 = arith.constant 0 : index
      %c1_134 = arith.constant 1 : index
      %c1_135 = arith.constant 1 : index
      %c0_136 = arith.constant 0 : index
      %90 = vector.load %arg10[%c0_133, %c1_134, %c1_135, %c0_136] : memref<1x20x24x256xbf16, #tpu.memory_space<vmem>>, vector<1x1x16x256xbf16>
      tpu.vector_store %arg10[%c0_133, %c1_134, %c1_135, %c0_136], %89 {strides = array<i32>} : memref<1x20x24x256xbf16, #tpu.memory_space<vmem>>, vector<1x1x16x256xbf16>,
    } else {
    }
    %c0_i32_75 = arith.constant 0 : i32
    %54 = arith.cmpi eq, %arg1, %c0_i32_75 : i32
    %55 = arith.extui %54 : i1 to i32
    %c0_i32_76 = arith.constant 0 : i32
    %56 = arith.cmpi ne, %55, %c0_i32_76 : i32
    scf.if %56 {
      %cst_132 = arith.constant 0.000000e+00 : bf16
      %89 = vector.broadcast %cst_132 : bf16 to vector<1x1x16x256xbf16>
      %c0_133 = arith.constant 0 : index
      %c18 = arith.constant 18 : index
      %c1_134 = arith.constant 1 : index
      %c0_135 = arith.constant 0 : index
      %90 = vector.load %arg10[%c0_133, %c18, %c1_134, %c0_135] : memref<1x20x24x256xbf16, #tpu.memory_space<vmem>>, vector<1x1x16x256xbf16>
      tpu.vector_store %arg10[%c0_133, %c18, %c1_134, %c0_135], %89 {strides = array<i32>} : memref<1x20x24x256xbf16, #tpu.memory_space<vmem>>, vector<1x1x16x256xbf16>,
    } else {
    }
    %c0_77 = arith.constant 0 : index
    %c1_78 = arith.constant 1 : index
    %c0_79 = arith.constant 0 : index
    %c0_80 = arith.constant 0 : index
    %57 = vector.load %arg10[%c0_77, %c1_78, %c0_79, %c0_80] : memref<1x20x24x256xbf16, #tpu.memory_space<vmem>>, vector<1x18x16x256xbf16>
    %c0_81 = arith.constant 0 : index
    %c0_82 = arith.constant 0 : index
    %c0_83 = arith.constant 0 : index
    %c0_84 = arith.constant 0 : index
    %58 = vector.load %arg11[%c0_81, %c0_82, %c0_83, %c0_84] : memref<1x20x16x768xbf16, #tpu.memory_space<vmem>>, vector<1x18x16x256xbf16>
    tpu.vector_store %arg11[%c0_81, %c0_82, %c0_83, %c0_84], %57 {strides = array<i32>} : memref<1x20x16x768xbf16, #tpu.memory_space<vmem>>, vector<1x18x16x256xbf16>,
    %c0_85 = arith.constant 0 : index
    %c1_86 = arith.constant 1 : index
    %c1_87 = arith.constant 1 : index
    %c0_88 = arith.constant 0 : index
    %59 = vector.load %arg10[%c0_85, %c1_86, %c1_87, %c0_88] : memref<1x20x24x256xbf16, #tpu.memory_space<vmem>>, vector<1x18x16x256xbf16>
    %c0_89 = arith.constant 0 : index
    %c0_90 = arith.constant 0 : index
    %c0_91 = arith.constant 0 : index
    %c256_92 = arith.constant 256 : index
    %60 = vector.load %arg11[%c0_89, %c0_90, %c0_91, %c256_92] : memref<1x20x16x768xbf16, #tpu.memory_space<vmem>>, vector<1x18x16x256xbf16>
    tpu.vector_store %arg11[%c0_89, %c0_90, %c0_91, %c256_92], %59 {strides = array<i32>} : memref<1x20x16x768xbf16, #tpu.memory_space<vmem>>, vector<1x18x16x256xbf16>,
    %c0_93 = arith.constant 0 : index
    %c1_94 = arith.constant 1 : index
    %c2_95 = arith.constant 2 : index
    %c0_96 = arith.constant 0 : index
    %61 = vector.load %arg10[%c0_93, %c1_94, %c2_95, %c0_96] : memref<1x20x24x256xbf16, #tpu.memory_space<vmem>>, vector<1x18x16x256xbf16>
    %c0_97 = arith.constant 0 : index
    %c0_98 = arith.constant 0 : index
    %c0_99 = arith.constant 0 : index
    %c512_100 = arith.constant 512 : index
    %62 = vector.load %arg11[%c0_97, %c0_98, %c0_99, %c512_100] : memref<1x20x16x768xbf16, #tpu.memory_space<vmem>>, vector<1x18x16x256xbf16>
    tpu.vector_store %arg11[%c0_97, %c0_98, %c0_99, %c512_100], %61 {strides = array<i32>} : memref<1x20x16x768xbf16, #tpu.memory_space<vmem>>, vector<1x18x16x256xbf16>,
    %c0_101 = arith.constant 0 : index
    %c0_102 = arith.constant 0 : index
    %63 = vector.load %arg8[%c0_101, %c0_102] : memref<1x256xf32, #tpu.memory_space<vmem>>, vector<1x256xf32>
    %64 = vector.shape_cast %63 : vector<1x256xf32> to vector<1x256xf32>
    %65 = vector.broadcast %64 : vector<1x256xf32> to vector<256x256xf32>
    %c0_103 = arith.constant 0 : index
    %c0_104 = arith.constant 0 : index
    %c0_105 = arith.constant 0 : index
    %c0_106 = arith.constant 0 : index
    %66 = vector.load %arg11[%c0_103, %c0_104, %c0_105, %c0_106] : memref<1x20x16x768xbf16, #tpu.memory_space<vmem>>, vector<1x16x16x768xbf16>
    %67 = vector.shape_cast %66 : vector<1x16x16x768xbf16> to vector<256x768xbf16>
    %c0_107 = arith.constant 0 : index
    %c0_108 = arith.constant 0 : index
    %c0_109 = arith.constant 0 : index
    %68 = vector.load %arg7[%c0_107, %c0_108, %c0_109] : memref<3x768x256xbf16, #tpu.memory_space<vmem>>, vector<1x768x256xbf16>
    %69 = vector.shape_cast %68 : vector<1x768x256xbf16> to vector<768x256xbf16>
    %cst_110 = arith.constant dense<0.000000e+00> : vector<256x256xf32>
    %70 = tpu.matmul %67, %69, %cst_110 {dimension_numbers = #tpu.dot_dimension_numbers<[1], [0], [0], [1], [0, 0, 1, 1], [], []>} : vector<256x768xbf16>, vector<768x256xbf16>, vector<256x256xf32> -> vector<256x256xf32>
    %71 = arith.addf %65, %70 : vector<256x256xf32>
    %c0_111 = arith.constant 0 : index
    %c1_112 = arith.constant 1 : index
    %c0_113 = arith.constant 0 : index
    %c0_114 = arith.constant 0 : index
    %72 = vector.load %arg11[%c0_111, %c1_112, %c0_113, %c0_114] : memref<1x20x16x768xbf16, #tpu.memory_space<vmem>>, vector<1x16x16x768xbf16>
    %73 = vector.shape_cast %72 : vector<1x16x16x768xbf16> to vector<256x768xbf16>
    %c1_115 = arith.constant 1 : index
    %c0_116 = arith.constant 0 : index
    %c0_117 = arith.constant 0 : index
    %74 = vector.load %arg7[%c1_115, %c0_116, %c0_117] : memref<3x768x256xbf16, #tpu.memory_space<vmem>>, vector<1x768x256xbf16>
    %75 = vector.shape_cast %74 : vector<1x768x256xbf16> to vector<768x256xbf16>
    %cst_118 = arith.constant dense<0.000000e+00> : vector<256x256xf32>
    %76 = tpu.matmul %73, %75, %cst_118 {dimension_numbers = #tpu.dot_dimension_numbers<[1], [0], [0], [1], [0, 0, 1, 1], [], []>} : vector<256x768xbf16>, vector<768x256xbf16>, vector<256x256xf32> -> vector<256x256xf32>
    %77 = arith.addf %71, %76 : vector<256x256xf32>
    %c0_119 = arith.constant 0 : index
    %c2_120 = arith.constant 2 : index
    %c0_121 = arith.constant 0 : index
    %c0_122 = arith.constant 0 : index
    %78 = vector.load %arg11[%c0_119, %c2_120, %c0_121, %c0_122] : memref<1x20x16x768xbf16, #tpu.memory_space<vmem>>, vector<1x16x16x768xbf16>
    %79 = vector.shape_cast %78 : vector<1x16x16x768xbf16> to vector<256x768xbf16>
    %c2_123 = arith.constant 2 : index
    %c0_124 = arith.constant 0 : index
    %c0_125 = arith.constant 0 : index
    %80 = vector.load %arg7[%c2_123, %c0_124, %c0_125] : memref<3x768x256xbf16, #tpu.memory_space<vmem>>, vector<1x768x256xbf16>
    %81 = vector.shape_cast %80 : vector<1x768x256xbf16> to vector<768x256xbf16>
    %cst_126 = arith.constant dense<0.000000e+00> : vector<256x256xf32>
    %82 = tpu.matmul %79, %81, %cst_126 {dimension_numbers = #tpu.dot_dimension_numbers<[1], [0], [0], [1], [0, 0, 1, 1], [], []>} : vector<256x768xbf16>, vector<768x256xbf16>, vector<256x256xf32> -> vector<256x256xf32>
    %83 = arith.addf %77, %82 : vector<256x256xf32>
    %84 = vector.shape_cast %83 : vector<256x256xf32> to vector<1x16x16x256xf32>
    %85 = arith.addf %84, %16 : vector<1x16x16x256xf32>
    %cst_127 = arith.constant 0.000000e+00 : f32
    %86 = vector.broadcast %cst_127 : f32 to vector<1x16x16x256xf32>
    %87 = arith.maximumf %85, %86 : vector<1x16x16x256xf32>
    %c0_128 = arith.constant 0 : index
    %c0_129 = arith.constant 0 : index
    %c0_130 = arith.constant 0 : index
    %c0_131 = arith.constant 0 : index
    %88 = vector.load %arg9[%c0_128, %c0_129, %c0_130, %c0_131] : memref<1x16x16x256xf32, #tpu.memory_space<vmem>>, vector<1x16x16x256xf32>
    tpu.vector_store %arg9[%c0_128, %c0_129, %c0_130, %c0_131], %87 {strides = array<i32>} : memref<1x16x16x256xf32, #tpu.memory_space<vmem>>, vector<1x16x16x256xf32>,
    return
  }
  func.func @transform_0(%arg0: i32, %arg1: i32) -> (i32, i32, i32, i32) {
    %c0_i32 = arith.constant 0 : i32
    %c0_i32_0 = arith.constant 0 : i32
    %c0_i32_1 = arith.constant 0 : i32
    return %arg0, %arg1, %c0_i32, %c0_i32_0 : i32, i32, i32, i32
  }
  func.func @transform_1(%arg0: i32, %arg1: i32) -> (i32, i32, i32, i32) {
    %c8_i32 = arith.constant 8 : i32
    %0 = arith.muli %arg1, %c8_i32 : i32
    %c1_i32 = arith.constant 1 : i32
    %1 = arith.subi %0, %c1_i32 : i32
    %c0_i32 = arith.constant 0 : i32
    %2 = arith.maxsi %1, %c0_i32 : i32
    %c0_i32_0 = arith.constant 0 : i32
    %c0_i32_1 = arith.constant 0 : i32
    %c0_i32_2 = arith.constant 0 : i32
    return %arg0, %2, %c0_i32_0, %c0_i32_1 : i32, i32, i32, i32
  }
  func.func @transform_2(%arg0: i32, %arg1: i32) -> (i32, i32, i32, i32) {
    %c1_i32 = arith.constant 1 : i32
    %0 = arith.addi %arg1, %c1_i32 : i32
    %c8_i32 = arith.constant 8 : i32
    %1 = arith.muli %0, %c8_i32 : i32
    %c7_i32 = arith.constant 7 : i32
    %2 = arith.minsi %1, %c7_i32 : i32
    %c0_i32 = arith.constant 0 : i32
    %c0_i32_0 = arith.constant 0 : i32
    %c0_i32_1 = arith.constant 0 : i32
    return %arg0, %2, %c0_i32, %c0_i32_0 : i32, i32, i32, i32
  }
  func.func @transform_3(%arg0: i32, %arg1: i32) -> (i32, i32, i32) {
    %c0_i32 = arith.constant 0 : i32
    %c0_i32_0 = arith.constant 0 : i32
    %c0_i32_1 = arith.constant 0 : i32
    %c0_i32_2 = arith.constant 0 : i32
    return %c0_i32, %c0_i32_0, %c0_i32_1 : i32, i32, i32
  }
  func.func @transform_4(%arg0: i32, %arg1: i32) -> (i32, i32) {
    %c0_i32 = arith.constant 0 : i32
    %c0_i32_0 = arith.constant 0 : i32
    %c0_i32_1 = arith.constant 0 : i32
    return %c0_i32, %c0_i32_0 : i32, i32
  }
  func.func @transform_5(%arg0: i32, %arg1: i32) -> (i32, i32, i32) {
    %c0_i32 = arith.constant 0 : i32
    %c0_i32_0 = arith.constant 0 : i32
    %c0_i32_1 = arith.constant 0 : i32
    %c0_i32_2 = arith.constant 0 : i32
    return %c0_i32, %c0_i32_0, %c0_i32_1 : i32, i32, i32
  }
  func.func @transform_6(%arg0: i32, %arg1: i32) -> (i32, i32) {
    %c0_i32 = arith.constant 0 : i32
    %c0_i32_0 = arith.constant 0 : i32
    %c0_i32_1 = arith.constant 0 : i32
    return %c0_i32, %c0_i32_0 : i32, i32
  }
  func.func @transform_7(%arg0: i32, %arg1: i32) -> (i32, i32, i32, i32) {
    %c0_i32 = arith.constant 0 : i32
    %c0_i32_0 = arith.constant 0 : i32
    %c0_i32_1 = arith.constant 0 : i32
    return %arg0, %arg1, %c0_i32, %c0_i32_0 : i32, i32, i32, i32
  }
}

</mosaic_0001>

<bundles_post_ra>
// kernel: tpu_custom_call.1
= control target key start
LH: loop header
LB: loop body
LE: loop exit
PB: predicated region body
PF: predicated region fallthrough
CT: control target
= control target key end

     0   :  { %s20956_s0 = inlined_call_operand.hbm [shape: f32[2,16,16,256], index: 0, kind: input, shape index: {}]   ;;  %s20957_s1 = inlined_call_operand.hbm [shape: f32[2,16,16,256], index: 1, kind: input, shape index: {}]   ;;  %s20958_s2 = inlined_call_operand.hbm [shape: f32[2,16,16,256], index: 2, kind: input, shape index: {}]   ;;  %s20959_s3 = inlined_call_operand.hbm [shape: bf16[3,768,256], index: 3, kind: input, shape index: {}]   ;;  %s20960_s4 = inlined_call_operand.hbm [shape: f32[1,256], index: 4, kind: input, shape index: {}]   ;;  %s20961_s5 = inlined_call_operand.hbm [shape: bf16[3,768,256], index: 5, kind: input, shape index: {}]   ;;  %s20962_s6 = inlined_call_operand.hbm [shape: f32[1,256], index: 6, kind: input, shape index: {}]   ;;  %s20963_s7 = inlined_call_operand.hbm [shape: f32[2,16,16,256], index: 7, kind: output, shape index: {}]  }
   0x1   :  { %21194 = sst [smem:[#allocation94_spill]] %s20957_s1 }
   0x2   :  { %21195 = sst [smem:[#allocation95_spill]] %s20959_s3 }
   0x3   :  { %21196 = sst [smem:[#allocation96_spill]] %s20961_s5 }
   0x4   :  { %21197 = sst [smem:[#allocation97_spill]] %s20963_s7 }
   0x5   :  { %12 = vsyncpa [#allocation5], 0 }
   0x6   :  { %14 = vsyncpa [#allocation5 + $0x1], 0 }
   0x7   :  { %15 = vsyncpa [#allocation8], 0 }
   0x8   :  { %17 = vsyncpa [#allocation8 + $0x1], 0 }
   0x9   :  { %18 = vsyncpa [#allocation11], 0 }
   0xa   :  { %19 = vsyncpa [#allocation14], 0 }
   0xb   :  { %20 = vsyncpa [#allocation6], 0 }
   0xc   :  { %22 = vsyncpa [#allocation6 + $0x1], 0  ;;  %s18078_s24 = smov 0   ;;  %s18080_s25 = smov 0  }
   0xd   :  { %s18082_s26 = smov 0   ;;  %s18084_s27 = smov 0  }
   0xe   :  { %s18086_s28 = smov 0   ;;  %s18088_s29 = smov 0  }
   0xf LB: > { %21198 = sst [smem:[#allocation22_spill]] %s18001_s24  ;;  %s18109_s30 = sadd.s32 4294967295, %s18021_s29   ;;  %s18021_s29 = sphi %s18088_s29, %s28_s29   ;;  %s18017_s28 = sphi %s18086_s28, %s21561_s28   ;;  %s18013_s27 = sphi %s18084_s27, %s21560_s27   ;;  %s18009_s26 = sphi %s18082_s26, %s21559_s26   ;;  %s18005_s25 = sphi %s18080_s25, %s21563_s25   ;;  %s18001_s24 = sphi %s18078_s24, %s21562_s24  }
  0x10   : > { %21199 = sst [smem:[#allocation23_spill]] %s18009_s26  ;;  %s13995_s8 = sadd.s32 4294967294, %s18021_s29  }
  0x11   : > { %21200 = sst [smem:[#allocation24_spill]] %s18017_s28  ;;  %p62_p0 = scmp.ne.s32.totalorder %s18005_s25, %s18001_s24 }
  0x12   : > { %21201 = sst [smem:[#allocation25_spill]] %s18021_s29  ;;  %p20964_p1 = scmp.eq.s32.totalorder %s18109_s30, 0 }
  0x13   : > { %p250_p3 = scmp.eq.s32.totalorder %s13995_s8, 1  ;;  %p13996_p5 = scmp.ge.s32.totalorder %s18021_s29, 1 }
  0x14   : > { %p18118_p4 = por %p20964_p1, %p62_p0  ;;  %p257_p7 = scmp.lt.s32.totalorder %s18021_s29, 3 }
  0x15   : > { %p18123_p6 = por %p250_p3, %p62_p0  ;;  %s18023_s12 = smov [#allocation10]  }
  0x16   : > { %s21202_s9 = scalar_select %p18118_p4, 1, 0 }
  0x17   : > { %s21203_s10 = scalar_select %p18123_p6, 1, 0 }
  0x18   : > { %p18128_p8 = pnand %p13996_p5, %p257_p7  ;;  %s269_s13 = sshll.u32 %s18023_s12, 4  ;;  %s18132_s13 = int_to_ptr.vmem [resolvable:$true] %s269_s13 }
  0x19   : > { %21204 = sst [smem:[#allocation26_spill]] %s21203_s10  ;;  %s18024_s15 = smov [#allocation13]  }
  0x1a   : > { %s21205_s11 = scalar_select %p18128_p8, 1, 0 }
  0x1b   : > { %p16419_p9 = pneg %p18128_p8  ;;  %s293_s16 = sshll.u32 %s18024_s15, 4  ;;  %s18143_s16 = int_to_ptr.vmem [resolvable:$true] %s293_s16 }
  0x1c   : > { %s21207_s3 = sld [smem:[#allocation95_spill]] }
  0x1d   : > { %p18139_p11 = pnand %p16419_p9, %p20964_p1 }
  0x1f   : > { %s21206_s14 = scalar_select %p18139_p11, 1, 0 }
  0x20   : > { %p18153_p13 = pneg %p18139_p11 }
  0x22   : > { %s17725_s19 = scalar_lea.hbm %s21207_s3, 36864 }
  0x23   : > { %p17726_p12 = scmp.ne.s32.totalorder %s21207_s3, %s17725_s19  ;;  %p17732_p5 = scmp.lt.u32.totalorder %s17725_s19, %s21207_s3 }
  0x24   : > { %s21208_s22 = scalar_select %p18153_p13, 1, 0 }
  0x25   : > { %p17728_p0 = pnand %p18153_p13, %p17726_p12 }
  0x27   : > { %p17729_p3 = pneg %p17728_p0 }
  0x29   : > { %p17734_p7 = pnand %p17732_p5, %p17729_p3 }
  0x2b   : > { %17737 = shalt.err (!%p17734_p7)
}
  0x2c   : > { %s17738_s12 = scalar_lea.vmem %s18132_s13, 36864  ;;  %p17746_p2 = scmp.lt.s32.totalorder %s18132_s13, %s18132_s13 }
  0x2d   : > { %p17739_p9 = scmp.ne.s32.totalorder %s18132_s13, %s17738_s12  ;;  %p17747_p6 = scmp.lt.s32.totalorder %s17738_s12, %s17738_s12 }
  0x2f   : > { %p17741_p10 = pnand %p17739_p9, %p18153_p13  ;;  %p17748_p12 = por %p17747_p6, %p17746_p2 }
  0x31   : > { %p17742_p1 = pneg %p17741_p10 }
  0x33   : > { %p17749_p0 = pnand %p17748_p12, %p17742_p1 }
  0x35   : > { %17752 = shalt.err (!%p17749_p0)
}
  0x36   : > { %s18025_s15 = smov 128   ;;  %s18026_s17 = smov 8  }
  0x37   : > { %16422 = dma.hbm_to_vmem [thread:$0]  (!%p18139_p11), %s21207_s3, 36864, %s18132_s13, [#allocation11], %s18025_s15, %s18025_s15, %s18026_s17  }
  0x38   : > { %s21209_s5 = sld [smem:[#allocation96_spill]] }
  0x3e   : > { %s17753_s23 = scalar_lea.hbm %s21209_s5, 36864 }
  0x3f   : > { %p17754_p2 = scmp.ne.s32.totalorder %s21209_s5, %s17753_s23  ;;  %p17760_p10 = scmp.lt.u32.totalorder %s17753_s23, %s21209_s5 }
  0x41   : > { %p17756_p1 = pnand %p17754_p2, %p18153_p13 }
  0x43   : > { %p17757_p6 = pneg %p17756_p1 }
  0x45   : > { %p17762_p3 = pnand %p17760_p10, %p17757_p6 }
  0x47   : > { %17765 = shalt.err (!%p17762_p3)
}
  0x48   : > { %s17766_s13 = scalar_lea.vmem %s18143_s16, 36864  ;;  %p17774_p12 = scmp.lt.s32.totalorder %s18143_s16, %s18143_s16 }
  0x49   : > { %p17767_p5 = scmp.ne.s32.totalorder %s18143_s16, %s17766_s13  ;;  %p17775_p0 = scmp.lt.s32.totalorder %s17766_s13, %s17766_s13 }
  0x4b   : > { %p17769_p7 = pnand %p17767_p5, %p18153_p13  ;;  %p17776_p2 = por %p17775_p0, %p17774_p12 }
  0x4d   : > { %p17770_p9 = pneg %p17769_p7 }
  0x4f   : > { %p17777_p1 = pnand %p17776_p2, %p17770_p9 }
  0x51   : > { %17780 = shalt.err (!%p17777_p1)
}
  0x52   : > { %16428 = dma.hbm_to_vmem [thread:$0]  (!%p18139_p11), %s21209_s5, 36864, %s18143_s16, [#allocation14], %s18025_s15, %s18025_s15, %s18026_s17  }
  0x53   : > { %s40_s18 = sadd.s32 1, %s18017_s28  ;;  %s49_s19 = sadd.s32 1, %s18009_s26 }
  0x54   : > { %p42_p6 = scmp.ge.s32.totalorder %s40_s18, 2  ;;  %p56_p10 = scmp.ne.s32.totalorder %s18009_s26, %s18005_s25 }
  0x55   : > { %p57_p3 = scmp.eq.s32.totalorder %s18021_s29, 0  ;;  %p16450_p5 = scmp.lt.s32.totalorder %s18021_s29, 2 }
  0x56   : > { %s21565_s18 = smov (%p42_p6, %s40_s18), 0  ;;  %p21211_p9 = scmp.eq.s32.totalorder %s18109_s30, 1 }
  0x57   : > { %21210 = sst [smem:[#allocation27_spill]] %s21565_s18  ;;  %p58_p7 = por %p57_p3, %p56_p10 }
  0x58   : > { %p18207_p12 = por %p21211_p9, %p56_p10  ;;  %s44_s21 = ssub.s32 %s18017_s28, %s21565_s18 }
  0x59   : > { %s18214_s23 = sand.u32 1, %s18009_s26   ;;  %p47_p0 = scmp.eq.s32.totalorder %s44_s21, 0 }
  0x5a   : > { %s21212_s20 = scalar_select %p18207_p12, 1, 0 }
  0x5b   : > { %s18217_s16 = sshll.u32 %s18017_s28, 13  ;;  %p18219_p2 = pnand %p16450_p5, %p58_p7 }
  0x5c   : > { %s18224_s17 = scalar_select %p47_p0, %s18009_s26, %s49_s19  }
  0x5d   : > { %s21213_s15 = scalar_select %p18219_p2, 1, 0 }
  0x5e   : > { %21214 = sst [smem:[#allocation28_spill]] %s18224_s17  ;;  %s342_s8 = sand.u32 1, %s18021_s29  }
  0x5f   : > { %s20968_s12 = sshll.u32 %s18214_s23, 6  ;;  %s21215_s1 = sld [smem:[#allocation94_spill]] }
  0x60   : > { %s346_s21 = scalar_lea.vmem [#allocation7], %s20968_s12  ;;  %s18238_s5 = scalar_lea.sflag [#allocation8], %s342_s8 }
  0x61   : > { %s360_s3 = sshll.u32 %s346_s21, 4  ;;  %p18244_p6 = pneg %p18219_p2  ;;  %s18236_s3 = int_to_ptr.vmem [resolvable:$true] %s360_s3 }
  0x63   : > { %s21216_s18 = scalar_select %p18244_p6, 1, 0 }
  0x65   : > { %s18232_s10 = scalar_lea.hbm %s21215_s1, %s18217_s16  ;;  %s17786_s12 = scalar_lea.hbm %s21215_s1, 16384 }
  0x66   : > { %s17781_s19 = scalar_lea.hbm %s18232_s10, 1024  ;;  %p17787_p5 = scmp.lt.u32.totalorder %s18232_s10, %s21215_s1 }
  0x67   : > { %p17782_p1 = scmp.ne.s32.totalorder %s18232_s10, %s17781_s19  ;;  %p17788_p7 = scmp.lt.u32.totalorder %s17786_s12, %s17781_s19 }
  0x68   : > { %p17790_p0 = scmp.lt.u32.totalorder %s17781_s19, %s18232_s10 }
  0x69   : > { %p17784_p10 = pnand %p18244_p6, %p17782_p1  ;;  %p17789_p9 = por %p17788_p7, %p17787_p5 }
  0x6b   : > { %p17785_p3 = pneg %p17784_p10  ;;  %p17791_p12 = por %p17790_p0, %p17789_p9 }
  0x6d   : > { %p17792_p4 = pnand %p17791_p12, %p17785_p3 }
  0x6f   : > { %17795 = shalt.err (!%p17792_p4)
}
  0x70   : > { %s17796_s8 = scalar_lea.vmem %s18236_s3, 1024  ;;  %s18027_s13 = smov [#allocation7]  }
  0x71   : > { %p17797_p1 = scmp.ne.s32.totalorder %s18236_s3, %s17796_s8  ;;  %s17801_s24 = sshll.u32 %s18027_s13, 4  ;;  %s17802_s24 = int_to_ptr.vmem [resolvable:$false] %s17801_s24 }
  0x72   : > { %s17803_s28 = scalar_lea.vmem %s17802_s24, 2048  ;;  %p17804_p11 = scmp.lt.s32.totalorder %s18236_s3, %s17802_s24 }
  0x73   : > { %p17799_p10 = pnand %p17797_p1, %p18244_p6  ;;  %p17805_p13 = scmp.lt.s32.totalorder %s17803_s28, %s17796_s8 }
  0x75   : > { %p17800_p8 = pneg %p17799_p10  ;;  %p17806_p5 = por %p17805_p13, %p17804_p11 }
  0x77   : > { %p17807_p7 = pnand %p17806_p5, %p17800_p8 }
  0x79   : > { %17810 = shalt.err (!%p17807_p7)
}
  0x7a   : > { %s20983_s12 = smov 256   ;;  %s18029_s19 = smov 16  }
  0x7b   : > { %16438 = dma.hbm_to_vmem [thread:$0]  (!%p18219_p2), %s18232_s10, 1024, %s18236_s3, %s18238_s5, %s20983_s12, %s20983_s12, %s18029_s19  }
  0x7c   : > { %s21217_s21 = sshll.u32 %s18214_s23, 6  ;;  %s18030_s8 = smov [#allocation12]  }
  0x7d   : > { %s374_s13 = scalar_lea.vmem [#allocation9], %s21217_s21  ;;  %s283_s28 = sshll.u32 %s18030_s8, 4  ;;  %s284_s28 = int_to_ptr.vmem [resolvable:$true] %s283_s28 }
  0x7e   : > { %s388_s24 = sshll.u32 %s374_s13, 4  ;;  %s17811_s26 = scalar_lea.hbm %s20960_s4, 32  ;;  %s18273_s24 = int_to_ptr.vmem [resolvable:$true] %s388_s24 }
  0x7f   : > { %p17812_p4 = scmp.ne.s32.totalorder %s20960_s4, %s17811_s26  ;;  %p21218_p8 = scmp.ne.s32.totalorder %s21208_s22, 0 }
  0x80   : > { %p17818_p12 = scmp.lt.u32.totalorder %s17811_s26, %s20960_s4 }
  0x81   : > { %p17814_p11 = pnand %p17812_p4, %p21218_p8 }
  0x83   : > { %p17815_p13 = pneg %p17814_p11 }
  0x85   : > { %p17820_p3 = pnand %p17818_p12, %p17815_p13 }
  0x87   : > { %17823 = shalt.err (!%p17820_p3)
}
  0x88   : > { %s17824_s21 = scalar_lea.vmem %s284_s28, 32  ;;  %p17832_p10 = scmp.lt.s32.totalorder %s284_s28, %s284_s28 }
  0x89   : > { %p17825_p9 = scmp.ne.s32.totalorder %s284_s28, %s17824_s21  ;;  %p17833_p5 = scmp.lt.s32.totalorder %s17824_s21, %s17824_s21 }
  0x8b   : > { %p17827_p0 = pnand %p17825_p9, %p21218_p8  ;;  %p17834_p7 = por %p17833_p5, %p17832_p10 }
  0x8d   : > { %p17828_p1 = pneg %p17827_p0 }
  0x8f   : > { %p17835_p2 = pnand %p17834_p7, %p17828_p1 }
  0x91   : > { %17838 = shalt.err (!%p17835_p2)
}
  0x92   : > { %p21219_p4 = scmp.ne.s32.totalorder %s21206_s14, 0  ;;  %s18031_s26 = smov [#allocation15]  }
  0x93   : > { %s307_s29 = sshll.u32 %s18031_s26, 4  ;;  %s14002_s17 = sshll.u32 %s18214_s23, 9  ;;  %s308_s29 = int_to_ptr.vmem [resolvable:$true] %s307_s29 }
  0x94   : > { %16425 = dma.hbm_to_vmem [thread:$0]  (!%p21219_p4), %s20960_s4, 32, %s284_s28, [#allocation11]  }
  0x95   : > { %s17839_s3 = scalar_lea.hbm %s20962_s6, 32 }
  0x96   : > { %p17840_p2 = scmp.ne.s32.totalorder %s20962_s6, %s17839_s3  ;;  %p17846_p12 = scmp.lt.u32.totalorder %s17839_s3, %s20962_s6 }
  0x98   : > { %p17842_p11 = pnand %p17840_p2, %p21218_p8 }
  0x9a   : > { %p17843_p13 = pneg %p17842_p11 }
  0x9c   : > { %p17848_p3 = pnand %p17846_p12, %p17843_p13 }
  0x9e   : > { %17851 = shalt.err (!%p17848_p3)
}
  0x9f   : > { %s17852_s28 = scalar_lea.vmem %s308_s29, 32  ;;  %p17860_p10 = scmp.lt.s32.totalorder %s308_s29, %s308_s29 }
  0xa0   : > { %p17853_p9 = scmp.ne.s32.totalorder %s308_s29, %s17852_s28  ;;  %p17861_p5 = scmp.lt.s32.totalorder %s17852_s28, %s17852_s28 }
  0xa2   : > { %p17855_p0 = pnand %p17853_p9, %p21218_p8  ;;  %p17862_p7 = por %p17861_p5, %p17860_p10 }
  0xa4   : > { %p17856_p1 = pneg %p17855_p0 }
  0xa6   : > { %p17863_p6 = pnand %p17862_p7, %p17856_p1 }
  0xa8   : > { %17866 = shalt.err (!%p17863_p6)
}
  0xa9   : > { %16431 = dma.hbm_to_vmem [thread:$0]  (!%p21219_p4), %s20962_s6, 32, %s308_s29, [#allocation14]  }
  0xaa   : > { %s18316_s22 = scalar_lea.hbm %s20956_s0, %s18217_s16  ;;  %s322_s8 = scalar_lea.vmem [#allocation4], %s14002_s17 }
  0xab   : > { %s332_s3 = sshll.u32 %s322_s8, 4  ;;  %s15060_s14 = sadd.s32 7168, %s18217_s16  ;;  %s18319_s3 = int_to_ptr.vmem [resolvable:$true] %s332_s3 }
  0xac   : > { %s18324_s1 = scalar_lea.hbm %s20958_s2, %s15060_s14  ;;  %s319_s29 = scalar_lea.sflag [#allocation5], %s18214_s23 }
  0xad   : > { %s17867_s28 = scalar_lea.hbm %s18316_s22, 8192  ;;  %p21220_p8 = scmp.ne.s32.totalorder %s21216_s18, 0 }
  0xae   : > { %p17868_p6 = scmp.ne.s32.totalorder %s18316_s22, %s17867_s28  ;;  %s17872_s12 = scalar_lea.hbm %s20956_s0, 16384 }
  0xaf   : > { %p17873_p11 = scmp.lt.u32.totalorder %s18316_s22, %s20956_s0  ;;  %p17874_p13 = scmp.lt.u32.totalorder %s17872_s12, %s17867_s28 }
  0xb0   : > { %p17870_p4 = pnand %p17868_p6, %p21220_p8  ;;  %p17876_p3 = scmp.lt.u32.totalorder %s17867_s28, %s18316_s22 }
  0xb1   : > { %p17875_p12 = por %p17874_p13, %p17873_p11 }
  0xb2   : > { %p17871_p2 = pneg %p17870_p4 }
  0xb3   : > { %p17877_p9 = por %p17876_p3, %p17875_p12 }
  0xb5   : > { %p17878_p0 = pnand %p17877_p9, %p17871_p2 }
  0xb7   : > { %17881 = shalt.err (!%p17878_p0)
}
  0xb8   : > { %s17882_s16 = scalar_lea.vmem %s18319_s3, 8192  ;;  %s18032_s8 = smov [#allocation4]  }
  0xb9   : > { %p17883_p1 = scmp.ne.s32.totalorder %s18319_s3, %s17882_s16  ;;  %s17887_s14 = sshll.u32 %s18032_s8, 4  ;;  %s17888_s14 = int_to_ptr.vmem [resolvable:$false] %s17887_s14 }
  0xba   : > { %s17889_s10 = scalar_lea.vmem %s17888_s14, 16384  ;;  %p17890_p7 = scmp.lt.s32.totalorder %s18319_s3, %s17888_s14 }
  0xbb   : > { %p17885_p10 = pnand %p17883_p1, %p21220_p8  ;;  %p17891_p6 = scmp.lt.s32.totalorder %s17889_s10, %s17882_s16 }
  0xbd   : > { %p17886_p5 = pneg %p17885_p10  ;;  %p17892_p4 = por %p17891_p6, %p17890_p7 }
  0xbf   : > { %p17893_p11 = pnand %p17892_p4, %p17886_p5 }
  0xc1   : > { %17896 = shalt.err (!%p17893_p11)
}
  0xc2   : > { %p21221_p2 = scmp.ne.s32.totalorder %s21213_s15, 0  ;;  %s21222_s21 = smov 256  }
  0xc3   : > { %s17897_s28 = scalar_lea.hbm %s18324_s1, 1024  ;;  %s17902_s12 = scalar_lea.hbm %s20958_s2, 16384 }
  0xc4   : > { %16435 = dma.hbm_to_vmem [thread:$0]  (!%p21221_p2), %s18316_s22, 8192, %s18319_s3, %s319_s29, %s21222_s21, %s21222_s21, %s18029_s19  }
  0xc5   : > { %p17898_p13 = scmp.ne.s32.totalorder %s18324_s1, %s17897_s28  ;;  %p17903_p9 = scmp.lt.u32.totalorder %s18324_s1, %s20958_s2 }
  0xc6   : > { %p17904_p0 = scmp.lt.u32.totalorder %s17902_s12, %s17897_s28  ;;  %p17906_p10 = scmp.lt.u32.totalorder %s17897_s28, %s18324_s1 }
  0xc7   : > { %p17900_p12 = pnand %p17898_p13, %p21220_p8 }
  0xc8   : > { %p17905_p1 = por %p17904_p0, %p17903_p9 }
  0xc9   : > { %p17901_p3 = pneg %p17900_p12 }
  0xca   : > { %p17907_p5 = por %p17906_p10, %p17905_p1 }
  0xcc   : > { %p17908_p7 = pnand %p17907_p5, %p17901_p3 }
  0xce   : > { %17911 = shalt.err (!%p17908_p7)
}
  0xcf   : > { %s17912_s23 = scalar_lea.vmem %s18273_s24, 1024  ;;  %s18033_s22 = smov [#allocation9]  }
  0xd0   : > { %p17913_p6 = scmp.ne.s32.totalorder %s18273_s24, %s17912_s23  ;;  %s17917_s3 = sshll.u32 %s18033_s22, 4  ;;  %s17918_s3 = int_to_ptr.vmem [resolvable:$false] %s17917_s3 }
  0xd1   : > { %s17919_s29 = scalar_lea.vmem %s17918_s3, 2048  ;;  %p17920_p13 = scmp.lt.s32.totalorder %s18273_s24, %s17918_s3 }
  0xd2   : > { %p17915_p4 = pnand %p17913_p6, %p21220_p8  ;;  %p17921_p12 = scmp.lt.s32.totalorder %s17919_s29, %s17912_s23 }
  0xd4   : > { %p17916_p11 = pneg %p17915_p4  ;;  %p17922_p9 = por %p17921_p12, %p17920_p13 }
  0xd6   : > { %p17923_p0 = pnand %p17922_p9, %p17916_p11 }
  0xd8   : > { %17926 = shalt.err (!%p17923_p0)
}
  0xd9   : > { %16441 = dma.hbm_to_vmem [thread:$0]  (!%p21221_p2), %s18324_s1, 1024, %s18273_s24, %s18238_s5, %s21222_s21, %s21222_s21, %s18029_s19  }
  0xda   : > { %p21223_p8 = scmp.ne.s32.totalorder %s21205_s11, 0 }
  0xdc   : > { %400 = sbr.rel (%p21223_p8) target bundleno = 2999 (0xbb7), region = 48 }
  0xe3   : > { %s18381_s18 = sand.u32 1, %s18005_s25   ;;  %p21224_p3 = scmp.ne.s32.totalorder %s21202_s9, 0 }
  0xe4   : > { %s14012_s16 = sshll.u32 %s18381_s18, 9  ;;  %s403_s8 = scalar_lea.sflag [#allocation5], %s18381_s18 }
  0xe5   : > { %s18387_s15 = scalar_lea.vmem [#allocation4], %s14012_s16 }
  0xe6   : > { %17980 = dma.done.wait (%p21224_p3), %s403_s8, 8192  }
  0xe7   : > { %17982 = vsyncadd (%p21224_p3), %s403_s8, 4294959104  ;;  %s411_s5 = sand.u32 1, %s18109_s30  }
  0xe8   : > { %s412_s11 = scalar_lea.sflag [#allocation8], %s411_s5 }
  0xe9   : > { %17984 = dma.done.wait (%p21224_p3), %s412_s11, 2048  }
  0xea   : > { %17986 = vsyncadd (%p21224_p3), %s412_s11, 4294965248  ;;  %p21225_p2 = scmp.eq.s32.totalorder %s18109_s30, 0 }
  0xec   : > { %17988 = dma.done.wait (%p21225_p2), [#allocation11], 36896   ;;  %p21226_p1 = pmov %p21225_p2 }
  0xee   : > { %17990 = vsyncadd (%p21226_p1), [#allocation11], 4294930400  ;;  %p21227_p10 = pmov %p21226_p1 }
  0xef   : > { %p21228_p5 = pmov %p21226_p1 }
  0xf0   : > { %17992 = dma.done.wait (%p21227_p10), [#allocation14], 36896  }
  0xf1   : > { %17994 = vsyncadd (%p21228_p5), [#allocation14], 4294930400  ;;  %v18034_v0 = vmov 0   ;;  %v16515_v1 = vld [vmem:[#allocation10 + $0x4] ss:$8 sps:$4 sm:$0xff]   ;;  %vm494_vm0 = vcmask 1040384  }
  0xf2   : > { %635 = vst [vmem:[#allocation2 + $0x8] sm:$0xff] %v18034_v0  ;;  %v16517_v2 = vld [vmem:[#allocation10] ss:$8 sps:$4 sm:$0xff]   ;;  %3878 = vmatprep.subr.bf16.mxu0 %v16515_v1  ;;  %v16518_v3 = vld [vmem:[#allocation10 + $0x14] ss:$8 sps:$4 sm:$0xff]   ;;  %15139 = vmatprep.subr.bf16.mxu1 %v16515_v1  ;;  %vm497_vm2 = vcmask 1044484  }
  0xf3   : > { %3879 = vmatpush1.bf16.msra.mxu0 %v16517_v2  ;;  %v16520_v4 = vld [vmem:[#allocation10 + $0x10] ss:$8 sps:$4 sm:$0xff]   ;;  %15155 = vmatpush1.bf16.msra.mxu1 %v16517_v2  ;;  %v16521_v5 = vld [vmem:[#allocation10 + $0x24] ss:$8 sps:$4 sm:$0xff]   ;;  %v16523_v6 = vld [vmem:[#allocation10 + $0x20] ss:$8 sps:$4 sm:$0xff]  }
  0xf4   : > { %3880 = vmatprep.subr.bf16.mxu0 %v16518_v3  ;;  %15140 = vmatprep.subr.bf16.mxu1 %v16518_v3  ;;  %v16524_v7 = vld [vmem:[#allocation10 + $0x34] ss:$8 sps:$4 sm:$0xff]   ;;  %v16526_v8 = vld [vmem:[#allocation10 + $0x30] ss:$8 sps:$4 sm:$0xff]   ;;  %vm495_vm1 = vsmask.f32 256 }
  0xf5   : > { %v16527_v9 = vld [vmem:[#allocation10 + $0x44] ss:$8 sps:$4 sm:$0xff]   ;;  %vm498_vm3 = vsmask.f32 4352  ;;  %vm496_vm4 = vmand %vm494_vm0, %vm495_vm1  ;;  %v16529_v10 = vld [vmem:[#allocation10 + $0x40] ss:$8 sps:$4 sm:$0xff]  }
  0xf6   : > { %vm499_vm5 = vmand %vm497_vm2, %vm498_vm3  ;;  %v16530_v11 = vld [vmem:[#allocation10 + $0x54] ss:$8 sps:$4 sm:$0xff]   ;;  %vm561_vm6 = vcmask 1043456   ;;  %vm562_vm7 = vsmask.f32 7938  ;;  %vm564_vm9 = vcmask 1047556  }
  0xf7   : > { %3881 = vmatpush1.bf16.msra.mxu0 %v16520_v4  ;;  %15156 = vmatpush1.bf16.msra.mxu1 %v16520_v4  ;;  %v16532_v12 = vld [vmem:[#allocation10 + $0x50] ss:$8 sps:$4 sm:$0xff]   ;;  %vm18408_vm8 = vmor %vm499_vm5, %vm496_vm4  ;;  %vm565_vm10 = vsmask.f32 7954  ;;  %v16533_v14 = vld [vmem:[#allocation10 + $0x64] ss:$8 sps:$4 sm:$0xff]  }
  0xf8   : > { %3882 = vmatprep.subr.bf16.mxu0 %v16521_v5  ;;  %15141 = vmatprep.subr.bf16.mxu1 %v16521_v5  ;;  %v501_v15 = vld [vmem:[#allocation2] sm:$0x11]  ;;  %vm563_vm11 = vmand %vm561_vm6, %vm562_vm7  ;;  %v16536_v18 = vld [vmem:[#allocation10 + $0x74] ss:$8 sps:$4 sm:$0xff]   ;;  %vm1065_vm14 = vsmask.f32 4368 }
  0xf9   : > { %v502_v16 = vsel %vm18408_vm8, 0, %v501_v15  ;;  %vm566_vm12 = vmand %vm564_vm9, %vm565_vm10  ;;  %v16535_v17 = vld [vmem:[#allocation10 + $0x60] ss:$8 sps:$4 sm:$0xff]   ;;  %v504_v19 = vld [vmem:[#allocation2 + $0x18] sm:$0x11]  ;;  %v21233_v54 = vmov 0 }
  0xfa   : > { %503 = vst [vmem:[#allocation2] sm:$0x11] %v502_v16  ;;  %vm18414_vm13 = vmor %vm566_vm12, %vm563_vm11  ;;  %v505_v21 = vsel %vm18408_vm8, 0, %v504_v19  ;;  %v16538_v22 = vld [vmem:[#allocation10 + $0x70] ss:$8 sps:$4 sm:$0xff]   ;;  %v841_v25 = vld [vmem:[%s18387_s15] sm:$0xff] }
  0xfb   : > { %3883 = vmatpush1.bf16.msra.mxu0 %v16523_v6  ;;  %15157 = vmatpush1.bf16.msra.mxu1 %v16523_v6  ;;  %506 = vst [vmem:[#allocation2 + $0x18] sm:$0x11] %v505_v21  ;;  %v16539_v23 = vld [vmem:[#allocation10 + $0x84] ss:$8 sps:$4 sm:$0xff]   ;;  %v507_v24 = vld [vmem:[#allocation2 + $0x30] sm:$0x11]  ;;  %vm18451_vm15 = vmor %vm495_vm1, %vm1065_vm14 }
  0xfc   : > { %3884 = vmatprep.subr.bf16.mxu0 %v16524_v7  ;;  %15142 = vmatprep.subr.bf16.mxu1 %v16524_v7  ;;  %v508_v26 = vsel %vm18408_vm8, 0, %v507_v24  ;;  %v842_v27 = vld [vmem:[%s18387_s15 + $0x8] sm:$0xff]  ;;  %v843_v28 = vld [vmem:[%s18387_s15 + $0x10] sm:$0xff]  ;;  %v844_v29 = vld [vmem:[%s18387_s15 + $0x18] sm:$0xff]  ;;  %v21234_v54 = vsel %vm18451_vm15, 4294967295, %v21233_v54  ;;  %vm2981_vm1 = vcmask 1046528  }
  0xfd   : > { %509 = vst [vmem:[#allocation2 + $0x30] sm:$0x11] %v508_v26  ;;  %v15069_v30 = vpack.c.bf16 %v842_v27, %v841_v25  ;;  %v15070_v31 = vpack.c.bf16 %v844_v29, %v843_v28  ;;  %v16541_v32 = vld [vmem:[#allocation10 + $0x80] ss:$8 sps:$4 sm:$0xff]   ;;  %v16542_v33 = vld [vmem:[#allocation10 + $0x94] ss:$8 sps:$4 sm:$0xff]  }
  0xfe   : > { %v510_v39 = vld [vmem:[#allocation2 + $0x48] sm:$0x11]  ;;  %v845_v43 = vld [vmem:[%s18387_s15 + $0x20] sm:$0xff]  ;;  %v847_v45 = vld [vmem:[%s18387_s15 + $0x30] sm:$0xff]  ;;  %21235 = vst [vmem:[#allocation29_spill] sm:$0xff] %v21234_v54  ;;  %s20714_s30 = scalar_lea.vmem [#allocation16], %s14012_s16 }
  0xff   : > { %3885 = vmatpush1.bf16.msra.mxu0 %v16526_v8  ;;  %15158 = vmatpush1.bf16.msra.mxu1 %v16526_v8  ;;  %v1068_v36 = vshrl.u32 %v15069_v30, 16  ;;  %v1071_v37 = vshll.u32 %v15069_v30, 16  ;;  %v1076_v38 = vshrl.u32 %v15070_v31, 16  ;;  %v1079_v41 = vshll.u32 %v15070_v31, 16  ;;  %v846_v44 = vld [vmem:[%s18387_s15 + $0x28] sm:$0xff]  ;;  %v848_v49 = vld [vmem:[%s18387_s15 + $0x38] sm:$0xff] }
 0x100   : > { %3886 = vmatprep.subr.bf16.mxu0 %v16527_v9  ;;  %15143 = vmatprep.subr.bf16.mxu1 %v16527_v9  ;;  %v511_v42 = vsel %vm18408_vm8, 0, %v510_v39  ;;  %v15071_v50 = vpack.c.bf16 %v846_v44, %v845_v43  ;;  %v16544_v51 = vld [vmem:[#allocation10 + $0x90] ss:$8 sps:$4 sm:$0xff]   ;;  %v15072_v53 = vpack.c.bf16 %v848_v49, %v847_v45  ;;  %v16545_v57 = vld [vmem:[#allocation10 + $0xa4] ss:$8 sps:$4 sm:$0xff]   ;;  %s15137_s9 = sshll.u32 %s18013_s27, 13 }
 0x101   : > { %v632_v34 = vld [vmem:[#allocation2] sm:$0xff]  ;;  %v1070_v47 = vrot.slane %v1068_v36, 7  ;;  %v18440_v48 = vrot.slane %v1076_v38, 7  ;;  %512 = vst [vmem:[#allocation2 + $0x48] sm:$0x11] %v511_v42  ;;  %v850_v4 = vld [vmem:[%s18387_s15 + $0x48] sm:$0xff] }
 0x102   : > { %v18428_v35 = vsel %vm18414_vm13, 0, %v632_v34  ;;  %v639_v46 = vld [vmem:[#allocation2 + $0x18] sm:$0xff]  ;;  %v1085_v60 = vshrl.u32 %v15071_v50, 16  ;;  %v1088_v61 = vshll.u32 %v15071_v50, 16  ;;  %v1093_v63 = vshrl.u32 %v15072_v53, 16  ;;  %v849_v3 = vld [vmem:[%s18387_s15 + $0x40] sm:$0xff] }
 0x103   : > { %3887 = vmatpush1.bf16.msra.mxu0 %v16529_v10  ;;  %15159 = vmatpush1.bf16.msra.mxu1 %v16529_v10  ;;  %634 = vst [vmem:[#allocation2] sm:$0xff] %v18428_v35  ;;  %v18433_v40 = vcombine.high %v18428_v35, %v18034_v0  ;;  %v18446_v52 = vsel %vm18414_vm13, 0, %v639_v46  ;;  %v1073_v55 = vor.u32 %v1071_v37, %v1070_v47  ;;  %v1074_v56 = vrot.slane %v1070_v47, 4  ;;  %v513_v2 = vld [vmem:[#allocation2 + $0x60] sm:$0x11]  ;;  %v851_v8 = vld [vmem:[%s18387_s15 + $0x50] sm:$0xff] }
 0x104   : > { %3888 = vmatprep.subr.bf16.mxu0 %v16530_v11  ;;  %15144 = vmatprep.subr.bf16.mxu1 %v16530_v11  ;;  %641 = vst [vmem:[#allocation2 + $0x18] sm:$0xff] %v18446_v52  ;;  %v1081_v58 = vor.u32 %v1079_v41, %v18440_v48  ;;  %v1388_v59 = vld [vmem:[#allocation2 + $0x30] sm:$0xff]  ;;  %v1096_v1 = vshll.u32 %v15072_v53, 16  ;;  %v1087_v6 = vrot.slane %v1085_v60, 7  ;;  %v514_v7 = vsel %vm18408_vm8, 0, %v513_v2  ;;  %v852_v9 = vld [vmem:[%s18387_s15 + $0x58] sm:$0xff] }
 0x105   : > { %3910 = vmatprep.mubr.bf16.mxu0 %v18433_v40  ;;  %v18458_v62 = vsel %vm18414_vm13, %v1073_v55, %v1388_v59  ;;  %v15073_v10 = vpack.c.bf16 %v850_v4, %v849_v3  ;;  %v16547_v11 = vld [vmem:[#allocation10 + $0xa0] ss:$8 sps:$4 sm:$0xff]   ;;  %515 = vst [vmem:[#allocation2 + $0x60] sm:$0x11] %v514_v7  ;;  %v15074_v15 = vpack.c.bf16 %v852_v9, %v851_v8  ;;  %v16550_v26 = vld [vmem:[#allocation10 + $0xb0] ss:$8 sps:$4 sm:$0xff]  }
 0x106   : > { %v18464_v5 = vsel %vm18451_vm15, %v1074_v56, %v1081_v58  ;;  %1390 = vst [vmem:[#allocation2 + $0x30] sm:$0xff] %v18458_v62  ;;  %v1090_v16 = vor.u32 %v1088_v61, %v1087_v6  ;;  %v853_v25 = vld [vmem:[%s18387_s15 + $0x60] sm:$0xff]  ;;  %v516_v29 = vld [vmem:[#allocation2 + $0x78] sm:$0x11]  ;;  %v854_v30 = vld [vmem:[%s18387_s15 + $0x68] sm:$0xff]  ;;  %s13820_s19 = sshll.u32 %s20714_s30, 4  ;;  %s20904_s19 = int_to_ptr.vmem [resolvable:$true] %s13820_s19 }
 0x107   : > { %3889 = vmatpush1.bf16.msra.mxu0 %v16532_v12  ;;  %15160 = vmatpush1.bf16.msra.mxu1 %v16532_v12  ;;  %v16548_v12 = vld [vmem:[#allocation10 + $0xb4] ss:$8 sps:$4 sm:$0xff]   ;;  %1391 = vst [vmem:[#allocation2 + $0x38] sm:$0xff] %v18464_v5  ;;  %v1102_v19 = vshrl.u32 %v15073_v10, 16  ;;  %v1105_v21 = vshll.u32 %v15073_v10, 16  ;;  %v1113_v24 = vshll.u32 %v15074_v15, 16  ;;  %v15075_v37 = vpack.c.bf16 %v854_v30, %v853_v25 }
 0x108   : > { %3890 = vmatprep.subr.bf16.mxu0 %v16533_v14  ;;  %15145 = vmatprep.subr.bf16.mxu1 %v16533_v14  ;;  %v18472_v14 = vrot.slane %v1093_v63, 7  ;;  %v855_v34 = vld [vmem:[%s18387_s15 + $0x70] sm:$0xff]  ;;  %v856_v36 = vld [vmem:[%s18387_s15 + $0x78] sm:$0xff]  ;;  %v16551_v38 = vld [vmem:[#allocation10 + $0xc4] ss:$8 sps:$4 sm:$0xff]   ;;  %s21551_s14 = sld [smem:[#allocation97_spill]] }
 0x109   : > { %v1104_v28 = vrot.slane %v1102_v19, 7  ;;  %v16553_v42 = vld [vmem:[#allocation10 + $0xc0] ss:$8 sps:$4 sm:$0xff]   ;;  %v15076_v44 = vpack.c.bf16 %v856_v36, %v855_v34  ;;  %v1119_v45 = vshrl.u32 %v15075_v37, 16  ;;  %v16554_v46 = vld [vmem:[#allocation10 + $0xd4] ss:$8 sps:$4 sm:$0xff]  }
 0x10a   : > { %v1122_v49 = vshll.u32 %v15075_v37, 16  ;;  %v519_v50 = vld [vmem:[#allocation2 + $0x90] sm:$0x11]  ;;  %v858_v58 = vld [vmem:[%s18387_s15 + $0x88] sm:$0xff]  ;;  %v860_v63 = vld [vmem:[%s18387_s15 + $0x98] sm:$0xff]  ;;  %s13804_s27 = scalar_lea.sflag [#allocation6], %s18381_s18 }
 0x10b   : > { %3891 = vmatpush1.bf16.msra.mxu0 %v16535_v17  ;;  %15161 = vmatpush1.bf16.msra.mxu1 %v16535_v17  ;;  %v1091_v17 = vrot.slane %v1087_v6, 4  ;;  %v1107_v39 = vor.u32 %v1105_v21, %v1104_v28  ;;  %v1108_v41 = vrot.slane %v1104_v28, 4  ;;  %v1121_v55 = vrot.slane %v1119_v45, 7  ;;  %v859_v59 = vld [vmem:[%s18387_s15 + $0x90] sm:$0xff]  ;;  %v16557_v8 = vld [vmem:[#allocation10 + $0xe4] ss:$8 sps:$4 sm:$0xff]  }
 0x10c   : > { %3892 = vmatprep.subr.bf16.mxu0 %v16536_v18  ;;  %15146 = vmatprep.subr.bf16.mxu1 %v16536_v18  ;;  %v1395_v18 = vld [vmem:[#allocation2 + $0x48] sm:$0xff]  ;;  %v1402_v47 = vld [vmem:[#allocation2 + $0x60] sm:$0xff]  ;;  %v1127_v56 = vshrl.u32 %v15076_v44, 16  ;;  %v1130_v60 = vshll.u32 %v15076_v44, 16  ;;  %v520_v61 = vsel %vm18408_vm8, 0, %v519_v50  ;;  %v15078_v7 = vpack.c.bf16 %v860_v63, %v859_v59  ;;  %v863_v25 = vld [vmem:[%s18387_s15 + $0xb0] sm:$0xff] }
 0x10d   : > { %v18478_v27 = vsel %vm18414_vm13, %v1090_v16, %v1395_v18  ;;  %v18500_v53 = vsel %vm18414_vm13, %v1107_v39, %v1402_v47  ;;  %v1125_v2 = vrot.slane %v1121_v55, 4  ;;  %521 = vst [vmem:[#allocation2 + $0x90] sm:$0x11] %v520_v61  ;;  %v16556_v6 = vld [vmem:[#allocation10 + $0xd0] ss:$8 sps:$4 sm:$0xff]   ;;  %v861_v19 = vld [vmem:[%s18387_s15 + $0xa0] sm:$0xff] }
 0x10e   : > { %1397 = vst [vmem:[#allocation2 + $0x48] sm:$0xff] %v18478_v27  ;;  %1404 = vst [vmem:[#allocation2 + $0x60] sm:$0xff] %v18500_v53  ;;  %v18510_v3 = vrot.slane %v1127_v56, 7  ;;  %v1144_v16 = vshrl.u32 %v15078_v7, 16  ;;  %v522_v18 = vld [vmem:[#allocation2 + $0xa8] sm:$0x11]  ;;  %s20902_s10 = scalar_lea.hbm %s21551_s14, %s15137_s9 }
 0x10f   : > { %3893 = vmatpush1.bf16.msra.mxu0 %v16538_v22  ;;  %15162 = vmatpush1.bf16.msra.mxu1 %v16538_v22  ;;  %v1098_v22 = vor.u32 %v1096_v1, %v18472_v14  ;;  %v1124_v1 = vor.u32 %v1122_v49, %v1121_v55  ;;  %v862_v21 = vld [vmem:[%s18387_s15 + $0xa8] sm:$0xff]  ;;  %v16560_v30 = vld [vmem:[#allocation10 + $0xf4] ss:$8 sps:$4 sm:$0xff]   ;;  %v16562_v63 = vld [vmem:[#allocation10 + $0xf0] ss:$8 sps:$4 sm:$0xff]   ;;  %s17927_s21 = scalar_lea.vmem %s20904_s19, 8192 }
 0x110   : > { %3894 = vmatprep.subr.bf16.mxu0 %v16539_v23  ;;  %15147 = vmatprep.subr.bf16.mxu1 %v16539_v23  ;;  %v1110_v23 = vshrl.u32 %v15074_v15, 16  ;;  %v1132_v9 = vor.u32 %v1130_v60, %v18510_v3  ;;  %v15079_v28 = vpack.c.bf16 %v862_v21, %v861_v19  ;;  %v866_v47 = vld [vmem:[%s18387_s15 + $0xc8] sm:$0xff]  ;;  %v867_v49 = vld [vmem:[%s18387_s15 + $0xd0] sm:$0xff]  ;;  %vm2100_vm0 = vsmask.f32 7424  ;;  %p17928_p7 = scmp.ne.s32.totalorder %s20904_s19, %s17927_s21  ;;  %p21552_p6 = scmp.ne.s32.totalorder %s21212_s20, 0 }
 0x111   : > { %v18483_v31 = vsel %vm18451_vm15, %v1091_v17, %v1098_v22  ;;  %v1147_v17 = vshll.u32 %v15078_v7, 16  ;;  %v16712_v54 = vld [vmem:[#allocation10 + $0x324] ss:$8 sps:$4 sm:$0xff]   ;;  %s18035_s28 = smov [#allocation16]  }
 0x112   : > { %1398 = vst [vmem:[#allocation2 + $0x50] sm:$0xff] %v18483_v31  ;;  %v18521_v22 = vsel %vm18451_vm15, %v1125_v2, %v1132_v9  ;;  %v1156_v39 = vshll.u32 %v15079_v28, 16  ;;  %v568_v9 = vld [vmem:[#allocation2 + $0x10] sm:$0xff]  ;;  %p17929_p4 = pnand %p17928_p7, %p21552_p6  ;;  %s17931_s7 = sshll.u32 %s18035_s28, 4  ;;  %s17932_s7 = int_to_ptr.vmem [resolvable:$false] %s17931_s7 }
 0x113   : > { %3895 = vmatpush1.bf16.msra.mxu0 %v16541_v32  ;;  %15163 = vmatpush1.bf16.msra.mxu1 %v16541_v32  ;;  %v18486_v32 = vrot.slane %v1110_v23, 7  ;;  %1412 = vst [vmem:[#allocation2 + $0x80] sm:$0xff] %v18521_v22  ;;  %s17933_s26 = scalar_lea.vmem %s17932_s7, 16384  ;;  %p17934_p13 = scmp.lt.s32.totalorder %s20904_s19, %s17932_s7 }
 0x114   : > { %3896 = vmatprep.subr.bf16.mxu0 %v16542_v33  ;;  %15148 = vmatprep.subr.bf16.mxu1 %v16542_v33  ;;  %v517_v33 = vsel %vm18408_vm8, 0, %v516_v29  ;;  %v16559_v29 = vld [vmem:[#allocation10 + $0xe0] ss:$8 sps:$4 sm:$0xff]   ;;  %v1416_v44 = vld [vmem:[#allocation2 + $0x90] sm:$0xff]  ;;  %p17930_p11 = pneg %p17929_p4  ;;  %p17935_p12 = scmp.lt.s32.totalorder %s17933_s26, %s17927_s21 }
 0x115   : > { %518 = vst [vmem:[#allocation2 + $0x78] sm:$0x11] %v517_v33  ;;  %v1115_v43 = vor.u32 %v1113_v24, %v18486_v32  ;;  %v523_v24 = vsel %vm18408_vm8, 0, %v522_v18  ;;  %v18529_v33 = vrot.slane %v1144_v16, 7  ;;  %v569_v16 = vsel %vm18414_vm13, 0, %v568_v9 }
 0x116   : > { %524 = vst [vmem:[#allocation2 + $0xa8] sm:$0x11] %v523_v24  ;;  %v18555_v18 = vcombine.low %v18428_v35, %v18034_v0  ;;  %570 = vst [vmem:[#allocation2 + $0x10] sm:$0xff] %v569_v16  ;;  %v16563_v24 = vld [vmem:[#allocation10 + $0x100] ss:$8 sps:$4 sm:$0xff]   ;;  %p17936_p9 = por %p17935_p12, %p17934_p13 }
 0x117   : > { %3897 = vmatpush1.bf16.msra.mxu0 %v16544_v51  ;;  %15164 = vmatpush1.bf16.msra.mxu1 %v16544_v51  ;;  %v18496_v51 = vsel %vm18451_vm15, %v1108_v41, %v1115_v43  ;;  %v525_v41 = vld [vmem:[#allocation2 + $0xc0] sm:$0x11]  ;;  %v1149_v43 = vor.u32 %v1147_v17, %v18529_v33  ;;  %v571_v17 = vld [vmem:[#allocation2 + $0x28] sm:$0xff] }
 0x118   : > { %3898 = vmatprep.subr.bf16.mxu0 %v16545_v57  ;;  %15149 = vmatprep.subr.bf16.mxu1 %v16545_v57  ;;  %v857_v57 = vld [vmem:[%s18387_s15 + $0x80] sm:$0xff]  ;;  %1405 = vst [vmem:[#allocation2 + $0x68] sm:$0xff] %v18496_v51  ;;  %v526_v56 = vsel %vm18408_vm8, 0, %v525_v41  ;;  %p17937_p0 = pnand %p17936_p9, %p17930_p11 }
 0x119   : > { %v15077_v4 = vpack.c.bf16 %v858_v58, %v857_v57  ;;  %v868_v57 = vld [vmem:[%s18387_s15 + $0xd8] sm:$0xff]  ;;  %527 = vst [vmem:[#allocation2 + $0xc0] sm:$0x11] %v526_v56  ;;  %v16569_v56 = vld [vmem:[#allocation10 + $0x120] ss:$8 sps:$4 sm:$0xff]  }
 0x11a   : > { %v15082_v61 = vpack.c.bf16 %v868_v57, %v867_v49  ;;  %v16574_v57 = vld [vmem:[#allocation10 + $0x134] ss:$8 sps:$4 sm:$0xff]   ;;  %v16575_v16 = vld [vmem:[#allocation10 + $0x140] ss:$8 sps:$4 sm:$0xff]  }
 0x11b   : > { %3899 = vmatpush1.bf16.msra.mxu0 %v16547_v11  ;;  %15165 = vmatpush1.bf16.msra.mxu1 %v16547_v11  ;;  %v1136_v11 = vshrl.u32 %v15077_v4, 16 }
 0x11c   : > { %3900 = vmatprep.subr.bf16.mxu0 %v16548_v12  ;;  %15150 = vmatprep.subr.bf16.mxu1 %v16548_v12  ;;  %v1409_v10 = vld [vmem:[#allocation2 + $0x78] sm:$0xff]  ;;  %v1139_v12 = vshll.u32 %v15077_v4, 16 }
 0x11d   : > { %v18515_v15 = vsel %vm18414_vm13, %v1124_v1, %v1409_v10  ;;  %v1138_v23 = vrot.slane %v1136_v11, 7  ;;  %v16565_v1 = vld [vmem:[#allocation10 + $0x104] ss:$8 sps:$4 sm:$0xff]   ;;  %v1178_v11 = vshrl.u32 %v15082_v61, 16 }
 0x11e   : > { %1411 = vst [vmem:[#allocation2 + $0x78] sm:$0xff] %v18515_v15  ;;  %v1423_v10 = vld [vmem:[#allocation2 + $0xa8] sm:$0xff] }
 0x11f   : > { %3901 = vmatpush1.bf16.msra.mxu0 %v16550_v26  ;;  %15166 = vmatpush1.bf16.msra.mxu1 %v16550_v26  ;;  %v864_v26 = vld [vmem:[%s18387_s15 + $0xb8] sm:$0xff]  ;;  %v1141_v36 = vor.u32 %v1139_v12, %v1138_v23  ;;  %v1142_v37 = vrot.slane %v1138_v23, 4  ;;  %v1181_v12 = vshll.u32 %v15082_v61, 16  ;;  %v18571_v35 = vrot.slane %v1178_v11, 7 }
 0x120   : > { %3902 = vmatprep.subr.bf16.mxu0 %v16551_v38  ;;  %15151 = vmatprep.subr.bf16.mxu1 %v16551_v38  ;;  %v15080_v34 = vpack.c.bf16 %v864_v26, %v863_v25  ;;  %v1153_v38 = vshrl.u32 %v15079_v28, 16  ;;  %v18567_v25 = vcombine.high %v18446_v52, %v18034_v0  ;;  %v16568_v26 = vld [vmem:[#allocation10 + $0x114] ss:$8 sps:$4 sm:$0xff]   ;;  %v1083_v61 = vrot.slane %v18440_v48, 4 }
 0x121   : > { %v18537_v50 = vsel %vm18414_vm13, %v1141_v36, %v1416_v44  ;;  %v18544_v59 = vsel %vm18451_vm15, %v1142_v37, %v1149_v43  ;;  %v1183_v36 = vor.u32 %v1181_v12, %v18571_v35  ;;  %v1430_v37 = vld [vmem:[#allocation2 + $0xc0] sm:$0xff]  ;;  %v577_v43 = vld [vmem:[#allocation2 + $0x58] sm:$0xff] }
 0x122   : > { %v1161_v45 = vshrl.u32 %v15080_v34, 16  ;;  %v1155_v55 = vrot.slane %v1153_v38, 7  ;;  %1418 = vst [vmem:[#allocation2 + $0x90] sm:$0xff] %v18537_v50  ;;  %1419 = vst [vmem:[#allocation2 + $0x98] sm:$0xff] %v18544_v59  ;;  %v16571_v44 = vld [vmem:[#allocation10 + $0x124] ss:$8 sps:$4 sm:$0xff]  }
 0x123   : > { %3903 = vmatpush1.bf16.msra.mxu0 %v16553_v42  ;;  %15167 = vmatpush1.bf16.msra.mxu1 %v16553_v42  ;;  %v865_v42 = vld [vmem:[%s18387_s15 + $0xc0] sm:$0xff] }
 0x124   : > { %3904 = vmatprep.subr.bf16.mxu0 %v16554_v46  ;;  %15152 = vmatprep.subr.bf16.mxu1 %v16554_v46  ;;  %v1164_v46 = vshll.u32 %v15080_v34, 16  ;;  %v15081_v58 = vpack.c.bf16 %v866_v47, %v865_v42  ;;  %v18547_v60 = vrot.slane %v1161_v45, 7  ;;  %v1158_v2 = vor.u32 %v1156_v39, %v1155_v55  ;;  %v574_v34 = vld [vmem:[#allocation2 + $0x40] sm:$0xff]  ;;  %v16566_v39 = vld [vmem:[#allocation10 + $0x110] ss:$8 sps:$4 sm:$0xff]  }
 0x125   : > { %v1159_v4 = vrot.slane %v1155_v55, 4  ;;  %v575_v42 = vsel %vm18414_vm13, 0, %v574_v34  ;;  %v636_v45 = vld [vmem:[#allocation2 + $0x10] sm:$0x11]  ;;  %v18592_v47 = vcombine.low %v18446_v52, %v18034_v0  ;;  %v578_v55 = vsel %vm18414_vm13, 0, %v577_v43 }
 0x126   : > { %v1170_v7 = vshrl.u32 %v15081_v58, 16  ;;  %v18563_v21 = vsel %vm18414_vm13, %v1158_v2, %v1423_v10  ;;  %576 = vst [vmem:[#allocation2 + $0x40] sm:$0xff] %v575_v42  ;;  %v637_v49 = vsel %vm18408_vm8, 0, %v636_v45  ;;  %579 = vst [vmem:[#allocation2 + $0x58] sm:$0xff] %v578_v55  ;;  %v16572_v2 = vld [vmem:[#allocation10 + $0x130] ss:$8 sps:$4 sm:$0xff]   ;;  %v18645_v43 = vcombine.high %v18500_v53, %v18496_v51 }
 0x127   : > { %3905 = vmatpush1.bf16.msra.mxu0 %v16556_v6  ;;  %15168 = vmatpush1.bf16.msra.mxu1 %v16556_v6  ;;  %v1166_v6 = vor.u32 %v1164_v46, %v18547_v60  ;;  %1425 = vst [vmem:[#allocation2 + $0xa8] sm:$0xff] %v18563_v21  ;;  %v580_v46 = vld [vmem:[#allocation2 + $0x70] sm:$0xff]  ;;  %638 = vst [vmem:[#allocation2 + $0x10] sm:$0x11] %v637_v49  ;;  %v1117_v10 = vrot.slane %v18486_v32, 4  ;;  %v589_v32 = vld [vmem:[#allocation2 + $0xb8] sm:$0xff] }
 0x128   : > { %3906 = vmatprep.subr.bf16.mxu0 %v16557_v8  ;;  %15153 = vmatprep.subr.bf16.mxu1 %v16557_v8  ;;  %v1173_v8 = vshll.u32 %v15081_v58, 16  ;;  %v1172_v23 = vrot.slane %v1170_v7, 7  ;;  %v18600_v58 = vcombine.high %v18458_v62, %v18464_v5  ;;  %v581_v52 = vsel %vm18414_vm13, 0, %v580_v46  ;;  %v586_v7 = vld [vmem:[#allocation2 + $0xa0] sm:$0xff]  ;;  %21238 = vst [vmem:[#allocation32_spill] sm:$0xff] %v18645_v43  ;;  %v592_v49 = vld [vmem:[#allocation2 + $0xd0] sm:$0xff] }
 0x129   : > { %v18559_v19 = vsel %vm18451_vm15, %v1159_v4, %v1166_v6  ;;  %582 = vst [vmem:[#allocation2 + $0x70] sm:$0xff] %v581_v52  ;;  %v1100_v4 = vrot.slane %v18472_v14, 4  ;;  %v587_v11 = vsel %vm18414_vm13, 0, %v586_v7  ;;  %v18619_v14 = vcombine.low %v18458_v62, %v18464_v5  ;;  %v16581_v42 = vld [vmem:[#allocation10 + $0x160] ss:$8 sps:$4 sm:$0xff]  }
 0x12a   : > { %1426 = vst [vmem:[#allocation2 + $0xb0] sm:$0xff] %v18559_v19  ;;  %v1175_v28 = vor.u32 %v1173_v8, %v1172_v23  ;;  %v16577_v8 = vld [vmem:[#allocation10 + $0x144] ss:$8 sps:$4 sm:$0xff]   ;;  %588 = vst [vmem:[#allocation2 + $0xa0] sm:$0xff] %v587_v11  ;;  %v590_v5 = vsel %vm18414_vm13, 0, %v589_v32  ;;  %v18676_v32 = vcombine.low %v18515_v15, %v18521_v22 }
 0x12b   : > { %3907 = vmatpush1.bf16.msra.mxu0 %v16559_v29  ;;  %15169 = vmatpush1.bf16.msra.mxu1 %v16559_v29  ;;  %v1176_v29 = vrot.slane %v1172_v23, 4  ;;  %591 = vst [vmem:[#allocation2 + $0xb8] sm:$0xff] %v590_v5  ;;  %v16586_v45 = vld [vmem:[#allocation10 + $0x174] ss:$8 sps:$4 sm:$0xff]   ;;  %v16589_v55 = vld [vmem:[#allocation10 + $0x184] ss:$8 sps:$4 sm:$0xff]   ;;  %v18684_v5 = vcombine.high %v18537_v50, %v18544_v59 }
 0x12c   : > { %3908 = vmatprep.subr.bf16.mxu0 %v16560_v30  ;;  %15154 = vmatprep.subr.bf16.mxu1 %v16560_v30  ;;  %v572_v30 = vsel %vm18414_vm13, 0, %v571_v17  ;;  %v18579_v38 = vsel %vm18414_vm13, %v1175_v28, %v1430_v37  ;;  %v18623_v17 = vcombine.high %v18478_v27, %v18483_v31  ;;  %v16592_v52 = vld [vmem:[#allocation10 + $0x194] ss:$8 sps:$4 sm:$0xff]  }
 0x12d   : > { %573 = vst [vmem:[#allocation2 + $0x28] sm:$0xff] %v572_v30  ;;  %v18584_v41 = vsel %vm18451_vm15, %v1176_v29, %v1183_v36  ;;  %1432 = vst [vmem:[#allocation2 + $0xc0] sm:$0xff] %v18579_v38  ;;  %v1392_v6 = vld [vmem:[#allocation2 + $0x40] sm:$0x11]  ;;  %v1399_v12 = vld [vmem:[#allocation2 + $0x58] sm:$0x11] }
 0x12e   : > { %1433 = vst [vmem:[#allocation2 + $0xc8] sm:$0xff] %v18584_v41  ;;  %v1393_v9 = vsel %vm18408_vm8, %v1083_v61, %v1392_v6  ;;  %21236 = vst [vmem:[#allocation30_spill] sm:$0xff] %v18623_v17  ;;  %v1400_v23 = vsel %vm18408_vm8, %v1100_v4, %v1399_v12  ;;  %v1151_v29 = vrot.slane %v18529_v33, 4  ;;  %v16578_v30 = vld [vmem:[#allocation10 + $0x150] ss:$8 sps:$4 sm:$0xff]   ;;  %v18660_v61 = vcombine.high %v18515_v15, %v18521_v22 }
 0x12f   : > { %3909 = vmatpush1.bf16.msra.mxu0 %v16562_v63  ;;  %15170 = vmatpush1.bf16.msra.mxu1 %v16562_v63  ;;  %v583_v63 = vld [vmem:[#allocation2 + $0x88] sm:$0xff]  ;;  %1394 = vst [vmem:[#allocation2 + $0x40] sm:$0x11] %v1393_v9  ;;  %1401 = vst [vmem:[#allocation2 + $0x58] sm:$0x11] %v1400_v23  ;;  %v871_v4 = vld [vmem:[%s18387_s15 + $0xf0] sm:$0xff] }
 0x130   : > { %4091 = vmatprep.subr.bf16.mxu0 %v16565_v1  ;;  %v584_v48 = vsel %vm18414_vm13, 0, %v583_v63  ;;  %v1406_v28 = vld [vmem:[#allocation2 + $0x70] sm:$0x11]  ;;  %21240 = vst [vmem:[#allocation34_spill] sm:$0xff] %v18660_v61  ;;  %v869_v63 = vld [vmem:[%s18387_s15 + $0xe0] sm:$0xff]  ;;  %v1185_v6 = vrot.slane %v18571_v35, 4 }
 0x131   : > { %585 = vst [vmem:[#allocation2 + $0x88] sm:$0xff] %v584_v48  ;;  %v1407_v62 = vsel %vm18408_vm8, %v1117_v10, %v1406_v28  ;;  %v1420_v37 = vld [vmem:[#allocation2 + $0xa0] sm:$0x11]  ;;  %v16590_v48 = vld [vmem:[#allocation10 + $0x190] ss:$8 sps:$4 sm:$0xff]  }
 0x132   : > { %3911 = vmatmul.mubr.bf16.vlgmr.msra.gmra.mrb[0].mxu0 %v18555_v18  ;;  %1408 = vst [vmem:[#allocation2 + $0x70] sm:$0x11] %v1407_v62  ;;  %v1421_v33 = vsel %vm18408_vm8, %v1151_v29, %v1420_v37  ;;  %v1427_v46 = vld [vmem:[#allocation2 + $0xb8] sm:$0x11]  ;;  %v531_v9 = vld [vmem:[#allocation2 + $0xf0] sm:$0x11] }
 0x133   : > { %4092 = vmatpush1.bf16.msra.mxu0 %v16563_v24  ;;  %3920 = vmatprep.mubr.bf16.mxu0 %v18567_v25  ;;  %v16580_v24 = vld [vmem:[#allocation10 + $0x154] ss:$8 sps:$4 sm:$0xff]   ;;  %1422 = vst [vmem:[#allocation2 + $0xa0] sm:$0x11] %v1421_v33  ;;  %v16593_v10 = vld [vmem:[#allocation10 + $0x1a0] ss:$8 sps:$4 sm:$0xff]  }
 0x134   : > { %4093 = vmatprep.subr.bf16.mxu0 %v16568_v26  ;;  %v643_v0 = vld [vmem:[#allocation2 + $0x28] sm:$0x11]  ;;  %v1134_v26 = vrot.slane %v18510_v3, 4  ;;  %v873_v23 = vld [vmem:[%s18387_s15 + $0x100] sm:$0xff]  ;;  %v875_v28 = vld [vmem:[%s18387_s15 + $0x110] sm:$0xff] }
 0x135   : > { %v644_v1 = vsel %vm18408_vm8, 0, %v643_v0  ;;  %v16583_v3 = vld [vmem:[#allocation10 + $0x164] ss:$8 sps:$4 sm:$0xff]   ;;  %v528_v0 = vld [vmem:[#allocation2 + $0xd8] sm:$0x11] }
 0x136   : > { %645 = vst [vmem:[#allocation2 + $0x28] sm:$0x11] %v644_v1  ;;  %v870_v1 = vld [vmem:[%s18387_s15 + $0xe8] sm:$0xff]  ;;  %v16598_v15 = vld [vmem:[#allocation10 + $0x1b4] ss:$8 sps:$4 sm:$0xff]  }
 0x137   : > { %4094 = vmatpush1.bf16.msra.mxu0 %v16566_v39  ;;  %v18639_v39 = vcombine.low %v18478_v27, %v18483_v31  ;;  %v16584_v27 = vld [vmem:[#allocation10 + $0x170] ss:$8 sps:$4 sm:$0xff]   ;;  %v15083_v7 = vpack.c.bf16 %v870_v1, %v869_v63  ;;  %v534_v62 = vld [vmem:[#allocation2 + $0x108] sm:$0x11]  ;;  %v18698_v1 = vcombine.low %v18537_v50, %v18544_v59 }
 0x138   : > { %4095 = vmatprep.subr.bf16.mxu0 %v16571_v44  ;;  %v1413_v34 = vld [vmem:[#allocation2 + $0x88] sm:$0x11]  ;;  %v1168_v44 = vrot.slane %v18547_v60, 4  ;;  %v593_v60 = vsel %vm18414_vm13, 0, %v592_v49 }
 0x139   : > { %v1414_v36 = vsel %vm18408_vm8, %v1134_v26, %v1413_v34  ;;  %21237 = vst [vmem:[#allocation31_spill] sm:$0xff] %v18639_v39  ;;  %594 = vst [vmem:[#allocation2 + $0xd0] sm:$0xff] %v593_v60  ;;  %v874_v26 = vld [vmem:[%s18387_s15 + $0x108] sm:$0xff]  ;;  %v1187_v29 = vshrl.u32 %v15083_v7, 16 }
 0x13a   : > { %3921 = vmatmul.mubr.bf16.gmra.mrb[4].mxu0 %v18592_v47  ;;  %1415 = vst [vmem:[#allocation2 + $0x88] sm:$0x11] %v1414_v36  ;;  %v1428_v31 = vsel %vm18408_vm8, %v1168_v44, %v1427_v46  ;;  %v532_v36 = vsel %vm18408_vm8, 0, %v531_v9  ;;  %v15085_v44 = vpack.c.bf16 %v874_v26, %v873_v23  ;;  %v2116_v46 = vshll.u32 %v18433_v40, 16  ;;  %v16601_v60 = vld [vmem:[#allocation10 + $0x1c4] ss:$8 sps:$4 sm:$0xff]  }
 0x13b   : > { %4096 = vmatpush1.bf16.msra.mxu0 %v16569_v56  ;;  %3930 = vmatprep.mubr.bf16.mxu0 %v18600_v58  ;;  %1429 = vst [vmem:[#allocation2 + $0xb8] sm:$0x11] %v1428_v31  ;;  %v18656_v56 = vcombine.low %v18500_v53, %v18496_v51  ;;  %v529_v51 = vsel %vm18408_vm8, 0, %v528_v0  ;;  %v872_v53 = vld [vmem:[%s18387_s15 + $0xf8] sm:$0xff]  ;;  %v1189_v37 = vrot.slane %v1187_v29, 7  ;;  %v535_v31 = vsel %vm18408_vm8, 0, %v534_v62 }
 0x13c   : > { %4097 = vmatprep.subr.bf16.mxu0 %v16574_v57  ;;  %v16587_v57 = vld [vmem:[#allocation10 + $0x180] ss:$8 sps:$4 sm:$0xff]   ;;  %530 = vst [vmem:[#allocation2 + $0xd8] sm:$0x11] %v529_v51  ;;  %v15084_v12 = vpack.c.bf16 %v872_v53, %v871_v4  ;;  %533 = vst [vmem:[#allocation2 + $0xf0] sm:$0x11] %v532_v36  ;;  %v18717_v23 = vcombine.high %v18563_v21, %v18559_v19 }
 0x13d   : > { %21239 = vst [vmem:[#allocation33_spill] sm:$0xff] %v18656_v56  ;;  %v1193_v0 = vrot.slane %v1189_v37, 4  ;;  %536 = vst [vmem:[#allocation2 + $0x108] sm:$0x11] %v535_v31  ;;  %v1207_v4 = vshll.u32 %v15085_v44, 16  ;;  %v877_v51 = vld [vmem:[%s18387_s15 + $0x120] sm:$0xff] }
 0x13e   : > { %v1195_v34 = vshrl.u32 %v15084_v12, 16  ;;  %v1198_v22 = vshll.u32 %v15084_v12, 16  ;;  %v878_v53 = vld [vmem:[%s18387_s15 + $0x128] sm:$0xff]  ;;  %v880_v26 = vld [vmem:[%s18387_s15 + $0x138] sm:$0xff]  ;;  %v2114_v29 = vshrl.u32 %v18433_v40, 16  ;;  %v2138_v31 = vshrl.u32 %v18567_v25, 16 }
 0x13f   : > { %4098 = vmatpush1.bf16.msra.mxu0 %v16572_v2  ;;  %v595_v2 = vld [vmem:[#allocation2 + $0xe8] sm:$0xff]  ;;  %v16604_v62 = vld [vmem:[#allocation10 + $0x1d4] ss:$8 sps:$4 sm:$0xff]   ;;  %v18785_v40 = vcombine.low %v18579_v38, %v18584_v41 }
 0x140   : > { %4099 = vmatprep.subr.bf16.mxu0 %v16577_v8  ;;  %v16595_v8 = vld [vmem:[#allocation10 + $0x1a4] ss:$8 sps:$4 sm:$0xff]   ;;  %v1434_v11 = vld [vmem:[#allocation2 + $0xd0] sm:$0x11]  ;;  %v596_v35 = vsel %vm18414_vm13, 0, %v595_v2  ;;  %v1197_v33 = vrot.slane %v1195_v34, 7 }
 0x141   : > { %597 = vst [vmem:[#allocation2 + $0xe8] sm:$0xff] %v596_v35  ;;  %v1204_v2 = vshrl.u32 %v15085_v44, 16  ;;  %v16599_v59 = vld [vmem:[#allocation10 + $0x1c0] ss:$8 sps:$4 sm:$0xff]   ;;  %v2102_v34 = vshrl.u32 %v18555_v18, 16 }
 0x142   : > { %3931 = vmatmul.mubr.bf16.gmra.mrb[8].mxu0 %v18619_v14  ;;  %v1202_v63 = vrot.slane %v1197_v33, 4 }
 0x143   : > { %4100 = vmatpush1.bf16.msra.mxu0 %v16575_v16  ;;  %3940 = vmatprep.mubr.bf16.mxu0 %v18623_v17  ;;  %v598_v16 = vld [vmem:[#allocation2 + $0x100] sm:$0xff]  ;;  %v1437_v49 = vld [vmem:[#allocation2 + $0xd8] sm:$0xff]  ;;  %v1206_v12 = vrot.slane %v1204_v2, 7 }
 0x144   : > { %4101 = vmatprep.subr.bf16.mxu0 %v16580_v24  ;;  %v1435_v24 = vsel %vm18408_vm8, %v1185_v6, %v1434_v11 }
 0x145   : > { %1436 = vst [vmem:[#allocation2 + $0xd0] sm:$0x11] %v1435_v24  ;;  %v1209_v36 = vor.u32 %v1207_v4, %v1206_v12  ;;  %v2126_v4 = vshrl.u32 %v18592_v47, 16 }
 0x147   : > { %4102 = vmatpush1.bf16.msra.mxu0 %v16578_v30  ;;  %v1190_v30 = vshll.u32 %v15083_v7, 16 }
 0x148   : > { %4103 = vmatprep.subr.bf16.mxu0 %v16583_v3  ;;  %v876_v3 = vld [vmem:[%s18387_s15 + $0x118] sm:$0xff] }
 0x14a   : > { %3941 = vmatmul.mubr.bf16.gmra.mrb[12].mxu0 %v18639_v39 }
 0x14b   : > { %4104 = vmatpush1.bf16.msra.mxu0 %v16581_v42  ;;  %3950 = vmatprep.mubr.bf16.mxu0 %v18645_v43  ;;  %v599_v42 = vsel %vm18414_vm13, 0, %v598_v16  ;;  %v879_v16 = vld [vmem:[%s18387_s15 + $0x130] sm:$0xff] }
 0x14c   : > { %4105 = vmatprep.subr.bf16.mxu0 %v16586_v45  ;;  %v16596_v45 = vld [vmem:[#allocation10 + $0x1b0] ss:$8 sps:$4 sm:$0xff]   ;;  %600 = vst [vmem:[#allocation2 + $0x100] sm:$0xff] %v599_v42  ;;  %v2140_v42 = vshll.u32 %v18567_v25, 16 }
 0x14f   : > { %4106 = vmatpush1.bf16.msra.mxu0 %v16584_v27  ;;  %v15086_v27 = vpack.c.bf16 %v876_v3, %v875_v28  ;;  %v15087_v28 = vpack.c.bf16 %v878_v53, %v877_v51  ;;  %v1444_v3 = vld [vmem:[#allocation2 + $0xf0] sm:$0xff]  ;;  %v18749_v53 = vld [vmem:[#allocation2 + $0x28] sm:$0x11] }
 0x150   : > { %4107 = vmatprep.subr.bf16.mxu0 %v16589_v55  ;;  %v601_v55 = vld [vmem:[#allocation2 + $0x118] sm:$0xff] }
 0x151   : > { %v1212_v6 = vshrl.u32 %v15086_v27, 16  ;;  %v1215_v9 = vshll.u32 %v15086_v27, 16  ;;  %v602_v50 = vsel %vm18414_vm13, 0, %v601_v55  ;;  %v16602_v27 = vld [vmem:[#allocation10 + $0x1d0] ss:$8 sps:$4 sm:$0xff]   ;;  %v1445_v55 = vsel %vm18414_vm13, %v1209_v36, %v1444_v3  ;;  %v881_v36 = vld [vmem:[%s18387_s15 + $0x140] sm:$0xff] }
 0x152   : > { %3951 = vmatmul.mubr.bf16.gmra.mrb[16].mxu0 %v18656_v56  ;;  %603 = vst [vmem:[#allocation2 + $0x118] sm:$0xff] %v602_v50  ;;  %1446 = vst [vmem:[#allocation2 + $0xf0] sm:$0xff] %v1445_v55  ;;  %v18755_v50 = vcombine.high %v18579_v38, %v18584_v41  ;;  %v14106_v38 = vcombine.low %v18749_v53, %v18749_v53 }
 0x153   : > { %4108 = vmatpush1.bf16.msra.mxu0 %v16587_v57  ;;  %3960 = vmatprep.mubr.bf16.mxu0 %v18660_v61  ;;  %v1192_v57 = vor.u32 %v1190_v30, %v1189_v37  ;;  %v1214_v24 = vrot.slane %v1212_v6, 7  ;;  %v18721_v30 = vrot.slane %v2116_v46, 1  ;;  %v1210_v37 = vrot.slane %v1206_v12, 4  ;;  %v1451_v12 = vld [vmem:[#allocation2 + $0x108] sm:$0xff] }
 0x154   : > { %4109 = vmatprep.subr.bf16.mxu0 %v16592_v52  ;;  %v1200_v52 = vor.u32 %v1198_v22, %v1197_v33  ;;  %v2104_v22 = vshll.u32 %v18555_v18, 16  ;;  %v1448_v33 = vld [vmem:[#allocation2 + $0x100] sm:$0x11]  ;;  %v18732_v46 = vcombine.low %v18563_v21, %v18559_v19 }
 0x155   : > { %v1438_v7 = vsel %vm18414_vm13, %v1192_v57, %v1437_v49  ;;  %v1217_v44 = vor.u32 %v1215_v9, %v1214_v24  ;;  %v15088_v49 = vpack.c.bf16 %v880_v26, %v879_v16  ;;  %v16607_v57 = vld [vmem:[#allocation10 + $0x1e4] ss:$8 sps:$4 sm:$0xff]   ;;  %v16605_v21 = vld [vmem:[#allocation10 + $0x1e0] ss:$8 sps:$4 sm:$0xff]   ;;  %v16610_v26 = vld [vmem:[#allocation10 + $0x1f4] ss:$8 sps:$4 sm:$0xff]  }
 0x156   : > { %1439 = vst [vmem:[#allocation2 + $0xd8] sm:$0xff] %v1438_v7  ;;  %v2106_v2 = vrot.slane %v2104_v22, 1  ;;  %v537_v16 = vld [vmem:[#allocation2 + $0x120] sm:$0x11] }
 0x157   : > { %4110 = vmatpush1.bf16.msra.mxu0 %v16590_v48  ;;  %v1201_v48 = vsel %vm18451_vm15, %v1193_v0, %v1200_v52  ;;  %v2128_v52 = vshll.u32 %v18592_v47, 16  ;;  %v1229_v9 = vshrl.u32 %v15088_v49, 16 }
 0x158   : > { %4111 = vmatprep.subr.bf16.mxu0 %v16595_v8  ;;  %v1441_v8 = vld [vmem:[#allocation2 + $0xe8] sm:$0x11]  ;;  %1440 = vst [vmem:[#allocation2 + $0xe0] sm:$0xff] %v1201_v48  ;;  %v18710_v11 = vcombine.high %v1438_v7, %v1201_v48  ;;  %v18712_v35 = vcombine.low %v1438_v7, %v1201_v48  ;;  %v18751_v48 = vrot.slane %v2140_v42, 1  ;;  %v2150_v42 = vshrl.u32 %v18619_v14, 16 }
 0x159   : > { %v18758_v3 = vrot.slane %v2128_v52, 1  ;;  %v2119_v52 = vor.u32 %v18721_v30, %v2114_v29  ;;  %v2107_v30 = vor.u32 %v2106_v2, %v2102_v34  ;;  %v607_v2 = vld [vmem:[#allocation2 + $0x148] sm:$0xff] }
 0x15a   : > { %3961 = vmatmul.mubr.bf16.gmra.mrb[20].mxu0 %v18676_v32 }
 0x15b   : > { %4112 = vmatpush1.bf16.msra.mxu0 %v16593_v10  ;;  %3970 = vmatprep.mubr.bf16.mxu0 %v18684_v5  ;;  %v1442_v10 = vsel %vm18408_vm8, %v1202_v63, %v1441_v8  ;;  %v1218_v63 = vsel %vm18451_vm15, %v1210_v37, %v1217_v44  ;;  %v1224_v8 = vshll.u32 %v15087_v28, 16  ;;  %v1231_v44 = vrot.slane %v1229_v9, 7 }
 0x15c   : > { %4113 = vmatprep.subr.bf16.mxu0 %v16598_v15  ;;  %1443 = vst [vmem:[#allocation2 + $0xe8] sm:$0x11] %v1442_v10  ;;  %v18724_v15 = vld [vmem:[#allocation2 + $0x10] sm:$0x11]  ;;  %1447 = vst [vmem:[#allocation2 + $0xf8] sm:$0xff] %v1218_v63  ;;  %v18745_v6 = vcombine.high %v1445_v55, %v1218_v63  ;;  %v18747_v51 = vcombine.low %v1445_v55, %v1218_v63  ;;  %v1232_v10 = vshll.u32 %v15088_v49, 16 }
 0x15d   : > { %v14103_v0 = vcombine.high %v18724_v15, %v18724_v15  ;;  %v14102_v37 = vcombine.low %v18724_v15, %v18724_v15  ;;  %v883_v49 = vld [vmem:[%s18387_s15 + $0x150] sm:$0xff]  ;;  %v2152_v63 = vshll.u32 %v18619_v14, 16 }
 0x15e   : > { %v16608_v55 = vld [vmem:[#allocation10 + $0x1f0] ss:$8 sps:$4 sm:$0xff]  }
 0x15f   : > { %4114 = vmatpush1.bf16.msra.mxu0 %v16596_v45  ;;  %v1219_v45 = vrot.slane %v1214_v24, 4  ;;  %v604_v24 = vld [vmem:[#allocation2 + $0x130] sm:$0xff]  ;;  %v2109_v29 = vshll.u32 %v14102_v37, 16 }
 0x160   : > { %4115 = vmatprep.subr.bf16.mxu0 %v16601_v60  ;;  %v1221_v60 = vshrl.u32 %v15087_v28, 16  ;;  %v2164_v28 = vshll.u32 %v18600_v58, 16  ;;  %v605_v15 = vsel %vm18414_vm13, 0, %v604_v24 }
 0x161   : > { %v1449_v19 = vsel %vm18408_vm8, %v1219_v45, %v1448_v33  ;;  %v14107_v33 = vcombine.high %v18749_v53, %v18749_v53  ;;  %v882_v45 = vld [vmem:[%s18387_s15 + $0x148] sm:$0xff]  ;;  %606 = vst [vmem:[#allocation2 + $0x130] sm:$0xff] %v605_v15 }
 0x162   : > { %3971 = vmatmul.mubr.bf16.gmra.mrb[24].mxu0 %v18698_v1  ;;  %1450 = vst [vmem:[#allocation2 + $0x100] sm:$0x11] %v1449_v19  ;;  %v1223_v7 = vrot.slane %v1221_v60, 7  ;;  %v15089_v24 = vpack.c.bf16 %v882_v45, %v881_v36  ;;  %v18789_v19 = vld [vmem:[#allocation2 + $0x40] sm:$0x11]  ;;  %v18797_v41 = vrot.slane %v2164_v28, 1 }
 0x163   : > { %3980 = vmatprep.mubr.bf16.mxu0 %v18717_v23  ;;  %4116 = vmatpush1.bf16.msra.mxu0 %v16599_v59  ;;  %v2162_v59 = vshrl.u32 %v18600_v58, 16  ;;  %v885_v28 = vld [vmem:[%s18387_s15 + $0x160] sm:$0xff] }
 0x164   : > { %4117 = vmatprep.subr.bf16.mxu0 %v16604_v62  ;;  %v2121_v62 = vshll.u32 %v14103_v0, 16  ;;  %v1226_v22 = vor.u32 %v1224_v8, %v1223_v7  ;;  %v1227_v60 = vrot.slane %v1223_v7, 4  ;;  %v538_v0 = vsel %vm18408_vm8, 0, %v537_v16  ;;  %v1455_v8 = vld [vmem:[#allocation2 + $0x118] sm:$0x11] }
 0x165   : > { %v1234_v7 = vor.u32 %v1232_v10, %v1231_v44  ;;  %539 = vst [vmem:[#allocation2 + $0x120] sm:$0x11] %v538_v0  ;;  %v1236_v16 = vrot.slane %v1231_v44, 4  ;;  %v540_v10 = vld [vmem:[#allocation2 + $0x138] sm:$0x11]  ;;  %v1238_v36 = vshrl.u32 %v15089_v24, 16 }
 0x166   : > { %v2123_v9 = vrot.slane %v2121_v62, 1  ;;  %v1241_v44 = vshll.u32 %v15089_v24, 16  ;;  %v541_v53 = vsel %vm18408_vm8, 0, %v540_v10  ;;  %v2111_v0 = vrot.slane %v2109_v29, 1  ;;  %v543_v10 = vld [vmem:[#allocation2 + $0x150] sm:$0x11] }
 0x167   : > { %4118 = vmatpush1.bf16.msra.mxu0 %v16602_v27  ;;  %v884_v27 = vld [vmem:[%s18387_s15 + $0x158] sm:$0xff]  ;;  %v1456_v62 = vsel %vm18408_vm8, %v1236_v16, %v1455_v8  ;;  %542 = vst [vmem:[#allocation2 + $0x138] sm:$0x11] %v541_v53 }
 0x168   : > { %4119 = vmatprep.subr.bf16.mxu0 %v16607_v57  ;;  %v1452_v57 = vsel %vm18414_vm13, %v1226_v22, %v1451_v12  ;;  %v16615_v12 = vld [vmem:[#allocation10 + $0x204] ss:$8 sps:$4 sm:$0xff]   ;;  %v15090_v22 = vpack.c.bf16 %v884_v27, %v883_v49  ;;  %1457 = vst [vmem:[#allocation2 + $0x118] sm:$0x11] %v1456_v62  ;;  %v2124_v37 = vsel %vm2100_vm0, %v2119_v52, %v2123_v9  ;;  %v18809_v27 = vrot.slane %v2152_v63, 1  ;;  %v887_v9 = vld [vmem:[%s18387_s15 + $0x170] sm:$0xff] }
 0x169   : > { %1453 = vst [vmem:[#allocation2 + $0x108] sm:$0xff] %v1452_v57  ;;  %v14111_v49 = vcombine.high %v18789_v19, %v18789_v19  ;;  %v2143_v63 = vor.u32 %v18751_v48, %v2138_v31  ;;  %v2112_v48 = vsel %vm2100_vm0, %v2107_v30, %v2111_v0  ;;  %v889_v0 = vld [vmem:[%s18387_s15 + $0x180] sm:$0xff] }
 0x16a   : > { %3981 = vmatmul.mubr.bf16.gmra.mrb[28].mxu0 %v18732_v46  ;;  %v1246_v45 = vshrl.u32 %v15090_v22, 16 }
 0x16b   : > { %3990 = vmatprep.mubr.bf16.mxu0 %v18755_v50  ;;  %4120 = vmatpush1.bf16.msra.mxu0 %v16605_v21  ;;  %v2145_v21 = vshll.u32 %v14107_v33, 16  ;;  %v1240_v33 = vrot.slane %v1238_v36, 7  ;;  %v16613_v36 = vld [vmem:[#allocation10 + $0x200] ss:$8 sps:$4 sm:$0xff]  }
 0x16c   : > { %4121 = vmatprep.subr.bf16.mxu0 %v16610_v26  ;;  %v1235_v26 = vsel %vm18451_vm15, %v1227_v60, %v1234_v7  ;;  %v1249_v60 = vshll.u32 %v15090_v22, 16  ;;  %v1458_v8 = vld [vmem:[#allocation2 + $0x120] sm:$0xff]  ;;  %v1248_v24 = vrot.slane %v1246_v45, 7  ;;  %v1462_v22 = vld [vmem:[#allocation2 + $0x130] sm:$0x11] }
 0x16d   : > { %1454 = vst [vmem:[#allocation2 + $0x110] sm:$0xff] %v1235_v26  ;;  %v18799_v18 = vcombine.high %v1452_v57, %v1235_v26  ;;  %v18801_v34 = vcombine.low %v1452_v57, %v1235_v26  ;;  %v886_v57 = vld [vmem:[%s18387_s15 + $0x168] sm:$0xff]  ;;  %v2147_v15 = vrot.slane %v2145_v21, 1  ;;  %v1243_v7 = vor.u32 %v1241_v44, %v1240_v33 }
 0x16e   : > { %v1244_v16 = vrot.slane %v1240_v33, 4  ;;  %v2133_v26 = vshll.u32 %v14106_v38, 16  ;;  %v608_v21 = vsel %vm18414_vm13, 0, %v607_v2  ;;  %v15091_v62 = vpack.c.bf16 %v886_v57, %v885_v28  ;;  %v16620_v33 = vld [vmem:[#allocation10 + $0x214] ss:$8 sps:$4 sm:$0xff]   ;;  %v610_v28 = vld [vmem:[#allocation2 + $0x160] sm:$0xff] }
 0x16f   : > { %4122 = vmatpush1.bf16.msra.mxu0 %v16608_v55  ;;  %v2188_v55 = vshll.u32 %v18623_v17, 16  ;;  %v1459_v29 = vsel %vm18414_vm13, %v1243_v7, %v1458_v8  ;;  %v18824_v44 = vshll.u32 %v14111_v49, 16  ;;  %v1253_v53 = vrot.slane %v1248_v24, 4  ;;  %609 = vst [vmem:[#allocation2 + $0x148] sm:$0xff] %v608_v21  ;;  %v18827_v38 = vld [vmem:[#allocation2 + $0x58] sm:$0x11] }
 0x170   : > { %4304 = vmatprep.subr.bf16.mxu0 %v16615_v12  ;;  %v888_v12 = vld [vmem:[%s18387_s15 + $0x178] sm:$0xff]  ;;  %1460 = vst [vmem:[#allocation2 + $0x120] sm:$0xff] %v1459_v29  ;;  %v1255_v45 = vshrl.u32 %v15091_v62, 16  ;;  %v544_v2 = vsel %vm18408_vm8, 0, %v543_v10  ;;  %v18832_v49 = vsel %vm2100_vm0, %v2143_v63, %v2147_v15  ;;  %v1258_v30 = vshll.u32 %v15091_v62, 16 }
 0x171   : > { %v15092_v31 = vpack.c.bf16 %v888_v12, %v887_v9  ;;  %21241 = vst [vmem:[#allocation35_spill] sm:$0xff] %v18832_v49  ;;  %v1463_v57 = vsel %vm18408_vm8, %v1253_v53, %v1462_v22  ;;  %545 = vst [vmem:[#allocation2 + $0x150] sm:$0x11] %v544_v2  ;;  %v890_v12 = vld [vmem:[%s18387_s15 + $0x188] sm:$0xff]  ;;  %v891_v22 = vld [vmem:[%s18387_s15 + $0x190] sm:$0xff]  ;;  %v2131_v10 = vor.u32 %v18758_v3, %v2126_v4  ;;  %v2135_v21 = vrot.slane %v2133_v26, 1 }
 0x172   : > { %3991 = vmatmul.mubr.bf16.gmra.mrb[32].mxu0 %v18785_v40  ;;  %1464 = vst [vmem:[#allocation2 + $0x130] sm:$0x11] %v1463_v57  ;;  %v1257_v9 = vrot.slane %v1255_v45, 7  ;;  %v892_v53 = vld [vmem:[%s18387_s15 + $0x198] sm:$0xff]  ;;  %v2171_v2 = vrot.slane %v18824_v44, 1  ;;  %v14115_v4 = vcombine.high %v18827_v38, %v18827_v38  ;;  %v2212_v26 = vshll.u32 %v18645_v43, 16 }
 0x173   : > { %4123 = vmatprep.mubr.bf16.mxu0 %v2124_v37  ;;  %v1251_v37 = vor.u32 %v1249_v60, %v1248_v24  ;;  %v1263_v15 = vshrl.u32 %v15092_v31, 16  ;;  %v611_v24 = vsel %vm18414_vm13, 0, %v610_v28  ;;  %v1266_v62 = vshll.u32 %v15092_v31, 16  ;;  %v16618_v45 = vld [vmem:[#allocation10 + $0x210] ss:$8 sps:$4 sm:$0xff]  }
 0x174   : > { %612 = vst [vmem:[#allocation2 + $0x160] sm:$0xff] %v611_v24  ;;  %v1260_v3 = vor.u32 %v1258_v30, %v1257_v9  ;;  %v1261_v31 = vrot.slane %v1257_v9, 4  ;;  %v2190_v57 = vrot.slane %v2188_v55, 1  ;;  %v15094_v44 = vpack.c.bf16 %v892_v53, %v891_v22  ;;  %v613_v63 = vld [vmem:[#allocation2 + $0x178] sm:$0xff] }
 0x175   : > { %v1252_v60 = vsel %vm18451_vm15, %v1244_v16, %v1251_v37  ;;  %v1465_v37 = vld [vmem:[#allocation2 + $0x138] sm:$0xff]  ;;  %v1265_v28 = vrot.slane %v1263_v15, 7  ;;  %v18868_v24 = vsel %vm2100_vm0, %v2131_v10, %v2135_v21  ;;  %v2193_v9 = vshll.u32 %v14115_v4, 16 }
 0x176   : > { %1461 = vst [vmem:[#allocation2 + $0x128] sm:$0xff] %v1252_v60  ;;  %v18839_v7 = vcombine.high %v1459_v29, %v1252_v60  ;;  %v18841_v8 = vcombine.low %v1459_v29, %v1252_v60  ;;  %v14110_v29 = vcombine.low %v18789_v19, %v18789_v19  ;;  %v16625_v19 = vld [vmem:[#allocation10 + $0x224] ss:$8 sps:$4 sm:$0xff]   ;;  %v16623_v60 = vld [vmem:[#allocation10 + $0x220] ss:$8 sps:$4 sm:$0xff]   ;;  %21242 = vst [vmem:[#allocation36_spill] sm:$0xff] %v18868_v24 }
 0x177   : > { %v1268_v16 = vor.u32 %v1266_v62, %v1265_v28  ;;  %v1270_v52 = vrot.slane %v1265_v28, 4  ;;  %v1280_v55 = vshrl.u32 %v15094_v44, 16  ;;  %v16628_v62 = vld [vmem:[#allocation10 + $0x230] ss:$8 sps:$4 sm:$0xff]   ;;  %v614_v4 = vsel %vm18414_vm13, 0, %v613_v63 }
 0x178   : > { %v2157_v30 = vshll.u32 %v14110_v29, 16  ;;  %v1283_v29 = vshll.u32 %v15094_v44, 16  ;;  %v1472_v44 = vld [vmem:[#allocation2 + $0x150] sm:$0xff]  ;;  %615 = vst [vmem:[#allocation2 + $0x178] sm:$0xff] %v614_v4  ;;  %v2200_v4 = vshll.u32 %v18656_v56, 16 }
 0x179   : > { %v1269_v22 = vsel %vm18451_vm15, %v1261_v31, %v1268_v16  ;;  %v16635_v16 = vld [vmem:[#allocation10 + $0x244] ss:$8 sps:$4 sm:$0xff]   ;;  %v2155_v31 = vor.u32 %v18809_v27, %v2150_v42  ;;  %v895_v63 = vld [vmem:[%s18387_s15 + $0x1b0] sm:$0xff] }
 0x17a   : > { %4124 = vmatmul.mubr.bf16.vlgmr.msra.gmra.mrb[0].mxu0 %v2112_v48  ;;  %v2167_v48 = vor.u32 %v18797_v41, %v2162_v59  ;;  %v1466_v59 = vsel %vm18414_vm13, %v1260_v3, %v1465_v37  ;;  %v1469_v41 = vld [vmem:[#allocation2 + $0x148] sm:$0x11]  ;;  %v18877_v37 = vld [vmem:[#allocation2 + $0x70] sm:$0x11]  ;;  %1468 = vst [vmem:[#allocation2 + $0x140] sm:$0xff] %v1269_v22  ;;  %v893_v3 = vld [vmem:[%s18387_s15 + $0x1a0] sm:$0xff] }
 0x17b   : > { %4305 = vmatpush1.bf16.msra.mxu0 %v16613_v36  ;;  %4133 = vmatprep.mubr.bf16.mxu0 %v18832_v49  ;;  %v15093_v36 = vpack.c.bf16 %v890_v12, %v889_v0  ;;  %1467 = vst [vmem:[#allocation2 + $0x138] sm:$0xff] %v1466_v59  ;;  %v546_v12 = vld [vmem:[#allocation2 + $0x168] sm:$0x11]  ;;  %v1470_v10 = vsel %vm18408_vm8, %v1270_v52, %v1469_v41  ;;  %v2159_v28 = vrot.slane %v2157_v30, 1  ;;  %v21245_v30 = vshll.u32 %v18639_v39, 16 }
 0x17c   : > { %4306 = vmatprep.subr.bf16.mxu0 %v16620_v33  ;;  %v16630_v33 = vld [vmem:[#allocation10 + $0x234] ss:$8 sps:$4 sm:$0xff]   ;;  %v18871_v0 = vsel %vm2100_vm0, %v2167_v48, %v2171_v2  ;;  %1471 = vst [vmem:[#allocation2 + $0x148] sm:$0x11] %v1470_v10  ;;  %v18879_v53 = vcombine.high %v1466_v59, %v1269_v22  ;;  %v1282_v2 = vrot.slane %v1280_v55, 7  ;;  %v547_v52 = vsel %vm18408_vm8, 0, %v546_v12 }
 0x17d   : > { %21243 = vst [vmem:[#allocation37_spill] sm:$0xff] %v18871_v0  ;;  %v1272_v15 = vshrl.u32 %v15093_v36, 16  ;;  %v1275_v21 = vshll.u32 %v15093_v36, 16  ;;  %v21244_v36 = vshrl.u32 %v18623_v17, 16  ;;  %v14114_v41 = vcombine.low %v18827_v38, %v18827_v38  ;;  %548 = vst [vmem:[#allocation2 + $0x168] sm:$0x11] %v547_v52 }
 0x17e   : > { %v896_v55 = vld [vmem:[%s18387_s15 + $0x1b8] sm:$0xff]  ;;  %v2195_v12 = vrot.slane %v2193_v9, 1  ;;  %v2214_v10 = vrot.slane %v2212_v26, 1  ;;  %v1285_v38 = vor.u32 %v1283_v29, %v1282_v2 }
 0x17f   : > { %4307 = vmatpush1.bf16.msra.mxu0 %v16618_v45  ;;  %v18881_v45 = vcombine.low %v1466_v59, %v1269_v22  ;;  %v1274_v48 = vrot.slane %v1272_v15, 7  ;;  %v2191_v59 = vor.u32 %v2190_v57, %v21244_v36  ;;  %v1476_v15 = vld [vmem:[#allocation2 + $0x160] sm:$0x11]  ;;  %v14119_v22 = vcombine.high %v18877_v37, %v18877_v37 }
 0x180   : > { %4308 = vmatprep.subr.bf16.mxu0 %v16625_v19  ;;  %v894_v19 = vld [vmem:[%s18387_s15 + $0x1a8] sm:$0xff]  ;;  %v2178_v57 = vrot.slane %v21245_v30, 1 }
 0x181   : > { %v1277_v42 = vor.u32 %v1275_v21, %v1274_v48  ;;  %v1278_v27 = vrot.slane %v1274_v48, 4  ;;  %v16633_v36 = vld [vmem:[#allocation10 + $0x240] ss:$8 sps:$4 sm:$0xff]   ;;  %v15095_v9 = vpack.c.bf16 %v894_v19, %v893_v3  ;;  %v18911_v21 = vsel %vm2100_vm0, %v2155_v31, %v2159_v28  ;;  %v616_v31 = vld [vmem:[#allocation2 + $0x190] sm:$0xff] }
 0x182   : > { %4134 = vmatmul.mubr.bf16.gmra.mrb[4].mxu0 %v18868_v24  ;;  %v16640_v24 = vld [vmem:[#allocation10 + $0x254] ss:$8 sps:$4 sm:$0xff]   ;;  %21246 = vst [vmem:[#allocation38_spill] sm:$0xff] %v18911_v21  ;;  %v2181_v48 = vshll.u32 %v14114_v41, 16  ;;  %v18913_v30 = vld [vmem:[#allocation2 + $0x88] sm:$0x11] }
 0x183   : > { %4143 = vmatprep.mubr.bf16.mxu0 %v18871_v0  ;;  %4309 = vmatpush1.bf16.msra.mxu0 %v16623_v60  ;;  %v549_v60 = vld [vmem:[#allocation2 + $0x180] sm:$0x11]  ;;  %v1287_v0 = vrot.slane %v1282_v2, 4  ;;  %v18917_v26 = vsel %vm18451_vm15, %v1278_v27, %v1285_v38  ;;  %v18923_v2 = vsel %vm2100_vm0, %v2191_v59, %v2195_v12  ;;  %v2217_v3 = vshll.u32 %v14119_v22, 16  ;;  %v16638_v12 = vld [vmem:[#allocation10 + $0x250] ss:$8 sps:$4 sm:$0xff]  }
 0x184   : > { %4310 = vmatprep.subr.bf16.mxu0 %v16630_v33  ;;  %v18908_v33 = vsel %vm18414_vm13, %v1277_v42, %v1472_v44  ;;  %21247 = vst [vmem:[#allocation39_spill] sm:$0xff] %v18923_v2  ;;  %1475 = vst [vmem:[#allocation2 + $0x158] sm:$0xff] %v18917_v26  ;;  %v1289_v19 = vshrl.u32 %v15095_v9, 16  ;;  %v2236_v28 = vshll.u32 %v18660_v61, 16  ;;  %v1292_v41 = vshll.u32 %v15095_v9, 16  ;;  %v897_v38 = vld [vmem:[%s18387_s15 + $0x1c0] sm:$0xff] }
 0x185   : > { %1474 = vst [vmem:[#allocation2 + $0x150] sm:$0xff] %v18908_v33  ;;  %v1477_v29 = vsel %vm18408_vm8, %v1287_v0, %v1476_v15  ;;  %v550_v44 = vsel %vm18408_vm8, 0, %v549_v60  ;;  %v21248_v0 = vshrl.u32 %v18639_v39, 16  ;;  %v16645_v22 = vld [vmem:[#allocation10 + $0x264] ss:$8 sps:$4 sm:$0xff]   ;;  %v2183_v42 = vrot.slane %v2181_v48, 1 }
 0x186   : > { %1478 = vst [vmem:[#allocation2 + $0x160] sm:$0x11] %v1477_v29  ;;  %551 = vst [vmem:[#allocation2 + $0x180] sm:$0x11] %v550_v44  ;;  %v2202_v27 = vrot.slane %v2200_v4, 1  ;;  %v1291_v60 = vrot.slane %v1289_v19, 7 }
 0x187   : > { %4311 = vmatpush1.bf16.msra.mxu0 %v16628_v62  ;;  %v15096_v62 = vpack.c.bf16 %v896_v55, %v895_v63  ;;  %v2179_v59 = vor.u32 %v2178_v57, %v21248_v0  ;;  %v14118_v63 = vcombine.low %v18877_v37, %v18877_v37  ;;  %v898_v9 = vld [vmem:[%s18387_s15 + $0x1c8] sm:$0xff]  ;;  %v14123_v37 = vcombine.high %v18913_v30, %v18913_v30  ;;  %v900_v55 = vld [vmem:[%s18387_s15 + $0x1d8] sm:$0xff] }
 0x188   : > { %4312 = vmatprep.subr.bf16.mxu0 %v16635_v16  ;;  %v21249_v16 = vshrl.u32 %v18645_v43, 16  ;;  %v1479_v0 = vld [vmem:[#allocation2 + $0x168] sm:$0xff]  ;;  %v617_v44 = vsel %vm18414_vm13, 0, %v616_v31  ;;  %v2238_v52 = vrot.slane %v2236_v28, 1  ;;  %v1294_v19 = vor.u32 %v1292_v41, %v1291_v60  ;;  %v1483_v4 = vld [vmem:[#allocation2 + $0x178] sm:$0x11] }
 0x189   : > { %v1297_v57 = vshrl.u32 %v15096_v62, 16  ;;  %v1300_v29 = vshll.u32 %v15096_v62, 16  ;;  %v16643_v48 = vld [vmem:[#allocation10 + $0x260] ss:$8 sps:$4 sm:$0xff]   ;;  %618 = vst [vmem:[#allocation2 + $0x190] sm:$0xff] %v617_v44  ;;  %v15097_v49 = vpack.c.bf16 %v898_v9, %v897_v38  ;;  %v18951_v43 = vsel %vm2100_vm0, %v2179_v59, %v2183_v42 }
 0x18a   : > { %4144 = vmatmul.mubr.bf16.gmra.mrb[8].mxu0 %v18911_v21  ;;  %v2215_v15 = vor.u32 %v2214_v10, %v21249_v16  ;;  %v2219_v10 = vrot.slane %v2217_v3, 1  ;;  %v899_v16 = vld [vmem:[%s18387_s15 + $0x1d0] sm:$0xff]  ;;  %v2205_v3 = vshll.u32 %v14118_v63, 16  ;;  %21250 = vst [vmem:[#allocation40_spill] sm:$0xff] %v18951_v43  ;;  %v2260_v31 = vshll.u32 %v18684_v5, 16 }
 0x18b   : > { %4153 = vmatprep.mubr.bf16.mxu0 %v18923_v2  ;;  %4313 = vmatpush1.bf16.msra.mxu0 %v16633_v36  ;;  %v2224_v36 = vshll.u32 %v18676_v32, 16  ;;  %v18948_v2 = vld [vmem:[#allocation2 + $0xa0] sm:$0x11]  ;;  %v16651_v21 = vld [vmem:[#allocation10 + $0x274] ss:$8 sps:$4 sm:$0xff]   ;;  %v1299_v62 = vrot.slane %v1297_v57, 7  ;;  %v18956_v28 = vsel %vm18414_vm13, %v1294_v19, %v1479_v0  ;;  %v15098_v41 = vpack.c.bf16 %v900_v55, %v899_v16 }
 0x18c   : > { %4314 = vmatprep.subr.bf16.mxu0 %v16640_v24  ;;  %v1295_v24 = vrot.slane %v1291_v60, 4  ;;  %v18959_v63 = vsel %vm2100_vm0, %v2215_v15, %v2219_v10  ;;  %v2241_v44 = vshll.u32 %v14123_v37, 16  ;;  %1481 = vst [vmem:[#allocation2 + $0x168] sm:$0xff] %v18956_v28  ;;  %v21252_v59 = vshrl.u32 %v18656_v56, 16  ;;  %v552_v0 = vld [vmem:[#allocation2 + $0x198] sm:$0x11] }
 0x18d   : > { %21251 = vst [vmem:[#allocation41_spill] sm:$0xff] %v18959_v63  ;;  %v1302_v60 = vor.u32 %v1300_v29, %v1299_v62  ;;  %v1304_v57 = vrot.slane %v1299_v62, 4  ;;  %v14122_v42 = vcombine.low %v18913_v30, %v18913_v30  ;;  %v1306_v38 = vshrl.u32 %v15097_v49, 16  ;;  %v619_v19 = vld [vmem:[#allocation2 + $0x1a8] sm:$0xff]  ;;  %v16649_v55 = vld [vmem:[#allocation10 + $0x270] ss:$8 sps:$4 sm:$0xff]  }
 0x18e   : > { %v1314_v9 = vshrl.u32 %v15098_v41, 16  ;;  %v2207_v15 = vrot.slane %v2205_v3, 1  ;;  %v1309_v37 = vshll.u32 %v15097_v49, 16  ;;  %v14127_v30 = vcombine.high %v18948_v2, %v18948_v2  ;;  %v16662_v56 = vld [vmem:[#allocation10 + $0x294] ss:$8 sps:$4 sm:$0xff]  }
 0x18f   : > { %4315 = vmatpush1.bf16.msra.mxu0 %v16638_v12  ;;  %v2203_v12 = vor.u32 %v2202_v27, %v21252_v59  ;;  %v18969_v10 = vsel %vm18451_vm15, %v1295_v24, %v1302_v60  ;;  %v1484_v27 = vsel %vm18408_vm8, %v1304_v57, %v1483_v4  ;;  %v1308_v29 = vrot.slane %v1306_v38, 7  ;;  %v903_v24 = vld [vmem:[%s18387_s15 + $0x1f0] sm:$0xff]  ;;  %v901_v59 = vld [vmem:[%s18387_s15 + $0x1e0] sm:$0xff] }
 0x190   : > { %4316 = vmatprep.subr.bf16.mxu0 %v16645_v22  ;;  %v16657_v22 = vld [vmem:[#allocation10 + $0x284] ss:$8 sps:$4 sm:$0xff]   ;;  %1482 = vst [vmem:[#allocation2 + $0x170] sm:$0xff] %v18969_v10  ;;  %1485 = vst [vmem:[#allocation2 + $0x178] sm:$0x11] %v1484_v27  ;;  %v1316_v16 = vrot.slane %v1314_v9, 7 }
 0x191   : > { %v1317_v3 = vshll.u32 %v15098_v41, 16  ;;  %v21253_v62 = vshrl.u32 %v18660_v61, 16  ;;  %v2243_v60 = vrot.slane %v2241_v44, 1  ;;  %v553_v49 = vsel %vm18408_vm8, 0, %v552_v0  ;;  %v16655_v41 = vld [vmem:[#allocation10 + $0x280] ss:$8 sps:$4 sm:$0xff]  }
 0x192   : > { %4154 = vmatmul.mubr.bf16.gmra.mrb[12].mxu0 %v18951_v43  ;;  %v620_v57 = vsel %vm18414_vm13, 0, %v619_v19  ;;  %v2226_v43 = vrot.slane %v2224_v36, 1  ;;  %v2258_v38 = vshrl.u32 %v18684_v5, 16  ;;  %v2262_v9 = vrot.slane %v2260_v31, 1  ;;  %v1486_v27 = vld [vmem:[#allocation2 + $0x180] sm:$0xff] }
 0x193   : > { %4163 = vmatprep.mubr.bf16.mxu0 %v18959_v63  ;;  %4317 = vmatpush1.bf16.msra.mxu0 %v16643_v48  ;;  %v2239_v4 = vor.u32 %v2238_v52, %v21253_v62  ;;  %v902_v48 = vld [vmem:[%s18387_s15 + $0x1e8] sm:$0xff]  ;;  %v904_v63 = vld [vmem:[%s18387_s15 + $0x1f8] sm:$0xff]  ;;  %554 = vst [vmem:[#allocation2 + $0x198] sm:$0x11] %v553_v49  ;;  %621 = vst [vmem:[#allocation2 + $0x1a8] sm:$0xff] %v620_v57  ;;  %v2229_v52 = vshll.u32 %v14122_v42, 16  ;;  %v1311_v44 = vor.u32 %v1309_v37, %v1308_v29 }
 0x194   : > { %4318 = vmatprep.subr.bf16.mxu0 %v16651_v21  ;;  %v1312_v21 = vrot.slane %v1308_v29, 4  ;;  %v1490_v62 = vld [vmem:[#allocation2 + $0x190] sm:$0x11]  ;;  %v18989_v0 = vsel %vm2100_vm0, %v2203_v12, %v2207_v15  ;;  %v2265_v61 = vshll.u32 %v14127_v30, 16  ;;  %v18991_v19 = vld [vmem:[#allocation2 + $0xb8] sm:$0x11]  ;;  %v1319_v36 = vor.u32 %v1317_v3, %v1316_v16 }
 0x195   : > { %v1321_v39 = vrot.slane %v1316_v16, 4  ;;  %v18994_v31 = vsel %vm2100_vm0, %v2239_v4, %v2243_v60  ;;  %v18998_v42 = vsel %vm18414_vm13, %v1311_v44, %v1486_v27  ;;  %v15099_v37 = vpack.c.bf16 %v902_v48, %v901_v59  ;;  %v16660_v4 = vld [vmem:[#allocation10 + $0x290] ss:$8 sps:$4 sm:$0xff]   ;;  %v16667_v59 = vld [vmem:[#allocation10 + $0x2a4] ss:$8 sps:$4 sm:$0xff]  }
 0x196   : > { %v15100_v29 = vpack.c.bf16 %v904_v63, %v903_v24  ;;  %v2248_v12 = vshll.u32 %v18698_v1, 16  ;;  %v19003_v15 = vsel %vm18451_vm15, %v1312_v21, %v1319_v36  ;;  %1488 = vst [vmem:[#allocation2 + $0x180] sm:$0xff] %v18998_v42  ;;  %v2284_v16 = vshll.u32 %v18717_v23, 16 }
 0x197   : > { %4319 = vmatpush1.bf16.msra.mxu0 %v16649_v55  ;;  %v1491_v55 = vsel %vm18408_vm8, %v1321_v39, %v1490_v62  ;;  %1489 = vst [vmem:[#allocation2 + $0x188] sm:$0xff] %v19003_v15  ;;  %v1323_v63 = vshrl.u32 %v15099_v37, 16  ;;  %v2231_v3 = vrot.slane %v2229_v52, 1  ;;  %v14126_v24 = vcombine.low %v18948_v2, %v18948_v2 }
 0x198   : > { %4320 = vmatprep.subr.bf16.mxu0 %v16657_v22  ;;  %v21254_v22 = vshrl.u32 %v18676_v32, 16  ;;  %1492 = vst [vmem:[#allocation2 + $0x190] sm:$0x11] %v1491_v55  ;;  %v1326_v39 = vshll.u32 %v15099_v37, 16  ;;  %v1331_v60 = vshrl.u32 %v15100_v29, 16  ;;  %v2263_v49 = vor.u32 %v2262_v9, %v2258_v38 }
 0x199   : > { %v2267_v57 = vrot.slane %v2265_v61, 1  ;;  %v1334_v48 = vshll.u32 %v15100_v29, 16  ;;  %v2246_v27 = vshrl.u32 %v18698_v1, 16  ;;  %v2250_v44 = vrot.slane %v2248_v12, 1  ;;  %v16672_v38 = vld [vmem:[#allocation10 + $0x2b4] ss:$8 sps:$4 sm:$0xff]  }
 0x19a   : > { %4164 = vmatmul.mubr.bf16.gmra.mrb[16].mxu0 %v18989_v0  ;;  %v2227_v30 = vor.u32 %v2226_v43, %v21254_v22  ;;  %v14131_v43 = vcombine.high %v18991_v19, %v18991_v19  ;;  %v1325_v21 = vrot.slane %v1323_v63, 7  ;;  %v1333_v52 = vrot.slane %v1331_v60, 7  ;;  %v1493_v36 = vld [vmem:[#allocation2 + $0x198] sm:$0xff]  ;;  %v1497_v55 = vld [vmem:[#allocation2 + $0x1a8] sm:$0x11] }
 0x19b   : > { %4173 = vmatprep.mubr.bf16.mxu0 %v18994_v31  ;;  %4321 = vmatpush1.bf16.msra.mxu0 %v16655_v41  ;;  %v2282_v62 = vshrl.u32 %v18717_v23, 16  ;;  %v2286_v2 = vrot.slane %v2284_v16, 1  ;;  %v16665_v41 = vld [vmem:[#allocation10 + $0x2a0] ss:$8 sps:$4 sm:$0xff]   ;;  %v2253_v61 = vshll.u32 %v14126_v24, 16  ;;  %v19024_v29 = vsel %vm2100_vm0, %v2263_v49, %v2267_v57 }
 0x19c   : > { %4322 = vmatprep.subr.bf16.mxu0 %v16662_v56  ;;  %v19021_v37 = vsel %vm2100_vm0, %v2227_v30, %v2231_v3  ;;  %v1328_v9 = vor.u32 %v1326_v39, %v1325_v21  ;;  %v1329_v56 = vrot.slane %v1325_v21, 4  ;;  %v2289_v12 = vshll.u32 %v14131_v43, 16  ;;  %v1806_v60 = vld [vmem:[#allocation2 + $0xd0] sm:$0x11] }
 0x19d   : > { %v1336_v22 = vor.u32 %v1334_v48, %v1333_v52  ;;  %v1338_v63 = vrot.slane %v1333_v52, 4  ;;  %v2251_v24 = vor.u32 %v2250_v44, %v2246_v27  ;;  %v14130_v39 = vcombine.low %v18991_v19, %v18991_v19  ;;  %v16670_v57 = vld [vmem:[#allocation10 + $0x2b0] ss:$8 sps:$4 sm:$0xff]   ;;  %v16677_v52 = vld [vmem:[#allocation10 + $0x2c4] ss:$8 sps:$4 sm:$0xff]  }
 0x19e   : > { %v19028_v16 = vsel %vm18414_vm13, %v1328_v9, %v1493_v36  ;;  %v2272_v49 = vshll.u32 %v18732_v46, 16  ;;  %v2287_v43 = vor.u32 %v2286_v2, %v2282_v62  ;;  %v14135_v48 = vcombine.high %v1806_v60, %v1806_v60  ;;  %v16675_v36 = vld [vmem:[#allocation10 + $0x2c0] ss:$8 sps:$4 sm:$0xff]   ;;  %v16682_v27 = vld [vmem:[#allocation10 + $0x2d4] ss:$8 sps:$4 sm:$0xff]  }
 0x19f   : > { %4323 = vmatpush1.bf16.msra.mxu0 %v16660_v4  ;;  %v19033_v30 = vsel %vm18451_vm15, %v1329_v56, %v1336_v22  ;;  %1495 = vst [vmem:[#allocation2 + $0x198] sm:$0xff] %v19028_v16  ;;  %v1498_v3 = vsel %vm18408_vm8, %v1338_v63, %v1497_v55  ;;  %v2255_v4 = vrot.slane %v2253_v61, 1  ;;  %v2308_v21 = vshll.u32 %v18755_v50, 16  ;;  %v1809_v9 = vld [vmem:[#allocation2 + $0xe8] sm:$0x11] }
 0x1a0   : > { %4324 = vmatprep.subr.bf16.mxu0 %v16667_v59  ;;  %1496 = vst [vmem:[#allocation2 + $0x1a0] sm:$0xff] %v19033_v30  ;;  %1499 = vst [vmem:[#allocation2 + $0x1a8] sm:$0x11] %v1498_v3  ;;  %v2291_v59 = vrot.slane %v2289_v12, 1  ;;  %v2270_v19 = vshrl.u32 %v18732_v46, 16  ;;  %v2274_v61 = vrot.slane %v2272_v49, 1  ;;  %v14134_v22 = vcombine.low %v1806_v60, %v1806_v60 }
 0x1a1   : > { %v19045_v44 = vsel %vm2100_vm0, %v2251_v24, %v2255_v4  ;;  %v2306_v62 = vshrl.u32 %v18755_v50, 16  ;;  %v2310_v2 = vrot.slane %v2308_v21, 1  ;;  %v2313_v55 = vshll.u32 %v14135_v48, 16  ;;  %v16680_v3 = vld [vmem:[#allocation10 + $0x2d0] ss:$8 sps:$4 sm:$0xff]  }
 0x1a2   : > { %4174 = vmatmul.mubr.bf16.gmra.mrb[20].mxu0 %v19021_v37  ;;  %v19049_v56 = vsel %vm2100_vm0, %v2287_v43, %v2291_v59  ;;  %v2296_v63 = vshll.u32 %v18785_v40, 16  ;;  %v2332_v49 = vshll.u32 %v18710_v11, 16  ;;  %v16685_v43 = vld [vmem:[#allocation10 + $0x2e0] ss:$8 sps:$4 sm:$0xff]   ;;  %v2294_v59 = vshrl.u32 %v18785_v40, 16 }
 0x1a3   : > { %4183 = vmatprep.mubr.bf16.mxu0 %v19024_v29  ;;  %4325 = vmatpush1.bf16.msra.mxu0 %v16665_v41  ;;  %v2277_v41 = vshll.u32 %v14130_v39, 16  ;;  %v2311_v24 = vor.u32 %v2310_v2, %v2306_v62  ;;  %v2315_v4 = vrot.slane %v2313_v55, 1  ;;  %v14139_v39 = vcombine.high %v1809_v9, %v1809_v9  ;;  %v1812_v60 = vld [vmem:[#allocation2 + $0x100] sm:$0x11] }
 0x1a4   : > { %4326 = vmatprep.subr.bf16.mxu0 %v16672_v38  ;;  %v2275_v38 = vor.u32 %v2274_v61, %v2270_v19  ;;  %v2298_v21 = vrot.slane %v2296_v63, 1  ;;  %v16693_v19 = vld [vmem:[#allocation10 + $0x2f4] ss:$8 sps:$4 sm:$0xff]   ;;  %v2330_v61 = vshrl.u32 %v18710_v11, 16  ;;  %v14138_v55 = vcombine.low %v1809_v9, %v1809_v9  ;;  %v16699_v11 = vld [vmem:[#allocation10 + $0x304] ss:$8 sps:$4 sm:$0xff]  }
 0x1a5   : > { %v2279_v12 = vrot.slane %v2277_v41, 1  ;;  %v2334_v41 = vrot.slane %v2332_v49, 1  ;;  %v2337_v62 = vshll.u32 %v14139_v39, 16  ;;  %v2318_v39 = vshrl.u32 %v18712_v35, 16 }
 0x1a7   : > { %4327 = vmatpush1.bf16.msra.mxu0 %v16670_v57  ;;  %v16687_v57 = vld [vmem:[#allocation10 + $0x2e4] ss:$8 sps:$4 sm:$0xff]   ;;  %v19058_v48 = vsel %vm2100_vm0, %v2275_v38, %v2279_v12  ;;  %v2320_v38 = vshll.u32 %v18712_v35, 16  ;;  %v16691_v12 = vld [vmem:[#allocation10 + $0x2f0] ss:$8 sps:$4 sm:$0xff]   ;;  %v2339_v63 = vrot.slane %v2337_v62, 1 }
 0x1a8   : > { %4328 = vmatprep.subr.bf16.mxu0 %v16677_v52  ;;  %v2301_v52 = vshll.u32 %v14134_v22, 16  ;;  %v2335_v22 = vor.u32 %v2334_v41, %v2330_v61  ;;  %v14142_v41 = vcombine.low %v1812_v60, %v1812_v60  ;;  %v2344_v35 = vshll.u32 %v18747_v51, 16 }
 0x1a9   : > { %v2322_v49 = vrot.slane %v2320_v38, 1 }
 0x1aa   : > { %4184 = vmatmul.mubr.bf16.gmra.mrb[24].mxu0 %v19045_v44  ;;  %v2303_v2 = vrot.slane %v2301_v52, 1  ;;  %v19073_v9 = vsel %vm2100_vm0, %v2335_v22, %v2339_v63  ;;  %v2349_v22 = vshll.u32 %v14142_v41, 16  ;;  %v1818_v63 = vld [vmem:[#allocation2 + $0x130] sm:$0x11] }
 0x1ab   : > { %4193 = vmatprep.mubr.bf16.mxu0 %v19049_v56  ;;  %4329 = vmatpush1.bf16.msra.mxu0 %v16675_v36  ;;  %v19061_v36 = vsel %vm2100_vm0, %v2311_v24, %v2315_v4  ;;  %v2356_v24 = vshll.u32 %v18745_v6, 16 }
 0x1ac   : > { %4330 = vmatprep.subr.bf16.mxu0 %v16682_v27  ;;  %v2299_v27 = vor.u32 %v2298_v21, %v2294_v59  ;;  %v1815_v59 = vld [vmem:[#allocation2 + $0x118] sm:$0x11] }
 0x1ad   : > { %v2358_v21 = vrot.slane %v2356_v24, 1 }
 0x1ae   : > { %v19069_v4 = vsel %vm2100_vm0, %v2299_v27, %v2303_v2  ;;  %v14147_v2 = vcombine.high %v1815_v59, %v1815_v59 }
 0x1af   : > { %4331 = vmatpush1.bf16.msra.mxu0 %v16680_v3  ;;  %v14143_v3 = vcombine.high %v1812_v60, %v1812_v60  ;;  %v2378_v60 = vshrl.u32 %v18799_v18, 16 }
 0x1b0   : > { %4332 = vmatprep.subr.bf16.mxu0 %v16687_v57  ;;  %v2325_v57 = vshll.u32 %v14138_v55, 16  ;;  %v2380_v55 = vshll.u32 %v18799_v18, 16  ;;  %v2366_v18 = vshrl.u32 %v18801_v34, 16 }
 0x1b1   : > { %v2361_v52 = vshll.u32 %v14143_v3, 16 }
 0x1b2   : > { %4194 = vmatmul.mubr.bf16.gmra.mrb[28].mxu0 %v19058_v48  ;;  %v2327_v61 = vrot.slane %v2325_v57, 1  ;;  %v2382_v24 = vrot.slane %v2380_v55, 1  ;;  %v14146_v57 = vcombine.low %v1815_v59, %v1815_v59  ;;  %v2402_v59 = vshrl.u32 %v18839_v7, 16 }
 0x1b3   : > { %4203 = vmatprep.mubr.bf16.mxu0 %v19061_v36  ;;  %4333 = vmatpush1.bf16.msra.mxu0 %v16685_v43  ;;  %v2354_v43 = vshrl.u32 %v18745_v6, 16  ;;  %v2363_v27 = vrot.slane %v2361_v52, 1  ;;  %v2342_v6 = vshrl.u32 %v18747_v51, 16  ;;  %v14151_v52 = vcombine.high %v1818_v63, %v1818_v63 }
 0x1b4   : > { %4334 = vmatprep.subr.bf16.mxu0 %v16693_v19  ;;  %v2323_v19 = vor.u32 %v2322_v49, %v2318_v39  ;;  %v2351_v49 = vrot.slane %v2349_v22, 1  ;;  %v2383_v51 = vor.u32 %v2382_v24, %v2378_v60  ;;  %v14150_v22 = vcombine.low %v1818_v63, %v1818_v63 }
 0x1b5   : > { %v2359_v62 = vor.u32 %v2358_v21, %v2354_v43  ;;  %v2368_v43 = vshll.u32 %v18801_v34, 16  ;;  %v2409_v55 = vshll.u32 %v14151_v52, 16  ;;  %v2392_v60 = vshll.u32 %v18841_v8, 16 }
 0x1b6   : > { %v19081_v38 = vsel %vm2100_vm0, %v2323_v19, %v2327_v61  ;;  %v2404_v19 = vshll.u32 %v18839_v7, 16 }
 0x1b7   : > { %4335 = vmatpush1.bf16.msra.mxu0 %v16691_v12  ;;  %21255 = vst [vmem:[#allocation42_spill] sm:$0xff] %v19081_v38  ;;  %v2346_v12 = vrot.slane %v2344_v35, 1  ;;  %v19085_v3 = vsel %vm2100_vm0, %v2359_v62, %v2363_v27  ;;  %v2370_v41 = vrot.slane %v2368_v43, 1  ;;  %v2373_v35 = vshll.u32 %v14146_v57, 16  ;;  %v1821_v62 = vld [vmem:[#allocation2 + $0x148] sm:$0x11] }
 0x1b8   : > { %5275 = vmatprep.subr.bf16.mxu0 %v16699_v11  ;;  %21256 = vst [vmem:[#allocation43_spill] sm:$0xff] %v19085_v3  ;;  %v2385_v11 = vshll.u32 %v14147_v2, 16  ;;  %v2406_v2 = vrot.slane %v2404_v19, 1  ;;  %v2411_v24 = vrot.slane %v2409_v55, 1  ;;  %v2394_v57 = vrot.slane %v2392_v60, 1 }
 0x1b9   : > { %v2347_v39 = vor.u32 %v2346_v12, %v2342_v6  ;;  %v2371_v6 = vor.u32 %v2370_v41, %v2366_v18  ;;  %v2375_v12 = vrot.slane %v2373_v35, 1  ;;  %v2397_v43 = vshll.u32 %v14150_v22, 16 }
 0x1ba   : > { %4204 = vmatmul.mubr.bf16.gmra.mrb[32].mxu0 %v19069_v4  ;;  %v2387_v21 = vrot.slane %v2385_v11, 1  ;;  %v2407_v34 = vor.u32 %v2406_v2, %v2402_v59  ;;  %v14155_v11 = vcombine.high %v1821_v62, %v1821_v62  ;;  %v14157_v18 = vcombine.high %v18908_v33, %v18917_v26 }
 0x1bb   : > { %4213 = vmatprep.mubr.bf16.mxu0 %v19073_v9  ;;  %v19093_v61 = vsel %vm2100_vm0, %v2347_v39, %v2351_v49  ;;  %v2428_v39 = vshll.u32 %v18879_v53, 16  ;;  %v2390_v49 = vshrl.u32 %v18841_v8, 16  ;;  %v19106_v7 = vsel %vm2100_vm0, %v2371_v6, %v2375_v12 }
 0x1bc   : > { %21257 = vst [vmem:[#allocation44_spill] sm:$0xff] %v19093_v61  ;;  %v19097_v27 = vsel %vm2100_vm0, %v2383_v51, %v2387_v21  ;;  %21259 = vst [vmem:[#allocation46_spill] sm:$0xff] %v19106_v7  ;;  %v2426_v51 = vshrl.u32 %v18879_v53, 16  ;;  %v1824_v21 = vld [vmem:[#allocation2 + $0x160] sm:$0x11]  ;;  %v19110_v52 = vsel %vm2100_vm0, %v2407_v34, %v2411_v24  ;;  %v2433_v19 = vshll.u32 %v14155_v11, 16 }
 0x1bd   : > { %21258 = vst [vmem:[#allocation45_spill] sm:$0xff] %v19097_v27  ;;  %21260 = vst [vmem:[#allocation47_spill] sm:$0xff] %v19110_v52  ;;  %v2430_v63 = vrot.slane %v2428_v39, 1  ;;  %v2395_v8 = vor.u32 %v2394_v57, %v2390_v49  ;;  %v2399_v41 = vrot.slane %v2397_v43, 1  ;;  %v14154_v35 = vcombine.low %v1821_v62, %v1821_v62  ;;  %v1827_v39 = vld [vmem:[#allocation2 + $0x178] sm:$0x11] }
 0x1be   : > { %v2416_v59 = vshll.u32 %v18881_v45, 16  ;;  %v2435_v53 = vrot.slane %v2433_v19, 1  ;;  %v14159_v55 = vcombine.high %v1824_v21, %v1824_v21  ;;  %v2452_v6 = vshll.u32 %v14157_v18, 16 }
 0x1bf   : > { %v2431_v2 = vor.u32 %v2430_v63, %v2426_v51  ;;  %v2414_v12 = vshrl.u32 %v18881_v45, 16  ;;  %v14156_v22 = vcombine.low %v18908_v33, %v18917_v26  ;;  %v19121_v60 = vsel %vm2100_vm0, %v2395_v8, %v2399_v41 }
 0x1c0   : > { %21261 = vst [vmem:[#allocation48_spill] sm:$0xff] %v19121_v60  ;;  %v2418_v34 = vrot.slane %v2416_v59, 1  ;;  %v2421_v24 = vshll.u32 %v14154_v35, 16  ;;  %v2450_v11 = vshrl.u32 %v14157_v18, 16  ;;  %v2454_v49 = vrot.slane %v2452_v6, 1 }
 0x1c1   : > { %v19124_v62 = vsel %vm2100_vm0, %v2431_v2, %v2435_v53  ;;  %v2457_v57 = vshll.u32 %v14159_v55, 16  ;;  %v14161_v43 = vcombine.high %v18956_v28, %v18969_v10  ;;  %v14158_v45 = vcombine.low %v1824_v21, %v1824_v21  ;;  %v1830_v21 = vld [vmem:[#allocation2 + $0x190] sm:$0x11] }
 0x1c2   : > { %4214 = vmatmul.mubr.bf16.gmra.mrb[36].mxu0 %v19081_v38  ;;  %21262 = vst [vmem:[#allocation49_spill] sm:$0xff] %v19124_v62  ;;  %v2440_v51 = vshll.u32 %v14156_v22, 16  ;;  %v2419_v33 = vor.u32 %v2418_v34, %v2414_v12  ;;  %v2423_v26 = vrot.slane %v2421_v24, 1  ;;  %v2455_v63 = vor.u32 %v2454_v49, %v2450_v11 }
 0x1c3   : > { %4223 = vmatprep.mubr.bf16.mxu0 %v19085_v3  ;;  %v2459_v19 = vrot.slane %v2457_v57, 1  ;;  %v14163_v18 = vcombine.high %v1827_v39, %v1827_v39  ;;  %v2476_v8 = vshll.u32 %v14161_v43, 16  ;;  %v2438_v41 = vshrl.u32 %v14156_v22, 16 }
 0x1c4   : > { %v2442_v35 = vrot.slane %v2440_v51, 1  ;;  %v2445_v59 = vshll.u32 %v14158_v45, 16  ;;  %v19131_v2 = vsel %vm2100_vm0, %v2419_v33, %v2423_v26  ;;  %v2474_v53 = vshrl.u32 %v14161_v43, 16 }
 0x1c5   : > { %21263 = vst [vmem:[#allocation50_spill] sm:$0xff] %v19131_v2  ;;  %v14160_v55 = vcombine.low %v18956_v28, %v18969_v10  ;;  %v19136_v6 = vsel %vm2100_vm0, %v2455_v63, %v2459_v19  ;;  %v2478_v12 = vrot.slane %v2476_v8, 1  ;;  %v2481_v34 = vshll.u32 %v14163_v18, 16  ;;  %v1833_v8 = vld [vmem:[#allocation2 + $0x1a8] sm:$0x11] }
 0x1c6   : > { %21264 = vst [vmem:[#allocation51_spill] sm:$0xff] %v19136_v6  ;;  %v14165_v24 = vcombine.high %v18998_v42, %v19003_v15  ;;  %v2443_v22 = vor.u32 %v2442_v35, %v2438_v41  ;;  %v2447_v11 = vrot.slane %v2445_v59, 1  ;;  %v14162_v49 = vcombine.low %v1827_v39, %v1827_v39 }
 0x1c7   : > { %v2464_v57 = vshll.u32 %v14160_v55, 16  ;;  %v2479_v43 = vor.u32 %v2478_v12, %v2474_v53  ;;  %v2483_v45 = vrot.slane %v2481_v34, 1  ;;  %v14167_v28 = vcombine.high %v1830_v21, %v1830_v21 }
 0x1c8   : > { %v2500_v10 = vshll.u32 %v14165_v24, 16  ;;  %v19143_v51 = vsel %vm2100_vm0, %v2443_v22, %v2447_v11  ;;  %v2462_v33 = vshrl.u32 %v14160_v55, 16  ;;  %v2469_v63 = vshll.u32 %v14162_v49, 16 }
 0x1c9   : > { %21265 = vst [vmem:[#allocation52_spill] sm:$0xff] %v19143_v51  ;;  %v2466_v26 = vrot.slane %v2464_v57, 1  ;;  %v2498_v19 = vshrl.u32 %v14165_v24, 16  ;;  %v14164_v18 = vcombine.low %v18998_v42, %v19003_v15  ;;  %v19148_v41 = vsel %vm2100_vm0, %v2479_v43, %v2483_v45 }
 0x1ca   : > { %4224 = vmatmul.mubr.bf16.gmra.mrb[40].mxu0 %v19093_v61  ;;  %21266 = vst [vmem:[#allocation53_spill] sm:$0xff] %v19148_v41  ;;  %v2502_v39 = vrot.slane %v2500_v10, 1  ;;  %v2505_v35 = vshll.u32 %v14167_v28, 16  ;;  %v14169_v59 = vcombine.high %v19028_v16, %v19033_v30  ;;  %v2471_v55 = vrot.slane %v2469_v63, 1 }
 0x1cb   : > { %4233 = vmatprep.mubr.bf16.mxu0 %v19097_v27  ;;  %v2467_v53 = vor.u32 %v2466_v26, %v2462_v33  ;;  %v14166_v12 = vcombine.low %v1830_v21, %v1830_v21  ;;  %v2488_v34 = vshll.u32 %v14164_v18, 16  ;;  %v14171_v42 = vcombine.high %v1833_v8, %v1833_v8 }
 0x1cc   : > { %v2503_v24 = vor.u32 %v2502_v39, %v2498_v19  ;;  %v2507_v22 = vrot.slane %v2505_v35, 1  ;;  %v2524_v15 = vshll.u32 %v14169_v59, 16  ;;  %v2486_v11 = vshrl.u32 %v14164_v18, 16  ;;  %v2661_v39 = vld [vmem:[#allocation2] sm:$0xee] }
 0x1cd   : > { %v19155_v49 = vsel %vm2100_vm0, %v2467_v53, %v2471_v55  ;;  %v2490_v57 = vrot.slane %v2488_v34, 1  ;;  %v2493_v43 = vshll.u32 %v14166_v12, 16  ;;  %v14168_v45 = vcombine.low %v19028_v16, %v19033_v30  ;;  %v2663_v35 = vld [vmem:[#allocation2 + $0x10] sm:$0x11] }
 0x1ce   : > { %21267 = vst [vmem:[#allocation54_spill] sm:$0xff] %v19155_v49  ;;  %v19160_v28 = vsel %vm2100_vm0, %v2503_v24, %v2507_v22  ;;  %v2522_v10 = vshrl.u32 %v14169_v59, 16  ;;  %v2526_v33 = vrot.slane %v2524_v15, 1  ;;  %v2529_v21 = vshll.u32 %v14171_v42, 16  ;;  %v17648_v24 = vld [vmem:[#allocation2 + $0x8] sm:$0xff] }
 0x1cf   : > { %21268 = vst [vmem:[#allocation55_spill] sm:$0xff] %v19160_v28  ;;  %v2491_v26 = vor.u32 %v2490_v57, %v2486_v11  ;;  %v2495_v63 = vrot.slane %v2493_v43, 1  ;;  %v14170_v19 = vcombine.low %v1833_v8, %v1833_v8  ;;  %v2512_v18 = vshll.u32 %v14168_v45, 16  ;;  %v2664_v11 = vld [vmem:[#allocation2 + $0x18] sm:$0xee] }
 0x1d0   : > { %v2527_v53 = vor.u32 %v2526_v33, %v2522_v10  ;;  %v2531_v55 = vrot.slane %v2529_v21, 1  ;;  %v2510_v30 = vshrl.u32 %v14168_v45, 16  ;;  %v14181_v22 = vcombine.high %v2661_v39, %v17648_v24  ;;  %v2666_v57 = vld [vmem:[#allocation2 + $0x28] sm:$0x11] }
 0x1d1   : > { %v19165_v16 = vsel %vm2100_vm0, %v2491_v26, %v2495_v63  ;;  %v2514_v12 = vrot.slane %v2512_v18, 1  ;;  %v2517_v59 = vshll.u32 %v14170_v19, 16  ;;  %v14183_v42 = vcombine.high %v2663_v35, %v2663_v35 }
 0x1d2   : > { %4234 = vmatmul.mubr.bf16.gmra.mrb[44].mxu0 %v19106_v7  ;;  %21269 = vst [vmem:[#allocation56_spill] sm:$0xff] %v19165_v16  ;;  %v19168_v34 = vsel %vm2100_vm0, %v2527_v53, %v2531_v55  ;;  %v2985_v43 = vrot.slane %v14181_v22, 1  ;;  %v14180_v33 = vcombine.low %v2661_v39, %v17648_v24  ;;  %v14182_v21 = vcombine.low %v2663_v35, %v2663_v35  ;;  %v2669_v55 = vld [vmem:[#allocation2 + $0x40] sm:$0x11]  ;;  %v16704_v22 = vld [vmem:[#allocation10 + $0x314] ss:$8 sps:$4 sm:$0xff]  }
 0x1d3   : > { %4243 = vmatprep.mubr.bf16.mxu0 %v19110_v52  ;;  %21270 = vst [vmem:[#allocation57_spill] sm:$0xff] %v19168_v34  ;;  %v2515_v8 = vor.u32 %v2514_v12, %v2510_v30  ;;  %v2519_v15 = vrot.slane %v2517_v59, 1  ;;  %v2986_v10 = vrot.slane %v14183_v42, 1  ;;  %v14185_v63 = vcombine.high %v2664_v11, %v17648_v24  ;;  %v16697_v59 = vld [vmem:[#allocation10 + $0x300] ss:$8 sps:$4 sm:$0xff]  }
 0x1d4   : > { %v14187_v19 = vcombine.high %v2666_v57, %v2666_v57  ;;  %v2982_v18 = vrot.slane %v14180_v33, 1  ;;  %v2983_v53 = vrot.slane %v14182_v21, 1  ;;  %v16705_v42 = vld [vmem:[#allocation2 + $0x34] ss:$8 sps:$4 sm:$0xfe]   ;;  %v14186_v39 = vcombine.low %v2666_v57, %v2666_v57 }
 0x1d5   : > { %v19173_v45 = vsel %vm2100_vm0, %v2515_v8, %v2519_v15  ;;  %v2987_v26 = vsel %vm2981_vm1, %v2985_v43, %v2986_v10  ;;  %v2991_v30 = vrot.slane %v14185_v63, 1  ;;  %v14184_v15 = vcombine.low %v2664_v11, %v17648_v24  ;;  %v16702_v10 = vld [vmem:[#allocation10 + $0x310] ss:$8 sps:$4 sm:$0xff]   ;;  %v16713_v24 = vld [vmem:[#allocation2 + $0x4c] ss:$8 sps:$4 sm:$0xfe]  }
 0x1d6   : > { %21271 = vst [vmem:[#allocation58_spill] sm:$0xff] %v19173_v45  ;;  %v2992_v12 = vrot.slane %v14187_v19, 1  ;;  %v2984_v8 = vsel %vm2981_vm1, %v2982_v18, %v2983_v53  ;;  %v14191_v43 = vcombine.high %v2669_v55, %v2669_v55  ;;  %v2989_v21 = vrot.slane %v14186_v39, 1  ;;  %v16710_v18 = vld [vmem:[#allocation10 + $0x320] ss:$8 sps:$4 sm:$0xff]  }
 0x1d7   : > { %v2988_v33 = vrot.slane %v14184_v15, 1  ;;  %v2997_v63 = vrot.slane %v16705_v42, 1  ;;  %v16720_v11 = vld [vmem:[#allocation10 + $0x334] ss:$8 sps:$4 sm:$0xff]   ;;  %v14190_v53 = vcombine.low %v2669_v55, %v2669_v55  ;;  %v3003_v39 = vrot.slane %v16713_v24, 1 }
 0x1d8   : > { %v19179_v35 = vsel %vm2981_vm1, %v2991_v30, %v2992_v12  ;;  %v2998_v19 = vrot.slane %v14191_v43, 1  ;;  %v2675_v15 = vld [vmem:[#allocation2 + $0x70] sm:$0x11]  ;;  %v16726_v55 = vld [vmem:[#allocation10 + $0x340] ss:$8 sps:$4 sm:$0xff]  }
 0x1d9   : > { %21272 = vst [vmem:[#allocation59_spill] sm:$0xff] %v19179_v35  ;;  %v19183_v57 = vsel %vm2981_vm1, %v2988_v33, %v2989_v21  ;;  %v16721_v33 = vld [vmem:[#allocation2 + $0x64] ss:$8 sps:$4 sm:$0xfe]   ;;  %v16736_v21 = vld [vmem:[#allocation10 + $0x354] ss:$8 sps:$4 sm:$0xff]  }
 0x1da   : > { %4244 = vmatmul.mubr.bf16.gmra.mrb[48].mxu0 %v19121_v60  ;;  %21273 = vst [vmem:[#allocation60_spill] sm:$0xff] %v19183_v57  ;;  %v19186_v30 = vsel %vm2981_vm1, %v2997_v63, %v2998_v19 }
 0x1db   : > { %4253 = vmatprep.mubr.bf16.mxu0 %v19124_v62  ;;  %21274 = vst [vmem:[#allocation61_spill] sm:$0xff] %v19186_v30 }
 0x1e2   : > { %4254 = vmatmul.mubr.bf16.gmra.mrb[52].mxu0 %v19131_v2 }
 0x1e3   : > { %4263 = vmatprep.mubr.bf16.mxu0 %v19136_v6 }
 0x1ea   : > { %4264 = vmatmul.mubr.bf16.gmra.mrb[56].mxu0 %v19143_v51 }
 0x1eb   : > { %4273 = vmatprep.mubr.bf16.mxu0 %v19148_v41 }
 0x1f2   : > { %4274 = vmatmul.mubr.bf16.gmra.mrb[60].mxu0 %v19155_v49 }
 0x1f3   : > { %4283 = vmatprep.mubr.bf16.mxu0 %v19160_v28 }
 0x1fa   : > { %4284 = vmatmul.mubr.bf16.gmra.mrb[64].mxu0 %v19165_v16 }
 0x1fb   : > { %4293 = vmatprep.mubr.bf16.mxu0 %v19168_v34 }
 0x202   : > { %4294 = vmatmul.mubr.bf16.gmra.mrb[68].mxu0 %v19173_v45  ;;  %v16708_v45 = vld [vmem:[#allocation2 + $0x30] ss:$8 sps:$4 sm:$0xfe]  }
 0x203   : > { %4336 = vmatprep.mubr.bf16.mxu0 %v2987_v26  ;;  %v2672_v26 = vld [vmem:[#allocation2 + $0x58] sm:$0x11]  ;;  %v2994_v42 = vrot.slane %v16708_v45, 1 }
 0x204   : > { %v14195_v12 = vcombine.high %v2672_v26, %v2672_v26  ;;  %v14194_v63 = vcombine.low %v2672_v26, %v2672_v26  ;;  %v16734_v45 = vld [vmem:[#allocation10 + $0x350] ss:$8 sps:$4 sm:$0xff]   ;;  %v16724_v26 = vld [vmem:[#allocation2 + $0x60] ss:$8 sps:$4 sm:$0xfe]  }
 0x206   : > { %v3004_v43 = vrot.slane %v14195_v12, 1  ;;  %v3009_v12 = vrot.slane %v16721_v33, 1 }
 0x208   : > { %v19194_v19 = vsel %vm2981_vm1, %v3003_v39, %v3004_v43  ;;  %v16755_v39 = vld [vmem:[#allocation10 + $0x374] ss:$8 sps:$4 sm:$0xff]  }
 0x209   : > { %21276 = vst [vmem:[#allocation63_spill] sm:$0xff] %v19194_v19 }
 0x20a   : > { %4337 = vmatmul.mubr.bf16.vlgmr.msra.gmra.mrb[0].mxu0 %v2984_v8  ;;  %v2995_v8 = vrot.slane %v14190_v53, 1  ;;  %v2678_v53 = vld [vmem:[#allocation2 + $0x88] sm:$0x11] }
 0x20b   : > { %5276 = vmatpush1.bf16.msra.mxu0 %v16697_v59  ;;  %4346 = vmatprep.mubr.bf16.mxu0 %v19179_v35  ;;  %v16718_v59 = vld [vmem:[#allocation10 + $0x330] ss:$8 sps:$4 sm:$0xff]  }
 0x20c   : > { %5277 = vmatprep.subr.bf16.mxu0 %v16704_v22  ;;  %v16728_v22 = vld [vmem:[#allocation10 + $0x344] ss:$8 sps:$4 sm:$0xff]   ;;  %v2692_v35 = vld [vmem:[#allocation2 + $0xf8] sm:$0xff] }
 0x20f   : > { %5278 = vmatpush1.bf16.msra.mxu0 %v16702_v10  ;;  %v16716_v10 = vld [vmem:[#allocation2 + $0x48] ss:$8 sps:$4 sm:$0xfe]  }
 0x210   : > { %5279 = vmatprep.subr.bf16.mxu0 %v16712_v54  ;;  %v19191_v54 = vsel %vm2981_vm1, %v2994_v42, %v2995_v8  ;;  %v3000_v24 = vrot.slane %v16716_v10, 1  ;;  %v16729_v8 = vld [vmem:[#allocation2 + $0x7c] ss:$8 sps:$4 sm:$0xfe]   ;;  %v16753_v10 = vld [vmem:[#allocation10 + $0x370] ss:$8 sps:$4 sm:$0xff]  }
 0x211   : > { %21275 = vst [vmem:[#allocation62_spill] sm:$0xff] %v19191_v54 }
 0x212   : > { %4347 = vmatmul.mubr.bf16.gmra.mrb[4].mxu0 %v19183_v57  ;;  %v2690_v57 = vld [vmem:[#allocation2 + $0xe8] sm:$0x11] }
 0x213   : > { %4356 = vmatprep.mubr.bf16.mxu0 %v19186_v30  ;;  %5280 = vmatpush1.bf16.msra.mxu0 %v16710_v18  ;;  %v14199_v30 = vcombine.high %v2675_v15, %v2675_v15  ;;  %v16744_v18 = vld [vmem:[#allocation10 + $0x364] ss:$8 sps:$4 sm:$0xff]  }
 0x214   : > { %5281 = vmatprep.subr.bf16.mxu0 %v16720_v11  ;;  %v3001_v11 = vrot.slane %v14194_v63, 1  ;;  %v3015_v63 = vrot.slane %v16729_v8, 1 }
 0x215   : > { %v3010_v42 = vrot.slane %v14199_v30, 1  ;;  %v3006_v30 = vrot.slane %v16724_v26, 1  ;;  %v16769_v26 = vld [vmem:[#allocation10 + $0x390] ss:$8 sps:$4 sm:$0xff]  }
 0x216   : > { %v19199_v43 = vsel %vm2981_vm1, %v3000_v24, %v3001_v11  ;;  %v16737_v11 = vld [vmem:[#allocation2 + $0x94] ss:$8 sps:$4 sm:$0xfe]  }
 0x217   : > { %5282 = vmatpush1.bf16.msra.mxu0 %v16718_v59  ;;  %v16742_v59 = vld [vmem:[#allocation10 + $0x360] ss:$8 sps:$4 sm:$0xff]   ;;  %21277 = vst [vmem:[#allocation64_spill] sm:$0xff] %v19199_v43 }
 0x218   : > { %5283 = vmatprep.subr.bf16.mxu0 %v16728_v22  ;;  %v14198_v22 = vcombine.low %v2675_v15, %v2675_v15  ;;  %v16732_v15 = vld [vmem:[#allocation2 + $0x78] ss:$8 sps:$4 sm:$0xfe]  }
 0x21a   : > { %4357 = vmatmul.mubr.bf16.gmra.mrb[8].mxu0 %v19191_v54  ;;  %v19202_v54 = vsel %vm2981_vm1, %v3009_v12, %v3010_v42  ;;  %v3007_v33 = vrot.slane %v14198_v22, 1  ;;  %v16771_v12 = vld [vmem:[#allocation10 + $0x394] ss:$8 sps:$4 sm:$0xff]   ;;  %v3021_v22 = vrot.slane %v16737_v11, 1 }
 0x21b   : > { %4366 = vmatprep.mubr.bf16.mxu0 %v19194_v19  ;;  %5284 = vmatpush1.bf16.msra.mxu0 %v16726_v55  ;;  %21278 = vst [vmem:[#allocation65_spill] sm:$0xff] %v19202_v54  ;;  %v14203_v19 = vcombine.high %v2678_v53, %v2678_v53  ;;  %v16764_v55 = vld [vmem:[#allocation10 + $0x384] ss:$8 sps:$4 sm:$0xff]  }
 0x21c   : > { %5285 = vmatprep.subr.bf16.mxu0 %v16736_v21  ;;  %v2681_v21 = vld [vmem:[#allocation2 + $0xa0] sm:$0x11]  ;;  %v19207_v42 = vsel %vm2981_vm1, %v3006_v30, %v3007_v33  ;;  %v16745_v33 = vld [vmem:[#allocation2 + $0xac] ss:$8 sps:$4 sm:$0xfe]  }
 0x21d   : > { %v3016_v24 = vrot.slane %v14203_v19, 1  ;;  %21279 = vst [vmem:[#allocation66_spill] sm:$0xff] %v19207_v42  ;;  %v3012_v19 = vrot.slane %v16732_v15, 1  ;;  %v16783_v15 = vld [vmem:[#allocation10 + $0x3b0] ss:$8 sps:$4 sm:$0xff]  }
 0x21f   : > { %5286 = vmatpush1.bf16.msra.mxu0 %v16734_v45  ;;  %v16762_v45 = vld [vmem:[#allocation10 + $0x380] ss:$8 sps:$4 sm:$0xff]  }
 0x220   : > { %5287 = vmatprep.subr.bf16.mxu0 %v16744_v18  ;;  %v14202_v18 = vcombine.low %v2678_v53, %v2678_v53  ;;  %v16740_v53 = vld [vmem:[#allocation2 + $0x90] ss:$8 sps:$4 sm:$0xfe]  }
 0x222   : > { %4367 = vmatmul.mubr.bf16.gmra.mrb[12].mxu0 %v19199_v43  ;;  %v19210_v43 = vsel %vm2981_vm1, %v3015_v63, %v3016_v24  ;;  %v3013_v8 = vrot.slane %v14202_v18, 1  ;;  %v16785_v63 = vld [vmem:[#allocation10 + $0x3b4] ss:$8 sps:$4 sm:$0xff]   ;;  %v3027_v18 = vrot.slane %v16745_v33, 1 }
 0x223   : > { %4376 = vmatprep.mubr.bf16.mxu0 %v19202_v54  ;;  %5288 = vmatpush1.bf16.msra.mxu0 %v16742_v59  ;;  %21280 = vst [vmem:[#allocation67_spill] sm:$0xff] %v19210_v43  ;;  %v14207_v54 = vcombine.high %v2681_v21, %v2681_v21  ;;  %v16778_v59 = vld [vmem:[#allocation10 + $0x3a4] ss:$8 sps:$4 sm:$0xff]  }
 0x224   : > { %5289 = vmatprep.subr.bf16.mxu0 %v16755_v39  ;;  %v2684_v39 = vld [vmem:[#allocation2 + $0xb8] sm:$0x11]  ;;  %v19215_v24 = vsel %vm2981_vm1, %v3012_v19, %v3013_v8  ;;  %v16750_v8 = vld [vmem:[#allocation2 + $0xc4] ss:$8 sps:$4 sm:$0xfe]  }
 0x225   : > { %v3022_v30 = vrot.slane %v14207_v54, 1  ;;  %21281 = vst [vmem:[#allocation68_spill] sm:$0xff] %v19215_v24  ;;  %v3018_v54 = vrot.slane %v16740_v53, 1  ;;  %v16795_v53 = vld [vmem:[#allocation10 + $0x3d0] ss:$8 sps:$4 sm:$0xff]  }
 0x227   : > { %5290 = vmatpush1.bf16.msra.mxu0 %v16753_v10  ;;  %v16776_v10 = vld [vmem:[#allocation10 + $0x3a0] ss:$8 sps:$4 sm:$0xff]  }
 0x228   : > { %5291 = vmatprep.subr.bf16.mxu0 %v16764_v55  ;;  %v14206_v55 = vcombine.low %v2681_v21, %v2681_v21  ;;  %v16748_v21 = vld [vmem:[#allocation2 + $0xa8] ss:$8 sps:$4 sm:$0xfe]  }
 0x22a   : > { %4377 = vmatmul.mubr.bf16.gmra.mrb[16].mxu0 %v19207_v42  ;;  %v19218_v42 = vsel %vm2981_vm1, %v3021_v22, %v3022_v30  ;;  %v3019_v11 = vrot.slane %v14206_v55, 1  ;;  %v16797_v22 = vld [vmem:[#allocation10 + $0x3d4] ss:$8 sps:$4 sm:$0xff]   ;;  %v2689_v55 = vld [vmem:[#allocation2 + $0xe0] sm:$0xff] }
 0x22b   : > { %4386 = vmatprep.mubr.bf16.mxu0 %v19210_v43  ;;  %5292 = vmatpush1.bf16.msra.mxu0 %v16762_v45  ;;  %21282 = vst [vmem:[#allocation69_spill] sm:$0xff] %v19218_v42  ;;  %v14211_v43 = vcombine.high %v2684_v39, %v2684_v39  ;;  %v16792_v45 = vld [vmem:[#allocation10 + $0x3c4] ss:$8 sps:$4 sm:$0xff]  }
 0x22c   : > { %5293 = vmatprep.subr.bf16.mxu0 %v16771_v12  ;;  %v2687_v12 = vld [vmem:[#allocation2 + $0xd0] sm:$0x11]  ;;  %v19223_v30 = vsel %vm2981_vm1, %v3018_v54, %v3019_v11  ;;  %v3033_v54 = vrot.slane %v16750_v8, 1  ;;  %v16800_v11 = vld [vmem:[#allocation10 + $0x3e0] ss:$8 sps:$4 sm:$0xff]  }
 0x22d   : > { %v3028_v19 = vrot.slane %v14211_v43, 1  ;;  %21283 = vst [vmem:[#allocation70_spill] sm:$0xff] %v19223_v30  ;;  %v3024_v43 = vrot.slane %v16748_v21, 1  ;;  %v16812_v8 = vld [vmem:[#allocation10 + $0x404] ss:$8 sps:$4 sm:$0xff]  }
 0x22f   : > { %5294 = vmatpush1.bf16.msra.mxu0 %v16769_v26  ;;  %v16790_v26 = vld [vmem:[#allocation10 + $0x3c0] ss:$8 sps:$4 sm:$0xff]  }
 0x230   : > { %5295 = vmatprep.subr.bf16.mxu0 %v16778_v59  ;;  %v14210_v59 = vcombine.low %v2684_v39, %v2684_v39 }
 0x232   : > { %4387 = vmatmul.mubr.bf16.gmra.mrb[20].mxu0 %v19215_v24  ;;  %v19226_v24 = vsel %vm2981_vm1, %v3027_v18, %v3028_v19  ;;  %v3025_v33 = vrot.slane %v14210_v59, 1  ;;  %v16808_v18 = vld [vmem:[#allocation10 + $0x3f4] ss:$8 sps:$4 sm:$0xff]   ;;  %v14214_v19 = vcombine.low %v2687_v12, %v2687_v12  ;;  %v14219_v59 = vcombine.high %v2690_v57, %v2690_v57 }
 0x233   : > { %4396 = vmatprep.mubr.bf16.mxu0 %v19218_v42  ;;  %5296 = vmatpush1.bf16.msra.mxu0 %v16776_v10  ;;  %21284 = vst [vmem:[#allocation71_spill] sm:$0xff] %v19226_v24  ;;  %v14215_v42 = vcombine.high %v2687_v12, %v2687_v12  ;;  %v16802_v10 = vld [vmem:[#allocation10 + $0x3e4] ss:$8 sps:$4 sm:$0xff]  }
 0x234   : > { %5297 = vmatprep.subr.bf16.mxu0 %v16785_v63  ;;  %v2688_v63 = vld [vmem:[#allocation2 + $0xd8] sm:$0xee] }
 0x235   : > { %v3034_v39 = vrot.slane %v14215_v42, 1  ;;  %v14217_v21 = vcombine.high %v2688_v63, %v2689_v55 }
 0x237   : > { %5298 = vmatpush1.bf16.msra.mxu0 %v16783_v15  ;;  %v16756_v15 = vld [vmem:[#allocation2 + $0xc0] ss:$8 sps:$4 sm:$0xfe]   ;;  %v3039_v12 = vrot.slane %v14217_v21, 1  ;;  %v2696_v21 = vld [vmem:[#allocation2 + $0x118] sm:$0x11] }
 0x238   : > { %5299 = vmatprep.subr.bf16.mxu0 %v16792_v45  ;;  %v19231_v45 = vsel %vm2981_vm1, %v3024_v43, %v3025_v33  ;;  %v3030_v42 = vrot.slane %v16756_v15, 1  ;;  %v2693_v43 = vld [vmem:[#allocation2 + $0x100] sm:$0x11] }
 0x239   : > { %21285 = vst [vmem:[#allocation72_spill] sm:$0xff] %v19231_v45 }
 0x23a   : > { %4397 = vmatmul.mubr.bf16.gmra.mrb[24].mxu0 %v19223_v30  ;;  %v19234_v30 = vsel %vm2981_vm1, %v3033_v54, %v3034_v39  ;;  %v14216_v54 = vcombine.low %v2688_v63, %v2689_v55 }
 0x23b   : > { %4406 = vmatprep.mubr.bf16.mxu0 %v19226_v24  ;;  %5300 = vmatpush1.bf16.msra.mxu0 %v16790_v26  ;;  %21286 = vst [vmem:[#allocation73_spill] sm:$0xff] %v19234_v30  ;;  %v16806_v26 = vld [vmem:[#allocation10 + $0x3f0] ss:$8 sps:$4 sm:$0xff]  }
 0x23c   : > { %5301 = vmatprep.subr.bf16.mxu0 %v16797_v22  ;;  %v3031_v22 = vrot.slane %v14214_v19, 1  ;;  %v2691_v24 = vld [vmem:[#allocation2 + $0xf0] sm:$0xee]  ;;  %v3036_v15 = vrot.slane %v14216_v54, 1  ;;  %v2694_v19 = vld [vmem:[#allocation2 + $0x108] sm:$0xee] }
 0x23d   : > { %v14220_v63 = vcombine.low %v2691_v24, %v2692_v35 }
 0x23e   : > { %v19239_v33 = vsel %vm2981_vm1, %v3030_v42, %v3031_v22 }
 0x23f   : > { %5302 = vmatpush1.bf16.msra.mxu0 %v16795_v53  ;;  %v3040_v53 = vrot.slane %v14219_v59, 1  ;;  %21287 = vst [vmem:[#allocation74_spill] sm:$0xff] %v19239_v33  ;;  %v3042_v54 = vrot.slane %v14220_v63, 1 }
 0x240   : > { %5303 = vmatprep.subr.bf16.mxu0 %v16802_v10  ;;  %v14218_v10 = vcombine.low %v2690_v57, %v2690_v57 }
 0x241   : > { %v19242_v39 = vsel %vm2981_vm1, %v3039_v12, %v3040_v53  ;;  %v14227_v12 = vcombine.high %v2696_v21, %v2696_v21  ;;  %v1518_v53 = vld [vmem:[#allocation2 + $0xd8] sm:$0xff] }
 0x242   : > { %4407 = vmatmul.mubr.bf16.gmra.mrb[28].mxu0 %v19231_v45  ;;  %21288 = vst [vmem:[#allocation75_spill] sm:$0xff] %v19242_v39  ;;  %v14221_v45 = vcombine.high %v2691_v24, %v2692_v35  ;;  %v2697_v24 = vld [vmem:[#allocation2 + $0x120] sm:$0xee] }
 0x243   : > { %4416 = vmatprep.mubr.bf16.mxu0 %v19234_v30  ;;  %5304 = vmatpush1.bf16.msra.mxu0 %v16800_v11  ;;  %v14223_v30 = vcombine.high %v2693_v43, %v2693_v43  ;;  %v3037_v11 = vrot.slane %v14218_v10, 1 }
 0x244   : > { %5305 = vmatprep.subr.bf16.mxu0 %v16808_v18  ;;  %v2695_v18 = vld [vmem:[#allocation2 + $0x110] sm:$0xff]  ;;  %v3045_v59 = vrot.slane %v14221_v45, 1  ;;  %v3052_v45 = vrot.slane %v14227_v12, 1 }
 0x245   : > { %v3046_v42 = vrot.slane %v14223_v30, 1  ;;  %v19247_v57 = vsel %vm2981_vm1, %v3036_v15, %v3037_v11  ;;  %v19256_v15 = vcombine.low %v1518_v53, %v2689_v55  ;;  %v2699_v11 = vld [vmem:[#allocation2 + $0x130] sm:$0x11] }
 0x246   : > { %21289 = vst [vmem:[#allocation76_spill] sm:$0xff] %v19247_v57 }
 0x247   : > { %5306 = vmatpush1.bf16.msra.mxu0 %v16806_v26  ;;  %v14222_v26 = vcombine.low %v2693_v43, %v2693_v43  ;;  %v19250_v22 = vsel %vm2981_vm1, %v3045_v59, %v3046_v42  ;;  %v2698_v43 = vld [vmem:[#allocation2 + $0x128] sm:$0xff]  ;;  %v14224_v42 = vcombine.low %v2694_v19, %v2695_v18 }
 0x248   : > { %5488 = vmatprep.subr.bf16.mxu0 %v16812_v8  ;;  %21290 = vst [vmem:[#allocation77_spill] sm:$0xff] %v19250_v22  ;;  %v14225_v8 = vcombine.high %v2694_v19, %v2695_v18  ;;  %v2700_v19 = vld [vmem:[#allocation2 + $0x138] sm:$0xee] }
 0x249   : > { %v3043_v10 = vrot.slane %v14222_v26, 1  ;;  %v14229_v26 = vcombine.high %v2697_v24, %v2698_v43  ;;  %v3048_v12 = vrot.slane %v14224_v42, 1 }
 0x24a   : > { %4417 = vmatmul.mubr.bf16.gmra.mrb[32].mxu0 %v19239_v33  ;;  %v3051_v30 = vrot.slane %v14225_v8, 1  ;;  %v14231_v8 = vcombine.high %v2699_v11, %v2699_v11 }
 0x24b   : > { %4426 = vmatprep.mubr.bf16.mxu0 %v19242_v39  ;;  %v19254_v39 = vcombine.high %v1518_v53, %v2689_v55  ;;  %v19261_v59 = vsel %vm2981_vm1, %v3042_v54, %v3043_v10  ;;  %v1520_v55 = vld [vmem:[#allocation2 + $0xf0] sm:$0xff]  ;;  %v3057_v33 = vrot.slane %v14229_v26, 1  ;;  %v2702_v10 = vld [vmem:[#allocation2 + $0x148] sm:$0x11] }
 0x24c   : > { %21291 = vst [vmem:[#allocation78_spill] sm:$0xff] %v19261_v59  ;;  %v19264_v63 = vsel %vm2981_vm1, %v3051_v30, %v3052_v45  ;;  %v3058_v34 = vrot.slane %v14231_v8, 1  ;;  %v19270_v54 = vcombine.low %v1520_v55, %v2692_v35  ;;  %v14228_v45 = vcombine.low %v2697_v24, %v2698_v43  ;;  %v2703_v24 = vld [vmem:[#allocation2 + $0x150] sm:$0xee] }
 0x24d   : > { %4000 = vmatprep.mubr.bf16.mxu1 %v19254_v39  ;;  %21292 = vst [vmem:[#allocation79_spill] sm:$0xff] %v19264_v63  ;;  %v14235_v26 = vcombine.high %v2702_v10, %v2702_v10 }
 0x24e   : > { %4001 = vmatmul.mubr.bf16.vlgmr.msra.gmra.mrb[0].mxu1 %v19256_v15  ;;  %v3054_v8 = vrot.slane %v14228_v45, 1 }
 0x24f   : > { %v3064_v28 = vrot.slane %v14235_v26, 1 }
 0x252   : > { %4427 = vmatmul.mubr.bf16.gmra.mrb[36].mxu0 %v19247_v57  ;;  %v19268_v57 = vcombine.high %v1520_v55, %v2692_v35  ;;  %v1522_v35 = vld [vmem:[#allocation2 + $0x108] sm:$0xff] }
 0x253   : > { %4436 = vmatprep.mubr.bf16.mxu0 %v19250_v22  ;;  %v14226_v22 = vcombine.low %v2696_v21, %v2696_v21  ;;  %v2701_v21 = vld [vmem:[#allocation2 + $0x140] sm:$0xff] }
 0x254   : > { %4010 = vmatprep.mubr.bf16.mxu1 %v19268_v57  ;;  %v14233_v42 = vcombine.high %v2700_v19, %v2701_v21 }
 0x255   : > { %v3049_v53 = vrot.slane %v14226_v22, 1  ;;  %v19278_v22 = vsel %vm2981_vm1, %v3057_v33, %v3058_v34  ;;  %v14232_v33 = vcombine.low %v2700_v19, %v2701_v21  ;;  %v2706_v19 = vld [vmem:[#allocation2 + $0x168] sm:$0xee] }
 0x256   : > { %4011 = vmatmul.mubr.bf16.gmra.mrb[4].mxu1 %v19270_v54  ;;  %21294 = vst [vmem:[#allocation81_spill] sm:$0xff] %v19278_v22  ;;  %v3063_v16 = vrot.slane %v14233_v42, 1 }
 0x257   : > { %v19275_v30 = vsel %vm2981_vm1, %v3048_v12, %v3049_v53  ;;  %v19284_v12 = vcombine.low %v1522_v35, %v2695_v18  ;;  %v14234_v53 = vcombine.low %v2702_v10, %v2702_v10  ;;  %v3060_v26 = vrot.slane %v14232_v33, 1  ;;  %v2708_v10 = vld [vmem:[#allocation2 + $0x178] sm:$0x11] }
 0x258   : > { %21293 = vst [vmem:[#allocation80_spill] sm:$0xff] %v19275_v30  ;;  %v19292_v45 = vsel %vm2981_vm1, %v3063_v16, %v3064_v28 }
 0x259   : > { %21296 = vst [vmem:[#allocation83_spill] sm:$0xff] %v19292_v45 }
 0x25a   : > { %4437 = vmatmul.mubr.bf16.gmra.mrb[40].mxu0 %v19261_v59  ;;  %v19282_v59 = vcombine.high %v1522_v35, %v2695_v18  ;;  %v1524_v18 = vld [vmem:[#allocation2 + $0x120] sm:$0xff]  ;;  %v3061_v35 = vrot.slane %v14234_v53, 1  ;;  %v17650_v53 = vld [vmem:[#allocation2 + $0x170] sm:$0xff] }
 0x25b   : > { %4446 = vmatprep.mubr.bf16.mxu0 %v19264_v63  ;;  %v14230_v63 = vcombine.low %v2699_v11, %v2699_v11  ;;  %v2705_v11 = vld [vmem:[#allocation2 + $0x160] sm:$0x11] }
 0x25c   : > { %4020 = vmatprep.mubr.bf16.mxu1 %v19282_v59  ;;  %v14239_v42 = vcombine.high %v2705_v11, %v2705_v11  ;;  %v19303_v28 = vsel %vm2981_vm1, %v3060_v26, %v3061_v35 }
 0x25d   : > { %v3055_v55 = vrot.slane %v14230_v63, 1  ;;  %v17649_v63 = vld [vmem:[#allocation2 + $0x158] sm:$0xff]  ;;  %21297 = vst [vmem:[#allocation84_spill] sm:$0xff] %v19303_v28 }
 0x25e   : > { %4021 = vmatmul.mubr.bf16.gmra.mrb[8].mxu1 %v19284_v12  ;;  %v14236_v16 = vcombine.low %v2703_v24, %v17649_v63 }
 0x25f   : > { %v19289_v34 = vsel %vm2981_vm1, %v3054_v8, %v3055_v55  ;;  %v3070_v8 = vrot.slane %v14239_v42, 1  ;;  %v19298_v55 = vcombine.low %v1524_v18, %v2698_v43 }
 0x260   : > { %21295 = vst [vmem:[#allocation82_spill] sm:$0xff] %v19289_v34  ;;  %v3066_v42 = vrot.slane %v14236_v16, 1 }
 0x262   : > { %4447 = vmatmul.mubr.bf16.gmra.mrb[44].mxu0 %v19275_v30  ;;  %v19296_v30 = vcombine.high %v1524_v18, %v2698_v43  ;;  %v1526_v43 = vld [vmem:[#allocation2 + $0x138] sm:$0xff] }
 0x263   : > { %4456 = vmatprep.mubr.bf16.mxu0 %v19278_v22  ;;  %v14237_v22 = vcombine.high %v2703_v24, %v17649_v63  ;;  %v19310_v41 = vcombine.high %v1526_v43, %v2701_v21  ;;  %v19312_v35 = vcombine.low %v1526_v43, %v2701_v21  ;;  %v2709_v24 = vld [vmem:[#allocation2 + $0x180] sm:$0xee]  ;;  %v14240_v63 = vcombine.low %v2706_v19, %v17650_v53  ;;  %v19323_v21 = vld [vmem:[#allocation2 + $0x154] ss:$8 sps:$4 sm:$0xff]  }
 0x264   : > { %4030 = vmatprep.mubr.bf16.mxu1 %v19296_v30 }
 0x265   : > { %v3069_v49 = vrot.slane %v14237_v22, 1  ;;  %v14243_v22 = vcombine.high %v2708_v10, %v2708_v10 }
 0x266   : > { %4031 = vmatmul.mubr.bf16.gmra.mrb[12].mxu1 %v19298_v55 }
 0x267   : > { %v19306_v33 = vsel %vm2981_vm1, %v3069_v49, %v3070_v8  ;;  %v3076_v26 = vrot.slane %v14243_v22, 1  ;;  %4040 = vmatprep.mubr.bf16.mxu1 %v19310_v41  ;;  %v14242_v8 = vcombine.low %v2708_v10, %v2708_v10  ;;  %v3072_v22 = vrot.slane %v14240_v63, 1  ;;  %v17652_v63 = vld [vmem:[#allocation2 + $0x1a0] sm:$0xff] }
 0x268   : > { %21298 = vst [vmem:[#allocation85_spill] sm:$0xff] %v19306_v33 }
 0x269   : > { %v3073_v43 = vrot.slane %v14242_v8, 1 }
 0x26a   : > { %4457 = vmatmul.mubr.bf16.gmra.mrb[48].mxu0 %v19289_v34  ;;  %v14238_v34 = vcombine.low %v2705_v11, %v2705_v11  ;;  %v2711_v11 = vld [vmem:[#allocation2 + $0x190] sm:$0x11] }
 0x26b   : > { %4466 = vmatprep.mubr.bf16.mxu0 %v19292_v45  ;;  %v14241_v45 = vcombine.high %v2706_v19, %v17650_v53  ;;  %v2712_v19 = vld [vmem:[#allocation2 + $0x198] sm:$0xee]  ;;  %v19331_v10 = vsel %vm2981_vm1, %v3072_v22, %v3073_v43  ;;  %v19340_v22 = vld [vmem:[#allocation2 + $0x168] ss:$8 sps:$4 sm:$0xff]  }
 0x26c   : > { %v3067_v18 = vrot.slane %v14238_v34, 1  ;;  %v17651_v34 = vld [vmem:[#allocation2 + $0x188] sm:$0xff]  ;;  %21301 = vst [vmem:[#allocation88_spill] sm:$0xff] %v19331_v10  ;;  %v14249_v8 = vcombine.high %v2712_v19, %v17652_v63 }
 0x26d   : > { %v3075_v51 = vrot.slane %v14241_v45, 1  ;;  %v14247_v45 = vcombine.high %v2711_v11, %v2711_v11  ;;  %v14244_v53 = vcombine.low %v2709_v24, %v17651_v34 }
 0x26e   : > { %4041 = vmatmul.mubr.bf16.gmra.mrb[16].mxu1 %v19312_v35  ;;  %v19317_v49 = vsel %vm2981_vm1, %v3066_v42, %v3067_v18  ;;  %v19326_v42 = vld [vmem:[#allocation2 + $0x150] ss:$8 sps:$4 sm:$0xff]   ;;  %v14246_v18 = vcombine.low %v2711_v11, %v2711_v11  ;;  %v3087_v2 = vrot.slane %v14249_v8, 1 }
 0x26f   : > { %21299 = vst [vmem:[#allocation86_spill] sm:$0xff] %v19317_v49  ;;  %v19320_v16 = vsel %vm2981_vm1, %v3075_v51, %v3076_v26  ;;  %v3082_v6 = vrot.slane %v14247_v45, 1  ;;  %4050 = vmatprep.mubr.bf16.mxu1 %v19323_v21  ;;  %v2714_v51 = vld [vmem:[#allocation2 + $0x1a8] sm:$0x11]  ;;  %v16813_v8 = vld [vmem:[#allocation10 + $0x410] ss:$8 sps:$4 sm:$0xff]  }
 0x270   : > { %21300 = vst [vmem:[#allocation87_spill] sm:$0xff] %v19320_v16  ;;  %v19337_v45 = vld [vmem:[#allocation2 + $0x16c] ss:$8 sps:$4 sm:$0xff]  }
 0x272   : > { %4467 = vmatmul.mubr.bf16.gmra.mrb[52].mxu0 %v19303_v28 }
 0x273   : > { %4476 = vmatprep.mubr.bf16.mxu0 %v19306_v33  ;;  %v14245_v33 = vcombine.high %v2709_v24, %v17651_v34  ;;  %v14250_v24 = vcombine.low %v2714_v51, %v2714_v51  ;;  %v19351_v34 = vld [vmem:[#allocation2 + $0x184] ss:$8 sps:$4 sm:$0xff]  }
 0x274   : > { %21303 = vst [vmem:[#allocation90_spill] sm:$0xff] %v19351_v34 }
 0x275   : > { %v3081_v28 = vrot.slane %v14245_v33, 1  ;;  %v14251_v33 = vcombine.high %v2714_v51, %v2714_v51  ;;  %v16810_v51 = vld [vmem:[#allocation10 + $0x400] ss:$8 sps:$4 sm:$0xff]  }
 0x276   : > { %4051 = vmatmul.mubr.bf16.gmra.mrb[20].mxu1 %v19326_v42 }
 0x277   : > { %v19334_v26 = vsel %vm2981_vm1, %v3081_v28, %v3082_v6  ;;  %v3088_v62 = vrot.slane %v14251_v33, 1  ;;  %4060 = vmatprep.mubr.bf16.mxu1 %v19337_v45  ;;  %v14248_v28 = vcombine.low %v2712_v19, %v17652_v63  ;;  %v16815_v63 = vld [vmem:[#allocation10 + $0x414] ss:$8 sps:$4 sm:$0xff]  }
 0x278   : > { %21302 = vst [vmem:[#allocation89_spill] sm:$0xff] %v19334_v26 }
 0x279   : > { %v19348_v11 = vsel %vm2981_vm1, %v3087_v2, %v3088_v62  ;;  %v3084_v43 = vrot.slane %v14248_v28, 1  ;;  %v19362_v62 = vld [vmem:[#allocation2 + $0x19c] ss:$8 sps:$4 sm:$0xff]   ;;  %v19365_v2 = vld [vmem:[#allocation2 + $0x198] ss:$8 sps:$4 sm:$0xff]  }
 0x27a   : > { %4477 = vmatmul.mubr.bf16.gmra.mrb[56].mxu0 %v19317_v49  ;;  %v3079_v49 = vrot.slane %v14246_v18, 1  ;;  %v19354_v18 = vld [vmem:[#allocation2 + $0x180] ss:$8 sps:$4 sm:$0xff]   ;;  %21305 = vst [vmem:[#allocation92_spill] sm:$0xff] %v19362_v62  ;;  %21306 = vst [vmem:[#allocation93_spill] sm:$0xff] %v19365_v2 }
 0x27b   : > { %4486 = vmatprep.mubr.bf16.mxu0 %v19320_v16  ;;  %v3078_v16 = vrot.slane %v14244_v53, 1  ;;  %v3085_v53 = vrot.slane %v14250_v24, 1  ;;  %21304 = vst [vmem:[#allocation91_spill] sm:$0xff] %v19354_v18  ;;  %v16816_v24 = vld [vmem:[#allocation10 + $0x420] ss:$8 sps:$4 sm:$0xff]  }
 0x27d   : > { %v19345_v6 = vsel %vm2981_vm1, %v3078_v16, %v3079_v49  ;;  %v19359_v49 = vsel %vm2981_vm1, %v3084_v43, %v3085_v53  ;;  %v555_v16 = vld [vmem:[#allocation2 + $0x1b0] sm:$0x11]  ;;  %v16824_v53 = vld [vmem:[#allocation10 + $0x444] ss:$8 sps:$4 sm:$0xff]  }
 0x27e   : > { %4061 = vmatmul.mubr.bf16.gmra.mrb[24].mxu1 %v19340_v22  ;;  %v556_v19 = vsel %vm18408_vm8, 0, %v555_v16  ;;  %v16821_v43 = vld [vmem:[#allocation10 + $0x434] ss:$8 sps:$4 sm:$0xff]   ;;  %v16822_v16 = vld [vmem:[#allocation10 + $0x440] ss:$8 sps:$4 sm:$0xff]  }
 0x27f   : > { %4070 = vmatprep.mubr.bf16.mxu1 %v19351_v34  ;;  %557 = vst [vmem:[#allocation2 + $0x1b0] sm:$0x11] %v556_v19  ;;  %v16827_v19 = vld [vmem:[#allocation10 + $0x454] ss:$8 sps:$4 sm:$0xff]  }
 0x282   : > { %4487 = vmatmul.mubr.bf16.gmra.mrb[60].mxu0 %v19331_v10 }
 0x283   : > { %4496 = vmatprep.mubr.bf16.mxu0 %v19334_v26 }
 0x286   : > { %4071 = vmatmul.mubr.bf16.gmra.mrb[28].mxu1 %v19354_v18  ;;  %v738_v33 = vld [vmem:[#allocation2 + $0x1b0] sm:$0xff] }
 0x287   : > { %4080 = vmatprep.mubr.bf16.mxu1 %v19362_v62  ;;  %v19375_v28 = vsel %vm18414_vm13, 0, %v738_v33  ;;  %v16828_v33 = vld [vmem:[#allocation10 + $0x460] ss:$8 sps:$4 sm:$0xff]  }
 0x288   : > { %740 = vst [vmem:[#allocation2 + $0x1b0] sm:$0xff] %v19375_v28 }
 0x28a   : > { %4497 = vmatmul.mubr.bf16.gmra.mrb[64].mxu0 %v19345_v6 }
 0x28b   : > { %4506 = vmatprep.mubr.bf16.mxu0 %v19348_v11 }
 0x28e   : > { %4081 = vmatmul.mubr.bf16.gmra.mrb[32].mxu1 %v19365_v2 }
 0x292   : > { %4507 = vmatmul.mubr.bf16.gmra.mrb[68].mxu0 %v19359_v49 }
 0x293   : > { %5307 = vmatprep.mubr.bf16.mxu0 %v18567_v25  ;;  %v16818_v25 = vld [vmem:[#allocation10 + $0x424] ss:$8 sps:$4 sm:$0xff]  }
 0x29a   : > { %5308 = vmatmul.mubr.bf16.vlgmr.msra.gmra.mrb[0].mxu0 %v18592_v47  ;;  %v16819_v47 = vld [vmem:[#allocation10 + $0x430] ss:$8 sps:$4 sm:$0xff]  }
 0x29b   : > { %5489 = vmatpush1.bf16.msra.mxu0 %v16810_v51  ;;  %5317 = vmatprep.mubr.bf16.mxu0 %v18600_v58  ;;  %v21307_v51 = vld [vmem:[#allocation31_spill] sm:$0xff] }
 0x29c   : > { %5490 = vmatprep.subr.bf16.mxu0 %v16815_v63  ;;  %v21308_v63 = vld [vmem:[#allocation32_spill] sm:$0xff] }
 0x29f   : > { %5491 = vmatpush1.bf16.msra.mxu0 %v16813_v8  ;;  %v16825_v8 = vld [vmem:[#allocation10 + $0x450] ss:$8 sps:$4 sm:$0xff]  }
 0x2a0   : > { %5492 = vmatprep.subr.bf16.mxu0 %v16818_v25  ;;  %v16830_v25 = vld [vmem:[#allocation10 + $0x464] ss:$8 sps:$4 sm:$0xff]  }
 0x2a2   : > { %5318 = vmatmul.mubr.bf16.gmra.mrb[4].mxu0 %v18619_v14 }
 0x2a3   : > { %5327 = vmatprep.mubr.bf16.mxu0 %v18623_v17  ;;  %5493 = vmatpush1.bf16.msra.mxu0 %v16816_v24  ;;  %v16834_v17 = vld [vmem:[#allocation10 + $0x474] ss:$8 sps:$4 sm:$0xff]   ;;  %v21309_v24 = vld [vmem:[#allocation33_spill] sm:$0xff] }
 0x2a4   : > { %5494 = vmatprep.subr.bf16.mxu0 %v16821_v43  ;;  %v21310_v43 = vld [vmem:[#allocation34_spill] sm:$0xff] }
 0x2a7   : > { %5495 = vmatpush1.bf16.msra.mxu0 %v16819_v47  ;;  %v16832_v47 = vld [vmem:[#allocation10 + $0x470] ss:$8 sps:$4 sm:$0xff]  }
 0x2a8   : > { %5496 = vmatprep.subr.bf16.mxu0 %v16824_v53  ;;  %v16840_v53 = vld [vmem:[#allocation10 + $0x484] ss:$8 sps:$4 sm:$0xff]  }
 0x2aa   : > { %5328 = vmatmul.mubr.bf16.gmra.mrb[8].mxu0 %v21307_v51  ;;  %v16838_v51 = vld [vmem:[#allocation10 + $0x480] ss:$8 sps:$4 sm:$0xff]  }
 0x2ab   : > { %5337 = vmatprep.mubr.bf16.mxu0 %v21308_v63  ;;  %5497 = vmatpush1.bf16.msra.mxu0 %v16822_v16  ;;  %v16845_v63 = vld [vmem:[#allocation10 + $0x494] ss:$8 sps:$4 sm:$0xff]   ;;  %v16843_v16 = vld [vmem:[#allocation10 + $0x490] ss:$8 sps:$4 sm:$0xff]  }
 0x2ac   : > { %5498 = vmatprep.subr.bf16.mxu0 %v16827_v19  ;;  %v16850_v19 = vld [vmem:[#allocation10 + $0x4a4] ss:$8 sps:$4 sm:$0xff]  }
 0x2af   : > { %5499 = vmatpush1.bf16.msra.mxu0 %v16825_v8  ;;  %v16848_v8 = vld [vmem:[#allocation10 + $0x4a0] ss:$8 sps:$4 sm:$0xff]  }
 0x2b0   : > { %5500 = vmatprep.subr.bf16.mxu0 %v16830_v25  ;;  %v16855_v25 = vld [vmem:[#allocation10 + $0x4b4] ss:$8 sps:$4 sm:$0xff]  }
 0x2b2   : > { %5338 = vmatmul.mubr.bf16.gmra.mrb[12].mxu0 %v21309_v24 }
 0x2b3   : > { %5347 = vmatprep.mubr.bf16.mxu0 %v21310_v43  ;;  %5501 = vmatpush1.bf16.msra.mxu0 %v16828_v33  ;;  %v16861_v33 = vld [vmem:[#allocation10 + $0x4c4] ss:$8 sps:$4 sm:$0xff]  }
 0x2b4   : > { %5502 = vmatprep.subr.bf16.mxu0 %v16834_v17  ;;  %v16853_v17 = vld [vmem:[#allocation10 + $0x4b0] ss:$8 sps:$4 sm:$0xff]  }
 0x2b7   : > { %5503 = vmatpush1.bf16.msra.mxu0 %v16832_v47  ;;  %v16859_v47 = vld [vmem:[#allocation10 + $0x4c0] ss:$8 sps:$4 sm:$0xff]  }
 0x2b8   : > { %5504 = vmatprep.subr.bf16.mxu0 %v16840_v53  ;;  %v16867_v53 = vld [vmem:[#allocation10 + $0x4d4] ss:$8 sps:$4 sm:$0xff]  }
 0x2ba   : > { %5348 = vmatmul.mubr.bf16.gmra.mrb[16].mxu0 %v18676_v32 }
 0x2bb   : > { %5357 = vmatprep.mubr.bf16.mxu0 %v18684_v5  ;;  %5505 = vmatpush1.bf16.msra.mxu0 %v16838_v51  ;;  %v16865_v51 = vld [vmem:[#allocation10 + $0x4d0] ss:$8 sps:$4 sm:$0xff]  }
 0x2bc   : > { %5506 = vmatprep.subr.bf16.mxu0 %v16845_v63  ;;  %v16873_v63 = vld [vmem:[#allocation10 + $0x4e4] ss:$8 sps:$4 sm:$0xff]  }
 0x2bf   : > { %5507 = vmatpush1.bf16.msra.mxu0 %v16843_v16  ;;  %v16871_v16 = vld [vmem:[#allocation10 + $0x4e0] ss:$8 sps:$4 sm:$0xff]  }
 0x2c0   : > { %5508 = vmatprep.subr.bf16.mxu0 %v16850_v19  ;;  %v16879_v19 = vld [vmem:[#allocation10 + $0x4f4] ss:$8 sps:$4 sm:$0xff]  }
 0x2c2   : > { %5358 = vmatmul.mubr.bf16.gmra.mrb[20].mxu0 %v18698_v1 }
 0x2c3   : > { %5367 = vmatprep.mubr.bf16.mxu0 %v18717_v23  ;;  %5509 = vmatpush1.bf16.msra.mxu0 %v16848_v8  ;;  %v16877_v8 = vld [vmem:[#allocation10 + $0x4f0] ss:$8 sps:$4 sm:$0xff]  }
 0x2c4   : > { %5510 = vmatprep.subr.bf16.mxu0 %v16855_v25  ;;  %v16882_v25 = vld [vmem:[#allocation10 + $0x504] ss:$8 sps:$4 sm:$0xff]  }
 0x2c7   : > { %5511 = vmatpush1.bf16.msra.mxu0 %v16853_v17  ;;  %v19408_v17 = vld [vmem:[#allocation2 + $0x8] sm:$0xff] }
 0x2c8   : > { %5512 = vmatprep.subr.bf16.mxu0 %v16861_v33  ;;  %v19412_v33 = vcombine.high %v19375_v28, %v19408_v17 }
 0x2ca   : > { %5368 = vmatmul.mubr.bf16.gmra.mrb[24].mxu0 %v18732_v46 }
 0x2cb   : > { %5377 = vmatprep.mubr.bf16.mxu0 %v18755_v50  ;;  %5513 = vmatpush1.bf16.msra.mxu0 %v16859_v47  ;;  %v622_v47 = vld [vmem:[#allocation2 + $0x1c0] sm:$0xff] }
 0x2cc   : > { %5514 = vmatprep.subr.bf16.mxu0 %v16867_v53  ;;  %v623_v53 = vsel %vm18414_vm13, 0, %v622_v47  ;;  %v21312_v47 = vld [vmem:[#allocation36_spill] sm:$0xff] }
 0x2cd   : > { %624 = vst [vmem:[#allocation2 + $0x1c0] sm:$0xff] %v623_v53  ;;  %v21313_v53 = vld [vmem:[#allocation37_spill] sm:$0xff] }
 0x2cf   : > { %5515 = vmatpush1.bf16.msra.mxu0 %v16865_v51  ;;  %v19420_v51 = vcombine.low %v19375_v28, %v19408_v17  ;;  %v16888_v28 = vld [vmem:[#allocation10 + $0x524] ss:$8 sps:$4 sm:$0xff]  }
 0x2d0   : > { %5516 = vmatprep.subr.bf16.mxu0 %v16873_v63 }
 0x2d2   : > { %5378 = vmatmul.mubr.bf16.gmra.mrb[28].mxu0 %v18785_v40 }
 0x2d3   : > { %5387 = vmatprep.mubr.bf16.mxu0 %v19254_v39  ;;  %5517 = vmatpush1.bf16.msra.mxu0 %v16871_v16 }
 0x2d4   : > { %5518 = vmatprep.subr.bf16.mxu0 %v16879_v19  ;;  %v742_v63 = vld [vmem:[#allocation2 + $0x1c0] sm:$0x11]  ;;  %v21311_v19 = vld [vmem:[#allocation35_spill] sm:$0xff] }
 0x2d5   : > { %v743_v16 = vsel %vm18408_vm8, 0, %v742_v63  ;;  %v21314_v63 = vld [vmem:[#allocation38_spill] sm:$0xff] }
 0x2d6   : > { %744 = vst [vmem:[#allocation2 + $0x1c0] sm:$0x11] %v743_v16  ;;  %v16889_v16 = vld [vmem:[#allocation10 + $0x530] ss:$8 sps:$4 sm:$0xff]  }
 0x2d7   : > { %5519 = vmatpush1.bf16.msra.mxu0 %v16877_v8  ;;  %v16880_v8 = vld [vmem:[#allocation10 + $0x500] ss:$8 sps:$4 sm:$0xff]  }
 0x2d8   : > { %5701 = vmatprep.subr.bf16.mxu0 %v16882_v25  ;;  %v16885_v25 = vld [vmem:[#allocation10 + $0x514] ss:$8 sps:$4 sm:$0xff]  }
 0x2da   : > { %5388 = vmatmul.mubr.bf16.gmra.mrb[32].mxu0 %v19256_v15 }
 0x2db   : > { %5397 = vmatprep.mubr.bf16.mxu0 %v19268_v57 }
 0x2e2   : > { %5398 = vmatmul.mubr.bf16.gmra.mrb[36].mxu0 %v19270_v54 }
 0x2e3   : > { %5407 = vmatprep.mubr.bf16.mxu0 %v19282_v59 }
 0x2ea   : > { %5408 = vmatmul.mubr.bf16.gmra.mrb[40].mxu0 %v19284_v12 }
 0x2eb   : > { %5417 = vmatprep.mubr.bf16.mxu0 %v19296_v30 }
 0x2f2   : > { %5418 = vmatmul.mubr.bf16.gmra.mrb[44].mxu0 %v19298_v55 }
 0x2f3   : > { %5427 = vmatprep.mubr.bf16.mxu0 %v19310_v41 }
 0x2fa   : > { %5428 = vmatmul.mubr.bf16.gmra.mrb[48].mxu0 %v19312_v35 }
 0x2fb   : > { %5437 = vmatprep.mubr.bf16.mxu0 %v19323_v21 }
 0x302   : > { %5438 = vmatmul.mubr.bf16.gmra.mrb[52].mxu0 %v19326_v42 }
 0x303   : > { %5447 = vmatprep.mubr.bf16.mxu0 %v19337_v45 }
 0x30a   : > { %5448 = vmatmul.mubr.bf16.gmra.mrb[56].mxu0 %v19340_v22 }
 0x30b   : > { %5457 = vmatprep.mubr.bf16.mxu0 %v19351_v34  ;;  %v21315_v34 = vld [vmem:[#allocation39_spill] sm:$0xff] }
 0x312   : > { %5458 = vmatmul.mubr.bf16.gmra.mrb[60].mxu0 %v19354_v18  ;;  %v16891_v18 = vld [vmem:[#allocation10 + $0x534] ss:$8 sps:$4 sm:$0xff]  }
 0x313   : > { %5467 = vmatprep.mubr.bf16.mxu0 %v19362_v62  ;;  %v16886_v62 = vld [vmem:[#allocation10 + $0x520] ss:$8 sps:$4 sm:$0xff]  }
 0x31a   : > { %5468 = vmatmul.mubr.bf16.gmra.mrb[64].mxu0 %v19365_v2  ;;  %v16883_v2 = vld [vmem:[#allocation10 + $0x510] ss:$8 sps:$4 sm:$0xff]  }
 0x31b   : > { %5477 = vmatprep.mubr.bf16.mxu0 %v19412_v33 }
 0x322   : > { %5478 = vmatmul.mubr.bf16.gmra.mrb[68].mxu0 %v19420_v51 }
 0x323   : > { %5520 = vmatprep.mubr.bf16.mxu0 %v21311_v19  ;;  %v16894_v19 = vld [vmem:[#allocation10 + $0x544] ss:$8 sps:$4 sm:$0xff]  }
 0x32a   : > { %5521 = vmatmul.mubr.bf16.vlgmr.msra.gmra.mrb[0].mxu0 %v21312_v47  ;;  %v16892_v47 = vld [vmem:[#allocation10 + $0x540] ss:$8 sps:$4 sm:$0xff]  }
 0x32b   : > { %5702 = vmatpush1.bf16.msra.mxu0 %v16880_v8  ;;  %5530 = vmatprep.mubr.bf16.mxu0 %v21313_v53  ;;  %v16897_v8 = vld [vmem:[#allocation10 + $0x554] ss:$8 sps:$4 sm:$0xff]  }
 0x32c   : > { %5703 = vmatprep.subr.bf16.mxu0 %v16885_v25  ;;  %v21316_v53 = vld [vmem:[#allocation40_spill] sm:$0xff]  ;;  %v21317_v25 = vld [vmem:[#allocation41_spill] sm:$0xff] }
 0x32f   : > { %5704 = vmatpush1.bf16.msra.mxu0 %v16883_v2  ;;  %v16895_v2 = vld [vmem:[#allocation10 + $0x550] ss:$8 sps:$4 sm:$0xff]  }
 0x330   : > { %5705 = vmatprep.subr.bf16.mxu0 %v16888_v28  ;;  %v16900_v28 = vld [vmem:[#allocation10 + $0x564] ss:$8 sps:$4 sm:$0xff]  }
 0x332   : > { %5531 = vmatmul.mubr.bf16.gmra.mrb[4].mxu0 %v21314_v63  ;;  %v16898_v63 = vld [vmem:[#allocation10 + $0x560] ss:$8 sps:$4 sm:$0xff]  }
 0x333   : > { %5540 = vmatprep.mubr.bf16.mxu0 %v21315_v34  ;;  %5706 = vmatpush1.bf16.msra.mxu0 %v16886_v62  ;;  %v16903_v34 = vld [vmem:[#allocation10 + $0x574] ss:$8 sps:$4 sm:$0xff]   ;;  %v16906_v62 = vld [vmem:[#allocation10 + $0x584] ss:$8 sps:$4 sm:$0xff]  }
 0x334   : > { %5707 = vmatprep.subr.bf16.mxu0 %v16891_v18  ;;  %v16901_v18 = vld [vmem:[#allocation10 + $0x570] ss:$8 sps:$4 sm:$0xff]  }
 0x337   : > { %5708 = vmatpush1.bf16.msra.mxu0 %v16889_v16  ;;  %v16904_v16 = vld [vmem:[#allocation10 + $0x580] ss:$8 sps:$4 sm:$0xff]  }
 0x338   : > { %5709 = vmatprep.subr.bf16.mxu0 %v16894_v19  ;;  %v16909_v19 = vld [vmem:[#allocation10 + $0x594] ss:$8 sps:$4 sm:$0xff]  }
 0x33a   : > { %5541 = vmatmul.mubr.bf16.gmra.mrb[8].mxu0 %v21316_v53 }
 0x33b   : > { %5550 = vmatprep.mubr.bf16.mxu0 %v21317_v25  ;;  %5710 = vmatpush1.bf16.msra.mxu0 %v16892_v47  ;;  %v16907_v47 = vld [vmem:[#allocation10 + $0x590] ss:$8 sps:$4 sm:$0xff]  }
 0x33c   : > { %5711 = vmatprep.subr.bf16.mxu0 %v16897_v8  ;;  %v16912_v8 = vld [vmem:[#allocation10 + $0x5a4] ss:$8 sps:$4 sm:$0xff]  }
 0x33f   : > { %5712 = vmatpush1.bf16.msra.mxu0 %v16895_v2  ;;  %v16910_v2 = vld [vmem:[#allocation10 + $0x5a0] ss:$8 sps:$4 sm:$0xff]  }
 0x340   : > { %5713 = vmatprep.subr.bf16.mxu0 %v16900_v28  ;;  %v16915_v28 = vld [vmem:[#allocation10 + $0x5b4] ss:$8 sps:$4 sm:$0xff]  }
 0x342   : > { %5551 = vmatmul.mubr.bf16.gmra.mrb[12].mxu0 %v18989_v0 }
 0x343   : > { %5560 = vmatprep.mubr.bf16.mxu0 %v18994_v31  ;;  %5714 = vmatpush1.bf16.msra.mxu0 %v16898_v63  ;;  %v16918_v63 = vld [vmem:[#allocation10 + $0x5c4] ss:$8 sps:$4 sm:$0xff]  }
 0x344   : > { %5715 = vmatprep.subr.bf16.mxu0 %v16903_v34  ;;  %v16913_v34 = vld [vmem:[#allocation10 + $0x5b0] ss:$8 sps:$4 sm:$0xff]  }
 0x347   : > { %5716 = vmatpush1.bf16.msra.mxu0 %v16901_v18  ;;  %v16916_v18 = vld [vmem:[#allocation10 + $0x5c0] ss:$8 sps:$4 sm:$0xff]  }
 0x348   : > { %5717 = vmatprep.subr.bf16.mxu0 %v16906_v62  ;;  %v16921_v62 = vld [vmem:[#allocation10 + $0x5d4] ss:$8 sps:$4 sm:$0xff]  }
 0x34a   : > { %5561 = vmatmul.mubr.bf16.gmra.mrb[16].mxu0 %v19021_v37 }
 0x34b   : > { %5570 = vmatprep.mubr.bf16.mxu0 %v19024_v29  ;;  %5718 = vmatpush1.bf16.msra.mxu0 %v16904_v16  ;;  %v16919_v16 = vld [vmem:[#allocation10 + $0x5d0] ss:$8 sps:$4 sm:$0xff]  }
 0x34c   : > { %5719 = vmatprep.subr.bf16.mxu0 %v16909_v19  ;;  %v16924_v19 = vld [vmem:[#allocation10 + $0x5e4] ss:$8 sps:$4 sm:$0xff]  }
 0x34f   : > { %5720 = vmatpush1.bf16.msra.mxu0 %v16907_v47  ;;  %v16922_v47 = vld [vmem:[#allocation10 + $0x5e0] ss:$8 sps:$4 sm:$0xff]  }
 0x350   : > { %5721 = vmatprep.subr.bf16.mxu0 %v16912_v8  ;;  %v16928_v8 = vld [vmem:[#allocation10 + $0x5f4] ss:$8 sps:$4 sm:$0xff]  }
 0x352   : > { %5571 = vmatmul.mubr.bf16.gmra.mrb[20].mxu0 %v19045_v44 }
 0x353   : > { %5580 = vmatprep.mubr.bf16.mxu0 %v19049_v56  ;;  %5722 = vmatpush1.bf16.msra.mxu0 %v16910_v2  ;;  %v16926_v2 = vld [vmem:[#allocation10 + $0x5f0] ss:$8 sps:$4 sm:$0xff]  }
 0x354   : > { %5723 = vmatprep.subr.bf16.mxu0 %v16915_v28  ;;  %v16932_v28 = vld [vmem:[#allocation10 + $0x604] ss:$8 sps:$4 sm:$0xff]  }
 0x357   : > { %5724 = vmatpush1.bf16.msra.mxu0 %v16913_v34  ;;  %v21318_v34 = vld [vmem:[#allocation49_spill] sm:$0xff] }
 0x358   : > { %5725 = vmatprep.subr.bf16.mxu0 %v16918_v63  ;;  %v21319_v63 = vld [vmem:[#allocation50_spill] sm:$0xff] }
 0x35a   : > { %5581 = vmatmul.mubr.bf16.gmra.mrb[24].mxu0 %v19058_v48 }
 0x35b   : > { %5590 = vmatprep.mubr.bf16.mxu0 %v19061_v36  ;;  %5726 = vmatpush1.bf16.msra.mxu0 %v16916_v18  ;;  %v21320_v18 = vld [vmem:[#allocation51_spill] sm:$0xff] }
 0x35c   : > { %5727 = vmatprep.subr.bf16.mxu0 %v16921_v62  ;;  %v21321_v62 = vld [vmem:[#allocation52_spill] sm:$0xff] }
 0x35f   : > { %5728 = vmatpush1.bf16.msra.mxu0 %v16919_v16  ;;  %v21322_v16 = vld [vmem:[#allocation53_spill] sm:$0xff] }
 0x360   : > { %5729 = vmatprep.subr.bf16.mxu0 %v16924_v19  ;;  %v1836_v19 = vld [vmem:[#allocation2 + $0x1c0] sm:$0x11] }
 0x362   : > { %5591 = vmatmul.mubr.bf16.gmra.mrb[28].mxu0 %v19069_v4 }
 0x363   : > { %5600 = vmatprep.mubr.bf16.mxu0 %v19073_v9  ;;  %5730 = vmatpush1.bf16.msra.mxu0 %v16922_v47  ;;  %v21323_v47 = vld [vmem:[#allocation54_spill] sm:$0xff] }
 0x364   : > { %5731 = vmatprep.subr.bf16.mxu0 %v16928_v8  ;;  %v21324_v8 = vld [vmem:[#allocation55_spill] sm:$0xff] }
 0x367   : > { %5732 = vmatpush1.bf16.msra.mxu0 %v16926_v2  ;;  %v14175_v2 = vcombine.high %v1836_v19, %v1836_v19 }
 0x368   : > { %6672 = vmatprep.subr.bf16.mxu0 %v16932_v28  ;;  %v2548_v28 = vshll.u32 %v19412_v33, 16 }
 0x36a   : > { %5601 = vmatmul.mubr.bf16.gmra.mrb[32].mxu0 %v19081_v38  ;;  %v21327_v38 = vld [vmem:[#allocation58_spill] sm:$0xff] }
 0x36b   : > { %5610 = vmatprep.mubr.bf16.mxu0 %v19085_v3 }
 0x372   : > { %5611 = vmatmul.mubr.bf16.gmra.mrb[36].mxu0 %v19093_v61 }
 0x373   : > { %5620 = vmatprep.mubr.bf16.mxu0 %v19097_v27 }
 0x37a   : > { %5621 = vmatmul.mubr.bf16.gmra.mrb[40].mxu0 %v19106_v7  ;;  %v21325_v7 = vld [vmem:[#allocation56_spill] sm:$0xff] }
 0x37b   : > { %5630 = vmatprep.mubr.bf16.mxu0 %v19110_v52  ;;  %v2550_v52 = vrot.slane %v2548_v28, 1 }
 0x382   : > { %5631 = vmatmul.mubr.bf16.gmra.mrb[44].mxu0 %v19121_v60  ;;  %v2546_v60 = vshrl.u32 %v19412_v33, 16 }
 0x383   : > { %5640 = vmatprep.mubr.bf16.mxu0 %v21318_v34  ;;  %v2553_v34 = vshll.u32 %v14175_v2, 16 }
 0x385   : > { %v2555_v27 = vrot.slane %v2553_v34, 1  ;;  %v16935_v34 = vld [vmem:[#allocation10 + $0x614] ss:$8 sps:$4 sm:$0xff]  }
 0x38a   : > { %5641 = vmatmul.mubr.bf16.gmra.mrb[48].mxu0 %v21319_v63  ;;  %v21326_v63 = vld [vmem:[#allocation57_spill] sm:$0xff] }
 0x38b   : > { %5650 = vmatprep.mubr.bf16.mxu0 %v21320_v18  ;;  %v14174_v18 = vcombine.low %v1836_v19, %v1836_v19  ;;  %v16941_v19 = vld [vmem:[#allocation10 + $0x634] ss:$8 sps:$4 sm:$0xff]  }
 0x392   : > { %5651 = vmatmul.mubr.bf16.gmra.mrb[52].mxu0 %v21321_v62  ;;  %v2536_v62 = vshll.u32 %v19420_v51, 16 }
 0x393   : > { %5660 = vmatprep.mubr.bf16.mxu0 %v21322_v16  ;;  %v2551_v16 = vor.u32 %v2550_v52, %v2546_v60  ;;  %v21328_v52 = vld [vmem:[#allocation59_spill] sm:$0xff]  ;;  %v16930_v60 = vld [vmem:[#allocation10 + $0x600] ss:$8 sps:$4 sm:$0xff]  }
 0x394   : > { %v2538_v61 = vrot.slane %v2536_v62, 1  ;;  %v21329_v62 = vld [vmem:[#allocation60_spill] sm:$0xff] }
 0x395   : > { %v19463_v3 = vsel %vm2100_vm0, %v2551_v16, %v2555_v27  ;;  %v21330_v27 = vld [vmem:[#allocation61_spill] sm:$0xff] }
 0x396   : > { %v16938_v16 = vld [vmem:[#allocation10 + $0x624] ss:$8 sps:$4 sm:$0xff]  }
 0x39a   : > { %5661 = vmatmul.mubr.bf16.gmra.mrb[56].mxu0 %v21323_v47  ;;  %v2534_v47 = vshrl.u32 %v19420_v51, 16 }
 0x39b   : > { %5670 = vmatprep.mubr.bf16.mxu0 %v21324_v8  ;;  %v2541_v8 = vshll.u32 %v14174_v18, 16  ;;  %v16933_v18 = vld [vmem:[#allocation10 + $0x610] ss:$8 sps:$4 sm:$0xff]  }
 0x39c   : > { %v2539_v2 = vor.u32 %v2538_v61, %v2534_v47  ;;  %v16936_v61 = vld [vmem:[#allocation10 + $0x620] ss:$8 sps:$4 sm:$0xff]   ;;  %v21331_v47 = vld [vmem:[#allocation62_spill] sm:$0xff] }
 0x39d   : > { %v2543_v28 = vrot.slane %v2541_v8, 1  ;;  %v21332_v8 = vld [vmem:[#allocation63_spill] sm:$0xff] }
 0x3a2   : > { %5671 = vmatmul.mubr.bf16.gmra.mrb[60].mxu0 %v21325_v7 }
 0x3a3   : > { %5680 = vmatprep.mubr.bf16.mxu0 %v21326_v63  ;;  %v19468_v63 = vsel %vm2100_vm0, %v2539_v2, %v2543_v28  ;;  %v16939_v2 = vld [vmem:[#allocation10 + $0x630] ss:$8 sps:$4 sm:$0xff]   ;;  %v16944_v28 = vld [vmem:[#allocation10 + $0x644] ss:$8 sps:$4 sm:$0xff]  }
 0x3aa   : > { %5681 = vmatmul.mubr.bf16.gmra.mrb[64].mxu0 %v21327_v38 }
 0x3ab   : > { %5690 = vmatprep.mubr.bf16.mxu0 %v19463_v3 }
 0x3b2   : > { %5691 = vmatmul.mubr.bf16.gmra.mrb[68].mxu0 %v19468_v63 }
 0x3b3   : > { %5733 = vmatprep.mubr.bf16.mxu0 %v21328_v52  ;;  %v16942_v52 = vld [vmem:[#allocation10 + $0x640] ss:$8 sps:$4 sm:$0xff]  }
 0x3ba   : > { %5734 = vmatmul.mubr.bf16.vlgmr.msra.gmra.mrb[0].mxu0 %v21329_v62  ;;  %v21333_v62 = vld [vmem:[#allocation64_spill] sm:$0xff] }
 0x3bb   : > { %6673 = vmatpush1.bf16.msra.mxu0 %v16930_v60  ;;  %5743 = vmatprep.mubr.bf16.mxu0 %v21330_v27  ;;  %v16947_v60 = vld [vmem:[#allocation10 + $0x654] ss:$8 sps:$4 sm:$0xff]  }
 0x3bc   : > { %6674 = vmatprep.subr.bf16.mxu0 %v16935_v34  ;;  %v21334_v34 = vld [vmem:[#allocation65_spill] sm:$0xff] }
 0x3bf   : > { %6675 = vmatpush1.bf16.msra.mxu0 %v16933_v18  ;;  %v16945_v18 = vld [vmem:[#allocation10 + $0x650] ss:$8 sps:$4 sm:$0xff]  }
 0x3c0   : > { %6676 = vmatprep.subr.bf16.mxu0 %v16938_v16  ;;  %v16950_v16 = vld [vmem:[#allocation10 + $0x664] ss:$8 sps:$4 sm:$0xff]  }
 0x3c2   : > { %5744 = vmatmul.mubr.bf16.gmra.mrb[4].mxu0 %v21331_v47  ;;  %v16948_v47 = vld [vmem:[#allocation10 + $0x660] ss:$8 sps:$4 sm:$0xff]  }
 0x3c3   : > { %5753 = vmatprep.mubr.bf16.mxu0 %v21332_v8  ;;  %6677 = vmatpush1.bf16.msra.mxu0 %v16936_v61  ;;  %v16953_v8 = vld [vmem:[#allocation10 + $0x674] ss:$8 sps:$4 sm:$0xff]   ;;  %v21335_v61 = vld [vmem:[#allocation66_spill] sm:$0xff] }
 0x3c4   : > { %6678 = vmatprep.subr.bf16.mxu0 %v16941_v19  ;;  %v21336_v19 = vld [vmem:[#allocation67_spill] sm:$0xff] }
 0x3c7   : > { %6679 = vmatpush1.bf16.msra.mxu0 %v16939_v2  ;;  %v16951_v2 = vld [vmem:[#allocation10 + $0x670] ss:$8 sps:$4 sm:$0xff]  }
 0x3c8   : > { %6680 = vmatprep.subr.bf16.mxu0 %v16944_v28  ;;  %v16956_v28 = vld [vmem:[#allocation10 + $0x684] ss:$8 sps:$4 sm:$0xff]  }
 0x3ca   : > { %5754 = vmatmul.mubr.bf16.gmra.mrb[8].mxu0 %v21333_v62  ;;  %v16954_v62 = vld [vmem:[#allocation10 + $0x680] ss:$8 sps:$4 sm:$0xff]  }
 0x3cb   : > { %5763 = vmatprep.mubr.bf16.mxu0 %v21334_v34  ;;  %6681 = vmatpush1.bf16.msra.mxu0 %v16942_v52  ;;  %v16959_v34 = vld [vmem:[#allocation10 + $0x694] ss:$8 sps:$4 sm:$0xff]  }
 0x3cc   : > { %6682 = vmatprep.subr.bf16.mxu0 %v16947_v60  ;;  %v21337_v52 = vld [vmem:[#allocation68_spill] sm:$0xff]  ;;  %v21338_v60 = vld [vmem:[#allocation69_spill] sm:$0xff] }
 0x3cf   : > { %6683 = vmatpush1.bf16.msra.mxu0 %v16945_v18  ;;  %v16957_v18 = vld [vmem:[#allocation10 + $0x690] ss:$8 sps:$4 sm:$0xff]  }
 0x3d0   : > { %6684 = vmatprep.subr.bf16.mxu0 %v16950_v16  ;;  %v16962_v16 = vld [vmem:[#allocation10 + $0x6a4] ss:$8 sps:$4 sm:$0xff]  }
 0x3d2   : > { %5764 = vmatmul.mubr.bf16.gmra.mrb[12].mxu0 %v21335_v61  ;;  %v16960_v61 = vld [vmem:[#allocation10 + $0x6a0] ss:$8 sps:$4 sm:$0xff]  }
 0x3d3   : > { %5773 = vmatprep.mubr.bf16.mxu0 %v21336_v19  ;;  %6685 = vmatpush1.bf16.msra.mxu0 %v16948_v47  ;;  %v16965_v19 = vld [vmem:[#allocation10 + $0x6b4] ss:$8 sps:$4 sm:$0xff]   ;;  %v21339_v47 = vld [vmem:[#allocation70_spill] sm:$0xff] }
 0x3d4   : > { %6686 = vmatprep.subr.bf16.mxu0 %v16953_v8  ;;  %v21340_v8 = vld [vmem:[#allocation71_spill] sm:$0xff] }
 0x3d7   : > { %6687 = vmatpush1.bf16.msra.mxu0 %v16951_v2  ;;  %v16963_v2 = vld [vmem:[#allocation10 + $0x6b0] ss:$8 sps:$4 sm:$0xff]  }
 0x3d8   : > { %6688 = vmatprep.subr.bf16.mxu0 %v16956_v28  ;;  %v16968_v28 = vld [vmem:[#allocation10 + $0x6c4] ss:$8 sps:$4 sm:$0xff]  }
 0x3da   : > { %5774 = vmatmul.mubr.bf16.gmra.mrb[16].mxu0 %v21337_v52  ;;  %v16966_v52 = vld [vmem:[#allocation10 + $0x6c0] ss:$8 sps:$4 sm:$0xff]  }
 0x3db   : > { %5783 = vmatprep.mubr.bf16.mxu0 %v21338_v60  ;;  %6689 = vmatpush1.bf16.msra.mxu0 %v16954_v62  ;;  %v16971_v60 = vld [vmem:[#allocation10 + $0x6d4] ss:$8 sps:$4 sm:$0xff]  }
 0x3dc   : > { %6690 = vmatprep.subr.bf16.mxu0 %v16959_v34  ;;  %v21341_v62 = vld [vmem:[#allocation72_spill] sm:$0xff]  ;;  %v21342_v34 = vld [vmem:[#allocation73_spill] sm:$0xff] }
 0x3df   : > { %6691 = vmatpush1.bf16.msra.mxu0 %v16957_v18  ;;  %v16969_v18 = vld [vmem:[#allocation10 + $0x6d0] ss:$8 sps:$4 sm:$0xff]  }
 0x3e0   : > { %6692 = vmatprep.subr.bf16.mxu0 %v16962_v16  ;;  %v16974_v16 = vld [vmem:[#allocation10 + $0x6e4] ss:$8 sps:$4 sm:$0xff]  }
 0x3e2   : > { %5784 = vmatmul.mubr.bf16.gmra.mrb[20].mxu0 %v21339_v47  ;;  %v16972_v47 = vld [vmem:[#allocation10 + $0x6e0] ss:$8 sps:$4 sm:$0xff]  }
 0x3e3   : > { %5793 = vmatprep.mubr.bf16.mxu0 %v21340_v8  ;;  %6693 = vmatpush1.bf16.msra.mxu0 %v16960_v61  ;;  %v16978_v8 = vld [vmem:[#allocation10 + $0x6f4] ss:$8 sps:$4 sm:$0xff]   ;;  %v21343_v61 = vld [vmem:[#allocation74_spill] sm:$0xff] }
 0x3e4   : > { %6694 = vmatprep.subr.bf16.mxu0 %v16965_v19  ;;  %v21344_v19 = vld [vmem:[#allocation75_spill] sm:$0xff] }
 0x3e7   : > { %6695 = vmatpush1.bf16.msra.mxu0 %v16963_v2  ;;  %v16976_v2 = vld [vmem:[#allocation10 + $0x6f0] ss:$8 sps:$4 sm:$0xff]  }
 0x3e8   : > { %6696 = vmatprep.subr.bf16.mxu0 %v16968_v28  ;;  %v16982_v28 = vld [vmem:[#allocation10 + $0x704] ss:$8 sps:$4 sm:$0xff]  }
 0x3ea   : > { %5794 = vmatmul.mubr.bf16.gmra.mrb[24].mxu0 %v21341_v62  ;;  %v21345_v62 = vld [vmem:[#allocation76_spill] sm:$0xff] }
 0x3eb   : > { %5803 = vmatprep.mubr.bf16.mxu0 %v21342_v34  ;;  %6697 = vmatpush1.bf16.msra.mxu0 %v16966_v52  ;;  %v21346_v52 = vld [vmem:[#allocation77_spill] sm:$0xff] }
 0x3ec   : > { %6698 = vmatprep.subr.bf16.mxu0 %v16971_v60  ;;  %v21347_v60 = vld [vmem:[#allocation78_spill] sm:$0xff]  ;;  %v21350_v34 = vld [vmem:[#allocation81_spill] sm:$0xff] }
 0x3ef   : > { %6699 = vmatpush1.bf16.msra.mxu0 %v16969_v18  ;;  %v21348_v18 = vld [vmem:[#allocation79_spill] sm:$0xff] }
 0x3f0   : > { %6700 = vmatprep.subr.bf16.mxu0 %v16974_v16  ;;  %v21349_v16 = vld [vmem:[#allocation80_spill] sm:$0xff] }
 0x3f2   : > { %5804 = vmatmul.mubr.bf16.gmra.mrb[28].mxu0 %v21343_v61  ;;  %v21351_v61 = vld [vmem:[#allocation82_spill] sm:$0xff] }
 0x3f3   : > { %5813 = vmatprep.mubr.bf16.mxu0 %v21344_v19  ;;  %6701 = vmatpush1.bf16.msra.mxu0 %v16972_v47  ;;  %v21352_v47 = vld [vmem:[#allocation83_spill] sm:$0xff] }
 0x3f4   : > { %6702 = vmatprep.subr.bf16.mxu0 %v16978_v8  ;;  %v21353_v8 = vld [vmem:[#allocation84_spill] sm:$0xff] }
 0x3f7   : > { %6703 = vmatpush1.bf16.msra.mxu0 %v16976_v2  ;;  %v21354_v2 = vld [vmem:[#allocation85_spill] sm:$0xff] }
 0x3f8   : > { %6885 = vmatprep.subr.bf16.mxu0 %v16982_v28  ;;  %v21355_v28 = vld [vmem:[#allocation86_spill] sm:$0xff] }
 0x3fa   : > { %5814 = vmatmul.mubr.bf16.gmra.mrb[32].mxu0 %v21345_v62  ;;  %v21356_v62 = vld [vmem:[#allocation87_spill] sm:$0xff] }
 0x3fb   : > { %5823 = vmatprep.mubr.bf16.mxu0 %v21346_v52 }
 0x402   : > { %5824 = vmatmul.mubr.bf16.gmra.mrb[36].mxu0 %v21347_v60 }
 0x403   : > { %5833 = vmatprep.mubr.bf16.mxu0 %v21348_v18  ;;  %v2715_v18 = vld [vmem:[#allocation2 + $0x1b0] sm:$0xee] }
 0x40a   : > { %5834 = vmatmul.mubr.bf16.gmra.mrb[40].mxu0 %v21349_v16  ;;  %v2717_v16 = vld [vmem:[#allocation2 + $0x1c0] sm:$0x11] }
 0x40b   : > { %5843 = vmatprep.mubr.bf16.mxu0 %v21350_v34  ;;  %v14253_v34 = vcombine.high %v2715_v18, %v19408_v17  ;;  %v14255_v60 = vcombine.high %v2717_v16, %v2717_v16 }
 0x412   : > { %5844 = vmatmul.mubr.bf16.gmra.mrb[44].mxu0 %v21351_v61 }
 0x413   : > { %5853 = vmatprep.mubr.bf16.mxu0 %v21352_v47  ;;  %v3094_v47 = vrot.slane %v14255_v60, 1 }
 0x41a   : > { %5854 = vmatmul.mubr.bf16.gmra.mrb[48].mxu0 %v21353_v8  ;;  %v3093_v8 = vrot.slane %v14253_v34, 1  ;;  %v558_v34 = vld [vmem:[#allocation2 + $0x1c8] sm:$0x11] }
 0x41b   : > { %5863 = vmatprep.mubr.bf16.mxu0 %v21354_v2  ;;  %v14252_v2 = vcombine.low %v2715_v18, %v19408_v17  ;;  %v559_v60 = vsel %vm18408_vm8, 0, %v558_v34  ;;  %v16980_v18 = vld [vmem:[#allocation10 + $0x700] ss:$8 sps:$4 sm:$0xff]   ;;  %v21358_v34 = vld [vmem:[#allocation31_spill] sm:$0xff] }
 0x41c   : > { %560 = vst [vmem:[#allocation2 + $0x1c8] sm:$0x11] %v559_v60  ;;  %v16989_v60 = vld [vmem:[#allocation10 + $0x730] ss:$8 sps:$4 sm:$0xff]  }
 0x422   : > { %5864 = vmatmul.mubr.bf16.gmra.mrb[52].mxu0 %v21355_v28  ;;  %v14254_v28 = vcombine.low %v2717_v16, %v2717_v16  ;;  %v16985_v16 = vld [vmem:[#allocation10 + $0x714] ss:$8 sps:$4 sm:$0xff]  }
 0x423   : > { %5873 = vmatprep.mubr.bf16.mxu0 %v21356_v62  ;;  %v19507_v62 = vsel %vm2981_vm1, %v3093_v8, %v3094_v47  ;;  %v21357_v47 = vld [vmem:[#allocation30_spill] sm:$0xff] }
 0x424   : > { %v16983_v8 = vld [vmem:[#allocation10 + $0x710] ss:$8 sps:$4 sm:$0xff]  }
 0x42a   : > { %5874 = vmatmul.mubr.bf16.gmra.mrb[56].mxu0 %v19331_v10  ;;  %v3091_v10 = vrot.slane %v14254_v28, 1  ;;  %v16991_v28 = vld [vmem:[#allocation10 + $0x734] ss:$8 sps:$4 sm:$0xff]  }
 0x42b   : > { %5883 = vmatprep.mubr.bf16.mxu0 %v19334_v26  ;;  %v3090_v26 = vrot.slane %v14252_v2, 1 }
 0x42d   : > { %v19512_v61 = vsel %vm2981_vm1, %v3090_v26, %v3091_v10  ;;  %v16988_v10 = vld [vmem:[#allocation10 + $0x724] ss:$8 sps:$4 sm:$0xff]  }
 0x42e   : > { %v745_v26 = vld [vmem:[#allocation2 + $0x1c8] sm:$0xff] }
 0x42f   : > { %v19522_v2 = vsel %vm18414_vm13, 0, %v745_v26  ;;  %v16998_v26 = vld [vmem:[#allocation10 + $0x760] ss:$8 sps:$4 sm:$0xff]  }
 0x430   : > { %747 = vst [vmem:[#allocation2 + $0x1c8] sm:$0xff] %v19522_v2 }
 0x432   : > { %5884 = vmatmul.mubr.bf16.gmra.mrb[60].mxu0 %v19345_v6 }
 0x433   : > { %5893 = vmatprep.mubr.bf16.mxu0 %v19348_v11 }
 0x43a   : > { %5894 = vmatmul.mubr.bf16.gmra.mrb[64].mxu0 %v19359_v49 }
 0x43b   : > { %5903 = vmatprep.mubr.bf16.mxu0 %v19507_v62 }
 0x442   : > { %5904 = vmatmul.mubr.bf16.gmra.mrb[68].mxu0 %v19512_v61 }
 0x443   : > { %6704 = vmatprep.mubr.bf16.mxu0 %v18600_v58  ;;  %v16986_v58 = vld [vmem:[#allocation10 + $0x720] ss:$8 sps:$4 sm:$0xff]  }
 0x44a   : > { %6705 = vmatmul.mubr.bf16.vlgmr.msra.gmra.mrb[0].mxu0 %v18619_v14  ;;  %v21359_v14 = vld [vmem:[#allocation32_spill] sm:$0xff] }
 0x44b   : > { %6886 = vmatpush1.bf16.msra.mxu0 %v16980_v18  ;;  %6714 = vmatprep.mubr.bf16.mxu0 %v21357_v47  ;;  %v16994_v18 = vld [vmem:[#allocation10 + $0x744] ss:$8 sps:$4 sm:$0xff]   ;;  %v16997_v47 = vld [vmem:[#allocation10 + $0x754] ss:$8 sps:$4 sm:$0xff]  }
 0x44c   : > { %6887 = vmatprep.subr.bf16.mxu0 %v16985_v16  ;;  %v16992_v16 = vld [vmem:[#allocation10 + $0x740] ss:$8 sps:$4 sm:$0xff]  }
 0x44f   : > { %6888 = vmatpush1.bf16.msra.mxu0 %v16983_v8  ;;  %v16995_v8 = vld [vmem:[#allocation10 + $0x750] ss:$8 sps:$4 sm:$0xff]  }
 0x450   : > { %6889 = vmatprep.subr.bf16.mxu0 %v16988_v10  ;;  %v17000_v10 = vld [vmem:[#allocation10 + $0x764] ss:$8 sps:$4 sm:$0xff]  }
 0x452   : > { %6715 = vmatmul.mubr.bf16.gmra.mrb[4].mxu0 %v21358_v34  ;;  %v17003_v34 = vld [vmem:[#allocation10 + $0x774] ss:$8 sps:$4 sm:$0xff]  }
 0x453   : > { %6724 = vmatprep.mubr.bf16.mxu0 %v21359_v14  ;;  %6890 = vmatpush1.bf16.msra.mxu0 %v16986_v58  ;;  %v17001_v58 = vld [vmem:[#allocation10 + $0x770] ss:$8 sps:$4 sm:$0xff]  }
 0x454   : > { %6891 = vmatprep.subr.bf16.mxu0 %v16991_v28  ;;  %v17006_v28 = vld [vmem:[#allocation10 + $0x784] ss:$8 sps:$4 sm:$0xff]   ;;  %v17007_v14 = vld [vmem:[#allocation10 + $0x790] ss:$8 sps:$4 sm:$0xff]  }
 0x457   : > { %6892 = vmatpush1.bf16.msra.mxu0 %v16989_v60  ;;  %v17012_v60 = vld [vmem:[#allocation10 + $0x7a4] ss:$8 sps:$4 sm:$0xff]  }
 0x458   : > { %6893 = vmatprep.subr.bf16.mxu0 %v16994_v18  ;;  %v17013_v18 = vld [vmem:[#allocation10 + $0x7b0] ss:$8 sps:$4 sm:$0xff]  }
 0x45a   : > { %6725 = vmatmul.mubr.bf16.gmra.mrb[8].mxu0 %v21309_v24  ;;  %v17004_v24 = vld [vmem:[#allocation10 + $0x780] ss:$8 sps:$4 sm:$0xff]  }
 0x45b   : > { %6734 = vmatprep.mubr.bf16.mxu0 %v21310_v43  ;;  %6894 = vmatpush1.bf16.msra.mxu0 %v16992_v16  ;;  %v17009_v43 = vld [vmem:[#allocation10 + $0x794] ss:$8 sps:$4 sm:$0xff]   ;;  %v17018_v16 = vld [vmem:[#allocation10 + $0x7c4] ss:$8 sps:$4 sm:$0xff]  }
 0x45c   : > { %6895 = vmatprep.subr.bf16.mxu0 %v16997_v47  ;;  %v17019_v47 = vld [vmem:[#allocation10 + $0x7d0] ss:$8 sps:$4 sm:$0xff]  }
 0x45f   : > { %6896 = vmatpush1.bf16.msra.mxu0 %v16995_v8  ;;  %v17024_v8 = vld [vmem:[#allocation10 + $0x7e4] ss:$8 sps:$4 sm:$0xff]  }
 0x460   : > { %6897 = vmatprep.subr.bf16.mxu0 %v17000_v10  ;;  %v17025_v10 = vld [vmem:[#allocation10 + $0x7f0] ss:$8 sps:$4 sm:$0xff]  }
 0x462   : > { %6735 = vmatmul.mubr.bf16.gmra.mrb[12].mxu0 %v18676_v32  ;;  %v17010_v32 = vld [vmem:[#allocation10 + $0x7a0] ss:$8 sps:$4 sm:$0xff]  }
 0x463   : > { %6744 = vmatprep.mubr.bf16.mxu0 %v18684_v5  ;;  %6898 = vmatpush1.bf16.msra.mxu0 %v16998_v26  ;;  %v17015_v5 = vld [vmem:[#allocation10 + $0x7b4] ss:$8 sps:$4 sm:$0xff]   ;;  %v17030_v26 = vld [vmem:[#allocation10 + $0x804] ss:$8 sps:$4 sm:$0xff]  }
 0x464   : > { %6899 = vmatprep.subr.bf16.mxu0 %v17003_v34  ;;  %v17037_v34 = vld [vmem:[#allocation10 + $0x830] ss:$8 sps:$4 sm:$0xff]  }
 0x467   : > { %6900 = vmatpush1.bf16.msra.mxu0 %v17001_v58  ;;  %v17042_v58 = vld [vmem:[#allocation10 + $0x844] ss:$8 sps:$4 sm:$0xff]  }
 0x468   : > { %6901 = vmatprep.subr.bf16.mxu0 %v17006_v28  ;;  %v17040_v28 = vld [vmem:[#allocation10 + $0x840] ss:$8 sps:$4 sm:$0xff]  }
 0x46a   : > { %6745 = vmatmul.mubr.bf16.gmra.mrb[16].mxu0 %v18698_v1  ;;  %v17016_v1 = vld [vmem:[#allocation10 + $0x7c0] ss:$8 sps:$4 sm:$0xff]  }
 0x46b   : > { %6754 = vmatprep.mubr.bf16.mxu0 %v18717_v23  ;;  %6902 = vmatpush1.bf16.msra.mxu0 %v17004_v24  ;;  %v17021_v23 = vld [vmem:[#allocation10 + $0x7d4] ss:$8 sps:$4 sm:$0xff]  }
 0x46c   : > { %6903 = vmatprep.subr.bf16.mxu0 %v17009_v43  ;;  %v17045_v24 = vld [vmem:[#allocation10 + $0x854] ss:$8 sps:$4 sm:$0xff]   ;;  %v17043_v43 = vld [vmem:[#allocation10 + $0x850] ss:$8 sps:$4 sm:$0xff]  }
 0x46f   : > { %6904 = vmatpush1.bf16.msra.mxu0 %v17007_v14  ;;  %v17048_v14 = vld [vmem:[#allocation10 + $0x864] ss:$8 sps:$4 sm:$0xff]  }
 0x470   : > { %6905 = vmatprep.subr.bf16.mxu0 %v17012_v60  ;;  %v17049_v60 = vld [vmem:[#allocation10 + $0x870] ss:$8 sps:$4 sm:$0xff]  }
 0x472   : > { %6755 = vmatmul.mubr.bf16.gmra.mrb[20].mxu0 %v18732_v46  ;;  %v17022_v46 = vld [vmem:[#allocation10 + $0x7e0] ss:$8 sps:$4 sm:$0xff]  }
 0x473   : > { %6764 = vmatprep.mubr.bf16.mxu0 %v18755_v50  ;;  %6906 = vmatpush1.bf16.msra.mxu0 %v17010_v32  ;;  %v17027_v50 = vld [vmem:[#allocation10 + $0x7f4] ss:$8 sps:$4 sm:$0xff]   ;;  %v17054_v32 = vld [vmem:[#allocation10 + $0x884] ss:$8 sps:$4 sm:$0xff]  }
 0x474   : > { %6907 = vmatprep.subr.bf16.mxu0 %v17015_v5  ;;  %v17055_v5 = vld [vmem:[#allocation10 + $0x890] ss:$8 sps:$4 sm:$0xff]  }
 0x477   : > { %6908 = vmatpush1.bf16.msra.mxu0 %v17013_v18  ;;  %v17060_v18 = vld [vmem:[#allocation10 + $0x8a4] ss:$8 sps:$4 sm:$0xff]  }
 0x478   : > { %6909 = vmatprep.subr.bf16.mxu0 %v17018_v16  ;;  %v17061_v16 = vld [vmem:[#allocation10 + $0x8b0] ss:$8 sps:$4 sm:$0xff]  }
 0x47a   : > { %6765 = vmatmul.mubr.bf16.gmra.mrb[24].mxu0 %v18785_v40  ;;  %v21360_v40 = vld [vmem:[#allocation90_spill] sm:$0xff] }
 0x47b   : > { %6774 = vmatprep.mubr.bf16.mxu0 %v19254_v39  ;;  %6910 = vmatpush1.bf16.msra.mxu0 %v17016_v1  ;;  %v21361_v39 = vld [vmem:[#allocation91_spill] sm:$0xff]  ;;  %v17066_v1 = vld [vmem:[#allocation10 + $0x8c4] ss:$8 sps:$4 sm:$0xff]  }
 0x47c   : > { %6911 = vmatprep.subr.bf16.mxu0 %v17021_v23  ;;  %v17067_v23 = vld [vmem:[#allocation10 + $0x8d0] ss:$8 sps:$4 sm:$0xff]  }
 0x47f   : > { %6912 = vmatpush1.bf16.msra.mxu0 %v17019_v47  ;;  %v17072_v47 = vld [vmem:[#allocation10 + $0x8e4] ss:$8 sps:$4 sm:$0xff]  }
 0x480   : > { %6913 = vmatprep.subr.bf16.mxu0 %v17024_v8  ;;  %v21367_v8 = vld [vmem:[#allocation42_spill] sm:$0xff] }
 0x482   : > { %6775 = vmatmul.mubr.bf16.gmra.mrb[28].mxu0 %v19256_v15  ;;  %v21363_v15 = vld [vmem:[#allocation93_spill] sm:$0xff] }
 0x483   : > { %6784 = vmatprep.mubr.bf16.mxu0 %v19268_v57  ;;  %6914 = vmatpush1.bf16.msra.mxu0 %v17022_v46  ;;  %v21362_v57 = vld [vmem:[#allocation92_spill] sm:$0xff]  ;;  %v21368_v46 = vld [vmem:[#allocation43_spill] sm:$0xff] }
 0x484   : > { %6915 = vmatprep.subr.bf16.mxu0 %v17027_v50  ;;  %v17074_v50 = vld [vmem:[#allocation10 + $0x8f0] ss:$8 sps:$4 sm:$0xff]  }
 0x487   : > { %6916 = vmatpush1.bf16.msra.mxu0 %v17025_v10  ;;  %v21369_v10 = vld [vmem:[#allocation44_spill] sm:$0xff] }
 0x488   : > { %7098 = vmatprep.subr.bf16.mxu0 %v17030_v26  ;;  %v21372_v26 = vld [vmem:[#allocation47_spill] sm:$0xff] }
 0x48a   : > { %6785 = vmatmul.mubr.bf16.gmra.mrb[32].mxu0 %v19270_v54 }
 0x48b   : > { %6794 = vmatprep.mubr.bf16.mxu0 %v19282_v59  ;;  %v625_v59 = vld [vmem:[#allocation2 + $0x1d8] sm:$0xff] }
 0x48c   : > { %v626_v54 = vsel %vm18414_vm13, 0, %v625_v59  ;;  %v21377_v59 = vld [vmem:[#allocation52_spill] sm:$0xff] }
 0x48d   : > { %627 = vst [vmem:[#allocation2 + $0x1d8] sm:$0xff] %v626_v54  ;;  %v21378_v54 = vld [vmem:[#allocation53_spill] sm:$0xff] }
 0x492   : > { %6795 = vmatmul.mubr.bf16.gmra.mrb[36].mxu0 %v19284_v12 }
 0x493   : > { %6804 = vmatprep.mubr.bf16.mxu0 %v19296_v30  ;;  %v19565_v30 = vcombine.low %v19522_v2, %v19408_v17 }
 0x494   : > { %v749_v12 = vld [vmem:[#allocation2 + $0x1d8] sm:$0x11] }
 0x49a   : > { %6805 = vmatmul.mubr.bf16.gmra.mrb[40].mxu0 %v19298_v55  ;;  %v750_v55 = vsel %vm18408_vm8, 0, %v749_v12  ;;  %v21379_v12 = vld [vmem:[#allocation54_spill] sm:$0xff] }
 0x49b   : > { %6814 = vmatprep.mubr.bf16.mxu0 %v19310_v41  ;;  %v19557_v41 = vcombine.high %v19522_v2, %v19408_v17  ;;  %751 = vst [vmem:[#allocation2 + $0x1d8] sm:$0x11] %v750_v55  ;;  %v17036_v17 = vld [vmem:[#allocation10 + $0x824] ss:$8 sps:$4 sm:$0xff]   ;;  %v17039_v2 = vld [vmem:[#allocation10 + $0x834] ss:$8 sps:$4 sm:$0xff]  }
 0x49c   : > { %v21380_v55 = vld [vmem:[#allocation55_spill] sm:$0xff] }
 0x4a2   : > { %6815 = vmatmul.mubr.bf16.gmra.mrb[44].mxu0 %v19312_v35  ;;  %v21364_v35 = vld [vmem:[#allocation37_spill] sm:$0xff] }
 0x4a3   : > { %6824 = vmatprep.mubr.bf16.mxu0 %v19323_v21  ;;  %v17028_v21 = vld [vmem:[#allocation10 + $0x800] ss:$8 sps:$4 sm:$0xff]  }
 0x4aa   : > { %6825 = vmatmul.mubr.bf16.gmra.mrb[48].mxu0 %v19326_v42  ;;  %v17033_v42 = vld [vmem:[#allocation10 + $0x814] ss:$8 sps:$4 sm:$0xff]  }
 0x4ab   : > { %6834 = vmatprep.mubr.bf16.mxu0 %v19337_v45  ;;  %v21365_v45 = vld [vmem:[#allocation38_spill] sm:$0xff] }
 0x4b2   : > { %6835 = vmatmul.mubr.bf16.gmra.mrb[52].mxu0 %v19340_v22  ;;  %v21366_v22 = vld [vmem:[#allocation39_spill] sm:$0xff] }
 0x4b3   : > { %6844 = vmatprep.mubr.bf16.mxu0 %v21360_v40  ;;  %v21373_v40 = vld [vmem:[#allocation48_spill] sm:$0xff] }
 0x4ba   : > { %6845 = vmatmul.mubr.bf16.gmra.mrb[56].mxu0 %v21361_v39  ;;  %v21374_v39 = vld [vmem:[#allocation49_spill] sm:$0xff] }
 0x4bb   : > { %6854 = vmatprep.mubr.bf16.mxu0 %v21362_v57  ;;  %v21375_v57 = vld [vmem:[#allocation50_spill] sm:$0xff] }
 0x4c2   : > { %6855 = vmatmul.mubr.bf16.gmra.mrb[60].mxu0 %v21363_v15  ;;  %v21376_v15 = vld [vmem:[#allocation51_spill] sm:$0xff] }
 0x4c3   : > { %6864 = vmatprep.mubr.bf16.mxu0 %v19412_v33  ;;  %v17031_v33 = vld [vmem:[#allocation10 + $0x810] ss:$8 sps:$4 sm:$0xff]  }
 0x4ca   : > { %6865 = vmatmul.mubr.bf16.gmra.mrb[64].mxu0 %v19420_v51  ;;  %v17034_v51 = vld [vmem:[#allocation10 + $0x820] ss:$8 sps:$4 sm:$0xff]  }
 0x4cb   : > { %6874 = vmatprep.mubr.bf16.mxu0 %v19557_v41 }
 0x4d2   : > { %6875 = vmatmul.mubr.bf16.gmra.mrb[68].mxu0 %v19565_v30 }
 0x4d3   : > { %6917 = vmatprep.mubr.bf16.mxu0 %v21364_v35  ;;  %v1839_v35 = vld [vmem:[#allocation2 + $0x1d8] sm:$0x11] }
 0x4da   : > { %6918 = vmatmul.mubr.bf16.vlgmr.msra.gmra.mrb[0].mxu0 %v21365_v45  ;;  %v2572_v45 = vshll.u32 %v19557_v41, 16 }
 0x4db   : > { %7099 = vmatpush1.bf16.msra.mxu0 %v17028_v21  ;;  %6927 = vmatprep.mubr.bf16.mxu0 %v21366_v22  ;;  %v21381_v21 = vld [vmem:[#allocation57_spill] sm:$0xff]  ;;  %v2570_v22 = vshrl.u32 %v19557_v41, 16 }
 0x4dc   : > { %7100 = vmatprep.subr.bf16.mxu0 %v17033_v42  ;;  %v14179_v42 = vcombine.high %v1839_v35, %v1839_v35 }
 0x4df   : > { %7101 = vmatpush1.bf16.msra.mxu0 %v17031_v33  ;;  %v2574_v33 = vrot.slane %v2572_v45, 1  ;;  %v17115_v45 = vld [vmem:[#allocation13 + $0xb4] ss:$8 sps:$4 sm:$0xff]  }
 0x4e0   : > { %7102 = vmatprep.subr.bf16.mxu0 %v17036_v17  ;;  %v2577_v17 = vshll.u32 %v14179_v42, 16  ;;  %v17110_v42 = vld [vmem:[#allocation13 + $0xa0] ss:$8 sps:$4 sm:$0xff]  }
 0x4e2   : > { %6928 = vmatmul.mubr.bf16.gmra.mrb[4].mxu0 %v21316_v53  ;;  %v17046_v53 = vld [vmem:[#allocation10 + $0x860] ss:$8 sps:$4 sm:$0xff]  }
 0x4e3   : > { %6937 = vmatprep.mubr.bf16.mxu0 %v21317_v25  ;;  %7103 = vmatpush1.bf16.msra.mxu0 %v17034_v51  ;;  %v17051_v25 = vld [vmem:[#allocation10 + $0x874] ss:$8 sps:$4 sm:$0xff]   ;;  %v14178_v51 = vcombine.low %v1839_v35, %v1839_v35 }
 0x4e4   : > { %7104 = vmatprep.subr.bf16.mxu0 %v17039_v2  ;;  %v2560_v2 = vshll.u32 %v19565_v30, 16  ;;  %v17107_v35 = vld [vmem:[#allocation13 + $0x90] ss:$8 sps:$4 sm:$0xff]  }
 0x4e7   : > { %7105 = vmatpush1.bf16.msra.mxu0 %v17037_v34  ;;  %v2575_v34 = vor.u32 %v2574_v33, %v2570_v22  ;;  %v17113_v22 = vld [vmem:[#allocation13 + $0xb0] ss:$8 sps:$4 sm:$0xff]   ;;  %v17118_v33 = vld [vmem:[#allocation13 + $0xc4] ss:$8 sps:$4 sm:$0xff]  }
 0x4e8   : > { %7106 = vmatprep.subr.bf16.mxu0 %v17042_v58  ;;  %v2579_v58 = vrot.slane %v2577_v17, 1  ;;  %v17116_v17 = vld [vmem:[#allocation13 + $0xc0] ss:$8 sps:$4 sm:$0xff]  }
 0x4ea   : > { %6938 = vmatmul.mubr.bf16.gmra.mrb[8].mxu0 %v18989_v0  ;;  %v17052_v0 = vld [vmem:[#allocation10 + $0x880] ss:$8 sps:$4 sm:$0xff]  }
 0x4eb   : > { %6947 = vmatprep.mubr.bf16.mxu0 %v18994_v31  ;;  %7107 = vmatpush1.bf16.msra.mxu0 %v17040_v28  ;;  %v17057_v31 = vld [vmem:[#allocation10 + $0x894] ss:$8 sps:$4 sm:$0xff]   ;;  %v2562_v28 = vrot.slane %v2560_v2, 1  ;;  %v21403_v2 = vld [vmem:[#allocation85_spill] sm:$0xff] }
 0x4ec   : > { %7108 = vmatprep.subr.bf16.mxu0 %v17045_v24  ;;  %v2565_v24 = vshll.u32 %v14178_v51, 16  ;;  %v21402_v51 = vld [vmem:[#allocation84_spill] sm:$0xff] }
 0x4ef   : > { %7109 = vmatpush1.bf16.msra.mxu0 %v17043_v43  ;;  %v2580_v43 = vsel %vm2100_vm0, %v2575_v34, %v2579_v58  ;;  %v17121_v34 = vld [vmem:[#allocation13 + $0xd4] ss:$8 sps:$4 sm:$0xff]   ;;  %v17119_v58 = vld [vmem:[#allocation13 + $0xd0] ss:$8 sps:$4 sm:$0xff]  }
 0x4f0   : > { %7110 = vmatprep.subr.bf16.mxu0 %v17048_v14  ;;  %v2567_v14 = vrot.slane %v2565_v24, 1  ;;  %v21404_v24 = vld [vmem:[#allocation86_spill] sm:$0xff] }
 0x4f2   : > { %6948 = vmatmul.mubr.bf16.gmra.mrb[12].mxu0 %v19021_v37  ;;  %v17058_v37 = vld [vmem:[#allocation10 + $0x8a0] ss:$8 sps:$4 sm:$0xff]  }
 0x4f3   : > { %6957 = vmatprep.mubr.bf16.mxu0 %v19024_v29  ;;  %7111 = vmatpush1.bf16.msra.mxu0 %v17046_v53  ;;  %v17063_v29 = vld [vmem:[#allocation10 + $0x8b4] ss:$8 sps:$4 sm:$0xff]  }
 0x4f4   : > { %7112 = vmatprep.subr.bf16.mxu0 %v17051_v25  ;;  %v21383_v53 = vld [vmem:[#allocation63_spill] sm:$0xff]  ;;  %v21384_v25 = vld [vmem:[#allocation64_spill] sm:$0xff] }
 0x4f7   : > { %7113 = vmatpush1.bf16.msra.mxu0 %v17049_v60  ;;  %v17082_v60 = vld [vmem:[#allocation13 + $0x4] ss:$8 sps:$4 sm:$0xff]  }
 0x4f8   : > { %7114 = vmatprep.subr.bf16.mxu0 %v17054_v32  ;;  %v21385_v32 = vld [vmem:[#allocation65_spill] sm:$0xff]  ;;  %10336 = vmatprep.subr.bf16.mxu1 %v17082_v60 }
 0x4fa   : > { %6958 = vmatmul.mubr.bf16.gmra.mrb[16].mxu0 %v19045_v44  ;;  %v17064_v44 = vld [vmem:[#allocation10 + $0x8c0] ss:$8 sps:$4 sm:$0xff]  }
 0x4fb   : > { %6967 = vmatprep.mubr.bf16.mxu0 %v19049_v56  ;;  %7115 = vmatpush1.bf16.msra.mxu0 %v17052_v0  ;;  %v17069_v56 = vld [vmem:[#allocation10 + $0x8d4] ss:$8 sps:$4 sm:$0xff]  }
 0x4fc   : > { %7116 = vmatprep.subr.bf16.mxu0 %v17057_v31  ;;  %v17085_v0 = vld [vmem:[#allocation13 + $0x14] ss:$8 sps:$4 sm:$0xff]   ;;  %v17088_v31 = vld [vmem:[#allocation13 + $0x24] ss:$8 sps:$4 sm:$0xff]  }
 0x4ff   : > { %7117 = vmatpush1.bf16.msra.mxu0 %v17055_v5  ;;  %v17086_v5 = vld [vmem:[#allocation13 + $0x20] ss:$8 sps:$4 sm:$0xff]  }
 0x500   : > { %7118 = vmatprep.subr.bf16.mxu0 %v17060_v18  ;;  %v21386_v18 = vld [vmem:[#allocation66_spill] sm:$0xff] }
 0x502   : > { %6968 = vmatmul.mubr.bf16.gmra.mrb[20].mxu0 %v19058_v48  ;;  %v17070_v48 = vld [vmem:[#allocation10 + $0x8e0] ss:$8 sps:$4 sm:$0xff]  }
 0x503   : > { %6977 = vmatprep.mubr.bf16.mxu0 %v19061_v36  ;;  %7119 = vmatpush1.bf16.msra.mxu0 %v17058_v37  ;;  %v17076_v36 = vld [vmem:[#allocation10 + $0x8f4] ss:$8 sps:$4 sm:$0xff]  }
 0x504   : > { %7120 = vmatprep.subr.bf16.mxu0 %v17063_v29  ;;  %v21387_v37 = vld [vmem:[#allocation67_spill] sm:$0xff] }
 0x505   : > { %v17089_v29 = vld [vmem:[#allocation13 + $0x30] ss:$8 sps:$4 sm:$0xff]  }
 0x507   : > { %7121 = vmatpush1.bf16.msra.mxu0 %v17061_v16  ;;  %v17094_v16 = vld [vmem:[#allocation13 + $0x44] ss:$8 sps:$4 sm:$0xff]  }
 0x508   : > { %7122 = vmatprep.subr.bf16.mxu0 %v17066_v1  ;;  %v17092_v1 = vld [vmem:[#allocation13 + $0x40] ss:$8 sps:$4 sm:$0xff]  }
 0x50a   : > { %6978 = vmatmul.mubr.bf16.gmra.mrb[24].mxu0 %v19069_v4  ;;  %v21370_v4 = vld [vmem:[#allocation45_spill] sm:$0xff] }
 0x50b   : > { %6987 = vmatprep.mubr.bf16.mxu0 %v19073_v9  ;;  %7123 = vmatpush1.bf16.msra.mxu0 %v17064_v44  ;;  %v21371_v9 = vld [vmem:[#allocation46_spill] sm:$0xff]  ;;  %v21388_v44 = vld [vmem:[#allocation68_spill] sm:$0xff] }
 0x50c   : > { %7124 = vmatprep.subr.bf16.mxu0 %v17069_v56  ;;  %v17097_v56 = vld [vmem:[#allocation13 + $0x54] ss:$8 sps:$4 sm:$0xff]  }
 0x50f   : > { %7125 = vmatpush1.bf16.msra.mxu0 %v17067_v23  ;;  %v21389_v23 = vld [vmem:[#allocation69_spill] sm:$0xff] }
 0x510   : > { %7126 = vmatprep.subr.bf16.mxu0 %v17072_v47  ;;  %v17095_v47 = vld [vmem:[#allocation13 + $0x50] ss:$8 sps:$4 sm:$0xff]  }
 0x512   : > { %6988 = vmatmul.mubr.bf16.gmra.mrb[28].mxu0 %v21367_v8  ;;  %v21390_v8 = vld [vmem:[#allocation70_spill] sm:$0xff] }
 0x513   : > { %6997 = vmatprep.mubr.bf16.mxu0 %v21368_v46  ;;  %7127 = vmatpush1.bf16.msra.mxu0 %v17070_v48  ;;  %v17100_v48 = vld [vmem:[#allocation13 + $0x64] ss:$8 sps:$4 sm:$0xff]   ;;  %v17103_v46 = vld [vmem:[#allocation13 + $0x74] ss:$8 sps:$4 sm:$0xff]  }
 0x514   : > { %7128 = vmatprep.subr.bf16.mxu0 %v17076_v36  ;;  %v17098_v36 = vld [vmem:[#allocation13 + $0x60] ss:$8 sps:$4 sm:$0xff]  }
 0x517   : > { %7129 = vmatpush1.bf16.msra.mxu0 %v17074_v50  ;;  %v21391_v50 = vld [vmem:[#allocation71_spill] sm:$0xff] }
 0x51a   : > { %6998 = vmatmul.mubr.bf16.gmra.mrb[32].mxu0 %v21369_v10  ;;  %v17101_v10 = vld [vmem:[#allocation13 + $0x70] ss:$8 sps:$4 sm:$0xff]  }
 0x51b   : > { %7007 = vmatprep.mubr.bf16.mxu0 %v21370_v4  ;;  %v17106_v4 = vld [vmem:[#allocation13 + $0x84] ss:$8 sps:$4 sm:$0xff]  }
 0x522   : > { %7008 = vmatmul.mubr.bf16.gmra.mrb[36].mxu0 %v21371_v9  ;;  %v17104_v9 = vld [vmem:[#allocation13 + $0x80] ss:$8 sps:$4 sm:$0xff]  }
 0x523   : > { %7017 = vmatprep.mubr.bf16.mxu0 %v21372_v26  ;;  %v21392_v26 = vld [vmem:[#allocation72_spill] sm:$0xff] }
 0x52a   : > { %7018 = vmatmul.mubr.bf16.gmra.mrb[40].mxu0 %v21373_v40  ;;  %v21393_v40 = vld [vmem:[#allocation73_spill] sm:$0xff] }
 0x52b   : > { %7027 = vmatprep.mubr.bf16.mxu0 %v21374_v39  ;;  %v21394_v39 = vld [vmem:[#allocation74_spill] sm:$0xff] }
 0x532   : > { %7028 = vmatmul.mubr.bf16.gmra.mrb[44].mxu0 %v21375_v57  ;;  %v21395_v57 = vld [vmem:[#allocation76_spill] sm:$0xff] }
 0x533   : > { %7037 = vmatprep.mubr.bf16.mxu0 %v21376_v15  ;;  %v21396_v15 = vld [vmem:[#allocation78_spill] sm:$0xff] }
 0x53a   : > { %7038 = vmatmul.mubr.bf16.gmra.mrb[48].mxu0 %v21377_v59  ;;  %v21397_v59 = vld [vmem:[#allocation79_spill] sm:$0xff] }
 0x53b   : > { %7047 = vmatprep.mubr.bf16.mxu0 %v21378_v54  ;;  %v21398_v54 = vld [vmem:[#allocation80_spill] sm:$0xff] }
 0x542   : > { %7048 = vmatmul.mubr.bf16.gmra.mrb[52].mxu0 %v21379_v12  ;;  %v17109_v12 = vld [vmem:[#allocation13 + $0x94] ss:$8 sps:$4 sm:$0xff]  }
 0x543   : > { %7057 = vmatprep.mubr.bf16.mxu0 %v21380_v55  ;;  %v21399_v55 = vld [vmem:[#allocation81_spill] sm:$0xff] }
 0x54a   : > { %7058 = vmatmul.mubr.bf16.gmra.mrb[56].mxu0 %v21325_v7  ;;  %v2558_v7 = vshrl.u32 %v19565_v30, 16  ;;  %v17080_v30 = vld [vmem:[#allocation13] ss:$8 sps:$4 sm:$0xff]  }
 0x54b   : > { %7067 = vmatprep.mubr.bf16.mxu0 %v21381_v21  ;;  %10337 = vmatpush1.bf16.msra.mxu1 %v17080_v30  ;;  %v17112_v21 = vld [vmem:[#allocation13 + $0xa4] ss:$8 sps:$4 sm:$0xff]  }
 0x54c   : > { %v2563_v41 = vor.u32 %v2562_v28, %v2558_v7  ;;  %10338 = vmatprep.subr.bf16.mxu1 %v17085_v0  ;;  %v17124_v7 = vld [vmem:[#allocation13 + $0xe4] ss:$8 sps:$4 sm:$0xff]   ;;  %v17122_v28 = vld [vmem:[#allocation13 + $0xe0] ss:$8 sps:$4 sm:$0xff]  }
 0x54d   : > { %v19641_v30 = vld [vmem:[#allocation2 + $0x8] sm:$0xff] }
 0x552   : > { %7068 = vmatmul.mubr.bf16.gmra.mrb[60].mxu0 %v21327_v38  ;;  %v2568_v38 = vsel %vm2100_vm0, %v2563_v41, %v2567_v14  ;;  %v17127_v41 = vld [vmem:[#allocation13 + $0xf4] ss:$8 sps:$4 sm:$0xff]   ;;  %v17125_v14 = vld [vmem:[#allocation13 + $0xf0] ss:$8 sps:$4 sm:$0xff]  }
 0x553   : > { %7077 = vmatprep.mubr.bf16.mxu0 %v19463_v3  ;;  %v21382_v3 = vld [vmem:[#allocation62_spill] sm:$0xff] }
 0x55a   : > { %7078 = vmatmul.mubr.bf16.gmra.mrb[64].mxu0 %v19468_v63  ;;  %v17083_v63 = vld [vmem:[#allocation13 + $0x10] ss:$8 sps:$4 sm:$0xff]  }
 0x55b   : > { %7087 = vmatprep.mubr.bf16.mxu0 %v2580_v43  ;;  %10339 = vmatpush1.bf16.msra.mxu1 %v17083_v63  ;;  %v21405_v43 = vld [vmem:[#allocation87_spill] sm:$0xff] }
 0x55c   : > { %10340 = vmatprep.subr.bf16.mxu1 %v17088_v31 }
 0x55f   : > { %10341 = vmatpush1.bf16.msra.mxu1 %v17086_v5 }
 0x562   : > { %7088 = vmatmul.mubr.bf16.gmra.mrb[68].mxu0 %v2568_v38  ;;  %v21406_v38 = vld [vmem:[#allocation88_spill] sm:$0xff] }
 0x563   : > { %7130 = vmatprep.mubr.bf16.mxu0 %v21330_v27  ;;  %v17091_v27 = vld [vmem:[#allocation13 + $0x34] ss:$8 sps:$4 sm:$0xff]  }
 0x564   : > { %10342 = vmatprep.subr.bf16.mxu1 %v17091_v27 }
 0x565   : > { %10343 = vmatpush1.bf16.msra.mxu1 %v17089_v29 }
 0x566   : > { %10344 = vmatprep.subr.bf16.mxu1 %v17094_v16 }
 0x569   : > { %10345 = vmatpush1.bf16.msra.mxu1 %v17092_v1 }
 0x56a   : > { %7131 = vmatmul.mubr.bf16.vlgmr.msra.gmra.mrb[0].mxu0 %v21382_v3  ;;  %10346 = vmatprep.subr.bf16.mxu1 %v17097_v56  ;;  %v21407_v3 = vld [vmem:[#allocation89_spill] sm:$0xff] }
 0x56b   : > { %7140 = vmatprep.mubr.bf16.mxu0 %v21383_v53  ;;  %v2718_v53 = vld [vmem:[#allocation2 + $0x1c8] sm:$0xee] }
 0x56c   : > { %v14257_v60 = vcombine.high %v2718_v53, %v19641_v30  ;;  %v14256_v31 = vcombine.low %v2718_v53, %v19641_v30 }
 0x56d   : > { %10347 = vmatpush1.bf16.msra.mxu1 %v17095_v47 }
 0x56e   : > { %10348 = vmatprep.subr.bf16.mxu1 %v17100_v48  ;;  %v3099_v0 = vrot.slane %v14257_v60, 1 }
 0x571   : > { %10349 = vmatpush1.bf16.msra.mxu1 %v17098_v36 }
 0x572   : > { %7141 = vmatmul.mubr.bf16.gmra.mrb[4].mxu0 %v21384_v25  ;;  %10350 = vmatprep.subr.bf16.mxu1 %v17103_v46  ;;  %v2720_v25 = vld [vmem:[#allocation2 + $0x1d8] sm:$0x11] }
 0x573   : > { %7150 = vmatprep.mubr.bf16.mxu0 %v21385_v32  ;;  %v14259_v32 = vcombine.high %v2720_v25, %v2720_v25  ;;  %v14258_v5 = vcombine.low %v2720_v25, %v2720_v25 }
 0x575   : > { %10351 = vmatpush1.bf16.msra.mxu1 %v17101_v10  ;;  %v3100_v63 = vrot.slane %v14259_v32, 1 }
 0x576   : > { %10352 = vmatprep.subr.bf16.mxu1 %v17106_v4 }
 0x579   : > { %10353 = vmatpush1.bf16.msra.mxu1 %v17104_v9 }
 0x57a   : > { %7151 = vmatmul.mubr.bf16.gmra.mrb[8].mxu0 %v21386_v18  ;;  %10354 = vmatprep.subr.bf16.mxu1 %v17109_v12  ;;  %v3097_v18 = vrot.slane %v14258_v5, 1 }
 0x57b   : > { %7160 = vmatprep.mubr.bf16.mxu0 %v21387_v37  ;;  %v17130_v37 = vld [vmem:[#allocation13 + $0x104] ss:$8 sps:$4 sm:$0xff]  }
 0x57d   : > { %10355 = vmatpush1.bf16.msra.mxu1 %v17107_v35 }
 0x57e   : > { %10356 = vmatprep.subr.bf16.mxu1 %v17112_v21 }
 0x581   : > { %10357 = vmatpush1.bf16.msra.mxu1 %v17110_v42 }
 0x582   : > { %7161 = vmatmul.mubr.bf16.gmra.mrb[12].mxu0 %v21388_v44  ;;  %10358 = vmatprep.subr.bf16.mxu1 %v17115_v45  ;;  %v3182_v45 = vld [vmem:[#allocation12] sm:$0x3] }
 0x583   : > { %7170 = vmatprep.mubr.bf16.mxu0 %v21389_v23 }
 0x585   : > { %10359 = vmatpush1.bf16.msra.mxu1 %v17113_v22 }
 0x586   : > { %10360 = vmatprep.subr.bf16.mxu1 %v17118_v33 }
 0x589   : > { %10361 = vmatpush1.bf16.msra.mxu1 %v17116_v17 }
 0x58a   : > { %7171 = vmatmul.mubr.bf16.gmra.mrb[16].mxu0 %v21390_v8  ;;  %10362 = vmatprep.subr.bf16.mxu1 %v17121_v34 }
 0x58b   : > { %7180 = vmatprep.mubr.bf16.mxu0 %v21391_v50 }
 0x58d   : > { %10363 = vmatpush1.bf16.msra.mxu1 %v17119_v58 }
 0x58e   : > { %10364 = vmatprep.subr.bf16.mxu1 %v17124_v7 }
 0x591   : > { %10365 = vmatpush1.bf16.msra.mxu1 %v17122_v28 }
 0x592   : > { %7181 = vmatmul.mubr.bf16.gmra.mrb[20].mxu0 %v21392_v26  ;;  %10366 = vmatprep.subr.bf16.mxu1 %v17127_v41 }
 0x593   : > { %7190 = vmatprep.mubr.bf16.mxu0 %v21393_v40 }
 0x595   : > { %10367 = vmatpush1.bf16.msra.mxu1 %v17125_v14 }
 0x596   : > { %10529 = vmatprep.subr.bf16.mxu1 %v17130_v37 }
 0x59a   : > { %7191 = vmatmul.mubr.bf16.gmra.mrb[24].mxu0 %v21394_v39 }
 0x59b   : > { %7200 = vmatprep.mubr.bf16.mxu0 %v21344_v19  ;;  %v21400_v19 = vld [vmem:[#allocation82_spill] sm:$0xff] }
 0x5a2   : > { %7201 = vmatmul.mubr.bf16.gmra.mrb[28].mxu0 %v21395_v57 }
 0x5a3   : > { %7210 = vmatprep.mubr.bf16.mxu0 %v21346_v52  ;;  %v21401_v52 = vld [vmem:[#allocation83_spill] sm:$0xff] }
 0x5aa   : > { %7211 = vmatmul.mubr.bf16.gmra.mrb[32].mxu0 %v21396_v15 }
 0x5ab   : > { %7220 = vmatprep.mubr.bf16.mxu0 %v21397_v59 }
 0x5b2   : > { %7221 = vmatmul.mubr.bf16.gmra.mrb[36].mxu0 %v21398_v54  ;;  %v3184_v54 = vlaneseq }
 0x5b3   : > { %7230 = vmatprep.mubr.bf16.mxu0 %v21399_v55 }
 0x5b4   : > { %v19698_v12 = vshrl.u32 %v3184_v54, 7 }
 0x5b6   : > { %21408 = vst [vmem:[#allocation33_spill] sm:$0xff] %v19698_v12 }
 0x5ba   : > { %7231 = vmatmul.mubr.bf16.gmra.mrb[40].mxu0 %v21400_v19  ;;  %v21100_v19 = vsub.s32 0, %v19698_v12 }
 0x5bb   : > { %7240 = vmatprep.mubr.bf16.mxu0 %v21401_v52  ;;  %v21099_v52 = vsub.s32 1, %v19698_v12 }
 0x5bc   : > { %v19712_v22 = vrot.slane %v3182_v45, %v21100_v19 }
 0x5bd   : > { %v19716_v33 = vrot.slane %v3182_v45, %v21099_v52  ;;  %v17133_v52 = vld [vmem:[#allocation13 + $0x114] ss:$8 sps:$4 sm:$0xff]  }
 0x5c2   : > { %7241 = vmatmul.mubr.bf16.gmra.mrb[44].mxu0 %v21402_v51 }
 0x5c3   : > { %7250 = vmatprep.mubr.bf16.mxu0 %v21403_v2 }
 0x5ca   : > { %7251 = vmatmul.mubr.bf16.gmra.mrb[48].mxu0 %v21404_v24 }
 0x5cb   : > { %7260 = vmatprep.mubr.bf16.mxu0 %v21405_v43 }
 0x5d2   : > { %7261 = vmatmul.mubr.bf16.gmra.mrb[52].mxu0 %v21406_v38 }
 0x5d3   : > { %7270 = vmatprep.mubr.bf16.mxu0 %v21407_v3 }
 0x5da   : > { %7271 = vmatmul.mubr.bf16.gmra.mrb[56].mxu0 %v19345_v6  ;;  %v3101_v6 = vsel %vm2981_vm1, %v3099_v0, %v3100_v63 }
 0x5db   : > { %7280 = vmatprep.mubr.bf16.mxu0 %v19348_v11  ;;  %v3096_v11 = vrot.slane %v14256_v31, 1 }
 0x5dd   : > { %v3098_v27 = vsel %vm2981_vm1, %v3096_v11, %v3097_v18 }
 0x5e2   : > { %7281 = vmatmul.mubr.bf16.gmra.mrb[60].mxu0 %v19359_v49  ;;  %v19650_v49 = vpop.f32.mrb[0].mxu1 }
 0x5e3   : > { %7290 = vmatprep.mubr.bf16.mxu0 %v19507_v62  ;;  %v19652_v62 = vpop.f32.mrb[1].mxu1 }
 0x5e4   : > { %v19654_v29 = vpop.f32.mrb[2].mxu1 }
 0x5e5   : > { %v19656_v16 = vpop.f32.mrb[3].mxu1 }
 0x5e6   : > { %v19658_v1 = vpop.f32.mrb[4].mxu1 }
 0x5e7   : > { %v19660_v44 = vpop.f32.mrb[5].mxu1 }
 0x5ea   : > { %7291 = vmatmul.mubr.bf16.gmra.mrb[64].mxu0 %v19512_v61  ;;  %v19662_v61 = vpop.f32.mrb[6].mxu1 }
 0x5eb   : > { %7300 = vmatprep.mubr.bf16.mxu0 %v3101_v6  ;;  %v19664_v56 = vpop.f32.mrb[7].mxu1 }
 0x5ec   : > { %v19666_v23 = vpop.f32.mrb[8].mxu1 }
 0x5ed   : > { %v19668_v47 = vpop.f32.mrb[9].mxu1 }
 0x5ee   : > { %v19670_v48 = vpop.f32.mrb[10].mxu1 }
 0x5ef   : > { %v19672_v36 = vpop.f32.mrb[11].mxu1 }
 0x5f0   : > { %v19674_v8 = vpop.f32.mrb[12].mxu1 }
 0x5f1   : > { %v19676_v46 = vpop.f32.mrb[13].mxu1 }
 0x5f2   : > { %7301 = vmatmul.mubr.bf16.gmra.mrb[68].mxu0 %v3098_v27  ;;  %v19678_v50 = vpop.f32.mrb[14].mxu1 }
 0x5f3   : > { %v19680_v10 = vpop.f32.mrb[15].mxu1 }
 0x5f4   : > { %v19682_v4 = vpop.f32.mrb[16].mxu1 }
 0x5f5   : > { %v19684_v9 = vpop.f32.mrb[17].mxu1 }
 0x5f6   : > { %v19686_v26 = vpop.f32.mrb[18].mxu1 }
 0x5f7   : > { %v19688_v40 = vpop.f32.mrb[19].mxu1 }
 0x5f8   : > { %v19690_v39 = vpop.f32.mrb[20].mxu1 }
 0x5f9   : > { %v19692_v57 = vpop.f32.mrb[21].mxu1 }
 0x5fa   : > { %v19694_v15 = vpop.f32.mrb[22].mxu1 }
 0x5fb   : > { %v19696_v59 = vpop.f32.mrb[23].mxu1 }
 0x5fc   : > { %v19700_v55 = vpop.f32.mrb[24].mxu1 }
 0x5fd   : > { %v19702_v35 = vpop.f32.mrb[25].mxu1 }
 0x5fe   : > { %v19704_v21 = vpop.f32.mrb[26].mxu1 }
 0x5ff   : > { %v19706_v42 = vpop.f32.mrb[27].mxu1 }
 0x600   : > { %v19718_v51 = vpop.f32.mrb[28].mxu1 }
 0x601   : > { %v19721_v58 = vpop.f32.mrb[29].mxu1 }
 0x602   : > { %v19724_v24 = vpop.f32.mrb[30].mxu1 }
 0x603   : > { %v19727_v38 = vpop.f32.mrb[31].mxu1 }
 0x604   : > { %v19730_v5 = vpop.f32.mrb[32].mxu1 }
 0x605   : > { %21409 = vst [vmem:[#allocation34_spill] sm:$0xff] %v19730_v5  ;;  %v19733_v18 = vpop.f32.mrb[33].mxu1 }
 0x606   : > { %21410 = vst [vmem:[#allocation35_spill] sm:$0xff] %v19733_v18 }
 0x63d   : > { %v7132_v17 = vpop.f32.mrb[0].mxu0 }
 0x63e   : > { %v15171_v2 = vadd.f32 %v7132_v17, %v19712_v22  ;;  %v7134_v34 = vpop.f32.mrb[1].mxu0 }
 0x63f   : > { %v15172_v7 = vadd.f32 %v7134_v34, %v19716_v33  ;;  %v7136_v28 = vpop.f32.mrb[2].mxu0  ;;  %v7996_v34 = vld [vmem:[#allocation2 + $0x18] sm:$0xff] }
 0x640   : > { %v7383_v43 = vmax.f32 %v15171_v2, 0.0  ;;  %v15173_v41 = vadd.f32 %v7136_v28, %v19712_v22  ;;  %v7138_v14 = vpop.f32.mrb[3].mxu0  ;;  %v19736_v2 = vpop.f32.mrb[34].mxu1 }
 0x641   : > { %v7384_v3 = vmax.f32 %v15172_v7, 0.0  ;;  %v15174_v53 = vadd.f32 %v7138_v14, %v19716_v33  ;;  %21411 = vst [vmem:[#allocation36_spill] sm:$0xff] %v19736_v2 }
 0x642   : > { %v7385_v25 = vmax.f32 %v15173_v41, 0.0  ;;  %v19739_v41 = vpop.f32.mrb[35].mxu1 }
 0x643   : > { %v15101_v60 = vpack.c.bf16 %v7384_v3, %v7383_v43  ;;  %v7386_v32 = vmax.f32 %v15174_v53, 0.0  ;;  %21412 = vst [vmem:[#allocation40_spill] sm:$0xff] %v19739_v41 }
 0x645   : > { %v7636_v0 = vshrl.u32 %v15101_v60, 16  ;;  %v15102_v63 = vpack.c.bf16 %v7386_v32, %v7385_v25  ;;  %v7142_v31 = vpop.f32.mrb[4].mxu0  ;;  %v7639_v37 = vshll.u32 %v15101_v60, 16  ;;  %v8000_v25 = vld [vmem:[#allocation2 + $0x28] sm:$0x11] }
 0x646   : > { %v15175_v6 = vadd.f32 %v7142_v31, %v19712_v22  ;;  %v7144_v11 = vpop.f32.mrb[5].mxu0 }
 0x647   : > { %v7638_v27 = vrot.slane %v7636_v0, 7  ;;  %v7644_v54 = vshrl.u32 %v15102_v63, 16  ;;  %v15176_v45 = vadd.f32 %v7144_v11, %v19716_v33  ;;  %v7146_v17 = vpop.f32.mrb[6].mxu0 }
 0x648   : > { %v7387_v7 = vmax.f32 %v15175_v6, 0.0  ;;  %v15177_v28 = vadd.f32 %v7146_v17, %v19712_v22  ;;  %v7148_v43 = vpop.f32.mrb[7].mxu0 }
 0x649   : > { %v7641_v14 = vor.u32 %v7639_v37, %v7638_v27  ;;  %v7388_v3 = vmax.f32 %v15176_v45, 0.0  ;;  %v15178_v53 = vadd.f32 %v7148_v43, %v19716_v33  ;;  %v17723_v0 = vrot.slane %v7644_v54, 11 }
 0x64a   : > { %v7389_v32 = vmax.f32 %v15177_v28, 0.0 }
 0x64b   : > { %v7997_v60 = vsel %vm18414_vm13, %v7641_v14, %v7996_v34  ;;  %v15103_v63 = vpack.c.bf16 %v7388_v3, %v7387_v7  ;;  %v7390_v31 = vmax.f32 %v15178_v53, 0.0  ;;  %v8001_v11 = vsel %vm18408_vm8, %v17723_v0, %v8000_v25  ;;  %v17128_v34 = vld [vmem:[#allocation13 + $0x100] ss:$8 sps:$4 sm:$0xff]   ;;  %v8003_v25 = vld [vmem:[#allocation2 + $0x30] sm:$0xff] }
 0x64c   : > { %v8126_v6 = vsel %vm18414_vm13, 0, %v7997_v60  ;;  %8002 = vst [vmem:[#allocation2 + $0x28] sm:$0x11] %v8001_v11 }
 0x64d   : > { %8127 = vst [vmem:[#allocation2 + $0x18] sm:$0xff] %v8126_v6  ;;  %v7653_v17 = vshrl.u32 %v15103_v63, 16  ;;  %v15104_v27 = vpack.c.bf16 %v7390_v31, %v7389_v32  ;;  %v7152_v37 = vpop.f32.mrb[8].mxu0  ;;  %v14584_v43 = vcombine.low %v8126_v6, %v19641_v30  ;;  %v14585_v54 = vcombine.high %v8126_v6, %v19641_v30  ;;  %v8007_v6 = vld [vmem:[#allocation2 + $0x40] sm:$0x11] }
 0x64e   : > { %v15179_v45 = vadd.f32 %v7152_v37, %v19712_v22  ;;  %v7154_v28 = vpop.f32.mrb[9].mxu0  ;;  %v7656_v14 = vshll.u32 %v15103_v63, 16 }
 0x64f   : > { %v7655_v7 = vrot.slane %v7653_v17, 7  ;;  %v7661_v3 = vshrl.u32 %v15104_v27, 16  ;;  %v15180_v53 = vadd.f32 %v7154_v28, %v19716_v33  ;;  %v7156_v60 = vpop.f32.mrb[10].mxu0  ;;  %10368 = vmatprep.mubr.bf16.mxu1 %v14585_v54  ;;  %v7664_v19 = vshll.u32 %v15104_v27, 16  ;;  %v17131_v28 = vld [vmem:[#allocation13 + $0x110] ss:$8 sps:$4 sm:$0xff]  }
 0x650   : > { %v7391_v0 = vmax.f32 %v15179_v45, 0.0  ;;  %v15181_v32 = vadd.f32 %v7156_v60, %v19712_v22  ;;  %v7158_v31 = vpop.f32.mrb[11].mxu0  ;;  %10369 = vmatmul.mubr.bf16.vlgmr.msra.gmra.mrb[36].mxu1 %v14584_v43  ;;  %v17136_v54 = vld [vmem:[#allocation13 + $0x124] ss:$8 sps:$4 sm:$0xff]  }
 0x651   : > { %v7658_v11 = vor.u32 %v7656_v14, %v7655_v7  ;;  %v7663_v37 = vrot.slane %v7661_v3, 7  ;;  %v7392_v12 = vmax.f32 %v15180_v53, 0.0  ;;  %v7659_v30 = vrot.slane %v7655_v7, 4  ;;  %10530 = vmatpush1.bf16.msra.mxu1 %v17128_v34 }
 0x652   : > { %v7393_v17 = vmax.f32 %v15181_v32, 0.0  ;;  %v15182_v63 = vadd.f32 %v7158_v31, %v19716_v33  ;;  %10531 = vmatprep.subr.bf16.mxu1 %v17133_v52 }
 0x653   : > { %v8004_v41 = vsel %vm18414_vm13, %v7658_v11, %v8003_v25  ;;  %v7666_v45 = vor.u32 %v7664_v19, %v7663_v37  ;;  %v7668_v2 = vrot.slane %v7663_v37, 4  ;;  %v15105_v60 = vpack.c.bf16 %v7392_v12, %v7391_v0  ;;  %v8129_v27 = vld [vmem:[#allocation2 + $0x28] sm:$0x11] }
 0x654   : > { %8005 = vst [vmem:[#allocation2 + $0x30] sm:$0xff] %v8004_v41  ;;  %v7394_v14 = vmax.f32 %v15182_v63, 0.0  ;;  %v8130_v32 = vsel %vm18408_vm8, 0, %v8129_v27  ;;  %v17134_v0 = vld [vmem:[#allocation13 + $0x120] ss:$8 sps:$4 sm:$0xff]  }
 0x655   : > { %v7667_v43 = vsel %vm18451_vm15, %v7659_v30, %v7666_v45  ;;  %v8008_v7 = vsel %vm18408_vm8, %v7668_v2, %v8007_v6  ;;  %v7670_v53 = vshrl.u32 %v15105_v60, 16  ;;  %v7162_v34 = vpop.f32.mrb[12].mxu0  ;;  %10532 = vmatpush1.bf16.msra.mxu1 %v17131_v28  ;;  %8131 = vst [vmem:[#allocation2 + $0x28] sm:$0x11] %v8130_v32  ;;  %v7673_v11 = vshll.u32 %v15105_v60, 16  ;;  %v8010_v63 = vld [vmem:[#allocation2 + $0x48] sm:$0xff] }
 0x656   : > { %8006 = vst [vmem:[#allocation2 + $0x38] sm:$0xff] %v7667_v43  ;;  %8009 = vst [vmem:[#allocation2 + $0x40] sm:$0x11] %v8008_v7  ;;  %v15106_v19 = vpack.c.bf16 %v7394_v14, %v7393_v17  ;;  %v15183_v12 = vadd.f32 %v7162_v34, %v19712_v22  ;;  %v7164_v52 = vpop.f32.mrb[13].mxu0  ;;  %v19763_v25 = vcombine.high %v8004_v41, %v7667_v43  ;;  %10533 = vmatprep.subr.bf16.mxu1 %v17136_v54  ;;  %v17139_v6 = vld [vmem:[#allocation13 + $0x134] ss:$8 sps:$4 sm:$0xff]  }
 0x657   : > { %v7672_v31 = vrot.slane %v7670_v53, 7  ;;  %v15184_v2 = vadd.f32 %v7164_v52, %v19716_v33  ;;  %v7166_v37 = vpop.f32.mrb[14].mxu0  ;;  %v19766_v30 = vcombine.low %v8004_v41, %v7667_v43  ;;  %v17137_v54 = vld [vmem:[#allocation13 + $0x130] ss:$8 sps:$4 sm:$0xff]  }
 0x658   : > { %21414 = vst [vmem:[#allocation41_spill] sm:$0xff] %v19763_v25  ;;  %v7678_v45 = vshrl.u32 %v15106_v19, 16  ;;  %v7395_v17 = vmax.f32 %v15183_v12, 0.0  ;;  %v15185_v14 = vadd.f32 %v7166_v37, %v19712_v22  ;;  %v7168_v27 = vpop.f32.mrb[15].mxu0  ;;  %10378 = vmatprep.mubr.bf16.mxu1 %v19763_v25  ;;  %v7681_v34 = vshll.u32 %v15106_v19, 16 }
 0x659   : > { %21415 = vst [vmem:[#allocation56_spill] sm:$0xff] %v19766_v30  ;;  %v7675_v28 = vor.u32 %v7673_v11, %v7672_v31  ;;  %v7396_v7 = vmax.f32 %v15184_v2, 0.0  ;;  %v15186_v53 = vadd.f32 %v7168_v27, %v19716_v33  ;;  %10379 = vmatmul.mubr.bf16.gmra.mrb[40].mxu1 %v19766_v30  ;;  %v8014_v32 = vld [vmem:[#allocation2 + $0x58] sm:$0x11]  ;;  %v17142_v37 = vld [vmem:[#allocation13 + $0x144] ss:$8 sps:$4 sm:$0xff]  }
 0x65a   : > { %v7680_v60 = vrot.slane %v7678_v45, 7  ;;  %v7397_v41 = vmax.f32 %v15185_v14, 0.0  ;;  %10534 = vmatpush1.bf16.msra.mxu1 %v17134_v0  ;;  %v7676_v25 = vrot.slane %v7672_v31, 4 }
 0x65b   : > { %v8011_v43 = vsel %vm18414_vm13, %v7675_v28, %v8010_v63  ;;  %v15107_v12 = vpack.c.bf16 %v7396_v7, %v7395_v17  ;;  %v7398_v52 = vmax.f32 %v15186_v53, 0.0  ;;  %10535 = vmatprep.subr.bf16.mxu1 %v17139_v6  ;;  %v17140_v17 = vld [vmem:[#allocation13 + $0x140] ss:$8 sps:$4 sm:$0xff]   ;;  %v17145_v53 = vld [vmem:[#allocation13 + $0x154] ss:$8 sps:$4 sm:$0xff]  }
 0x65c   : > { %8012 = vst [vmem:[#allocation2 + $0x48] sm:$0xff] %v8011_v43  ;;  %v7683_v11 = vor.u32 %v7681_v34, %v7680_v60  ;;  %v7685_v2 = vrot.slane %v7680_v60, 4  ;;  %v8017_v60 = vld [vmem:[#allocation2 + $0x60] sm:$0xff] }
 0x65d   : > { %v7687_v27 = vshrl.u32 %v15107_v12, 16  ;;  %v15108_v18 = vpack.c.bf16 %v7398_v52, %v7397_v41  ;;  %v7172_v30 = vpop.f32.mrb[16].mxu0  ;;  %v7690_v6 = vshll.u32 %v15107_v12, 16 }
 0x65e   : > { %v7684_v19 = vsel %vm18451_vm15, %v7676_v25, %v7683_v11  ;;  %v8015_v0 = vsel %vm18408_vm8, %v7685_v2, %v8014_v32  ;;  %v15187_v63 = vadd.f32 %v7172_v30, %v19712_v22  ;;  %v7174_v45 = vpop.f32.mrb[17].mxu0  ;;  %10536 = vmatpush1.bf16.msra.mxu1 %v17137_v54 }
 0x65f   : > { %8013 = vst [vmem:[#allocation2 + $0x50] sm:$0xff] %v7684_v19  ;;  %8016 = vst [vmem:[#allocation2 + $0x58] sm:$0x11] %v8015_v0  ;;  %v7689_v31 = vrot.slane %v7687_v27, 7  ;;  %v7695_v14 = vshrl.u32 %v15108_v18, 16  ;;  %v15188_v28 = vadd.f32 %v7174_v45, %v19716_v33  ;;  %v7176_v7 = vpop.f32.mrb[18].mxu0  ;;  %10537 = vmatprep.subr.bf16.mxu1 %v17142_v37  ;;  %v19781_v32 = vcombine.high %v8011_v43, %v7684_v19 }
 0x660   : > { %v7399_v25 = vmax.f32 %v15187_v63, 0.0  ;;  %v15189_v34 = vadd.f32 %v7176_v7, %v19712_v22  ;;  %v7178_v41 = vpop.f32.mrb[19].mxu0  ;;  %v19783_v30 = vcombine.low %v8011_v43, %v7684_v19  ;;  %v7698_v11 = vshll.u32 %v15108_v18, 16  ;;  %v8021_v27 = vld [vmem:[#allocation2 + $0x70] sm:$0x11] }
 0x661   : > { %21416 = vst [vmem:[#allocation58_spill] sm:$0xff] %v19781_v32  ;;  %v7692_v54 = vor.u32 %v7690_v6, %v7689_v31  ;;  %v7697_v52 = vrot.slane %v7695_v14, 7  ;;  %v7400_v2 = vmax.f32 %v15188_v28, 0.0  ;;  %v7693_v12 = vrot.slane %v7689_v31, 4  ;;  %10388 = vmatprep.mubr.bf16.mxu1 %v19781_v32  ;;  %v17143_v37 = vld [vmem:[#allocation13 + $0x150] ss:$8 sps:$4 sm:$0xff]  }
 0x662   : > { %21417 = vst [vmem:[#allocation59_spill] sm:$0xff] %v19783_v30  ;;  %v7401_v0 = vmax.f32 %v15189_v34, 0.0  ;;  %v15190_v45 = vadd.f32 %v7178_v41, %v19716_v33  ;;  %10538 = vmatpush1.bf16.msra.mxu1 %v17140_v17  ;;  %v17148_v18 = vld [vmem:[#allocation13 + $0x164] ss:$8 sps:$4 sm:$0xff]   ;;  %v17146_v41 = vld [vmem:[#allocation13 + $0x160] ss:$8 sps:$4 sm:$0xff]  }
 0x663   : > { %v8018_v63 = vsel %vm18414_vm13, %v7692_v54, %v8017_v60  ;;  %v7700_v7 = vor.u32 %v7698_v11, %v7697_v52  ;;  %v7702_v5 = vrot.slane %v7697_v52, 4  ;;  %v15109_v43 = vpack.c.bf16 %v7400_v2, %v7399_v25  ;;  %10389 = vmatmul.mubr.bf16.gmra.mrb[44].mxu1 %v19783_v30  ;;  %10539 = vmatprep.subr.bf16.mxu1 %v17145_v53 }
 0x664   : > { %8019 = vst [vmem:[#allocation2 + $0x60] sm:$0xff] %v8018_v63  ;;  %v7402_v19 = vmax.f32 %v15190_v45, 0.0 }
 0x665   : > { %v7701_v31 = vsel %vm18451_vm15, %v7693_v12, %v7700_v7  ;;  %v8022_v6 = vsel %vm18408_vm8, %v7702_v5, %v8021_v27  ;;  %v7704_v17 = vshrl.u32 %v15109_v43, 16  ;;  %v7182_v14 = vpop.f32.mrb[20].mxu0  ;;  %v7707_v52 = vshll.u32 %v15109_v43, 16  ;;  %v17151_v5 = vld [vmem:[#allocation13 + $0x174] ss:$8 sps:$4 sm:$0xff]  }
 0x666   : > { %8020 = vst [vmem:[#allocation2 + $0x68] sm:$0xff] %v7701_v31  ;;  %8023 = vst [vmem:[#allocation2 + $0x70] sm:$0x11] %v8022_v6  ;;  %v15110_v28 = vpack.c.bf16 %v7402_v19, %v7401_v0  ;;  %v15191_v60 = vadd.f32 %v7182_v14, %v19712_v22  ;;  %v7184_v25 = vpop.f32.mrb[21].mxu0  ;;  %v19795_v34 = vcombine.high %v8018_v63, %v7701_v31  ;;  %10540 = vmatpush1.bf16.msra.mxu1 %v17143_v37  ;;  %v8024_v12 = vld [vmem:[#allocation2 + $0x78] sm:$0xff] }
 0x667   : > { %v19797_v53 = vcombine.low %v8018_v63, %v7701_v31  ;;  %v7706_v54 = vrot.slane %v7704_v17, 7  ;;  %v15192_v11 = vadd.f32 %v7184_v25, %v19716_v33  ;;  %v7186_v2 = vpop.f32.mrb[22].mxu0  ;;  %10541 = vmatprep.subr.bf16.mxu1 %v17148_v18  ;;  %v17149_v17 = vld [vmem:[#allocation13 + $0x170] ss:$8 sps:$4 sm:$0xff]   ;;  %v8028_v14 = vld [vmem:[#allocation2 + $0x88] sm:$0x11] }
 0x668   : > { %21418 = vst [vmem:[#allocation60_spill] sm:$0xff] %v19795_v34  ;;  %v7712_v27 = vshrl.u32 %v15110_v28, 16  ;;  %v7403_v45 = vmax.f32 %v15191_v60, 0.0  ;;  %v15193_v0 = vadd.f32 %v7186_v2, %v19712_v22  ;;  %v7188_v7 = vpop.f32.mrb[23].mxu0  ;;  %10398 = vmatprep.mubr.bf16.mxu1 %v19795_v34  ;;  %v7715_v6 = vshll.u32 %v15110_v28, 16 }
 0x669   : > { %21419 = vst [vmem:[#allocation61_spill] sm:$0xff] %v19797_v53  ;;  %v7709_v19 = vor.u32 %v7707_v52, %v7706_v54  ;;  %v7404_v63 = vmax.f32 %v15192_v11, 0.0  ;;  %v15194_v37 = vadd.f32 %v7188_v7, %v19716_v33  ;;  %v17154_v2 = vld [vmem:[#allocation13 + $0x184] ss:$8 sps:$4 sm:$0xff]   ;;  %v7710_v34 = vrot.slane %v7706_v54, 4 }
 0x66a   : > { %v7714_v31 = vrot.slane %v7712_v27, 7  ;;  %v7405_v43 = vmax.f32 %v15193_v0, 0.0  ;;  %10542 = vmatpush1.bf16.msra.mxu1 %v17146_v41 }
 0x66b   : > { %v8025_v18 = vsel %vm18414_vm13, %v7709_v19, %v8024_v12  ;;  %v15111_v25 = vpack.c.bf16 %v7404_v63, %v7403_v45  ;;  %v7406_v60 = vmax.f32 %v15194_v37, 0.0  ;;  %10399 = vmatmul.mubr.bf16.gmra.mrb[48].mxu1 %v19797_v53  ;;  %10543 = vmatprep.subr.bf16.mxu1 %v17151_v5  ;;  %v17152_v19 = vld [vmem:[#allocation13 + $0x180] ss:$8 sps:$4 sm:$0xff]  }
 0x66c   : > { %8026 = vst [vmem:[#allocation2 + $0x78] sm:$0xff] %v8025_v18  ;;  %v7717_v52 = vor.u32 %v7715_v6, %v7714_v31  ;;  %v7719_v11 = vrot.slane %v7714_v31, 4  ;;  %v17157_v6 = vld [vmem:[#allocation13 + $0x194] ss:$8 sps:$4 sm:$0xff]  }
 0x66d   : > { %v7721_v7 = vshrl.u32 %v15111_v25, 16  ;;  %v15112_v27 = vpack.c.bf16 %v7406_v60, %v7405_v43  ;;  %v7192_v28 = vpop.f32.mrb[24].mxu0  ;;  %v7724_v5 = vshll.u32 %v15111_v25, 16  ;;  %v8031_v43 = vld [vmem:[#allocation2 + $0x90] sm:$0xff]  ;;  %v8035_v53 = vld [vmem:[#allocation2 + $0xa0] sm:$0x11] }
 0x66e   : > { %v7718_v41 = vsel %vm18451_vm15, %v7710_v34, %v7717_v52  ;;  %v8029_v12 = vsel %vm18408_vm8, %v7719_v11, %v8028_v14  ;;  %v15195_v45 = vadd.f32 %v7192_v28, %v19712_v22  ;;  %v7194_v0 = vpop.f32.mrb[25].mxu0  ;;  %10544 = vmatpush1.bf16.msra.mxu1 %v17149_v17  ;;  %v8403_v20 = vld [vmem:[#allocation2 + $0x70] sm:$0x11] }
 0x66f   : > { %8027 = vst [vmem:[#allocation2 + $0x80] sm:$0xff] %v7718_v41  ;;  %8030 = vst [vmem:[#allocation2 + $0x88] sm:$0x11] %v8029_v12  ;;  %v7723_v54 = vrot.slane %v7721_v7, 7  ;;  %v7729_v63 = vshrl.u32 %v15112_v27, 16  ;;  %v15196_v37 = vadd.f32 %v7194_v0, %v19716_v33  ;;  %v7196_v31 = vpop.f32.mrb[26].mxu0  ;;  %10545 = vmatprep.subr.bf16.mxu1 %v17154_v2  ;;  %v19813_v52 = vcombine.high %v8025_v18, %v7718_v41 }
 0x670   : > { %v7407_v34 = vmax.f32 %v15195_v45, 0.0  ;;  %v15197_v60 = vadd.f32 %v7196_v31, %v19712_v22  ;;  %v7198_v14 = vpop.f32.mrb[27].mxu0  ;;  %v19815_v11 = vcombine.low %v8025_v18, %v7718_v41  ;;  %v7732_v12 = vshll.u32 %v15112_v27, 16  ;;  %v17155_v2 = vld [vmem:[#allocation13 + $0x190] ss:$8 sps:$4 sm:$0xff]  }
 0x671   : > { %21420 = vst [vmem:[#allocation75_spill] sm:$0xff] %v19813_v52  ;;  %v7726_v17 = vor.u32 %v7724_v5, %v7723_v54  ;;  %v7731_v28 = vrot.slane %v7729_v63, 7  ;;  %v7408_v7 = vmax.f32 %v15196_v37, 0.0  ;;  %v7727_v25 = vrot.slane %v7723_v54, 4  ;;  %10408 = vmatprep.mubr.bf16.mxu1 %v19813_v52  ;;  %v17160_v27 = vld [vmem:[#allocation13 + $0x1a4] ss:$8 sps:$4 sm:$0xff]  }
 0x672   : > { %21421 = vst [vmem:[#allocation77_spill] sm:$0xff] %v19815_v11  ;;  %v7409_v30 = vmax.f32 %v15197_v60, 0.0  ;;  %v15198_v0 = vadd.f32 %v7198_v14, %v19716_v33  ;;  %10546 = vmatpush1.bf16.msra.mxu1 %v17152_v19  ;;  %v17158_v14 = vld [vmem:[#allocation13 + $0x1a0] ss:$8 sps:$4 sm:$0xff]  }
 0x673   : > { %v8032_v45 = vsel %vm18414_vm13, %v7726_v17, %v8031_v43  ;;  %v7734_v31 = vor.u32 %v7732_v12, %v7731_v28  ;;  %v7736_v32 = vrot.slane %v7731_v28, 4  ;;  %v15113_v18 = vpack.c.bf16 %v7408_v7, %v7407_v34  ;;  %10409 = vmatmul.mubr.bf16.gmra.mrb[52].mxu1 %v19815_v11  ;;  %10547 = vmatprep.subr.bf16.mxu1 %v17157_v6 }
 0x674   : > { %8033 = vst [vmem:[#allocation2 + $0x90] sm:$0xff] %v8032_v45  ;;  %v7410_v41 = vmax.f32 %v15198_v0, 0.0 }
 0x675   : > { %v7735_v54 = vsel %vm18451_vm15, %v7727_v25, %v7734_v31  ;;  %v8036_v5 = vsel %vm18408_vm8, %v7736_v32, %v8035_v53  ;;  %v7738_v19 = vshrl.u32 %v15113_v18, 16  ;;  %v7202_v63 = vpop.f32.mrb[28].mxu0  ;;  %v7741_v28 = vshll.u32 %v15113_v18, 16  ;;  %v17163_v32 = vld [vmem:[#allocation13 + $0x1b4] ss:$8 sps:$4 sm:$0xff]   ;;  %v8038_v53 = vld [vmem:[#allocation2 + $0xa8] sm:$0xff] }
 0x676   : > { %8034 = vst [vmem:[#allocation2 + $0x98] sm:$0xff] %v7735_v54  ;;  %8037 = vst [vmem:[#allocation2 + $0xa0] sm:$0x11] %v8036_v5  ;;  %v15114_v37 = vpack.c.bf16 %v7410_v41, %v7409_v30  ;;  %v15199_v43 = vadd.f32 %v7202_v63, %v19712_v22  ;;  %v7204_v34 = vpop.f32.mrb[29].mxu0  ;;  %v19827_v60 = vcombine.high %v8032_v45, %v7735_v54  ;;  %10548 = vmatpush1.bf16.msra.mxu1 %v17155_v2  ;;  %v8042_v63 = vld [vmem:[#allocation2 + $0xb8] sm:$0x11] }
 0x677   : > { %v19829_v6 = vcombine.low %v8032_v45, %v7735_v54  ;;  %v7740_v17 = vrot.slane %v7738_v19, 7  ;;  %v15200_v12 = vadd.f32 %v7204_v34, %v19716_v33  ;;  %v7206_v7 = vpop.f32.mrb[30].mxu0  ;;  %10549 = vmatprep.subr.bf16.mxu1 %v17160_v27  ;;  %v17161_v19 = vld [vmem:[#allocation13 + $0x1b0] ss:$8 sps:$4 sm:$0xff]  }
 0x678   : > { %21422 = vst [vmem:[#allocation30_spill] sm:$0xff] %v19827_v60  ;;  %v7746_v25 = vshrl.u32 %v15114_v37, 16  ;;  %v7411_v0 = vmax.f32 %v15199_v43, 0.0  ;;  %v15201_v30 = vadd.f32 %v7206_v7, %v19712_v22  ;;  %v7208_v31 = vpop.f32.mrb[31].mxu0  ;;  %10418 = vmatprep.mubr.bf16.mxu1 %v19827_v60  ;;  %v7749_v5 = vshll.u32 %v15114_v37, 16 }
 0x679   : > { %21423 = vst [vmem:[#allocation31_spill] sm:$0xff] %v19829_v6  ;;  %v7743_v41 = vor.u32 %v7741_v28, %v7740_v17  ;;  %v7412_v45 = vmax.f32 %v15200_v12, 0.0  ;;  %v15202_v2 = vadd.f32 %v7208_v31, %v19716_v33  ;;  %v17166_v7 = vld [vmem:[#allocation13 + $0x1c4] ss:$8 sps:$4 sm:$0xff]   ;;  %v7744_v60 = vrot.slane %v7740_v17, 4 }
 0x67a   : > { %v7748_v54 = vrot.slane %v7746_v25, 7  ;;  %v7413_v18 = vmax.f32 %v15201_v30, 0.0  ;;  %10550 = vmatpush1.bf16.msra.mxu1 %v17158_v14  ;;  %v17164_v17 = vld [vmem:[#allocation13 + $0x1c0] ss:$8 sps:$4 sm:$0xff]  }
 0x67b   : > { %v8039_v27 = vsel %vm18414_vm13, %v7743_v41, %v8038_v53  ;;  %v15115_v34 = vpack.c.bf16 %v7412_v45, %v7411_v0  ;;  %v7414_v43 = vmax.f32 %v15202_v2, 0.0  ;;  %10419 = vmatmul.mubr.bf16.gmra.mrb[56].mxu1 %v19829_v6  ;;  %10551 = vmatprep.subr.bf16.mxu1 %v17163_v32  ;;  %v15207_v32 = vadd.f32 %v19650_v49, %v19712_v22  ;;  %v8049_v6 = vld [vmem:[#allocation2 + $0xd0] sm:$0x11] }
 0x67c   : > { %8040 = vst [vmem:[#allocation2 + $0xa8] sm:$0xff] %v8039_v27  ;;  %v7751_v28 = vor.u32 %v7749_v5, %v7748_v54  ;;  %v7753_v12 = vrot.slane %v7748_v54, 4 }
 0x67d   : > { %v7755_v31 = vshrl.u32 %v15115_v34, 16  ;;  %v15116_v25 = vpack.c.bf16 %v7414_v43, %v7413_v18  ;;  %v7212_v37 = vpop.f32.mrb[32].mxu0  ;;  %v7758_v45 = vshll.u32 %v15115_v34, 16  ;;  %v8045_v18 = vld [vmem:[#allocation2 + $0xc0] sm:$0xff] }
 0x67e   : > { %v7752_v14 = vsel %vm18451_vm15, %v7744_v60, %v7751_v28  ;;  %v8043_v53 = vsel %vm18408_vm8, %v7753_v12, %v8042_v63  ;;  %v15203_v0 = vadd.f32 %v7212_v37, %v19712_v22  ;;  %v7214_v30 = vpop.f32.mrb[33].mxu0  ;;  %10552 = vmatpush1.bf16.msra.mxu1 %v17161_v19  ;;  %v17169_v60 = vld [vmem:[#allocation13 + $0x1d4] ss:$8 sps:$4 sm:$0xff]  }
 0x67f   : > { %8041 = vst [vmem:[#allocation2 + $0xb0] sm:$0xff] %v7752_v14  ;;  %8044 = vst [vmem:[#allocation2 + $0xb8] sm:$0x11] %v8043_v53  ;;  %v7757_v41 = vrot.slane %v7755_v31, 7  ;;  %v7763_v2 = vshrl.u32 %v15116_v25, 16  ;;  %v15204_v54 = vadd.f32 %v7214_v30, %v19716_v33  ;;  %v7216_v5 = vpop.f32.mrb[34].mxu0  ;;  %10553 = vmatprep.subr.bf16.mxu1 %v17166_v7  ;;  %v19847_v12 = vcombine.high %v8039_v27, %v7752_v14 }
 0x680   : > { %v7415_v63 = vmax.f32 %v15203_v0, 0.0  ;;  %v15205_v43 = vadd.f32 %v7216_v5, %v19712_v22  ;;  %v7218_v28 = vpop.f32.mrb[35].mxu0  ;;  %v19849_v49 = vcombine.low %v8039_v27, %v7752_v14  ;;  %v7766_v53 = vshll.u32 %v15116_v25, 16  ;;  %v17167_v0 = vld [vmem:[#allocation13 + $0x1d0] ss:$8 sps:$4 sm:$0xff]  }
 0x681   : > { %v7760_v19 = vor.u32 %v7758_v45, %v7757_v41  ;;  %v7765_v37 = vrot.slane %v7763_v2, 7  ;;  %v7416_v31 = vmax.f32 %v15204_v54, 0.0  ;;  %v7761_v34 = vrot.slane %v7757_v41, 4  ;;  %10428 = vmatprep.mubr.bf16.mxu1 %v19847_v12  ;;  %v17172_v25 = vld [vmem:[#allocation13 + $0x1e4] ss:$8 sps:$4 sm:$0xff]  }
 0x682   : > { %v7417_v11 = vmax.f32 %v15205_v43, 0.0  ;;  %v15206_v30 = vadd.f32 %v7218_v28, %v19716_v33  ;;  %v15209_v7 = vadd.f32 %v19652_v62, %v19716_v33  ;;  %10554 = vmatpush1.bf16.msra.mxu1 %v17164_v17  ;;  %v15211_v5 = vadd.f32 %v19654_v29, %v19712_v22  ;;  %v17175_v29 = vld [vmem:[#allocation13 + $0x1f4] ss:$8 sps:$4 sm:$0xff]  }
 0x683   : > { %v8046_v27 = vsel %vm18414_vm13, %v7760_v19, %v8045_v18  ;;  %v7768_v14 = vor.u32 %v7766_v53, %v7765_v37  ;;  %v7770_v45 = vrot.slane %v7765_v37, 4  ;;  %v15117_v2 = vpack.c.bf16 %v7416_v31, %v7415_v63  ;;  %10429 = vmatmul.mubr.bf16.gmra.mrb[60].mxu1 %v19849_v49  ;;  %10555 = vmatprep.subr.bf16.mxu1 %v17169_v60  ;;  %v17170_v37 = vld [vmem:[#allocation13 + $0x1e0] ss:$8 sps:$4 sm:$0xff]  }
 0x684   : > { %8047 = vst [vmem:[#allocation2 + $0xc0] sm:$0xff] %v8046_v27  ;;  %v7418_v41 = vmax.f32 %v15206_v30, 0.0 }
 0x685   : > { %v7769_v54 = vsel %vm18451_vm15, %v7761_v34, %v7768_v14  ;;  %v8050_v62 = vsel %vm18408_vm8, %v7770_v45, %v8049_v6  ;;  %v7772_v17 = vshrl.u32 %v15117_v2, 16  ;;  %v7222_v18 = vpop.f32.mrb[36].mxu0  ;;  %v7775_v31 = vshll.u32 %v15117_v2, 16  ;;  %v8052_v14 = vld [vmem:[#allocation2 + $0xd8] sm:$0xff] }
 0x686   : > { %8048 = vst [vmem:[#allocation2 + $0xc8] sm:$0xff] %v7769_v54  ;;  %8051 = vst [vmem:[#allocation2 + $0xd0] sm:$0x11] %v8050_v62  ;;  %v15118_v63 = vpack.c.bf16 %v7418_v41, %v7417_v11  ;;  %v15208_v43 = vadd.f32 %v15207_v32, %v7222_v18  ;;  %v7224_v28 = vpop.f32.mrb[37].mxu0  ;;  %v19864_v60 = vcombine.high %v8046_v27, %v7769_v54  ;;  %10556 = vmatpush1.bf16.msra.mxu1 %v17167_v0  ;;  %v8056_v18 = vld [vmem:[#allocation2 + $0xe8] sm:$0x11] }
 0x687   : > { %v19866_v19 = vcombine.low %v8046_v27, %v7769_v54  ;;  %v7774_v53 = vrot.slane %v7772_v17, 7  ;;  %v15213_v6 = vadd.f32 %v19656_v16, %v19716_v33  ;;  %v15210_v34 = vadd.f32 %v15209_v7, %v7224_v28  ;;  %v7226_v30 = vpop.f32.mrb[38].mxu0  ;;  %10557 = vmatprep.subr.bf16.mxu1 %v17172_v25  ;;  %v17173_v7 = vld [vmem:[#allocation13 + $0x1f0] ss:$8 sps:$4 sm:$0xff]  }
 0x688   : > { %v7780_v45 = vshrl.u32 %v15118_v63, 16  ;;  %v7419_v11 = vmax.f32 %v15208_v43, 0.0  ;;  %v15212_v32 = vadd.f32 %v15211_v5, %v7226_v30  ;;  %v7228_v41 = vpop.f32.mrb[39].mxu0  ;;  %10438 = vmatprep.mubr.bf16.mxu1 %v19864_v60  ;;  %v7783_v17 = vshll.u32 %v15118_v63, 16 }
 0x689   : > { %v7777_v27 = vor.u32 %v7775_v31, %v7774_v53  ;;  %v7420_v54 = vmax.f32 %v15210_v34, 0.0  ;;  %v15214_v0 = vadd.f32 %v15213_v6, %v7228_v41  ;;  %v15215_v16 = vadd.f32 %v19658_v1, %v19712_v22  ;;  %v17180_v31 = vld [vmem:[#allocation13 + $0x204] ss:$8 sps:$4 sm:$0xff]  }
 0x68a   : > { %v7782_v62 = vrot.slane %v7780_v45, 7  ;;  %v7421_v2 = vmax.f32 %v15212_v32, 0.0  ;;  %10558 = vmatpush1.bf16.msra.mxu1 %v17170_v37  ;;  %v15217_v28 = vadd.f32 %v19660_v44, %v19716_v33  ;;  %v7778_v63 = vrot.slane %v7774_v53, 4 }
 0x68b   : > { %v8053_v25 = vsel %vm18414_vm13, %v7777_v27, %v8052_v14  ;;  %v15119_v43 = vpack.c.bf16 %v7420_v54, %v7419_v11  ;;  %v7422_v5 = vmax.f32 %v15214_v0, 0.0  ;;  %10439 = vmatmul.mubr.bf16.gmra.mrb[64].mxu1 %v19866_v19  ;;  %10559 = vmatprep.subr.bf16.mxu1 %v17175_v29  ;;  %v15219_v30 = vadd.f32 %v19662_v61, %v19712_v22 }
 0x68c   : > { %8054 = vst [vmem:[#allocation2 + $0xd8] sm:$0xff] %v8053_v25  ;;  %v7785_v6 = vor.u32 %v7783_v17, %v7782_v62  ;;  %v7787_v34 = vrot.slane %v7782_v62, 4  ;;  %v15221_v45 = vadd.f32 %v19664_v56, %v19716_v33  ;;  %v15223_v32 = vadd.f32 %v19666_v23, %v19712_v22  ;;  %v8059_v56 = vld [vmem:[#allocation2 + $0xf0] sm:$0xff] }
 0x68d   : > { %v7789_v1 = vshrl.u32 %v15119_v43, 16  ;;  %v15120_v37 = vpack.c.bf16 %v7422_v5, %v7421_v2  ;;  %v7232_v14 = vpop.f32.mrb[40].mxu0  ;;  %v7792_v61 = vshll.u32 %v15119_v43, 16 }
 0x68e   : > { %v7786_v44 = vsel %vm18451_vm15, %v7778_v63, %v7785_v6  ;;  %v8057_v29 = vsel %vm18408_vm8, %v7787_v34, %v8056_v18  ;;  %v15216_v11 = vadd.f32 %v15215_v16, %v7232_v14  ;;  %v7234_v53 = vpop.f32.mrb[41].mxu0  ;;  %10560 = vmatpush1.bf16.msra.mxu1 %v17173_v7  ;;  %v8063_v34 = vld [vmem:[#allocation2 + $0x100] sm:$0x11] }
 0x68f   : > { %8055 = vst [vmem:[#allocation2 + $0xe0] sm:$0xff] %v7786_v44  ;;  %8058 = vst [vmem:[#allocation2 + $0xe8] sm:$0x11] %v8057_v29  ;;  %v7791_v41 = vrot.slane %v7789_v1, 7  ;;  %v7797_v27 = vshrl.u32 %v15120_v37, 16  ;;  %v15218_v54 = vadd.f32 %v15217_v28, %v7234_v53  ;;  %v7236_v0 = vpop.f32.mrb[42].mxu0  ;;  %10722 = vmatprep.subr.bf16.mxu1 %v17180_v31  ;;  %v19888_v5 = vcombine.high %v8053_v25, %v7786_v44 }
 0x690   : > { %v7423_v62 = vmax.f32 %v15216_v11, 0.0  ;;  %v15220_v17 = vadd.f32 %v15219_v30, %v7236_v0  ;;  %v7238_v2 = vpop.f32.mrb[43].mxu0  ;;  %v19890_v16 = vcombine.low %v8053_v25, %v7786_v44  ;;  %v7800_v23 = vshll.u32 %v15120_v37, 16 }
 0x691   : > { %v7794_v18 = vor.u32 %v7792_v61, %v7791_v41  ;;  %v7799_v63 = vrot.slane %v7797_v27, 7  ;;  %v7424_v7 = vmax.f32 %v15218_v54, 0.0  ;;  %v7795_v6 = vrot.slane %v7791_v41, 4  ;;  %10448 = vmatprep.mubr.bf16.mxu1 %v19888_v5 }
 0x692   : > { %v7425_v1 = vmax.f32 %v15220_v17, 0.0  ;;  %v15222_v43 = vadd.f32 %v15221_v45, %v7238_v2  ;;  %v15225_v28 = vadd.f32 %v19668_v47, %v19716_v33  ;;  %v15227_v47 = vadd.f32 %v19670_v48, %v19712_v22 }
 0x693   : > { %v8060_v31 = vsel %vm18414_vm13, %v7794_v18, %v8059_v56  ;;  %v7802_v30 = vor.u32 %v7800_v23, %v7799_v63  ;;  %v7804_v14 = vrot.slane %v7799_v63, 4  ;;  %v15121_v25 = vpack.c.bf16 %v7424_v7, %v7423_v62  ;;  %10449 = vmatmul.mubr.bf16.gmra.mrb[68].mxu1 %v19890_v16  ;;  %v8066_v18 = vld [vmem:[#allocation2 + $0x108] sm:$0xff] }
 0x694   : > { %8061 = vst [vmem:[#allocation2 + $0xf0] sm:$0xff] %v8060_v31  ;;  %v7426_v37 = vmax.f32 %v15222_v43, 0.0  ;;  %v15229_v62 = vadd.f32 %v19672_v36, %v19716_v33  ;;  %v15233_v36 = vadd.f32 %v19676_v46, %v19716_v33 }
 0x695   : > { %v7803_v44 = vsel %vm18451_vm15, %v7795_v6, %v7802_v30  ;;  %v8064_v45 = vsel %vm18408_vm8, %v7804_v14, %v8063_v34  ;;  %v7806_v29 = vshrl.u32 %v15121_v25, 16  ;;  %v7242_v11 = vpop.f32.mrb[44].mxu0  ;;  %v7809_v56 = vshll.u32 %v15121_v25, 16  ;;  %v8070_v14 = vld [vmem:[#allocation2 + $0x118] sm:$0x11] }
 0x696   : > { %8062 = vst [vmem:[#allocation2 + $0xf8] sm:$0xff] %v7803_v44  ;;  %8065 = vst [vmem:[#allocation2 + $0x100] sm:$0x11] %v8064_v45  ;;  %v15122_v53 = vpack.c.bf16 %v7426_v37, %v7425_v1  ;;  %v15224_v41 = vadd.f32 %v15223_v32, %v7242_v11  ;;  %v7244_v61 = vpop.f32.mrb[45].mxu0  ;;  %v19904_v27 = vcombine.high %v8060_v31, %v7803_v44 }
 0x697   : > { %v19906_v54 = vcombine.low %v8060_v31, %v7803_v44  ;;  %v7808_v0 = vrot.slane %v7806_v29, 7  ;;  %v15226_v17 = vadd.f32 %v15225_v28, %v7244_v61  ;;  %v7246_v2 = vpop.f32.mrb[46].mxu0  ;;  %v15231_v1 = vadd.f32 %v19674_v8, %v19712_v22 }
 0x698   : > { %v7814_v63 = vshrl.u32 %v15122_v53, 16  ;;  %v7427_v48 = vmax.f32 %v15224_v41, 0.0  ;;  %v15228_v23 = vadd.f32 %v15227_v47, %v7246_v2  ;;  %v7248_v7 = vpop.f32.mrb[47].mxu0  ;;  %10458 = vmatprep.mubr.bf16.mxu1 %v19904_v27  ;;  %v7817_v31 = vshll.u32 %v15122_v53, 16 }
 0x699   : > { %v7811_v32 = vor.u32 %v7809_v56, %v7808_v0  ;;  %v7428_v6 = vmax.f32 %v15226_v17, 0.0  ;;  %v15230_v34 = vadd.f32 %v15229_v62, %v7248_v7  ;;  %v15235_v44 = vadd.f32 %v19678_v50, %v19712_v22 }
 0x69a   : > { %v7816_v43 = vrot.slane %v7814_v63, 7  ;;  %v7429_v30 = vmax.f32 %v15228_v23, 0.0  ;;  %v7812_v45 = vrot.slane %v7808_v0, 4  ;;  %v15237_v47 = vadd.f32 %v19680_v10, %v19716_v33 }
 0x69b   : > { %v8067_v28 = vsel %vm18414_vm13, %v7811_v32, %v8066_v18  ;;  %v15123_v25 = vpack.c.bf16 %v7428_v6, %v7427_v48  ;;  %v7430_v37 = vmax.f32 %v15230_v34, 0.0  ;;  %10459 = vmatmul.mubr.bf16.gmra.mrb[72].mxu1 %v19906_v54  ;;  %v15239_v41 = vadd.f32 %v19682_v4, %v19712_v22  ;;  %v8073_v48 = vld [vmem:[#allocation2 + $0x120] sm:$0xff] }
 0x69c   : > { %8068 = vst [vmem:[#allocation2 + $0x108] sm:$0xff] %v8067_v28  ;;  %v7819_v8 = vor.u32 %v7817_v31, %v7816_v43  ;;  %v7821_v29 = vrot.slane %v7816_v43, 4  ;;  %v15241_v61 = vadd.f32 %v19684_v9, %v19716_v33  ;;  %v15243_v10 = vadd.f32 %v19686_v26, %v19712_v22 }
 0x69d   : > { %v7823_v11 = vshrl.u32 %v15123_v25, 16  ;;  %v15124_v46 = vpack.c.bf16 %v7430_v37, %v7429_v30  ;;  %v7252_v53 = vpop.f32.mrb[48].mxu0  ;;  %v7826_v2 = vshll.u32 %v15123_v25, 16  ;;  %v8077_v30 = vld [vmem:[#allocation2 + $0x130] sm:$0x11] }
 0x69e   : > { %v7820_v50 = vsel %vm18451_vm15, %v7812_v45, %v7819_v8  ;;  %v8071_v0 = vsel %vm18408_vm8, %v7821_v29, %v8070_v14  ;;  %v15232_v56 = vadd.f32 %v15231_v1, %v7252_v53  ;;  %v7254_v62 = vpop.f32.mrb[49].mxu0  ;;  %v15247_v29 = vadd.f32 %v19690_v39, %v19712_v22 }
 0x69f   : > { %8069 = vst [vmem:[#allocation2 + $0x110] sm:$0xff] %v7820_v50  ;;  %8072 = vst [vmem:[#allocation2 + $0x118] sm:$0x11] %v8071_v0  ;;  %v7825_v17 = vrot.slane %v7823_v11, 7  ;;  %v7831_v18 = vshrl.u32 %v15124_v46, 16  ;;  %v15234_v4 = vadd.f32 %v15233_v36, %v7254_v62  ;;  %v7256_v63 = vpop.f32.mrb[50].mxu0  ;;  %v19932_v32 = vcombine.high %v8067_v28, %v7820_v50 }
 0x6a0   : > { %v7431_v9 = vmax.f32 %v15232_v56, 0.0  ;;  %v15236_v23 = vadd.f32 %v15235_v44, %v7256_v63  ;;  %v7258_v7 = vpop.f32.mrb[51].mxu0  ;;  %v19934_v6 = vcombine.low %v8067_v28, %v7820_v50  ;;  %v7834_v43 = vshll.u32 %v15124_v46, 16 }
 0x6a1   : > { %v7828_v34 = vor.u32 %v7826_v2, %v7825_v17  ;;  %v7833_v1 = vrot.slane %v7831_v18, 7  ;;  %v7432_v31 = vmax.f32 %v15234_v4, 0.0  ;;  %v7829_v26 = vrot.slane %v7825_v17, 4  ;;  %10468 = vmatprep.mubr.bf16.mxu1 %v19932_v32 }
 0x6a2   : > { %v7433_v14 = vmax.f32 %v15236_v23, 0.0  ;;  %v15238_v37 = vadd.f32 %v15237_v47, %v7258_v7  ;;  %v15245_v36 = vadd.f32 %v19688_v40, %v19716_v33  ;;  %v15249_v47 = vadd.f32 %v19692_v57, %v19716_v33 }
 0x6a3   : > { %v8074_v25 = vsel %vm18414_vm13, %v7828_v34, %v8073_v48  ;;  %v7836_v44 = vor.u32 %v7834_v43, %v7833_v1  ;;  %v7838_v45 = vrot.slane %v7833_v1, 4  ;;  %v15125_v28 = vpack.c.bf16 %v7432_v31, %v7431_v9  ;;  %10469 = vmatmul.mubr.bf16.gmra.mrb[76].mxu1 %v19934_v6  ;;  %v8080_v48 = vld [vmem:[#allocation2 + $0x138] sm:$0xff] }
 0x6a4   : > { %8075 = vst [vmem:[#allocation2 + $0x120] sm:$0xff] %v8074_v25  ;;  %v7434_v8 = vmax.f32 %v15238_v37, 0.0  ;;  %v19948_v40 = vadd.f32 %v19694_v15, %v19712_v22  ;;  %v19956_v0 = vadd.f32 %v19696_v59, %v19716_v33  ;;  %v19964_v63 = vadd.f32 %v19700_v55, %v19712_v22 }
 0x6a5   : > { %v7837_v11 = vsel %vm18451_vm15, %v7829_v26, %v7836_v44  ;;  %v8078_v46 = vsel %vm18408_vm8, %v7838_v45, %v8077_v30  ;;  %v7840_v53 = vshrl.u32 %v15125_v28, 16  ;;  %v7262_v50 = vpop.f32.mrb[52].mxu0  ;;  %v7843_v2 = vshll.u32 %v15125_v28, 16 }
 0x6a6   : > { %8076 = vst [vmem:[#allocation2 + $0x128] sm:$0xff] %v7837_v11  ;;  %8079 = vst [vmem:[#allocation2 + $0x130] sm:$0x11] %v8078_v46  ;;  %v15126_v39 = vpack.c.bf16 %v7434_v8, %v7433_v14  ;;  %v15240_v57 = vadd.f32 %v15239_v41, %v7262_v50  ;;  %v7264_v56 = vpop.f32.mrb[53].mxu0  ;;  %v19958_v62 = vcombine.high %v8074_v25, %v7837_v11  ;;  %v8084_v14 = vld [vmem:[#allocation2 + $0x148] sm:$0x11] }
 0x6a7   : > { %v19960_v15 = vcombine.low %v8074_v25, %v7837_v11  ;;  %v7842_v17 = vrot.slane %v7840_v53, 7  ;;  %v15242_v18 = vadd.f32 %v15241_v61, %v7264_v56  ;;  %v7266_v4 = vpop.f32.mrb[54].mxu0  ;;  %v19969_v41 = vadd.f32 %v19702_v35, %v19716_v33 }
 0x6a8   : > { %v7848_v59 = vshrl.u32 %v15126_v39, 16  ;;  %v7435_v9 = vmax.f32 %v15240_v57, 0.0  ;;  %v15244_v23 = vadd.f32 %v15243_v10, %v7266_v4  ;;  %v7268_v7 = vpop.f32.mrb[55].mxu0  ;;  %10478 = vmatprep.mubr.bf16.mxu1 %v19958_v62  ;;  %v19973_v61 = vadd.f32 %v19704_v21, %v19712_v22 }
 0x6a9   : > { %v7845_v34 = vor.u32 %v7843_v2, %v7842_v17  ;;  %v7436_v1 = vmax.f32 %v15242_v18, 0.0  ;;  %v15246_v43 = vadd.f32 %v15245_v36, %v7268_v7  ;;  %v7851_v31 = vshll.u32 %v15126_v39, 16  ;;  %v21424_v39 = vld [vmem:[#allocation34_spill] sm:$0xff] }
 0x6aa   : > { %v7850_v55 = vrot.slane %v7848_v59, 7  ;;  %v7437_v26 = vmax.f32 %v15244_v23, 0.0  ;;  %v19977_v10 = vadd.f32 %v19706_v42, %v19716_v33  ;;  %v19984_v36 = vadd.f32 %v19718_v51, %v19712_v22  ;;  %v8087_v18 = vld [vmem:[#allocation2 + $0x150] sm:$0xff] }
 0x6ab   : > { %v8081_v30 = vsel %vm18414_vm13, %v7845_v34, %v8080_v48  ;;  %v15127_v35 = vpack.c.bf16 %v7436_v1, %v7435_v9  ;;  %v7438_v37 = vmax.f32 %v15246_v43, 0.0  ;;  %10479 = vmatmul.mubr.bf16.gmra.mrb[80].mxu1 %v19960_v15  ;;  %v7846_v21 = vrot.slane %v7842_v17, 4  ;;  %v8392_v43 = vld [vmem:[#allocation2 + $0x18] sm:$0xff] }
 0x6ac   : > { %8082 = vst [vmem:[#allocation2 + $0x138] sm:$0xff] %v8081_v30  ;;  %v7853_v25 = vor.u32 %v7851_v31, %v7850_v55  ;;  %v7855_v44 = vrot.slane %v7850_v55, 4  ;;  %v19988_v42 = vadd.f32 %v19721_v58, %v19716_v33  ;;  %v19992_v11 = vadd.f32 %v19724_v24, %v19712_v22  ;;  %v8091_v31 = vld [vmem:[#allocation2 + $0x160] sm:$0x11] }
 0x6ad   : > { %v7857_v45 = vshrl.u32 %v15127_v35, 16  ;;  %v15128_v28 = vpack.c.bf16 %v7438_v37, %v7437_v26  ;;  %v7272_v8 = vpop.f32.mrb[56].mxu0  ;;  %v19996_v46 = vadd.f32 %v19727_v38, %v19716_v33  ;;  %v20004_v57 = vadd.f32 %v21424_v39, %v19712_v22 }
 0x6ae   : > { %v7854_v51 = vsel %vm18451_vm15, %v7846_v21, %v7853_v25  ;;  %v8085_v53 = vsel %vm18408_vm8, %v7855_v44, %v8084_v14  ;;  %v15248_v50 = vadd.f32 %v15247_v29, %v7272_v8  ;;  %v7274_v58 = vpop.f32.mrb[57].mxu0  ;;  %v7860_v56 = vshll.u32 %v15127_v35, 16  ;;  %v21425_v14 = vld [vmem:[#allocation35_spill] sm:$0xff]  ;;  %v20017_v35 = vld [vmem:[#allocation2 + $0x28] sm:$0x11] }
 0x6af   : > { %8083 = vst [vmem:[#allocation2 + $0x140] sm:$0xff] %v7854_v51  ;;  %8086 = vst [vmem:[#allocation2 + $0x148] sm:$0x11] %v8085_v53  ;;  %v7859_v24 = vrot.slane %v7857_v45, 7  ;;  %v7865_v17 = vshrl.u32 %v15128_v28, 16  ;;  %v15250_v2 = vadd.f32 %v15249_v47, %v7274_v58  ;;  %v7276_v38 = vpop.f32.mrb[58].mxu0  ;;  %v20007_v9 = vcombine.high %v8081_v30, %v7854_v51 }
 0x6b0   : > { %v7439_v4 = vmax.f32 %v15248_v50, 0.0  ;;  %v15252_v48 = vadd.f32 %v19948_v40, %v7276_v38  ;;  %v7278_v59 = vpop.f32.mrb[59].mxu0  ;;  %v20009_v29 = vcombine.low %v8081_v30, %v7854_v51  ;;  %v7868_v34 = vshll.u32 %v15128_v28, 16  ;;  %v17655_v28 = vld [vmem:[#allocation2 + $0x8] sm:$0xff] }
 0x6b1   : > { %v7862_v23 = vor.u32 %v7860_v56, %v7859_v24  ;;  %v7867_v7 = vrot.slane %v7865_v17, 7  ;;  %v7440_v1 = vmax.f32 %v15250_v2, 0.0  ;;  %v7863_v55 = vrot.slane %v7859_v24, 4  ;;  %10488 = vmatprep.mubr.bf16.mxu1 %v20007_v9 }
 0x6b2   : > { %v7441_v26 = vmax.f32 %v15252_v48, 0.0  ;;  %v15254_v47 = vadd.f32 %v19956_v0, %v7278_v59  ;;  %v20015_v40 = vadd.f32 %v21425_v14, %v19716_v33  ;;  %v21426_v0 = vld [vmem:[#allocation36_spill] sm:$0xff]  ;;  %v20026_v8 = vcombine.low %v8392_v43, %v17655_v28 }
 0x6b3   : > { %v8088_v30 = vsel %vm18414_vm13, %v7862_v23, %v8087_v18  ;;  %v7870_v37 = vor.u32 %v7868_v34, %v7867_v7  ;;  %v7872_v21 = vrot.slane %v7867_v7, 4  ;;  %v15129_v25 = vpack.c.bf16 %v7440_v1, %v7439_v4  ;;  %10489 = vmatmul.mubr.bf16.gmra.mrb[84].mxu1 %v20009_v29  ;;  %v21427_v23 = vld [vmem:[#allocation40_spill] sm:$0xff]  ;;  %v8094_v34 = vld [vmem:[#allocation2 + $0x168] sm:$0xff] }
 0x6b4   : > { %8089 = vst [vmem:[#allocation2 + $0x150] sm:$0xff] %v8088_v30  ;;  %v7442_v44 = vmax.f32 %v15254_v47, 0.0  ;;  %v20024_v45 = vadd.f32 %v21426_v0, %v19712_v22  ;;  %v20028_v51 = vcombine.high %v8392_v43, %v17655_v28  ;;  %v14623_v24 = vcombine.high %v20017_v35, %v20017_v35 }
 0x6b5   : > { %v7871_v53 = vsel %vm18451_vm15, %v7863_v55, %v7870_v37  ;;  %v8092_v50 = vsel %vm18408_vm8, %v7872_v21, %v8091_v31  ;;  %v7874_v58 = vshrl.u32 %v15129_v25, 16  ;;  %v7282_v39 = vpop.f32.mrb[60].mxu0  ;;  %v7877_v4 = vshll.u32 %v15129_v25, 16 }
 0x6b6   : > { %8090 = vst [vmem:[#allocation2 + $0x158] sm:$0xff] %v7871_v53  ;;  %8093 = vst [vmem:[#allocation2 + $0x160] sm:$0x11] %v8092_v50  ;;  %v15130_v22 = vpack.c.bf16 %v7442_v44, %v7441_v26  ;;  %v15256_v56 = vadd.f32 %v19964_v63, %v7282_v39  ;;  %v7284_v17 = vpop.f32.mrb[61].mxu0  ;;  %v20037_v2 = vcombine.high %v8088_v30, %v7871_v53  ;;  %v8695_v31 = vshll.u32 %v20028_v51, 16 }
 0x6b7   : > { %v20039_v38 = vcombine.low %v8088_v30, %v7871_v53  ;;  %v7876_v18 = vrot.slane %v7874_v58, 7  ;;  %v15258_v48 = vadd.f32 %v19969_v41, %v7284_v17  ;;  %v7286_v59 = vpop.f32.mrb[62].mxu0  ;;  %v20044_v7 = vadd.f32 %v21427_v23, %v19716_v33  ;;  %v8098_v44 = vld [vmem:[#allocation2 + $0x178] sm:$0x11] }
 0x6b8   : > { %v7882_v1 = vshrl.u32 %v15130_v22, 16  ;;  %v7443_v43 = vmax.f32 %v15256_v56, 0.0  ;;  %v15260_v55 = vadd.f32 %v19973_v61, %v7286_v59  ;;  %v7288_v63 = vpop.f32.mrb[63].mxu0  ;;  %10498 = vmatprep.mubr.bf16.mxu1 %v20037_v2  ;;  %v8700_v41 = vshll.u32 %v14623_v24, 16  ;;  %v20055_v53 = vld [vmem:[#allocation2 + $0x38] sm:$0xff] }
 0x6b9   : > { %v7879_v26 = vor.u32 %v7877_v4, %v7876_v18  ;;  %v7444_v47 = vmax.f32 %v15258_v48, 0.0  ;;  %v15262_v14 = vadd.f32 %v19977_v10, %v7288_v63  ;;  %v7885_v37 = vshll.u32 %v15130_v22, 16  ;;  %v20059_v48 = vld [vmem:[#allocation2 + $0x30] sm:$0xff] }
 0x6ba   : > { %v7884_v30 = vrot.slane %v7882_v1, 7  ;;  %v7445_v21 = vmax.f32 %v15260_v55, 0.0  ;;  %v8683_v33 = vshll.u32 %v20026_v8, 16  ;;  %v8693_v28 = vshrl.u32 %v20028_v51, 16 }
 0x6bb   : > { %v8095_v25 = vsel %vm18414_vm13, %v7879_v26, %v8094_v34  ;;  %v15131_v61 = vpack.c.bf16 %v7444_v47, %v7443_v43  ;;  %v7446_v0 = vmax.f32 %v15262_v14, 0.0  ;;  %10499 = vmatmul.mubr.bf16.gmra.mrb[88].mxu1 %v20039_v38  ;;  %v7880_v50 = vrot.slane %v7876_v18, 4 }
 0x6bc   : > { %8096 = vst [vmem:[#allocation2 + $0x168] sm:$0xff] %v8095_v25  ;;  %v7887_v10 = vor.u32 %v7885_v37, %v7884_v30  ;;  %v7889_v58 = vrot.slane %v7884_v30, 4  ;;  %v8697_v39 = vrot.slane %v8695_v31, 1  ;;  %v14622_v17 = vcombine.low %v20017_v35, %v20017_v35  ;;  %v8101_v31 = vld [vmem:[#allocation2 + $0x180] sm:$0xff] }
 0x6bd   : > { %v7891_v24 = vshrl.u32 %v15131_v61, 16  ;;  %v15132_v22 = vpack.c.bf16 %v7446_v0, %v7445_v21  ;;  %v7292_v56 = vpop.f32.mrb[64].mxu0  ;;  %v8702_v4 = vrot.slane %v8700_v41, 1  ;;  %v20068_v34 = vcombine.high %v20059_v48, %v20055_v53 }
 0x6be   : > { %v7888_v59 = vsel %vm18451_vm15, %v7880_v50, %v7887_v10  ;;  %v8099_v51 = vsel %vm18408_vm8, %v7889_v58, %v8098_v44  ;;  %v15264_v18 = vadd.f32 %v19984_v36, %v7292_v56  ;;  %v7294_v23 = vpop.f32.mrb[65].mxu0  ;;  %v7894_v35 = vshll.u32 %v15131_v61, 16  ;;  %v8105_v50 = vld [vmem:[#allocation2 + $0x190] sm:$0x11] }
 0x6bf   : > { %8097 = vst [vmem:[#allocation2 + $0x170] sm:$0xff] %v7888_v59  ;;  %8100 = vst [vmem:[#allocation2 + $0x178] sm:$0x11] %v8099_v51  ;;  %v7893_v1 = vrot.slane %v7891_v24, 7  ;;  %v7899_v43 = vshrl.u32 %v15132_v22, 16  ;;  %v15266_v55 = vadd.f32 %v19988_v42, %v7294_v23  ;;  %v7296_v63 = vpop.f32.mrb[66].mxu0  ;;  %v20072_v41 = vcombine.high %v8095_v25, %v7888_v59 }
 0x6c0   : > { %v7447_v26 = vmax.f32 %v15264_v18, 0.0  ;;  %v15268_v47 = vadd.f32 %v19992_v11, %v7296_v63  ;;  %v7298_v14 = vpop.f32.mrb[67].mxu0  ;;  %v20074_v36 = vcombine.low %v8095_v25, %v7888_v59  ;;  %v7902_v21 = vshll.u32 %v15132_v22, 16 }
 0x6c1   : > { %v7896_v30 = vor.u32 %v7894_v35, %v7893_v1  ;;  %v7901_v37 = vrot.slane %v7899_v43, 7  ;;  %v7448_v44 = vmax.f32 %v15266_v55, 0.0  ;;  %v7897_v0 = vrot.slane %v7893_v1, 4  ;;  %10508 = vmatprep.mubr.bf16.mxu1 %v20072_v41 }
 0x6c2   : > { %21428 = vst [vmem:[#allocation32_spill] sm:$0xff] %v20074_v36  ;;  %v7449_v61 = vmax.f32 %v15268_v47, 0.0  ;;  %v15270_v10 = vadd.f32 %v19996_v46, %v7298_v14  ;;  %v8698_v42 = vor.u32 %v8697_v39, %v8693_v28  ;;  %v20081_v22 = vshll.u32 %v14622_v17, 16  ;;  %v20086_v46 = vld [vmem:[#allocation2 + $0x40] sm:$0x11]  ;;  %v8108_v14 = vld [vmem:[#allocation2 + $0x198] sm:$0xff] }
 0x6c3   : > { %v8102_v11 = vsel %vm18414_vm13, %v7896_v30, %v8101_v31  ;;  %v7904_v58 = vor.u32 %v7902_v21, %v7901_v37  ;;  %v7906_v24 = vrot.slane %v7901_v37, 4  ;;  %v15133_v56 = vpack.c.bf16 %v7448_v44, %v7447_v26  ;;  %10509 = vmatmul.mubr.bf16.gmra.mrb[92].mxu1 %v20074_v36 }
 0x6c4   : > { %8103 = vst [vmem:[#allocation2 + $0x180] sm:$0xff] %v8102_v11  ;;  %v7450_v25 = vmax.f32 %v15270_v10, 0.0  ;;  %v8703_v59 = vsel %vm2100_vm0, %v8698_v42, %v8702_v4  ;;  %v20084_v51 = vrot.slane %v8683_v33, 1  ;;  %v8719_v1 = vshll.u32 %v20068_v34, 16 }
 0x6c5   : > { %v7905_v28 = vsel %vm18451_vm15, %v7897_v0, %v7904_v58  ;;  %v8106_v39 = vsel %vm18408_vm8, %v7906_v24, %v8105_v50  ;;  %v7908_v18 = vshrl.u32 %v15133_v56, 16  ;;  %v7302_v23 = vpop.f32.mrb[68].mxu0  ;;  %v7911_v63 = vshll.u32 %v15133_v56, 16  ;;  %v20104_v0 = vld [vmem:[#allocation2 + $0x50] sm:$0xff] }
 0x6c6   : > { %8104 = vst [vmem:[#allocation2 + $0x188] sm:$0xff] %v7905_v28  ;;  %8107 = vst [vmem:[#allocation2 + $0x190] sm:$0x11] %v8106_v39  ;;  %v15134_v17 = vpack.c.bf16 %v7450_v25, %v7449_v61  ;;  %v15272_v35 = vadd.f32 %v20004_v57, %v7302_v23  ;;  %v7304_v4 = vpop.f32.mrb[69].mxu0  ;;  %v20094_v33 = vcombine.high %v8102_v11, %v7905_v28  ;;  %v8717_v57 = vshrl.u32 %v20068_v34, 16 }
 0x6c7   : > { %v20096_v43 = vcombine.low %v8102_v11, %v7905_v28  ;;  %v7910_v55 = vrot.slane %v7908_v18, 7  ;;  %v15274_v31 = vadd.f32 %v20015_v40, %v7304_v4  ;;  %v7306_v26 = vpop.f32.mrb[70].mxu0  ;;  %v14627_v47 = vcombine.high %v20086_v46, %v20086_v46  ;;  %v8112_v25 = vld [vmem:[#allocation2 + $0x1a8] sm:$0x11] }
 0x6c8   : > { %21429 = vst [vmem:[#allocation90_spill] sm:$0xff] %v20094_v33  ;;  %v7916_v30 = vshrl.u32 %v15134_v17, 16  ;;  %v7451_v37 = vmax.f32 %v15272_v35, 0.0  ;;  %v15276_v21 = vadd.f32 %v20024_v45, %v7306_v26  ;;  %v7308_v44 = vpop.f32.mrb[71].mxu0  ;;  %10518 = vmatprep.mubr.bf16.mxu1 %v20094_v33  ;;  %v8721_v10 = vrot.slane %v8719_v1, 1  ;;  %v8398_v45 = vld [vmem:[#allocation2 + $0x48] sm:$0xff] }
 0x6c9   : > { %21430 = vst [vmem:[#allocation91_spill] sm:$0xff] %v20096_v43  ;;  %v7913_v50 = vor.u32 %v7911_v63, %v7910_v55  ;;  %v7452_v61 = vmax.f32 %v15274_v31, 0.0  ;;  %v15278_v40 = vadd.f32 %v20044_v7, %v7308_v44  ;;  %v7919_v11 = vshll.u32 %v15134_v17, 16  ;;  %v20122_v26 = vld [vmem:[#allocation2 + $0x58] sm:$0x11]  ;;  %v20127_v44 = vld [vmem:[#allocation2 + $0x68] sm:$0xff] }
 0x6ca   : > { %v7918_v42 = vrot.slane %v7916_v30, 7  ;;  %v7453_v58 = vmax.f32 %v15276_v21, 0.0  ;;  %v20109_v24 = vcombine.low %v20059_v48, %v20055_v53  ;;  %v14629_v39 = vcombine.high %v8398_v45, %v20104_v0 }
 0x6cb   : > { %v8109_v56 = vsel %vm18414_vm13, %v7913_v50, %v8108_v14  ;;  %v15135_v34 = vpack.c.bf16 %v7452_v61, %v7451_v37  ;;  %v7454_v28 = vmax.f32 %v15278_v40, 0.0  ;;  %10519 = vmatmul.mubr.bf16.gmra.mrb[96].mxu1 %v20096_v43  ;;  %v7914_v7 = vrot.slane %v7910_v55, 4  ;;  %v17178_v37 = vld [vmem:[#allocation13 + $0x200] ss:$8 sps:$4 sm:$0xff]   ;;  %v17187_v50 = vld [vmem:[#allocation13 + $0x214] ss:$8 sps:$4 sm:$0xff]  }
 0x6cc   : > { %8110 = vst [vmem:[#allocation2 + $0x198] sm:$0xff] %v8109_v56  ;;  %v7921_v18 = vor.u32 %v7919_v11, %v7918_v42  ;;  %v7923_v23 = vrot.slane %v7918_v42, 4  ;;  %10561 = vmatprep.mubr.bf16.mxu1 %v8703_v59  ;;  %v8724_v1 = vshll.u32 %v14627_v47, 16  ;;  %v8681_v48 = vshrl.u32 %v20026_v8, 16  ;;  %v8115_v8 = vld [vmem:[#allocation2 + $0x1b0] sm:$0xff] }
 0x6cd   : > { %v7925_v17 = vshrl.u32 %v15135_v34, 16  ;;  %v15136_v53 = vpack.c.bf16 %v7454_v28, %v7453_v58  ;;  %v8690_v35 = vrot.slane %v20081_v22, 1  ;;  %v8722_v31 = vor.u32 %v8721_v10, %v8717_v57  ;;  %v8119_v40 = vld [vmem:[#allocation2 + $0x1c0] sm:$0x11] }
 0x6ce   : > { %v7922_v4 = vsel %vm18451_vm15, %v7914_v7, %v7921_v18  ;;  %v8113_v63 = vsel %vm18408_vm8, %v7923_v23, %v8112_v25  ;;  %v8707_v55 = vshll.u32 %v20109_v24, 16  ;;  %v7928_v47 = vshll.u32 %v15135_v34, 16  ;;  %v8401_v58 = vld [vmem:[#allocation2 + $0x60] sm:$0xff]  ;;  %v17185_v23 = vld [vmem:[#allocation13 + $0x210] ss:$8 sps:$4 sm:$0xff]  }
 0x6cf   : > { %8111 = vst [vmem:[#allocation2 + $0x1a0] sm:$0xff] %v7922_v4  ;;  %8114 = vst [vmem:[#allocation2 + $0x1a8] sm:$0x11] %v8113_v63  ;;  %v7927_v59 = vrot.slane %v7925_v17, 7  ;;  %v7933_v14 = vshrl.u32 %v15136_v53, 16  ;;  %v8743_v30 = vshll.u32 %v14629_v39, 16  ;;  %v8686_v22 = vor.u32 %v20084_v51, %v8681_v48 }
 0x6d0   : > { %v8726_v3 = vrot.slane %v8724_v1, 1  ;;  %v14626_v21 = vcombine.low %v20086_v46, %v20086_v46  ;;  %v14631_v61 = vcombine.high %v20122_v26, %v20122_v26  ;;  %v8709_v11 = vrot.slane %v8707_v55, 1  ;;  %v17194_v53 = vld [vmem:[#allocation13 + $0x224] ss:$8 sps:$4 sm:$0xff]   ;;  %v17192_v55 = vld [vmem:[#allocation13 + $0x220] ss:$8 sps:$4 sm:$0xff]  }
 0x6d1   : > { %v7930_v57 = vor.u32 %v7928_v47, %v7927_v59  ;;  %v8691_v10 = vsel %vm2100_vm0, %v8686_v22, %v8690_v35  ;;  %v14628_v51 = vcombine.low %v8398_v45, %v20104_v0  ;;  %v17724_v56 = vrot.slane %v7933_v14, 11  ;;  %v20147_v59 = vld [vmem:[#allocation2 + $0x80] sm:$0xff] }
 0x6d2   : > { %v20133_v42 = vsel %vm2100_vm0, %v8722_v31, %v8726_v3  ;;  %v8745_v25 = vrot.slane %v8743_v30, 1  ;;  %v14633_v34 = vcombine.high %v8401_v58, %v20127_v44  ;;  %v8705_v7 = vshrl.u32 %v20109_v24, 16 }
 0x6d3   : > { %v8116_v46 = vsel %vm18414_vm13, %v7930_v57, %v8115_v8  ;;  %10562 = vmatmul.mubr.bf16.vlgmr.msra.gmra.mrb[36].mxu1 %v8691_v10  ;;  %v8712_v18 = vshll.u32 %v14626_v21, 16  ;;  %v8120_v45 = vsel %vm18408_vm8, %v17724_v56, %v8119_v40  ;;  %v8741_v1 = vshrl.u32 %v14629_v39, 16  ;;  %v17201_v39 = vld [vmem:[#allocation13 + $0x234] ss:$8 sps:$4 sm:$0xff]  }
 0x6d4   : > { %v8134_v28 = vsel %vm18414_vm13, 0, %v8116_v46  ;;  %10571 = vmatprep.mubr.bf16.mxu1 %v20133_v42  ;;  %10723 = vmatpush1.bf16.msra.mxu1 %v17178_v37  ;;  %v8748_v17 = vshll.u32 %v14631_v61, 16  ;;  %8121 = vst [vmem:[#allocation2 + $0x1c0] sm:$0x11] %v8120_v45  ;;  %v8710_v48 = vor.u32 %v8709_v11, %v8705_v7  ;;  %v8731_v35 = vshll.u32 %v14628_v51, 16  ;;  %v8404_v37 = vld [vmem:[#allocation2 + $0x78] sm:$0xff] }
 0x6d5   : > { %8135 = vst [vmem:[#allocation2 + $0x1b0] sm:$0xff] %v8134_v28  ;;  %10724 = vmatprep.subr.bf16.mxu1 %v17187_v50  ;;  %v8746_v4 = vor.u32 %v8745_v25, %v8741_v1  ;;  %v8767_v63 = vshll.u32 %v14633_v34, 16  ;;  %v8714_v31 = vrot.slane %v8712_v18, 1  ;;  %v14630_v24 = vcombine.low %v20122_v26, %v20122_v26  ;;  %v17199_v61 = vld [vmem:[#allocation13 + $0x230] ss:$8 sps:$4 sm:$0xff]  }
 0x6d6   : > { %v8750_v47 = vrot.slane %v8748_v17, 1  ;;  %v14635_v14 = vcombine.high %v8403_v20, %v8403_v20  ;;  %v8733_v8 = vrot.slane %v8731_v35, 1  ;;  %v14632_v22 = vcombine.low %v8401_v58, %v20127_v44  ;;  %v17208_v58 = vld [vmem:[#allocation13 + $0x244] ss:$8 sps:$4 sm:$0xff]   ;;  %v20161_v1 = vld [vmem:[#allocation2 + $0x98] sm:$0xff] }
 0x6d7   : > { %v20150_v30 = vsel %vm2100_vm0, %v8710_v48, %v8714_v31  ;;  %v8769_v26 = vrot.slane %v8767_v63, 1  ;;  %v14637_v21 = vcombine.high %v8404_v37, %v20147_v59  ;;  %v8729_v57 = vshrl.u32 %v14628_v51, 16  ;;  %v8406_v28 = vld [vmem:[#allocation2 + $0x88] sm:$0x11] }
 0x6d8   : > { %10725 = vmatpush1.bf16.msra.mxu1 %v17185_v23  ;;  %v20155_v3 = vsel %vm2100_vm0, %v8746_v4, %v8750_v47  ;;  %v8736_v50 = vshll.u32 %v14630_v24, 16  ;;  %v8765_v10 = vshrl.u32 %v14633_v34, 16  ;;  %v8772_v11 = vshll.u32 %v14635_v14, 16  ;;  %v17206_v51 = vld [vmem:[#allocation13 + $0x240] ss:$8 sps:$4 sm:$0xff]   ;;  %v8407_v4 = vld [vmem:[#allocation2 + $0x90] sm:$0xff] }
 0x6d9   : > { %10726 = vmatprep.subr.bf16.mxu1 %v17194_v53  ;;  %21431 = vst [vmem:[#allocation92_spill] sm:$0xff] %v20155_v3  ;;  %v8734_v56 = vor.u32 %v8733_v8, %v8729_v57  ;;  %v8755_v25 = vshll.u32 %v14632_v22, 16  ;;  %v8791_v18 = vshll.u32 %v14637_v21, 16  ;;  %v14634_v45 = vcombine.low %v8403_v20, %v8403_v20  ;;  %v17215_v53 = vld [vmem:[#allocation13 + $0x254] ss:$8 sps:$4 sm:$0xff]  }
 0x6da   : > { %v8770_v7 = vor.u32 %v8769_v26, %v8765_v10  ;;  %v8738_v23 = vrot.slane %v8736_v50, 1  ;;  %v8774_v17 = vrot.slane %v8772_v11, 1  ;;  %v14639_v34 = vcombine.high %v8406_v28, %v8406_v28  ;;  %v17213_v47 = vld [vmem:[#allocation13 + $0x250] ss:$8 sps:$4 sm:$0xff]   ;;  %v17222_v8 = vld [vmem:[#allocation13 + $0x264] ss:$8 sps:$4 sm:$0xff]  }
 0x6db   : > { %10572 = vmatmul.mubr.bf16.gmra.mrb[40].mxu1 %v20150_v30  ;;  %v8137_v40 = vld [vmem:[#allocation2 + $0x1c0] sm:$0x11]  ;;  %v8757_v13 = vrot.slane %v8755_v25, 1  ;;  %v14636_v35 = vcombine.low %v8404_v37, %v20147_v59  ;;  %v8793_v20 = vrot.slane %v8791_v18, 1  ;;  %v14641_v31 = vcombine.high %v8407_v4, %v20161_v1  ;;  %v20173_v11 = vld [vmem:[#allocation2 + $0xb0] sm:$0xff]  ;;  %v8410_v18 = vld [vmem:[#allocation2 + $0xa8] sm:$0xff] }
 0x6dc   : > { %10581 = vmatprep.mubr.bf16.mxu1 %v20155_v3  ;;  %10727 = vmatpush1.bf16.msra.mxu1 %v17192_v55  ;;  %v8138_v46 = vsel %vm18408_vm8, 0, %v8137_v40  ;;  %v20164_v48 = vsel %vm2100_vm0, %v8734_v56, %v8738_v23  ;;  %v20169_v63 = vsel %vm2100_vm0, %v8770_v7, %v8774_v17  ;;  %v8753_v24 = vshrl.u32 %v14632_v22, 16  ;;  %v8409_v57 = vld [vmem:[#allocation2 + $0xa0] sm:$0x11] }
 0x6dd   : > { %10728 = vmatprep.subr.bf16.mxu1 %v17201_v39  ;;  %8139 = vst [vmem:[#allocation2 + $0x1c0] sm:$0x11] %v8138_v46  ;;  %21432 = vst [vmem:[#allocation93_spill] sm:$0xff] %v20164_v48  ;;  %v8760_v55 = vshll.u32 %v14634_v45, 16  ;;  %v8789_v14 = vshrl.u32 %v14637_v21, 16  ;;  %v8796_v39 = vshll.u32 %v14639_v34, 16  ;;  %v14638_v10 = vcombine.low %v8406_v28, %v8406_v28 }
 0x6de   : > { %21433 = vst [vmem:[#allocation37_spill] sm:$0xff] %v20169_v63  ;;  %v8758_v37 = vor.u32 %v8757_v13, %v8753_v24  ;;  %v8779_v26 = vshll.u32 %v14636_v35, 16  ;;  %v14643_v22 = vcombine.high %v8409_v57, %v8409_v57  ;;  %v17229_v56 = vld [vmem:[#allocation13 + $0x274] ss:$8 sps:$4 sm:$0xff]   ;;  %v14640_v7 = vcombine.low %v8407_v4, %v20161_v1  ;;  %v17227_v34 = vld [vmem:[#allocation13 + $0x270] ss:$8 sps:$4 sm:$0xff]  }
 0x6df   : > { %v8794_v50 = vor.u32 %v8793_v20, %v8789_v14  ;;  %v8762_v40 = vrot.slane %v8760_v55, 1  ;;  %v8798_v46 = vrot.slane %v8796_v39, 1  ;;  %v14645_v45 = vcombine.high %v8410_v18, %v20173_v11  ;;  %v17236_v20 = vld [vmem:[#allocation13 + $0x284] ss:$8 sps:$4 sm:$0xff]   ;;  %v8412_v55 = vld [vmem:[#allocation2 + $0xb8] sm:$0x11] }
 0x6e0   : > { %10729 = vmatpush1.bf16.msra.mxu1 %v17199_v61  ;;  %v8815_v61 = vshll.u32 %v14641_v31, 16  ;;  %v8781_v25 = vrot.slane %v8779_v26, 1  ;;  %v8784_v17 = vshll.u32 %v14638_v10, 16  ;;  %v8820_v13 = vshll.u32 %v14643_v22, 16  ;;  %v17234_v26 = vld [vmem:[#allocation13 + $0x280] ss:$8 sps:$4 sm:$0xff]  }
 0x6e1   : > { %10730 = vmatprep.subr.bf16.mxu1 %v17208_v58  ;;  %v17220_v58 = vld [vmem:[#allocation13 + $0x260] ss:$8 sps:$4 sm:$0xff]   ;;  %v20176_v21 = vsel %vm2100_vm0, %v8758_v37, %v8762_v40  ;;  %v20181_v23 = vsel %vm2100_vm0, %v8794_v50, %v8798_v46  ;;  %v8803_v24 = vshll.u32 %v14640_v7, 16  ;;  %v8839_v14 = vshll.u32 %v14645_v45, 16 }
 0x6e2   : > { %21434 = vst [vmem:[#allocation38_spill] sm:$0xff] %v20176_v21  ;;  %21435 = vst [vmem:[#allocation39_spill] sm:$0xff] %v20181_v23  ;;  %v8817_v28 = vrot.slane %v8815_v61, 1  ;;  %v8786_v39 = vrot.slane %v8784_v17, 1  ;;  %v20185_v37 = vld [vmem:[#allocation2 + $0xc8] sm:$0xff]  ;;  %v8822_v50 = vrot.slane %v8820_v13, 1  ;;  %v14644_v10 = vcombine.low %v8410_v18, %v20173_v11 }
 0x6e3   : > { %10582 = vmatmul.mubr.bf16.gmra.mrb[44].mxu1 %v20164_v48  ;;  %v17243_v61 = vld [vmem:[#allocation13 + $0x294] ss:$8 sps:$4 sm:$0xff]   ;;  %v8805_v40 = vrot.slane %v8803_v24, 1  ;;  %v8415_v13 = vld [vmem:[#allocation2 + $0xd0] sm:$0x11] }
 0x6e4   : > { %10591 = vmatprep.mubr.bf16.mxu1 %v20169_v63  ;;  %10731 = vmatpush1.bf16.msra.mxu1 %v17206_v51  ;;  %v8777_v51 = vshrl.u32 %v14636_v35, 16  ;;  %v14647_v35 = vcombine.high %v8412_v55, %v8412_v55 }
 0x6e5   : > { %10732 = vmatprep.subr.bf16.mxu1 %v17215_v53  ;;  %v8813_v53 = vshrl.u32 %v14641_v31, 16 }
 0x6e6   : > { %v8782_v4 = vor.u32 %v8781_v25, %v8777_v51  ;;  %v8837_v51 = vshrl.u32 %v14645_v45, 16  ;;  %v8844_v17 = vshll.u32 %v14647_v35, 16 }
 0x6e8   : > { %10733 = vmatpush1.bf16.msra.mxu1 %v17213_v47  ;;  %v8818_v47 = vor.u32 %v8817_v28, %v8813_v53  ;;  %v20188_v31 = vsel %vm2100_vm0, %v8782_v4, %v8786_v39  ;;  %v17241_v28 = vld [vmem:[#allocation13 + $0x290] ss:$8 sps:$4 sm:$0xff]   ;;  %v8827_v53 = vshll.u32 %v14644_v10, 16  ;;  %v17248_v39 = vld [vmem:[#allocation13 + $0x2a0] ss:$8 sps:$4 sm:$0xff]  }
 0x6e9   : > { %10734 = vmatprep.subr.bf16.mxu1 %v17222_v8  ;;  %v14642_v8 = vcombine.low %v8409_v57, %v8409_v57  ;;  %21436 = vst [vmem:[#allocation42_spill] sm:$0xff] %v20188_v31  ;;  %v8841_v57 = vrot.slane %v8839_v14, 1  ;;  %v20197_v14 = vld [vmem:[#allocation2 + $0xe0] sm:$0xff] }
 0x6ea   : > { %v20193_v46 = vsel %vm2100_vm0, %v8818_v47, %v8822_v50  ;;  %v14646_v47 = vcombine.low %v8412_v55, %v8412_v55  ;;  %v8846_v50 = vrot.slane %v8844_v17, 1 }
 0x6eb   : > { %10592 = vmatmul.mubr.bf16.gmra.mrb[48].mxu1 %v20176_v21  ;;  %21437 = vst [vmem:[#allocation43_spill] sm:$0xff] %v20193_v46  ;;  %v8808_v25 = vshll.u32 %v14642_v8, 16  ;;  %v17257_v8 = vld [vmem:[#allocation13 + $0x2b4] ss:$8 sps:$4 sm:$0xff]  }
 0x6ec   : > { %10601 = vmatprep.mubr.bf16.mxu1 %v20181_v23  ;;  %10735 = vmatpush1.bf16.msra.mxu1 %v17220_v58  ;;  %v8413_v58 = vld [vmem:[#allocation2 + $0xc0] sm:$0xff] }
 0x6ed   : > { %10736 = vmatprep.subr.bf16.mxu1 %v17229_v56  ;;  %v14649_v22 = vcombine.high %v8413_v58, %v20185_v37  ;;  %v8801_v56 = vshrl.u32 %v14640_v7, 16  ;;  %v8810_v24 = vrot.slane %v8808_v25, 1  ;;  %v14651_v7 = vcombine.high %v8415_v13, %v8415_v13 }
 0x6ee   : > { %v14648_v35 = vcombine.low %v8413_v58, %v20185_v37  ;;  %v8832_v25 = vshll.u32 %v14646_v47, 16  ;;  %v17271_v47 = vld [vmem:[#allocation13 + $0x2d4] ss:$8 sps:$4 sm:$0xff]  }
 0x6ef   : > { %v8806_v18 = vor.u32 %v8805_v40, %v8801_v56  ;;  %v8863_v4 = vshll.u32 %v14649_v22, 16  ;;  %v8825_v56 = vshrl.u32 %v14644_v10, 16  ;;  %v8868_v17 = vshll.u32 %v14651_v7, 16 }
 0x6f0   : > { %10737 = vmatpush1.bf16.msra.mxu1 %v17227_v34  ;;  %v17250_v34 = vld [vmem:[#allocation13 + $0x2a4] ss:$8 sps:$4 sm:$0xff]  }
 0x6f1   : > { %10738 = vmatprep.subr.bf16.mxu1 %v17236_v20  ;;  %v8842_v20 = vor.u32 %v8841_v57, %v8837_v51  ;;  %v20200_v45 = vsel %vm2100_vm0, %v8806_v18, %v8810_v24  ;;  %v8865_v55 = vrot.slane %v8863_v4, 1  ;;  %v8861_v51 = vshrl.u32 %v14649_v22, 16  ;;  %v20209_v4 = vld [vmem:[#allocation2 + $0xf8] sm:$0xff] }
 0x6f2   : > { %21438 = vst [vmem:[#allocation44_spill] sm:$0xff] %v20200_v45  ;;  %v8851_v18 = vshll.u32 %v14648_v35, 16 }
 0x6f3   : > { %10602 = vmatmul.mubr.bf16.gmra.mrb[52].mxu1 %v20188_v31  ;;  %v20205_v40 = vsel %vm2100_vm0, %v8842_v20, %v8846_v50  ;;  %v8866_v24 = vor.u32 %v8865_v55, %v8861_v51  ;;  %v8834_v20 = vrot.slane %v8832_v25, 1  ;;  %v14650_v50 = vcombine.low %v8415_v13, %v8415_v13  ;;  %v17276_v31 = vld [vmem:[#allocation13 + $0x2e0] ss:$8 sps:$4 sm:$0xff]  }
 0x6f4   : > { %10611 = vmatprep.mubr.bf16.mxu1 %v20193_v46  ;;  %10739 = vmatpush1.bf16.msra.mxu1 %v17234_v26  ;;  %v8829_v26 = vrot.slane %v8827_v53, 1  ;;  %21439 = vst [vmem:[#allocation45_spill] sm:$0xff] %v20205_v40  ;;  %v8418_v53 = vld [vmem:[#allocation2 + $0xe8] sm:$0x11] }
 0x6f5   : > { %10740 = vmatprep.subr.bf16.mxu1 %v17243_v61  ;;  %v8416_v61 = vld [vmem:[#allocation2 + $0xd8] sm:$0xff]  ;;  %v17262_v46 = vld [vmem:[#allocation13 + $0x2c0] ss:$8 sps:$4 sm:$0xff]   ;;  %v14655_v10 = vcombine.high %v8418_v53, %v8418_v53  ;;  %v8856_v25 = vshll.u32 %v14650_v50, 16 }
 0x6f6   : > { %v14653_v57 = vcombine.high %v8416_v61, %v20197_v14  ;;  %v8830_v58 = vor.u32 %v8829_v26, %v8825_v56  ;;  %v14652_v7 = vcombine.low %v8416_v61, %v20197_v14  ;;  %v8849_v56 = vshrl.u32 %v14648_v35, 16 }
 0x6f8   : > { %10741 = vmatpush1.bf16.msra.mxu1 %v17241_v28  ;;  %v17255_v28 = vld [vmem:[#allocation13 + $0x2b0] ss:$8 sps:$4 sm:$0xff]   ;;  %v20212_v22 = vsel %vm2100_vm0, %v8830_v58, %v8834_v20  ;;  %v8885_v51 = vshrl.u32 %v14653_v57, 16  ;;  %v8875_v58 = vshll.u32 %v14652_v7, 16 }
 0x6f9   : > { %10742 = vmatprep.subr.bf16.mxu1 %v17250_v34  ;;  %v17264_v34 = vld [vmem:[#allocation13 + $0x2c4] ss:$8 sps:$4 sm:$0xff]   ;;  %21440 = vst [vmem:[#allocation46_spill] sm:$0xff] %v20212_v22 }
 0x6fa   : > { %v8877_v50 = vrot.slane %v8875_v58, 1  ;;  %v8424_v58 = vld [vmem:[#allocation2 + $0x118] sm:$0x11] }
 0x6fb   : > { %10612 = vmatmul.mubr.bf16.gmra.mrb[56].mxu1 %v20200_v45  ;;  %v8887_v45 = vshll.u32 %v14653_v57, 16 }
 0x6fc   : > { %10621 = vmatprep.mubr.bf16.mxu1 %v20205_v40  ;;  %10743 = vmatpush1.bf16.msra.mxu1 %v17248_v39  ;;  %v8870_v40 = vrot.slane %v8868_v17, 1  ;;  %v8853_v39 = vrot.slane %v8851_v18, 1  ;;  %v8892_v17 = vshll.u32 %v14655_v10, 16  ;;  %v8421_v18 = vld [vmem:[#allocation2 + $0x100] sm:$0x11] }
 0x6fd   : > { %10744 = vmatprep.subr.bf16.mxu1 %v17257_v8  ;;  %v8419_v8 = vld [vmem:[#allocation2 + $0xf0] sm:$0xff]  ;;  %v8889_v13 = vrot.slane %v8887_v45, 1  ;;  %v14659_v35 = vcombine.high %v8421_v18, %v8421_v18 }
 0x6fe   : > { %v20217_v26 = vsel %vm2100_vm0, %v8866_v24, %v8870_v40  ;;  %v14657_v55 = vcombine.high %v8419_v8, %v20209_v4  ;;  %v8854_v61 = vor.u32 %v8853_v39, %v8849_v56  ;;  %v8858_v40 = vrot.slane %v8856_v25, 1  ;;  %v20221_v45 = vld [vmem:[#allocation2 + $0x110] sm:$0xff] }
 0x6ff   : > { %21441 = vst [vmem:[#allocation47_spill] sm:$0xff] %v20217_v26  ;;  %v8890_v20 = vor.u32 %v8889_v13, %v8885_v51  ;;  %v14654_v24 = vcombine.low %v8418_v53, %v8418_v53  ;;  %v14656_v10 = vcombine.low %v8419_v8, %v20209_v4  ;;  %v8873_v56 = vshrl.u32 %v14652_v7, 16 }
 0x700   : > { %10745 = vmatpush1.bf16.msra.mxu1 %v17255_v28  ;;  %v17269_v28 = vld [vmem:[#allocation13 + $0x2d0] ss:$8 sps:$4 sm:$0xff]   ;;  %v20224_v57 = vsel %vm2100_vm0, %v8854_v61, %v8858_v40  ;;  %v8909_v51 = vshrl.u32 %v14657_v55, 16 }
 0x701   : > { %10746 = vmatprep.subr.bf16.mxu1 %v17264_v34  ;;  %v17278_v34 = vld [vmem:[#allocation13 + $0x2e4] ss:$8 sps:$4 sm:$0xff]   ;;  %21442 = vst [vmem:[#allocation48_spill] sm:$0xff] %v20224_v57  ;;  %v8880_v25 = vshll.u32 %v14654_v24, 16  ;;  %v8878_v8 = vor.u32 %v8877_v50, %v8873_v56  ;;  %v8899_v61 = vshll.u32 %v14656_v10, 16  ;;  %v8897_v50 = vshrl.u32 %v14656_v10, 16 }
 0x702   : > { %v8425_v24 = vld [vmem:[#allocation2 + $0x120] sm:$0xff] }
 0x703   : > { %10622 = vmatmul.mubr.bf16.gmra.mrb[60].mxu1 %v20212_v22  ;;  %v8911_v22 = vshll.u32 %v14657_v55, 16  ;;  %v8901_v7 = vrot.slane %v8899_v61, 1  ;;  %v14662_v61 = vcombine.low %v8424_v58, %v8424_v58 }
 0x704   : > { %10631 = vmatprep.mubr.bf16.mxu1 %v20217_v26  ;;  %10747 = vmatpush1.bf16.msra.mxu1 %v17262_v46  ;;  %v8894_v26 = vrot.slane %v8892_v17, 1  ;;  %v17285_v46 = vld [vmem:[#allocation13 + $0x2f4] ss:$8 sps:$4 sm:$0xff]   ;;  %v8916_v17 = vshll.u32 %v14659_v35, 16 }
 0x705   : > { %10748 = vmatprep.subr.bf16.mxu1 %v17271_v47  ;;  %v8422_v47 = vld [vmem:[#allocation2 + $0x108] sm:$0xff]  ;;  %v8913_v53 = vrot.slane %v8911_v22, 1 }
 0x706   : > { %v20229_v39 = vsel %vm2100_vm0, %v8890_v20, %v8894_v26  ;;  %v14661_v13 = vcombine.high %v8422_v47, %v20221_v45  ;;  %v8882_v26 = vrot.slane %v8880_v25, 1  ;;  %v14658_v20 = vcombine.low %v8421_v18, %v8421_v18  ;;  %v20233_v22 = vld [vmem:[#allocation2 + $0x128] sm:$0xff] }
 0x707   : > { %21443 = vst [vmem:[#allocation49_spill] sm:$0xff] %v20229_v39  ;;  %v8914_v40 = vor.u32 %v8913_v53, %v8909_v51  ;;  %v8918_v23 = vrot.slane %v8916_v17, 1  ;;  %v14660_v55 = vcombine.low %v8422_v47, %v20221_v45  ;;  %v14665_v18 = vcombine.high %v8425_v24, %v20233_v22  ;;  %v8427_v17 = vld [vmem:[#allocation2 + $0x130] sm:$0x11] }
 0x708   : > { %10749 = vmatpush1.bf16.msra.mxu1 %v17269_v28  ;;  %v17283_v28 = vld [vmem:[#allocation13 + $0x2f0] ss:$8 sps:$4 sm:$0xff]   ;;  %v8904_v53 = vshll.u32 %v14658_v20, 16  ;;  %v8933_v56 = vshrl.u32 %v14661_v13, 16  ;;  %v14664_v10 = vcombine.low %v8425_v24, %v20233_v22 }
 0x709   : > { %10750 = vmatprep.subr.bf16.mxu1 %v17278_v34  ;;  %v17290_v34 = vld [vmem:[#allocation13 + $0x304] ss:$8 sps:$4 sm:$0xff]   ;;  %v20241_v35 = vsel %vm2100_vm0, %v8914_v40, %v8918_v23  ;;  %v8923_v51 = vshll.u32 %v14660_v55, 16  ;;  %v8959_v47 = vshll.u32 %v14665_v18, 16  ;;  %v14667_v40 = vcombine.high %v8427_v17, %v8427_v17  ;;  %v8428_v20 = vld [vmem:[#allocation2 + $0x138] sm:$0xff] }
 0x70a   : > { %21445 = vst [vmem:[#allocation51_spill] sm:$0xff] %v20241_v35 }
 0x70b   : > { %10632 = vmatmul.mubr.bf16.gmra.mrb[64].mxu1 %v20224_v57  ;;  %v8935_v57 = vshll.u32 %v14661_v13, 16  ;;  %v8961_v13 = vrot.slane %v8959_v47, 1 }
 0x70c   : > { %10641 = vmatprep.mubr.bf16.mxu1 %v20229_v39  ;;  %10751 = vmatpush1.bf16.msra.mxu1 %v17276_v31  ;;  %v14663_v39 = vcombine.high %v8424_v58, %v8424_v58  ;;  %v20236_v31 = vsel %vm2100_vm0, %v8878_v8, %v8882_v26  ;;  %v8906_v8 = vrot.slane %v8904_v53, 1  ;;  %v20245_v26 = vld [vmem:[#allocation2 + $0x140] sm:$0xff]  ;;  %v8921_v58 = vshrl.u32 %v14660_v55, 16 }
 0x70d   : > { %10752 = vmatprep.subr.bf16.mxu1 %v17285_v46  ;;  %21444 = vst [vmem:[#allocation50_spill] sm:$0xff] %v20236_v31  ;;  %v8937_v46 = vrot.slane %v8935_v57, 1  ;;  %v8964_v53 = vshll.u32 %v14667_v40, 16  ;;  %v14668_v55 = vcombine.low %v8428_v20, %v20245_v26 }
 0x70e   : > { %v8940_v25 = vshll.u32 %v14663_v39, 16 }
 0x710   : > { %10753 = vmatpush1.bf16.msra.mxu1 %v17283_v28  ;;  %v8902_v28 = vor.u32 %v8901_v7, %v8897_v50  ;;  %v8942_v23 = vrot.slane %v8940_v25, 1  ;;  %v14669_v7 = vcombine.high %v8428_v20, %v20245_v26  ;;  %v8957_v50 = vshrl.u32 %v14665_v18, 16 }
 0x711   : > { %11652 = vmatprep.subr.bf16.mxu1 %v17290_v34  ;;  %v8938_v34 = vor.u32 %v8937_v46, %v8933_v56  ;;  %v8928_v46 = vshll.u32 %v14662_v61, 16  ;;  %v8947_v25 = vshll.u32 %v14664_v10, 16  ;;  %v8431_v61 = vld [vmem:[#allocation2 + $0x150] sm:$0xff] }
 0x712   : > { %v20248_v57 = vsel %vm2100_vm0, %v8902_v28, %v8906_v8  ;;  %v8430_v28 = vld [vmem:[#allocation2 + $0x148] sm:$0x11]  ;;  %v8983_v24 = vshll.u32 %v14669_v7, 16 }
 0x713   : > { %10642 = vmatmul.mubr.bf16.gmra.mrb[68].mxu1 %v20236_v31  ;;  %21446 = vst [vmem:[#allocation52_spill] sm:$0xff] %v20248_v57  ;;  %v8925_v31 = vrot.slane %v8923_v51, 1  ;;  %v20253_v39 = vsel %vm2100_vm0, %v8938_v34, %v8942_v23  ;;  %v8962_v51 = vor.u32 %v8961_v13, %v8957_v50  ;;  %v8930_v8 = vrot.slane %v8928_v46, 1 }
 0x714   : > { %10651 = vmatprep.mubr.bf16.mxu1 %v20241_v35  ;;  %21447 = vst [vmem:[#allocation53_spill] sm:$0xff] %v20253_v39  ;;  %v14666_v35 = vcombine.low %v8427_v17, %v8427_v17  ;;  %v8966_v34 = vrot.slane %v8964_v53, 1  ;;  %v14671_v23 = vcombine.high %v8430_v28, %v8430_v28  ;;  %v8949_v21 = vrot.slane %v8947_v25, 1 }
 0x715   : > { %v8926_v56 = vor.u32 %v8925_v31, %v8921_v58  ;;  %v8985_v18 = vrot.slane %v8983_v24, 1  ;;  %v8945_v17 = vshrl.u32 %v14664_v10, 16  ;;  %v8981_v58 = vshrl.u32 %v14669_v7, 16 }
 0x716   : > { %v20265_v31 = vsel %vm2100_vm0, %v8962_v51, %v8966_v34  ;;  %v8952_v13 = vshll.u32 %v14666_v35, 16  ;;  %v8988_v46 = vshll.u32 %v14671_v23, 16  ;;  %v8971_v53 = vshll.u32 %v14668_v55, 16  ;;  %v8434_v35 = vld [vmem:[#allocation2 + $0x168] sm:$0xff] }
 0x717   : > { %v20260_v47 = vsel %vm2100_vm0, %v8926_v56, %v8930_v8  ;;  %21449 = vst [vmem:[#allocation55_spill] sm:$0xff] %v20265_v31  ;;  %v8950_v50 = vor.u32 %v8949_v21, %v8945_v17  ;;  %v8433_v56 = vld [vmem:[#allocation2 + $0x160] sm:$0x11]  ;;  %v8986_v25 = vor.u32 %v8985_v18, %v8981_v58 }
 0x718   : > { %21448 = vst [vmem:[#allocation54_spill] sm:$0xff] %v20260_v47  ;;  %v8954_v8 = vrot.slane %v8952_v13, 1  ;;  %v8990_v51 = vrot.slane %v8988_v46, 1  ;;  %v14675_v34 = vcombine.high %v8433_v56, %v8433_v56  ;;  %v8973_v63 = vrot.slane %v8971_v53, 1 }
 0x71a   : > { %v20272_v24 = vsel %vm2100_vm0, %v8950_v50, %v8954_v8  ;;  %v20277_v21 = vsel %vm2100_vm0, %v8986_v25, %v8990_v51  ;;  %v9012_v13 = vshll.u32 %v14675_v34, 16  ;;  %v8436_v50 = vld [vmem:[#allocation2 + $0x178] sm:$0x11] }
 0x71b   : > { %10652 = vmatmul.mubr.bf16.gmra.mrb[72].mxu1 %v20248_v57  ;;  %v20257_v57 = vld [vmem:[#allocation2 + $0x158] sm:$0xff]  ;;  %21450 = vst [vmem:[#allocation57_spill] sm:$0xff] %v20272_v24  ;;  %21451 = vst [vmem:[#allocation62_spill] sm:$0xff] %v20277_v21  ;;  %v14679_v51 = vcombine.high %v8436_v50, %v8436_v50 }
 0x71c   : > { %10661 = vmatprep.mubr.bf16.mxu1 %v20253_v39  ;;  %v14673_v40 = vcombine.high %v8431_v61, %v20257_v57  ;;  %v14670_v39 = vcombine.low %v8430_v28, %v8430_v28  ;;  %v14672_v10 = vcombine.low %v8431_v61, %v20257_v57  ;;  %v8969_v28 = vshrl.u32 %v14668_v55, 16 }
 0x71d   : > { %v9014_v25 = vrot.slane %v9012_v13, 1 }
 0x71e   : > { %v9007_v20 = vshll.u32 %v14673_v40, 16  ;;  %v8976_v18 = vshll.u32 %v14670_v39, 16  ;;  %v9005_v17 = vshrl.u32 %v14673_v40, 16  ;;  %v8974_v58 = vor.u32 %v8973_v63, %v8969_v28  ;;  %v8437_v39 = vld [vmem:[#allocation2 + $0x180] sm:$0xff] }
 0x71f   : > { %v8995_v46 = vshll.u32 %v14672_v10, 16 }
 0x720   : > { %v9009_v7 = vrot.slane %v9007_v20, 1  ;;  %v8978_v8 = vrot.slane %v8976_v18, 1  ;;  %v9036_v18 = vshll.u32 %v14679_v51, 16 }
 0x721   : > { %v8997_v48 = vrot.slane %v8995_v46, 1 }
 0x722   : > { %v9010_v53 = vor.u32 %v9009_v7, %v9005_v17  ;;  %v20284_v20 = vsel %vm2100_vm0, %v8974_v58, %v8978_v8  ;;  %v8439_v58 = vld [vmem:[#allocation2 + $0x190] sm:$0x11] }
 0x723   : > { %10662 = vmatmul.mubr.bf16.gmra.mrb[76].mxu1 %v20260_v47  ;;  %v20269_v47 = vld [vmem:[#allocation2 + $0x170] sm:$0xff]  ;;  %21452 = vst [vmem:[#allocation63_spill] sm:$0xff] %v20284_v20  ;;  %v14683_v3 = vcombine.high %v8439_v58, %v8439_v58 }
 0x724   : > { %10671 = vmatprep.mubr.bf16.mxu1 %v20265_v31  ;;  %v14677_v23 = vcombine.high %v8434_v35, %v20269_v47  ;;  %v14674_v31 = vcombine.low %v8433_v56, %v8433_v56  ;;  %v14676_v55 = vcombine.low %v8434_v35, %v20269_v47  ;;  %v20289_v63 = vsel %vm2100_vm0, %v9010_v53, %v9014_v25 }
 0x725   : > { %21453 = vst [vmem:[#allocation64_spill] sm:$0xff] %v20289_v63  ;;  %v8993_v56 = vshrl.u32 %v14672_v10, 16 }
 0x726   : > { %v9031_v61 = vshll.u32 %v14677_v23, 16  ;;  %v9000_v7 = vshll.u32 %v14674_v31, 16  ;;  %v9029_v28 = vshrl.u32 %v14677_v23, 16  ;;  %v9019_v13 = vshll.u32 %v14676_v55, 16 }
 0x727   : > { %v8998_v17 = vor.u32 %v8997_v48, %v8993_v56  ;;  %v9017_v10 = vshrl.u32 %v14676_v55, 16 }
 0x728   : > { %v9033_v40 = vrot.slane %v9031_v61, 1  ;;  %v9002_v8 = vrot.slane %v9000_v7, 1  ;;  %v9021_v61 = vrot.slane %v9019_v13, 1 }
 0x72a   : > { %v9034_v46 = vor.u32 %v9033_v40, %v9029_v28  ;;  %v20294_v53 = vsel %vm2100_vm0, %v8998_v17, %v9002_v8  ;;  %v9022_v40 = vor.u32 %v9021_v61, %v9017_v10  ;;  %v9186_v17 = vld [vmem:[#allocation2 + $0x28] sm:$0x11]  ;;  %v9189_v10 = vld [vmem:[#allocation2 + $0x40] sm:$0x11] }
 0x72b   : > { %10672 = vmatmul.mubr.bf16.gmra.mrb[80].mxu1 %v20272_v24  ;;  %v20281_v24 = vld [vmem:[#allocation2 + $0x188] sm:$0xff]  ;;  %21454 = vst [vmem:[#allocation65_spill] sm:$0xff] %v20294_v53 }
 0x72c   : > { %10681 = vmatprep.mubr.bf16.mxu1 %v20277_v21  ;;  %v14681_v34 = vcombine.high %v8437_v39, %v20281_v24  ;;  %v14678_v21 = vcombine.low %v8436_v50, %v8436_v50  ;;  %v14680_v25 = vcombine.low %v8437_v39, %v20281_v24  ;;  %v9060_v50 = vshll.u32 %v14683_v3, 16 }
 0x72e   : > { %v9055_v35 = vshll.u32 %v14681_v34, 16  ;;  %v9024_v23 = vshll.u32 %v14678_v21, 16  ;;  %v9053_v51 = vshrl.u32 %v14681_v34, 16  ;;  %v9043_v56 = vshll.u32 %v14680_v25, 16  ;;  %v17656_v34 = vld [vmem:[#allocation2 + $0x8] sm:$0xff] }
 0x72f   : > { %v9062_v13 = vrot.slane %v9060_v50, 1  ;;  %v14695_v21 = vcombine.high %v9186_v17, %v9186_v17  ;;  %v9041_v3 = vshrl.u32 %v14680_v25, 16  ;;  %v14694_v50 = vcombine.low %v9186_v17, %v9186_v17 }
 0x730   : > { %v9057_v48 = vrot.slane %v9055_v35, 1  ;;  %v9026_v28 = vrot.slane %v9024_v23, 1  ;;  %v9045_v8 = vrot.slane %v9043_v56, 1  ;;  %v14699_v25 = vcombine.high %v9189_v10, %v9189_v10 }
 0x731   : > { %v9476_v61 = vrot.slane %v14695_v21, 1 }
 0x732   : > { %v9058_v7 = vor.u32 %v9057_v48, %v9053_v51  ;;  %v20303_v39 = vsel %vm2100_vm0, %v9022_v40, %v9026_v28  ;;  %v9187_v40 = vld [vmem:[#allocation2 + $0x30] sm:$0xee]  ;;  %v9482_v21 = vrot.slane %v14699_v25, 1 }
 0x733   : > { %10682 = vmatmul.mubr.bf16.gmra.mrb[84].mxu1 %v20284_v20  ;;  %v9038_v20 = vrot.slane %v9036_v18, 1  ;;  %v14682_v18 = vcombine.low %v8439_v58, %v8439_v58  ;;  %21456 = vst [vmem:[#allocation67_spill] sm:$0xff] %v20303_v39  ;;  %v9046_v58 = vor.u32 %v9045_v8, %v9041_v3 }
 0x734   : > { %10691 = vmatprep.mubr.bf16.mxu1 %v20289_v63 }
 0x735   : > { %v20299_v31 = vsel %vm2100_vm0, %v9034_v46, %v9038_v20  ;;  %v9184_v20 = vld [vmem:[#allocation2 + $0x18] sm:$0xee]  ;;  %v20307_v46 = vsel %vm2100_vm0, %v9058_v7, %v9062_v13  ;;  %v9048_v55 = vshll.u32 %v14682_v18, 16  ;;  %v9473_v13 = vrot.slane %v14694_v50, 1  ;;  %v17304_v50 = vld [vmem:[#allocation13 + $0x324] ss:$8 sps:$4 sm:$0xff]  }
 0x736   : > { %21455 = vst [vmem:[#allocation66_spill] sm:$0xff] %v20299_v31  ;;  %21457 = vst [vmem:[#allocation68_spill] sm:$0xff] %v20307_v46  ;;  %v14693_v35 = vcombine.high %v9184_v20, %v17656_v34  ;;  %v17657_v7 = vld [vmem:[#allocation2 + $0x38] sm:$0xff]  ;;  %v14692_v18 = vcombine.low %v9184_v20, %v17656_v34 }
 0x737   : > { %v9050_v48 = vrot.slane %v9048_v55, 1  ;;  %v14697_v28 = vcombine.high %v9187_v40, %v17657_v7  ;;  %v17288_v55 = vld [vmem:[#allocation13 + $0x300] ss:$8 sps:$4 sm:$0xff]   ;;  %v14696_v17 = vcombine.low %v9187_v40, %v17657_v7  ;;  %v17295_v34 = vld [vmem:[#allocation13 + $0x310] ss:$8 sps:$4 sm:$0xff]  }
 0x738   : > { %v9475_v23 = vrot.slane %v14693_v35, 1  ;;  %v9472_v3 = vrot.slane %v14692_v18, 1  ;;  %v9192_v35 = vld [vmem:[#allocation2 + $0x58] sm:$0x11]  ;;  %v9195_v40 = vld [vmem:[#allocation2 + $0x70] sm:$0x11] }
 0x739   : > { %v20311_v51 = vsel %vm2100_vm0, %v9046_v58, %v9050_v48  ;;  %v9481_v8 = vrot.slane %v14697_v28, 1  ;;  %v14698_v48 = vcombine.low %v9189_v10, %v9189_v10  ;;  %v14703_v20 = vcombine.high %v9192_v35, %v9192_v35  ;;  %v17302_v10 = vld [vmem:[#allocation13 + $0x320] ss:$8 sps:$4 sm:$0xff]   ;;  %v17311_v7 = vld [vmem:[#allocation13 + $0x334] ss:$8 sps:$4 sm:$0xff]  }
 0x73a   : > { %v9477_v56 = vsel %vm2981_vm1, %v9475_v23, %v9476_v61  ;;  %v9474_v58 = vsel %vm2981_vm1, %v9472_v3, %v9473_v13  ;;  %v9193_v3 = vld [vmem:[#allocation2 + $0x60] sm:$0xee] }
 0x73b   : > { %10692 = vmatmul.mubr.bf16.gmra.mrb[88].mxu1 %v20294_v53  ;;  %v20317_v61 = vsel %vm2981_vm1, %v9481_v8, %v9482_v21  ;;  %v9479_v28 = vrot.slane %v14698_v48, 1  ;;  %v9488_v18 = vrot.slane %v14703_v20, 1  ;;  %v14702_v21 = vcombine.low %v9192_v35, %v9192_v35  ;;  %v17318_v48 = vld [vmem:[#allocation13 + $0x344] ss:$8 sps:$4 sm:$0xff]   ;;  %v17316_v35 = vld [vmem:[#allocation13 + $0x340] ss:$8 sps:$4 sm:$0xff]  }
 0x73c   : > { %10701 = vmatprep.mubr.bf16.mxu1 %v20299_v31 }
 0x73d   : > { %v9485_v20 = vrot.slane %v14702_v21, 1  ;;  %v17323_v21 = vld [vmem:[#allocation13 + $0x350] ss:$8 sps:$4 sm:$0xff]  }
 0x743   : > { %10702 = vmatmul.mubr.bf16.gmra.mrb[92].mxu1 %v20303_v39  ;;  %v9190_v39 = vld [vmem:[#allocation2 + $0x48] sm:$0xee] }
 0x744   : > { %10711 = vmatprep.mubr.bf16.mxu1 %v20307_v46  ;;  %v17297_v46 = vld [vmem:[#allocation13 + $0x314] ss:$8 sps:$4 sm:$0xff]   ;;  %v14701_v23 = vcombine.high %v9190_v39, %v20104_v0  ;;  %v14700_v8 = vcombine.low %v9190_v39, %v20104_v0  ;;  %v9198_v39 = vld [vmem:[#allocation2 + $0x88] sm:$0x11] }
 0x746   : > { %v9487_v25 = vrot.slane %v14701_v23, 1  ;;  %v9484_v23 = vrot.slane %v14700_v8, 1  ;;  %v14711_v8 = vcombine.high %v9198_v39, %v9198_v39 }
 0x74b   : > { %10712 = vmatmul.mubr.bf16.gmra.mrb[96].mxu1 %v20311_v51 }
 0x74c   : > { %10754 = vmatprep.mubr.bf16.mxu1 %v9477_v56  ;;  %v9478_v56 = vrot.slane %v14696_v17, 1  ;;  %v17309_v17 = vld [vmem:[#allocation13 + $0x330] ss:$8 sps:$4 sm:$0xff]  }
 0x74e   : > { %v20322_v13 = vsel %vm2981_vm1, %v9478_v56, %v9479_v28  ;;  %v20332_v56 = vsel %vm2981_vm1, %v9484_v23, %v9485_v20  ;;  %v14704_v28 = vcombine.low %v9193_v3, %v20127_v44  ;;  %v17339_v23 = vld [vmem:[#allocation13 + $0x374] ss:$8 sps:$4 sm:$0xff]  }
 0x753   : > { %10755 = vmatmul.mubr.bf16.vlgmr.msra.gmra.mrb[36].mxu1 %v9474_v58  ;;  %v14707_v58 = vcombine.high %v9195_v40, %v9195_v40 }
 0x754   : > { %10764 = vmatprep.mubr.bf16.mxu1 %v20317_v61  ;;  %11653 = vmatpush1.bf16.msra.mxu1 %v17288_v55  ;;  %v14705_v55 = vcombine.high %v9193_v3, %v20127_v44  ;;  %v9500_v44 = vrot.slane %v14711_v8, 1  ;;  %v17330_v3 = vld [vmem:[#allocation13 + $0x360] ss:$8 sps:$4 sm:$0xff]  }
 0x755   : > { %11654 = vmatprep.subr.bf16.mxu1 %v17297_v46  ;;  %v20327_v46 = vsel %vm2981_vm1, %v9487_v25, %v9488_v18  ;;  %v9494_v0 = vrot.slane %v14707_v58, 1  ;;  %v14706_v25 = vcombine.low %v9195_v40, %v9195_v40  ;;  %v9196_v18 = vld [vmem:[#allocation2 + $0x78] sm:$0xee]  ;;  %v9490_v58 = vrot.slane %v14704_v28, 1  ;;  %v9201_v40 = vld [vmem:[#allocation2 + $0xa0] sm:$0x11] }
 0x756   : > { %v14715_v28 = vcombine.high %v9201_v40, %v9201_v40 }
 0x758   : > { %11655 = vmatpush1.bf16.msra.mxu1 %v17295_v34  ;;  %v9493_v34 = vrot.slane %v14705_v55, 1  ;;  %v17332_v55 = vld [vmem:[#allocation13 + $0x364] ss:$8 sps:$4 sm:$0xff]  }
 0x759   : > { %11656 = vmatprep.subr.bf16.mxu1 %v17304_v50  ;;  %v17325_v50 = vld [vmem:[#allocation13 + $0x354] ss:$8 sps:$4 sm:$0xff]  }
 0x75b   : > { %10765 = vmatmul.mubr.bf16.gmra.mrb[40].mxu1 %v20322_v13 }
 0x75c   : > { %10774 = vmatprep.mubr.bf16.mxu1 %v20327_v46  ;;  %11657 = vmatpush1.bf16.msra.mxu1 %v17302_v10  ;;  %v20337_v10 = vsel %vm2981_vm1, %v9493_v34, %v9494_v0  ;;  %v14708_v34 = vcombine.low %v9196_v18, %v20147_v59  ;;  %v14710_v0 = vcombine.low %v9198_v39, %v9198_v39  ;;  %v9204_v39 = vld [vmem:[#allocation2 + $0xb8] sm:$0x11] }
 0x75d   : > { %11658 = vmatprep.subr.bf16.mxu1 %v17311_v7  ;;  %21458 = vst [vmem:[#allocation69_spill] sm:$0xff] %v20337_v10  ;;  %v14709_v7 = vcombine.high %v9196_v18, %v20147_v59  ;;  %v9506_v59 = vrot.slane %v14715_v28, 1  ;;  %v17344_v18 = vld [vmem:[#allocation13 + $0x380] ss:$8 sps:$4 sm:$0xff]  }
 0x75e   : > { %v9496_v8 = vrot.slane %v14708_v34, 1  ;;  %v14719_v34 = vcombine.high %v9204_v39, %v9204_v39 }
 0x760   : > { %11659 = vmatpush1.bf16.msra.mxu1 %v17309_v17  ;;  %v9491_v17 = vrot.slane %v14706_v25, 1  ;;  %v17337_v25 = vld [vmem:[#allocation13 + $0x370] ss:$8 sps:$4 sm:$0xff]  }
 0x761   : > { %11660 = vmatprep.subr.bf16.mxu1 %v17318_v48  ;;  %v9499_v48 = vrot.slane %v14709_v7, 1  ;;  %v17346_v7 = vld [vmem:[#allocation13 + $0x384] ss:$8 sps:$4 sm:$0xff]  }
 0x762   : > { %v20342_v20 = vsel %vm2981_vm1, %v9490_v58, %v9491_v17  ;;  %v17353_v58 = vld [vmem:[#allocation13 + $0x394] ss:$8 sps:$4 sm:$0xff]  }
 0x763   : > { %10775 = vmatmul.mubr.bf16.gmra.mrb[44].mxu1 %v20332_v56 }
 0x764   : > { %10784 = vmatprep.mubr.bf16.mxu1 %v20337_v10  ;;  %11661 = vmatpush1.bf16.msra.mxu1 %v17316_v35  ;;  %v9199_v10 = vld [vmem:[#allocation2 + $0x90] sm:$0xee]  ;;  %v20347_v35 = vsel %vm2981_vm1, %v9499_v48, %v9500_v44  ;;  %v14714_v44 = vcombine.low %v9201_v40, %v9201_v40  ;;  %v17358_v40 = vld [vmem:[#allocation13 + $0x3a0] ss:$8 sps:$4 sm:$0xff]  }
 0x765   : > { %11662 = vmatprep.subr.bf16.mxu1 %v17325_v50  ;;  %21459 = vst [vmem:[#allocation70_spill] sm:$0xff] %v20347_v35  ;;  %v14713_v50 = vcombine.high %v9199_v10, %v20161_v1  ;;  %v14712_v48 = vcombine.low %v9199_v10, %v20161_v1  ;;  %v9512_v1 = vrot.slane %v14719_v34, 1  ;;  %v9207_v10 = vld [vmem:[#allocation2 + $0xd0] sm:$0x11] }
 0x767   : > { %v9502_v28 = vrot.slane %v14712_v48, 1  ;;  %v14723_v48 = vcombine.high %v9207_v10, %v9207_v10 }
 0x768   : > { %11663 = vmatpush1.bf16.msra.mxu1 %v17323_v21  ;;  %v9497_v21 = vrot.slane %v14710_v0, 1  ;;  %v17351_v0 = vld [vmem:[#allocation13 + $0x390] ss:$8 sps:$4 sm:$0xff]  }
 0x769   : > { %11664 = vmatprep.subr.bf16.mxu1 %v17332_v55  ;;  %v9505_v55 = vrot.slane %v14713_v50, 1  ;;  %v17360_v50 = vld [vmem:[#allocation13 + $0x3a4] ss:$8 sps:$4 sm:$0xff]  }
 0x76a   : > { %v20352_v17 = vsel %vm2981_vm1, %v9496_v8, %v9497_v21  ;;  %v17367_v8 = vld [vmem:[#allocation13 + $0x3b4] ss:$8 sps:$4 sm:$0xff]  }
 0x76b   : > { %10785 = vmatmul.mubr.bf16.gmra.mrb[48].mxu1 %v20342_v20 }
 0x76c   : > { %10794 = vmatprep.mubr.bf16.mxu1 %v20347_v35  ;;  %11665 = vmatpush1.bf16.msra.mxu1 %v17330_v3  ;;  %v9202_v35 = vld [vmem:[#allocation2 + $0xa8] sm:$0xee]  ;;  %v20357_v3 = vsel %vm2981_vm1, %v9505_v55, %v9506_v59  ;;  %v14718_v59 = vcombine.low %v9204_v39, %v9204_v39 }
 0x76d   : > { %11666 = vmatprep.subr.bf16.mxu1 %v17339_v23  ;;  %21460 = vst [vmem:[#allocation71_spill] sm:$0xff] %v20357_v3  ;;  %v14717_v23 = vcombine.high %v9202_v35, %v20173_v11  ;;  %v14716_v55 = vcombine.low %v9202_v35, %v20173_v11  ;;  %v9518_v11 = vrot.slane %v14723_v48, 1  ;;  %v9210_v35 = vld [vmem:[#allocation2 + $0xe8] sm:$0x11] }
 0x76e   : > { %v17372_v39 = vld [vmem:[#allocation13 + $0x3c0] ss:$8 sps:$4 sm:$0xff]  }
 0x76f   : > { %v9508_v34 = vrot.slane %v14716_v55, 1  ;;  %v14727_v55 = vcombine.high %v9210_v35, %v9210_v35 }
 0x770   : > { %11667 = vmatpush1.bf16.msra.mxu1 %v17337_v25  ;;  %v9503_v25 = vrot.slane %v14714_v44, 1  ;;  %v17365_v44 = vld [vmem:[#allocation13 + $0x3b0] ss:$8 sps:$4 sm:$0xff]  }
 0x771   : > { %11668 = vmatprep.subr.bf16.mxu1 %v17346_v7  ;;  %v9511_v7 = vrot.slane %v14717_v23, 1  ;;  %v17374_v23 = vld [vmem:[#allocation13 + $0x3c4] ss:$8 sps:$4 sm:$0xff]  }
 0x772   : > { %v20362_v21 = vsel %vm2981_vm1, %v9502_v28, %v9503_v25  ;;  %v17381_v28 = vld [vmem:[#allocation13 + $0x3d4] ss:$8 sps:$4 sm:$0xff]  }
 0x773   : > { %10795 = vmatmul.mubr.bf16.gmra.mrb[52].mxu1 %v20352_v17 }
 0x774   : > { %10804 = vmatprep.mubr.bf16.mxu1 %v20357_v3  ;;  %11669 = vmatpush1.bf16.msra.mxu1 %v17344_v18  ;;  %v9205_v3 = vld [vmem:[#allocation2 + $0xc0] sm:$0xee]  ;;  %v20367_v18 = vsel %vm2981_vm1, %v9511_v7, %v9512_v1  ;;  %v14722_v1 = vcombine.low %v9207_v10, %v9207_v10 }
 0x775   : > { %11670 = vmatprep.subr.bf16.mxu1 %v17353_v58  ;;  %21461 = vst [vmem:[#allocation72_spill] sm:$0xff] %v20367_v18  ;;  %v14721_v58 = vcombine.high %v9205_v3, %v20185_v37  ;;  %v14720_v7 = vcombine.low %v9205_v3, %v20185_v37  ;;  %v9524_v37 = vrot.slane %v14727_v55, 1  ;;  %v9213_v3 = vld [vmem:[#allocation2 + $0x100] sm:$0x11] }
 0x776   : > { %v17386_v10 = vld [vmem:[#allocation13 + $0x3e0] ss:$8 sps:$4 sm:$0xff]  }
 0x777   : > { %v9514_v48 = vrot.slane %v14720_v7, 1  ;;  %v14731_v7 = vcombine.high %v9213_v3, %v9213_v3 }
 0x778   : > { %11671 = vmatpush1.bf16.msra.mxu1 %v17351_v0  ;;  %v9509_v0 = vrot.slane %v14718_v59, 1  ;;  %v17379_v59 = vld [vmem:[#allocation13 + $0x3d0] ss:$8 sps:$4 sm:$0xff]  }
 0x779   : > { %11672 = vmatprep.subr.bf16.mxu1 %v17360_v50  ;;  %v9517_v50 = vrot.slane %v14721_v58, 1  ;;  %v17388_v58 = vld [vmem:[#allocation13 + $0x3e4] ss:$8 sps:$4 sm:$0xff]  }
 0x77a   : > { %v20372_v25 = vsel %vm2981_vm1, %v9508_v34, %v9509_v0  ;;  %v17395_v34 = vld [vmem:[#allocation13 + $0x3f4] ss:$8 sps:$4 sm:$0xff]  }
 0x77b   : > { %10805 = vmatmul.mubr.bf16.gmra.mrb[56].mxu1 %v20362_v21 }
 0x77c   : > { %10814 = vmatprep.mubr.bf16.mxu1 %v20367_v18  ;;  %11673 = vmatpush1.bf16.msra.mxu1 %v17358_v40  ;;  %v9208_v18 = vld [vmem:[#allocation2 + $0xd8] sm:$0xee]  ;;  %v20377_v40 = vsel %vm2981_vm1, %v9517_v50, %v9518_v11  ;;  %v14726_v11 = vcombine.low %v9210_v35, %v9210_v35 }
 0x77d   : > { %11674 = vmatprep.subr.bf16.mxu1 %v17367_v8  ;;  %21462 = vst [vmem:[#allocation73_spill] sm:$0xff] %v20377_v40  ;;  %v14725_v8 = vcombine.high %v9208_v18, %v20197_v14  ;;  %v14724_v50 = vcombine.low %v9208_v18, %v20197_v14  ;;  %v9530_v14 = vrot.slane %v14731_v7, 1  ;;  %v9216_v18 = vld [vmem:[#allocation2 + $0x118] sm:$0x11] }
 0x77f   : > { %v9520_v55 = vrot.slane %v14724_v50, 1 }
 0x780   : > { %11675 = vmatpush1.bf16.msra.mxu1 %v17365_v44  ;;  %v9515_v44 = vrot.slane %v14722_v1, 1  ;;  %v17393_v1 = vld [vmem:[#allocation13 + $0x3f0] ss:$8 sps:$4 sm:$0xff]  }
 0x781   : > { %11676 = vmatprep.subr.bf16.mxu1 %v17374_v23  ;;  %v9523_v23 = vrot.slane %v14725_v8, 1  ;;  %v17398_v8 = vld [vmem:[#allocation13 + $0x404] ss:$8 sps:$4 sm:$0xff]  }
 0x782   : > { %v20382_v0 = vsel %vm2981_vm1, %v9514_v48, %v9515_v44  ;;  %v14730_v44 = vcombine.low %v9213_v3, %v9213_v3  ;;  %v9217_v3 = vld [vmem:[#allocation2 + $0x120] sm:$0xee] }
 0x783   : > { %10815 = vmatmul.mubr.bf16.gmra.mrb[60].mxu1 %v20372_v25 }
 0x784   : > { %10824 = vmatprep.mubr.bf16.mxu1 %v20377_v40  ;;  %11677 = vmatpush1.bf16.msra.mxu1 %v17372_v39  ;;  %v9211_v40 = vld [vmem:[#allocation2 + $0xf0] sm:$0xee]  ;;  %v20387_v39 = vsel %vm2981_vm1, %v9523_v23, %v9524_v37  ;;  %v9214_v23 = vld [vmem:[#allocation2 + $0x108] sm:$0xee] }
 0x785   : > { %11678 = vmatprep.subr.bf16.mxu1 %v17381_v28  ;;  %v14729_v28 = vcombine.high %v9211_v40, %v20209_v4  ;;  %v14728_v48 = vcombine.low %v9211_v40, %v20209_v4  ;;  %v14732_v4 = vcombine.low %v9214_v23, %v20221_v45  ;;  %v14734_v40 = vcombine.low %v9216_v18, %v9216_v18 }
 0x787   : > { %v9526_v50 = vrot.slane %v14728_v48, 1  ;;  %v9533_v48 = vrot.slane %v14734_v40, 1 }
 0x788   : > { %11679 = vmatpush1.bf16.msra.mxu1 %v17379_v59  ;;  %v9521_v59 = vrot.slane %v14726_v11, 1  ;;  %v9527_v11 = vrot.slane %v14730_v44, 1 }
 0x789   : > { %11680 = vmatprep.subr.bf16.mxu1 %v17388_v58  ;;  %v9529_v58 = vrot.slane %v14729_v28, 1 }
 0x78a   : > { %v20392_v35 = vsel %vm2981_vm1, %v9520_v55, %v9521_v59  ;;  %v14737_v59 = vcombine.high %v9217_v3, %v20233_v22 }
 0x78b   : > { %10825 = vmatmul.mubr.bf16.gmra.mrb[64].mxu1 %v20382_v0  ;;  %v20397_v37 = vsel %vm2981_vm1, %v9529_v58, %v9530_v14  ;;  %v9532_v14 = vrot.slane %v14732_v4, 1 }
 0x78c   : > { %10834 = vmatprep.mubr.bf16.mxu1 %v20387_v39  ;;  %11681 = vmatpush1.bf16.msra.mxu1 %v17386_v10  ;;  %v14733_v10 = vcombine.high %v9214_v23, %v20221_v45  ;;  %v9541_v44 = vrot.slane %v14737_v59, 1  ;;  %v14736_v45 = vcombine.low %v9217_v3, %v20233_v22  ;;  %v9220_v23 = vld [vmem:[#allocation2 + $0x138] sm:$0xee]  ;;  %v9223_v3 = vld [vmem:[#allocation2 + $0x150] sm:$0xee] }
 0x78d   : > { %11682 = vmatprep.subr.bf16.mxu1 %v17395_v34  ;;  %v14735_v34 = vcombine.high %v9216_v18, %v9216_v18  ;;  %v14740_v22 = vcombine.low %v9220_v23, %v20245_v26 }
 0x78e   : > { %v9535_v28 = vrot.slane %v14733_v10, 1  ;;  %v9538_v4 = vrot.slane %v14736_v45, 1 }
 0x78f   : > { %v9536_v7 = vrot.slane %v14735_v34, 1  ;;  %v9222_v34 = vld [vmem:[#allocation2 + $0x148] sm:$0x11]  ;;  %v9544_v45 = vrot.slane %v14740_v22, 1 }
 0x790   : > { %11683 = vmatpush1.bf16.msra.mxu1 %v17393_v1  ;;  %v9219_v1 = vld [vmem:[#allocation2 + $0x130] sm:$0x11] }
 0x791   : > { %11845 = vmatprep.subr.bf16.mxu1 %v17398_v8  ;;  %v20402_v8 = vsel %vm2981_vm1, %v9526_v50, %v9527_v11  ;;  %v20407_v55 = vsel %vm2981_vm1, %v9535_v28, %v9536_v7  ;;  %v14739_v58 = vcombine.high %v9219_v1, %v9219_v1  ;;  %v20412_v50 = vsel %vm2981_vm1, %v9532_v14, %v9533_v48  ;;  %v9225_v14 = vld [vmem:[#allocation2 + $0x160] sm:$0x11] }
 0x792   : > { %v14738_v18 = vcombine.low %v9219_v1, %v9219_v1  ;;  %v14741_v28 = vcombine.high %v9220_v23, %v20245_v26  ;;  %v14743_v7 = vcombine.high %v9222_v34, %v9222_v34  ;;  %v14742_v1 = vcombine.low %v9222_v34, %v9222_v34  ;;  %v9226_v23 = vld [vmem:[#allocation2 + $0x168] sm:$0xee] }
 0x793   : > { %10835 = vmatmul.mubr.bf16.gmra.mrb[68].mxu1 %v20392_v35  ;;  %v9542_v10 = vrot.slane %v14739_v58, 1  ;;  %v14744_v26 = vcombine.low %v9223_v3, %v20257_v57  ;;  %v14746_v34 = vcombine.low %v9225_v14, %v9225_v14 }
 0x794   : > { %10844 = vmatprep.mubr.bf16.mxu1 %v20397_v37  ;;  %v9539_v40 = vrot.slane %v14738_v18, 1  ;;  %v9547_v59 = vrot.slane %v14741_v28, 1  ;;  %v9548_v58 = vrot.slane %v14743_v7, 1  ;;  %v9545_v18 = vrot.slane %v14742_v1, 1 }
 0x795   : > { %v20417_v11 = vsel %vm2981_vm1, %v9541_v44, %v9542_v10  ;;  %v14745_v10 = vcombine.high %v9223_v3, %v20257_v57  ;;  %v9550_v22 = vrot.slane %v14744_v26, 1  ;;  %v14748_v57 = vcombine.low %v9226_v23, %v20269_v47  ;;  %v9229_v3 = vld [vmem:[#allocation2 + $0x180] sm:$0xee] }
 0x796   : > { %21463 = vst [vmem:[#allocation74_spill] sm:$0xff] %v20417_v11  ;;  %v20422_v48 = vsel %vm2981_vm1, %v9538_v4, %v9539_v40  ;;  %v20427_v44 = vsel %vm2981_vm1, %v9547_v59, %v9548_v58  ;;  %v9228_v4 = vld [vmem:[#allocation2 + $0x178] sm:$0x11]  ;;  %v20432_v40 = vsel %vm2981_vm1, %v9544_v45, %v9545_v18  ;;  %v14749_v58 = vcombine.high %v9226_v23, %v20269_v47  ;;  %v9231_v45 = vld [vmem:[#allocation2 + $0x190] sm:$0x11] }
 0x797   : > { %21464 = vst [vmem:[#allocation76_spill] sm:$0xff] %v20427_v44  ;;  %v9553_v28 = vrot.slane %v14745_v10, 1  ;;  %21465 = vst [vmem:[#allocation78_spill] sm:$0xff] %v20432_v40  ;;  %v9556_v26 = vrot.slane %v14748_v57, 1  ;;  %v14752_v47 = vcombine.low %v9229_v3, %v20281_v24  ;;  %v17396_v57 = vld [vmem:[#allocation13 + $0x400] ss:$8 sps:$4 sm:$0xff]  }
 0x798   : > { %v9559_v1 = vrot.slane %v14749_v58, 1 }
 0x79b   : > { %10845 = vmatmul.mubr.bf16.gmra.mrb[72].mxu1 %v20402_v8 }
 0x79c   : > { %10854 = vmatprep.mubr.bf16.mxu1 %v20407_v55 }
 0x7a3   : > { %10855 = vmatmul.mubr.bf16.gmra.mrb[76].mxu1 %v20412_v50 }
 0x7a4   : > { %10864 = vmatprep.mubr.bf16.mxu1 %v20417_v11  ;;  %v14747_v11 = vcombine.high %v9225_v14, %v9225_v14  ;;  %v14750_v14 = vcombine.low %v9228_v4, %v9228_v4 }
 0x7a6   : > { %v9554_v7 = vrot.slane %v14747_v11, 1  ;;  %v9551_v11 = vrot.slane %v14746_v34, 1 }
 0x7a8   : > { %v20437_v59 = vsel %vm2981_vm1, %v9553_v28, %v9554_v7  ;;  %v20442_v18 = vsel %vm2981_vm1, %v9550_v22, %v9551_v11  ;;  %v14753_v7 = vcombine.high %v9229_v3, %v20281_v24  ;;  %v9562_v11 = vrot.slane %v14752_v47, 1  ;;  %v21471_v24 = vld [vmem:[#allocation56_spill] sm:$0xff] }
 0x7a9   : > { %21466 = vst [vmem:[#allocation79_spill] sm:$0xff] %v20437_v59  ;;  %21467 = vst [vmem:[#allocation80_spill] sm:$0xff] %v20442_v18  ;;  %v17399_v3 = vld [vmem:[#allocation13 + $0x410] ss:$8 sps:$4 sm:$0xff]  }
 0x7aa   : > { %v9565_v34 = vrot.slane %v14753_v7, 1  ;;  %v17404_v7 = vld [vmem:[#allocation13 + $0x424] ss:$8 sps:$4 sm:$0xff]   ;;  %v17405_v47 = vld [vmem:[#allocation13 + $0x430] ss:$8 sps:$4 sm:$0xff]  }
 0x7ab   : > { %10865 = vmatmul.mubr.bf16.gmra.mrb[80].mxu1 %v20422_v48 }
 0x7ac   : > { %10874 = vmatprep.mubr.bf16.mxu1 %v20427_v44  ;;  %v14751_v44 = vcombine.high %v9228_v4, %v9228_v4  ;;  %v14754_v4 = vcombine.low %v9231_v45, %v9231_v45 }
 0x7ae   : > { %v9560_v10 = vrot.slane %v14751_v44, 1  ;;  %v9557_v44 = vrot.slane %v14750_v14, 1  ;;  %v17401_v14 = vld [vmem:[#allocation13 + $0x414] ss:$8 sps:$4 sm:$0xff]  }
 0x7b0   : > { %v20447_v28 = vsel %vm2981_vm1, %v9559_v1, %v9560_v10  ;;  %v20452_v22 = vsel %vm2981_vm1, %v9556_v26, %v9557_v44  ;;  %v9563_v1 = vrot.slane %v14754_v4, 1  ;;  %v17402_v26 = vld [vmem:[#allocation13 + $0x420] ss:$8 sps:$4 sm:$0xff]   ;;  %v17407_v44 = vld [vmem:[#allocation13 + $0x434] ss:$8 sps:$4 sm:$0xff]  }
 0x7b1   : > { %21468 = vst [vmem:[#allocation81_spill] sm:$0xff] %v20447_v28  ;;  %21469 = vst [vmem:[#allocation82_spill] sm:$0xff] %v20452_v22  ;;  %v17410_v4 = vld [vmem:[#allocation13 + $0x444] ss:$8 sps:$4 sm:$0xff]  }
 0x7b2   : > { %v20461_v10 = vsel %vm2981_vm1, %v9562_v11, %v9563_v1  ;;  %v17408_v11 = vld [vmem:[#allocation13 + $0x440] ss:$8 sps:$4 sm:$0xff]   ;;  %v17413_v1 = vld [vmem:[#allocation13 + $0x454] ss:$8 sps:$4 sm:$0xff]  }
 0x7b3   : > { %10875 = vmatmul.mubr.bf16.gmra.mrb[84].mxu1 %v20432_v40 }
 0x7b4   : > { %10884 = vmatprep.mubr.bf16.mxu1 %v20437_v59  ;;  %v14755_v59 = vcombine.high %v9231_v45, %v9231_v45  ;;  %v21472_v45 = vld [vmem:[#allocation58_spill] sm:$0xff] }
 0x7b6   : > { %v9566_v58 = vrot.slane %v14755_v59, 1  ;;  %v21470_v59 = vld [vmem:[#allocation41_spill] sm:$0xff] }
 0x7b8   : > { %v20457_v23 = vsel %vm2981_vm1, %v9565_v34, %v9566_v58  ;;  %v21473_v34 = vld [vmem:[#allocation59_spill] sm:$0xff]  ;;  %v21474_v58 = vld [vmem:[#allocation60_spill] sm:$0xff] }
 0x7bb   : > { %10885 = vmatmul.mubr.bf16.gmra.mrb[88].mxu1 %v20442_v18 }
 0x7bc   : > { %10894 = vmatprep.mubr.bf16.mxu1 %v20447_v28 }
 0x7c3   : > { %10895 = vmatmul.mubr.bf16.gmra.mrb[92].mxu1 %v20452_v22 }
 0x7c4   : > { %10904 = vmatprep.mubr.bf16.mxu1 %v20457_v23 }
 0x7cb   : > { %10905 = vmatmul.mubr.bf16.gmra.mrb[96].mxu1 %v20461_v10 }
 0x7cc   : > { %11684 = vmatprep.mubr.bf16.mxu1 %v21470_v59  ;;  %v21475_v59 = vld [vmem:[#allocation61_spill] sm:$0xff] }
 0x7d3   : > { %11685 = vmatmul.mubr.bf16.vlgmr.msra.gmra.mrb[36].mxu1 %v21471_v24  ;;  %v17414_v24 = vld [vmem:[#allocation13 + $0x460] ss:$8 sps:$4 sm:$0xff]  }
 0x7d4   : > { %11694 = vmatprep.mubr.bf16.mxu1 %v21472_v45  ;;  %11846 = vmatpush1.bf16.msra.mxu1 %v17396_v57  ;;  %v17411_v57 = vld [vmem:[#allocation13 + $0x450] ss:$8 sps:$4 sm:$0xff]  }
 0x7d5   : > { %11847 = vmatprep.subr.bf16.mxu1 %v17401_v14  ;;  %v17416_v14 = vld [vmem:[#allocation13 + $0x464] ss:$8 sps:$4 sm:$0xff]  }
 0x7d8   : > { %11848 = vmatpush1.bf16.msra.mxu1 %v17399_v3  ;;  %v17419_v3 = vld [vmem:[#allocation13 + $0x474] ss:$8 sps:$4 sm:$0xff]  }
 0x7d9   : > { %11849 = vmatprep.subr.bf16.mxu1 %v17404_v7  ;;  %v21476_v7 = vld [vmem:[#allocation77_spill] sm:$0xff] }
 0x7db   : > { %11695 = vmatmul.mubr.bf16.gmra.mrb[40].mxu1 %v21473_v34 }
 0x7dc   : > { %11704 = vmatprep.mubr.bf16.mxu1 %v21474_v58  ;;  %11850 = vmatpush1.bf16.msra.mxu1 %v17402_v26  ;;  %v21477_v26 = vld [vmem:[#allocation30_spill] sm:$0xff] }
 0x7dd   : > { %11851 = vmatprep.subr.bf16.mxu1 %v17407_v44  ;;  %v17417_v44 = vld [vmem:[#allocation13 + $0x470] ss:$8 sps:$4 sm:$0xff]  }
 0x7e0   : > { %11852 = vmatpush1.bf16.msra.mxu1 %v17405_v47  ;;  %v17422_v47 = vld [vmem:[#allocation13 + $0x484] ss:$8 sps:$4 sm:$0xff]  }
 0x7e1   : > { %11853 = vmatprep.subr.bf16.mxu1 %v17410_v4  ;;  %v17420_v4 = vld [vmem:[#allocation13 + $0x480] ss:$8 sps:$4 sm:$0xff]  }
 0x7e3   : > { %11705 = vmatmul.mubr.bf16.gmra.mrb[44].mxu1 %v21475_v59 }
 0x7e4   : > { %11714 = vmatprep.mubr.bf16.mxu1 %v19813_v52  ;;  %11854 = vmatpush1.bf16.msra.mxu1 %v17408_v11  ;;  %v17425_v52 = vld [vmem:[#allocation13 + $0x494] ss:$8 sps:$4 sm:$0xff]  }
 0x7e5   : > { %11855 = vmatprep.subr.bf16.mxu1 %v17413_v1  ;;  %v21478_v11 = vld [vmem:[#allocation31_spill] sm:$0xff] }
 0x7e6   : > { %v17423_v1 = vld [vmem:[#allocation13 + $0x490] ss:$8 sps:$4 sm:$0xff]  }
 0x7e8   : > { %11856 = vmatpush1.bf16.msra.mxu1 %v17411_v57  ;;  %v17428_v57 = vld [vmem:[#allocation13 + $0x4a4] ss:$8 sps:$4 sm:$0xff]  }
 0x7e9   : > { %11857 = vmatprep.subr.bf16.mxu1 %v17416_v14  ;;  %v17426_v14 = vld [vmem:[#allocation13 + $0x4a0] ss:$8 sps:$4 sm:$0xff]  }
 0x7eb   : > { %11715 = vmatmul.mubr.bf16.gmra.mrb[48].mxu1 %v21476_v7 }
 0x7ec   : > { %11724 = vmatprep.mubr.bf16.mxu1 %v21477_v26  ;;  %11858 = vmatpush1.bf16.msra.mxu1 %v17414_v24  ;;  %v17431_v26 = vld [vmem:[#allocation13 + $0x4b4] ss:$8 sps:$4 sm:$0xff]   ;;  %v17429_v24 = vld [vmem:[#allocation13 + $0x4b0] ss:$8 sps:$4 sm:$0xff]  }
 0x7ed   : > { %11859 = vmatprep.subr.bf16.mxu1 %v17419_v3  ;;  %v17434_v3 = vld [vmem:[#allocation13 + $0x4c4] ss:$8 sps:$4 sm:$0xff]  }
 0x7f0   : > { %11860 = vmatpush1.bf16.msra.mxu1 %v17417_v44  ;;  %v17432_v44 = vld [vmem:[#allocation13 + $0x4c0] ss:$8 sps:$4 sm:$0xff]  }
 0x7f1   : > { %11861 = vmatprep.subr.bf16.mxu1 %v17422_v47  ;;  %v17437_v47 = vld [vmem:[#allocation13 + $0x4d4] ss:$8 sps:$4 sm:$0xff]  }
 0x7f3   : > { %11725 = vmatmul.mubr.bf16.gmra.mrb[52].mxu1 %v21478_v11 }
 0x7f4   : > { %11734 = vmatprep.mubr.bf16.mxu1 %v19847_v12  ;;  %11862 = vmatpush1.bf16.msra.mxu1 %v17420_v4  ;;  %v17440_v4 = vld [vmem:[#allocation13 + $0x4e4] ss:$8 sps:$4 sm:$0xff]  }
 0x7f5   : > { %11863 = vmatprep.subr.bf16.mxu1 %v17425_v52  ;;  %v17435_v52 = vld [vmem:[#allocation13 + $0x4d0] ss:$8 sps:$4 sm:$0xff]  }
 0x7f8   : > { %11864 = vmatpush1.bf16.msra.mxu1 %v17423_v1  ;;  %v17438_v1 = vld [vmem:[#allocation13 + $0x4e0] ss:$8 sps:$4 sm:$0xff]  }
 0x7f9   : > { %11865 = vmatprep.subr.bf16.mxu1 %v17428_v57  ;;  %v17445_v57 = vld [vmem:[#allocation13 + $0x4f4] ss:$8 sps:$4 sm:$0xff]  }
 0x7fb   : > { %11735 = vmatmul.mubr.bf16.gmra.mrb[56].mxu1 %v19849_v49 }
 0x7fc   : > { %11744 = vmatprep.mubr.bf16.mxu1 %v19864_v60  ;;  %11866 = vmatpush1.bf16.msra.mxu1 %v17426_v14  ;;  %v17448_v14 = vld [vmem:[#allocation13 + $0x504] ss:$8 sps:$4 sm:$0xff]  }
 0x7fd   : > { %11867 = vmatprep.subr.bf16.mxu1 %v17431_v26  ;;  %v17443_v26 = vld [vmem:[#allocation13 + $0x4f0] ss:$8 sps:$4 sm:$0xff]  }
 0x800   : > { %11868 = vmatpush1.bf16.msra.mxu1 %v17429_v24  ;;  %v20493_v24 = vld [vmem:[#allocation2 + $0x1a0] sm:$0xff] }
 0x801   : > { %11869 = vmatprep.subr.bf16.mxu1 %v17434_v3  ;;  %v8172_v3 = vld [vmem:[#allocation2 + $0x198] sm:$0xff] }
 0x803   : > { %11745 = vmatmul.mubr.bf16.gmra.mrb[60].mxu1 %v19866_v19 }
 0x804   : > { %11754 = vmatprep.mubr.bf16.mxu1 %v19888_v5  ;;  %11870 = vmatpush1.bf16.msra.mxu1 %v17432_v44  ;;  %v20496_v44 = vcombine.high %v8172_v3, %v20493_v24 }
 0x805   : > { %11871 = vmatprep.subr.bf16.mxu1 %v17437_v47  ;;  %v20501_v47 = vcombine.low %v8172_v3, %v20493_v24  ;;  %v21480_v3 = vld [vmem:[#allocation93_spill] sm:$0xff] }
 0x808   : > { %11872 = vmatpush1.bf16.msra.mxu1 %v17435_v52  ;;  %v17446_v52 = vld [vmem:[#allocation13 + $0x500] ss:$8 sps:$4 sm:$0xff]  }
 0x809   : > { %11873 = vmatprep.subr.bf16.mxu1 %v17440_v4  ;;  %v17451_v4 = vld [vmem:[#allocation13 + $0x514] ss:$8 sps:$4 sm:$0xff]  }
 0x80b   : > { %11755 = vmatmul.mubr.bf16.gmra.mrb[64].mxu1 %v19890_v16 }
 0x80c   : > { %11764 = vmatprep.mubr.bf16.mxu1 %v19904_v27  ;;  %11874 = vmatpush1.bf16.msra.mxu1 %v17438_v1  ;;  %v21479_v1 = vld [vmem:[#allocation92_spill] sm:$0xff] }
 0x80d   : > { %11875 = vmatprep.subr.bf16.mxu1 %v17445_v57  ;;  %v17449_v57 = vld [vmem:[#allocation13 + $0x510] ss:$8 sps:$4 sm:$0xff]  }
 0x810   : > { %11876 = vmatpush1.bf16.msra.mxu1 %v17443_v26  ;;  %v17454_v26 = vld [vmem:[#allocation13 + $0x524] ss:$8 sps:$4 sm:$0xff]  }
 0x811   : > { %12038 = vmatprep.subr.bf16.mxu1 %v17448_v14  ;;  %v17452_v14 = vld [vmem:[#allocation13 + $0x520] ss:$8 sps:$4 sm:$0xff]  }
 0x813   : > { %11765 = vmatmul.mubr.bf16.gmra.mrb[68].mxu1 %v19906_v54 }
 0x814   : > { %11774 = vmatprep.mubr.bf16.mxu1 %v19932_v32 }
 0x81b   : > { %11775 = vmatmul.mubr.bf16.gmra.mrb[72].mxu1 %v19934_v6 }
 0x81c   : > { %11784 = vmatprep.mubr.bf16.mxu1 %v19958_v62 }
 0x823   : > { %11785 = vmatmul.mubr.bf16.gmra.mrb[76].mxu1 %v19960_v15 }
 0x824   : > { %11794 = vmatprep.mubr.bf16.mxu1 %v20007_v9 }
 0x82b   : > { %11795 = vmatmul.mubr.bf16.gmra.mrb[80].mxu1 %v20009_v29 }
 0x82c   : > { %11804 = vmatprep.mubr.bf16.mxu1 %v20037_v2 }
 0x833   : > { %11805 = vmatmul.mubr.bf16.gmra.mrb[84].mxu1 %v20039_v38 }
 0x834   : > { %11814 = vmatprep.mubr.bf16.mxu1 %v20072_v41 }
 0x83b   : > { %11815 = vmatmul.mubr.bf16.gmra.mrb[88].mxu1 %v20074_v36  ;;  %v17460_v36 = vld [vmem:[#allocation13 + $0x544] ss:$8 sps:$4 sm:$0xff]  }
 0x83c   : > { %11824 = vmatprep.mubr.bf16.mxu1 %v20094_v33  ;;  %v21481_v33 = vld [vmem:[#allocation37_spill] sm:$0xff] }
 0x843   : > { %11825 = vmatmul.mubr.bf16.gmra.mrb[92].mxu1 %v20096_v43  ;;  %v17457_v43 = vld [vmem:[#allocation13 + $0x534] ss:$8 sps:$4 sm:$0xff]  }
 0x844   : > { %11834 = vmatprep.mubr.bf16.mxu1 %v20496_v44 }
 0x84b   : > { %11835 = vmatmul.mubr.bf16.gmra.mrb[96].mxu1 %v20501_v47 }
 0x84c   : > { %11877 = vmatprep.mubr.bf16.mxu1 %v20133_v42  ;;  %v17455_v42 = vld [vmem:[#allocation13 + $0x530] ss:$8 sps:$4 sm:$0xff]  }
 0x853   : > { %11878 = vmatmul.mubr.bf16.vlgmr.msra.gmra.mrb[36].mxu1 %v20150_v30  ;;  %v17458_v30 = vld [vmem:[#allocation13 + $0x540] ss:$8 sps:$4 sm:$0xff]  }
 0x854   : > { %11887 = vmatprep.mubr.bf16.mxu1 %v21479_v1  ;;  %12039 = vmatpush1.bf16.msra.mxu1 %v17446_v52  ;;  %v17463_v1 = vld [vmem:[#allocation13 + $0x554] ss:$8 sps:$4 sm:$0xff]   ;;  %v21482_v52 = vld [vmem:[#allocation38_spill] sm:$0xff] }
 0x855   : > { %12040 = vmatprep.subr.bf16.mxu1 %v17451_v4  ;;  %v21483_v4 = vld [vmem:[#allocation39_spill] sm:$0xff] }
 0x858   : > { %12041 = vmatpush1.bf16.msra.mxu1 %v17449_v57  ;;  %v17461_v57 = vld [vmem:[#allocation13 + $0x550] ss:$8 sps:$4 sm:$0xff]  }
 0x859   : > { %12042 = vmatprep.subr.bf16.mxu1 %v17454_v26  ;;  %v17466_v26 = vld [vmem:[#allocation13 + $0x564] ss:$8 sps:$4 sm:$0xff]  }
 0x85b   : > { %11888 = vmatmul.mubr.bf16.gmra.mrb[40].mxu1 %v21480_v3  ;;  %v17464_v3 = vld [vmem:[#allocation13 + $0x560] ss:$8 sps:$4 sm:$0xff]  }
 0x85c   : > { %11897 = vmatprep.mubr.bf16.mxu1 %v21481_v33  ;;  %12043 = vmatpush1.bf16.msra.mxu1 %v17452_v14  ;;  %v17469_v33 = vld [vmem:[#allocation13 + $0x574] ss:$8 sps:$4 sm:$0xff]   ;;  %v21484_v14 = vld [vmem:[#allocation42_spill] sm:$0xff] }
 0x85d   : > { %12044 = vmatprep.subr.bf16.mxu1 %v17457_v43  ;;  %v21485_v43 = vld [vmem:[#allocation43_spill] sm:$0xff] }
 0x860   : > { %12045 = vmatpush1.bf16.msra.mxu1 %v17455_v42  ;;  %v17467_v42 = vld [vmem:[#allocation13 + $0x570] ss:$8 sps:$4 sm:$0xff]  }
 0x861   : > { %12046 = vmatprep.subr.bf16.mxu1 %v17460_v36  ;;  %v17472_v36 = vld [vmem:[#allocation13 + $0x584] ss:$8 sps:$4 sm:$0xff]  }
 0x863   : > { %11898 = vmatmul.mubr.bf16.gmra.mrb[44].mxu1 %v21482_v52  ;;  %v17470_v52 = vld [vmem:[#allocation13 + $0x580] ss:$8 sps:$4 sm:$0xff]  }
 0x864   : > { %11907 = vmatprep.mubr.bf16.mxu1 %v21483_v4  ;;  %12047 = vmatpush1.bf16.msra.mxu1 %v17458_v30  ;;  %v17475_v4 = vld [vmem:[#allocation13 + $0x594] ss:$8 sps:$4 sm:$0xff]  }
 0x865   : > { %12048 = vmatprep.subr.bf16.mxu1 %v17463_v1  ;;  %v21486_v30 = vld [vmem:[#allocation44_spill] sm:$0xff]  ;;  %v21487_v1 = vld [vmem:[#allocation45_spill] sm:$0xff] }
 0x868   : > { %12049 = vmatpush1.bf16.msra.mxu1 %v17461_v57  ;;  %v17473_v57 = vld [vmem:[#allocation13 + $0x590] ss:$8 sps:$4 sm:$0xff]  }
 0x869   : > { %12050 = vmatprep.subr.bf16.mxu1 %v17466_v26  ;;  %v17478_v26 = vld [vmem:[#allocation13 + $0x5a4] ss:$8 sps:$4 sm:$0xff]  }
 0x86b   : > { %11908 = vmatmul.mubr.bf16.gmra.mrb[48].mxu1 %v21484_v14  ;;  %v17476_v14 = vld [vmem:[#allocation13 + $0x5a0] ss:$8 sps:$4 sm:$0xff]  }
 0x86c   : > { %11917 = vmatprep.mubr.bf16.mxu1 %v21485_v43  ;;  %12051 = vmatpush1.bf16.msra.mxu1 %v17464_v3  ;;  %v17481_v43 = vld [vmem:[#allocation13 + $0x5b4] ss:$8 sps:$4 sm:$0xff]   ;;  %v21488_v3 = vld [vmem:[#allocation46_spill] sm:$0xff] }
 0x86d   : > { %12052 = vmatprep.subr.bf16.mxu1 %v17469_v33  ;;  %v21489_v33 = vld [vmem:[#allocation47_spill] sm:$0xff] }
 0x870   : > { %12053 = vmatpush1.bf16.msra.mxu1 %v17467_v42  ;;  %v17479_v42 = vld [vmem:[#allocation13 + $0x5b0] ss:$8 sps:$4 sm:$0xff]  }
 0x871   : > { %12054 = vmatprep.subr.bf16.mxu1 %v17472_v36  ;;  %v17484_v36 = vld [vmem:[#allocation13 + $0x5c4] ss:$8 sps:$4 sm:$0xff]  }
 0x873   : > { %11918 = vmatmul.mubr.bf16.gmra.mrb[52].mxu1 %v21486_v30  ;;  %v17482_v30 = vld [vmem:[#allocation13 + $0x5c0] ss:$8 sps:$4 sm:$0xff]  }
 0x874   : > { %11927 = vmatprep.mubr.bf16.mxu1 %v21487_v1  ;;  %12055 = vmatpush1.bf16.msra.mxu1 %v17470_v52  ;;  %v17487_v1 = vld [vmem:[#allocation13 + $0x5d4] ss:$8 sps:$4 sm:$0xff]  }
 0x875   : > { %12056 = vmatprep.subr.bf16.mxu1 %v17475_v4  ;;  %v21490_v52 = vld [vmem:[#allocation48_spill] sm:$0xff]  ;;  %v21491_v4 = vld [vmem:[#allocation49_spill] sm:$0xff] }
 0x878   : > { %12057 = vmatpush1.bf16.msra.mxu1 %v17473_v57  ;;  %v17485_v57 = vld [vmem:[#allocation13 + $0x5d0] ss:$8 sps:$4 sm:$0xff]  }
 0x879   : > { %12058 = vmatprep.subr.bf16.mxu1 %v17478_v26  ;;  %v17490_v26 = vld [vmem:[#allocation13 + $0x5e4] ss:$8 sps:$4 sm:$0xff]  }
 0x87b   : > { %11928 = vmatmul.mubr.bf16.gmra.mrb[56].mxu1 %v21488_v3  ;;  %v17488_v3 = vld [vmem:[#allocation13 + $0x5e0] ss:$8 sps:$4 sm:$0xff]  }
 0x87c   : > { %11937 = vmatprep.mubr.bf16.mxu1 %v21489_v33  ;;  %12059 = vmatpush1.bf16.msra.mxu1 %v17476_v14  ;;  %v17495_v33 = vld [vmem:[#allocation13 + $0x5f4] ss:$8 sps:$4 sm:$0xff]   ;;  %v21492_v14 = vld [vmem:[#allocation50_spill] sm:$0xff] }
 0x87d   : > { %12060 = vmatprep.subr.bf16.mxu1 %v17481_v43  ;;  %v21493_v43 = vld [vmem:[#allocation51_spill] sm:$0xff] }
 0x880   : > { %12061 = vmatpush1.bf16.msra.mxu1 %v17479_v42  ;;  %v17493_v42 = vld [vmem:[#allocation13 + $0x5f0] ss:$8 sps:$4 sm:$0xff]  }
 0x881   : > { %12062 = vmatprep.subr.bf16.mxu1 %v17484_v36  ;;  %v17498_v36 = vld [vmem:[#allocation13 + $0x604] ss:$8 sps:$4 sm:$0xff]  }
 0x883   : > { %11938 = vmatmul.mubr.bf16.gmra.mrb[60].mxu1 %v21490_v52  ;;  %v21494_v52 = vld [vmem:[#allocation52_spill] sm:$0xff] }
 0x884   : > { %11947 = vmatprep.mubr.bf16.mxu1 %v21491_v4  ;;  %12063 = vmatpush1.bf16.msra.mxu1 %v17482_v30  ;;  %v21495_v30 = vld [vmem:[#allocation53_spill] sm:$0xff]  ;;  %v21499_v4 = vld [vmem:[#allocation62_spill] sm:$0xff] }
 0x885   : > { %12064 = vmatprep.subr.bf16.mxu1 %v17487_v1  ;;  %v21496_v1 = vld [vmem:[#allocation54_spill] sm:$0xff] }
 0x888   : > { %12065 = vmatpush1.bf16.msra.mxu1 %v17485_v57  ;;  %v21497_v57 = vld [vmem:[#allocation55_spill] sm:$0xff] }
 0x889   : > { %12066 = vmatprep.subr.bf16.mxu1 %v17490_v26  ;;  %v21498_v26 = vld [vmem:[#allocation57_spill] sm:$0xff] }
 0x88b   : > { %11948 = vmatmul.mubr.bf16.gmra.mrb[64].mxu1 %v21492_v14  ;;  %v21500_v14 = vld [vmem:[#allocation63_spill] sm:$0xff] }
 0x88c   : > { %11957 = vmatprep.mubr.bf16.mxu1 %v21493_v43  ;;  %12067 = vmatpush1.bf16.msra.mxu1 %v17488_v3  ;;  %v8442_v3 = vld [vmem:[#allocation2 + $0x1a8] sm:$0x11] }
 0x88d   : > { %12068 = vmatprep.subr.bf16.mxu1 %v17495_v33  ;;  %v9079_v33 = vshll.u32 %v20496_v44, 16 }
 0x890   : > { %12069 = vmatpush1.bf16.msra.mxu1 %v17493_v42  ;;  %v14687_v42 = vcombine.high %v8442_v3, %v8442_v3 }
 0x891   : > { %12968 = vmatprep.subr.bf16.mxu1 %v17498_v36  ;;  %v21501_v36 = vld [vmem:[#allocation67_spill] sm:$0xff] }
 0x893   : > { %11958 = vmatmul.mubr.bf16.gmra.mrb[68].mxu1 %v21494_v52 }
 0x894   : > { %11967 = vmatprep.mubr.bf16.mxu1 %v21495_v30 }
 0x89b   : > { %11968 = vmatmul.mubr.bf16.gmra.mrb[72].mxu1 %v21496_v1  ;;  %v9081_v1 = vrot.slane %v9079_v33, 1  ;;  %v9065_v33 = vshrl.u32 %v20501_v47, 16 }
 0x89c   : > { %11977 = vmatprep.mubr.bf16.mxu1 %v21497_v57  ;;  %v21502_v57 = vld [vmem:[#allocation68_spill] sm:$0xff] }
 0x8a3   : > { %11978 = vmatmul.mubr.bf16.gmra.mrb[76].mxu1 %v21498_v26  ;;  %v9077_v26 = vshrl.u32 %v20496_v44, 16 }
 0x8a4   : > { %11987 = vmatprep.mubr.bf16.mxu1 %v21499_v4  ;;  %v9084_v4 = vshll.u32 %v14687_v42, 16 }
 0x8a5   : > { %v9082_v30 = vor.u32 %v9081_v1, %v9077_v26  ;;  %v17510_v1 = vld [vmem:[#allocation13 + $0x644] ss:$8 sps:$4 sm:$0xff]  }
 0x8a6   : > { %v9086_v52 = vrot.slane %v9084_v4, 1  ;;  %v17496_v4 = vld [vmem:[#allocation13 + $0x600] ss:$8 sps:$4 sm:$0xff]  }
 0x8a7   : > { %v21504_v26 = vld [vmem:[#allocation70_spill] sm:$0xff] }
 0x8ab   : > { %11988 = vmatmul.mubr.bf16.gmra.mrb[80].mxu1 %v21500_v14  ;;  %v9067_v14 = vshll.u32 %v20501_v47, 16 }
 0x8ac   : > { %11997 = vmatprep.mubr.bf16.mxu1 %v20289_v63  ;;  %v14686_v63 = vcombine.low %v8442_v3, %v8442_v3  ;;  %v17511_v3 = vld [vmem:[#allocation13 + $0x650] ss:$8 sps:$4 sm:$0xff]  }
 0x8b3   : > { %11998 = vmatmul.mubr.bf16.gmra.mrb[84].mxu1 %v20294_v53  ;;  %v9069_v53 = vrot.slane %v9067_v14, 1  ;;  %v17501_v14 = vld [vmem:[#allocation13 + $0x614] ss:$8 sps:$4 sm:$0xff]  }
 0x8b4   : > { %12007 = vmatprep.mubr.bf16.mxu1 %v20299_v31  ;;  %v20538_v31 = vsel %vm2100_vm0, %v9082_v30, %v9086_v52  ;;  %v17499_v52 = vld [vmem:[#allocation13 + $0x610] ss:$8 sps:$4 sm:$0xff]   ;;  %v17504_v30 = vld [vmem:[#allocation13 + $0x624] ss:$8 sps:$4 sm:$0xff]  }
 0x8bb   : > { %12008 = vmatmul.mubr.bf16.gmra.mrb[88].mxu1 %v21501_v36  ;;  %v9072_v36 = vshll.u32 %v14686_v63, 16  ;;  %v17502_v63 = vld [vmem:[#allocation13 + $0x620] ss:$8 sps:$4 sm:$0xff]  }
 0x8bc   : > { %12017 = vmatprep.mubr.bf16.mxu1 %v21502_v57  ;;  %v9070_v57 = vor.u32 %v9069_v53, %v9065_v33  ;;  %v17507_v53 = vld [vmem:[#allocation13 + $0x634] ss:$8 sps:$4 sm:$0xff]   ;;  %v17514_v33 = vld [vmem:[#allocation13 + $0x660] ss:$8 sps:$4 sm:$0xff]  }
 0x8bd   : > { %v9074_v43 = vrot.slane %v9072_v36, 1  ;;  %v17516_v36 = vld [vmem:[#allocation13 + $0x664] ss:$8 sps:$4 sm:$0xff]  }
 0x8bf   : > { %v20543_v42 = vsel %vm2100_vm0, %v9070_v57, %v9074_v43  ;;  %v21503_v43 = vld [vmem:[#allocation69_spill] sm:$0xff]  ;;  %v17513_v57 = vld [vmem:[#allocation13 + $0x654] ss:$8 sps:$4 sm:$0xff]  }
 0x8c3   : > { %12018 = vmatmul.mubr.bf16.gmra.mrb[92].mxu1 %v20311_v51 }
 0x8c4   : > { %12027 = vmatprep.mubr.bf16.mxu1 %v20538_v31 }
 0x8cb   : > { %12028 = vmatmul.mubr.bf16.gmra.mrb[96].mxu1 %v20543_v42 }
 0x8cc   : > { %12070 = vmatprep.mubr.bf16.mxu1 %v20317_v61  ;;  %v17505_v61 = vld [vmem:[#allocation13 + $0x630] ss:$8 sps:$4 sm:$0xff]  }
 0x8d3   : > { %12071 = vmatmul.mubr.bf16.vlgmr.msra.gmra.mrb[36].mxu1 %v20322_v13  ;;  %v17508_v13 = vld [vmem:[#allocation13 + $0x640] ss:$8 sps:$4 sm:$0xff]  }
 0x8d4   : > { %12080 = vmatprep.mubr.bf16.mxu1 %v20327_v46  ;;  %12969 = vmatpush1.bf16.msra.mxu1 %v17496_v4  ;;  %v17519_v4 = vld [vmem:[#allocation13 + $0x674] ss:$8 sps:$4 sm:$0xff]  }
 0x8d5   : > { %12970 = vmatprep.subr.bf16.mxu1 %v17501_v14  ;;  %v21505_v14 = vld [vmem:[#allocation71_spill] sm:$0xff] }
 0x8d8   : > { %12971 = vmatpush1.bf16.msra.mxu1 %v17499_v52  ;;  %v17517_v52 = vld [vmem:[#allocation13 + $0x670] ss:$8 sps:$4 sm:$0xff]  }
 0x8d9   : > { %12972 = vmatprep.subr.bf16.mxu1 %v17504_v30  ;;  %v17522_v30 = vld [vmem:[#allocation13 + $0x684] ss:$8 sps:$4 sm:$0xff]  }
 0x8db   : > { %12081 = vmatmul.mubr.bf16.gmra.mrb[40].mxu1 %v20332_v56 }
 0x8dc   : > { %12090 = vmatprep.mubr.bf16.mxu1 %v21503_v43  ;;  %12973 = vmatpush1.bf16.msra.mxu1 %v17502_v63  ;;  %v17520_v63 = vld [vmem:[#allocation13 + $0x680] ss:$8 sps:$4 sm:$0xff]  }
 0x8dd   : > { %12974 = vmatprep.subr.bf16.mxu1 %v17507_v53  ;;  %v17525_v53 = vld [vmem:[#allocation13 + $0x694] ss:$8 sps:$4 sm:$0xff]  }
 0x8e0   : > { %12975 = vmatpush1.bf16.msra.mxu1 %v17505_v61  ;;  %v21506_v61 = vld [vmem:[#allocation72_spill] sm:$0xff] }
 0x8e1   : > { %12976 = vmatprep.subr.bf16.mxu1 %v17510_v1  ;;  %v17523_v1 = vld [vmem:[#allocation13 + $0x690] ss:$8 sps:$4 sm:$0xff]  }
 0x8e3   : > { %12091 = vmatmul.mubr.bf16.gmra.mrb[44].mxu1 %v20342_v20 }
 0x8e4   : > { %12100 = vmatprep.mubr.bf16.mxu1 %v21504_v26  ;;  %12977 = vmatpush1.bf16.msra.mxu1 %v17508_v13  ;;  %v17528_v13 = vld [vmem:[#allocation13 + $0x6a4] ss:$8 sps:$4 sm:$0xff]  }
 0x8e5   : > { %12978 = vmatprep.subr.bf16.mxu1 %v17513_v57  ;;  %v17526_v57 = vld [vmem:[#allocation13 + $0x6a0] ss:$8 sps:$4 sm:$0xff]  }
 0x8e8   : > { %12979 = vmatpush1.bf16.msra.mxu1 %v17511_v3  ;;  %v17531_v3 = vld [vmem:[#allocation13 + $0x6b4] ss:$8 sps:$4 sm:$0xff]  }
 0x8e9   : > { %12980 = vmatprep.subr.bf16.mxu1 %v17516_v36  ;;  %v21507_v36 = vld [vmem:[#allocation73_spill] sm:$0xff] }
 0x8eb   : > { %12101 = vmatmul.mubr.bf16.gmra.mrb[48].mxu1 %v20352_v17 }
 0x8ec   : > { %12110 = vmatprep.mubr.bf16.mxu1 %v21505_v14  ;;  %12981 = vmatpush1.bf16.msra.mxu1 %v17514_v33  ;;  %v17529_v33 = vld [vmem:[#allocation13 + $0x6b0] ss:$8 sps:$4 sm:$0xff]  }
 0x8ed   : > { %12982 = vmatprep.subr.bf16.mxu1 %v17519_v4  ;;  %v17534_v4 = vld [vmem:[#allocation13 + $0x6c4] ss:$8 sps:$4 sm:$0xff]  }
 0x8f0   : > { %12983 = vmatpush1.bf16.msra.mxu1 %v17517_v52  ;;  %v17532_v52 = vld [vmem:[#allocation13 + $0x6c0] ss:$8 sps:$4 sm:$0xff]  }
 0x8f1   : > { %12984 = vmatprep.subr.bf16.mxu1 %v17522_v30  ;;  %v17537_v30 = vld [vmem:[#allocation13 + $0x6d4] ss:$8 sps:$4 sm:$0xff]  }
 0x8f3   : > { %12111 = vmatmul.mubr.bf16.gmra.mrb[52].mxu1 %v20362_v21 }
 0x8f4   : > { %12120 = vmatprep.mubr.bf16.mxu1 %v21506_v61  ;;  %12985 = vmatpush1.bf16.msra.mxu1 %v17520_v63  ;;  %v17535_v63 = vld [vmem:[#allocation13 + $0x6d0] ss:$8 sps:$4 sm:$0xff]  }
 0x8f5   : > { %12986 = vmatprep.subr.bf16.mxu1 %v17525_v53  ;;  %v17540_v53 = vld [vmem:[#allocation13 + $0x6e4] ss:$8 sps:$4 sm:$0xff]  }
 0x8f8   : > { %12987 = vmatpush1.bf16.msra.mxu1 %v17523_v1  ;;  %v17538_v1 = vld [vmem:[#allocation13 + $0x6e0] ss:$8 sps:$4 sm:$0xff]  }
 0x8f9   : > { %12988 = vmatprep.subr.bf16.mxu1 %v17528_v13  ;;  %v17547_v13 = vld [vmem:[#allocation13 + $0x6f4] ss:$8 sps:$4 sm:$0xff]  }
 0x8fb   : > { %12121 = vmatmul.mubr.bf16.gmra.mrb[56].mxu1 %v20372_v25 }
 0x8fc   : > { %12130 = vmatprep.mubr.bf16.mxu1 %v21507_v36  ;;  %12989 = vmatpush1.bf16.msra.mxu1 %v17526_v57  ;;  %v17545_v57 = vld [vmem:[#allocation13 + $0x6f0] ss:$8 sps:$4 sm:$0xff]  }
 0x8fd   : > { %12990 = vmatprep.subr.bf16.mxu1 %v17531_v3  ;;  %v17550_v3 = vld [vmem:[#allocation13 + $0x704] ss:$8 sps:$4 sm:$0xff]  }
 0x900   : > { %12991 = vmatpush1.bf16.msra.mxu1 %v17529_v33  ;;  %v21508_v33 = vld [vmem:[#allocation74_spill] sm:$0xff] }
 0x901   : > { %12992 = vmatprep.subr.bf16.mxu1 %v17534_v4  ;;  %v21509_v4 = vld [vmem:[#allocation76_spill] sm:$0xff] }
 0x903   : > { %12131 = vmatmul.mubr.bf16.gmra.mrb[60].mxu1 %v20382_v0 }
 0x904   : > { %12140 = vmatprep.mubr.bf16.mxu1 %v20387_v39  ;;  %12993 = vmatpush1.bf16.msra.mxu1 %v17532_v52  ;;  %v21510_v52 = vld [vmem:[#allocation79_spill] sm:$0xff] }
 0x905   : > { %12994 = vmatprep.subr.bf16.mxu1 %v17537_v30  ;;  %v9234_v30 = vld [vmem:[#allocation2 + $0x1a8] sm:$0x11] }
 0x908   : > { %12995 = vmatpush1.bf16.msra.mxu1 %v17535_v63  ;;  %v9232_v63 = vld [vmem:[#allocation2 + $0x198] sm:$0xee] }
 0x909   : > { %12996 = vmatprep.subr.bf16.mxu1 %v17540_v53  ;;  %v14757_v53 = vcombine.high %v9232_v63, %v20493_v24 }
 0x90b   : > { %12141 = vmatmul.mubr.bf16.gmra.mrb[64].mxu1 %v20392_v35 }
 0x90c   : > { %12150 = vmatprep.mubr.bf16.mxu1 %v20397_v37  ;;  %12997 = vmatpush1.bf16.msra.mxu1 %v17538_v1  ;;  %v14759_v1 = vcombine.high %v9234_v30, %v9234_v30 }
 0x90d   : > { %12998 = vmatprep.subr.bf16.mxu1 %v17547_v13  ;;  %v9571_v13 = vrot.slane %v14757_v53, 1  ;;  %v17548_v53 = vld [vmem:[#allocation13 + $0x700] ss:$8 sps:$4 sm:$0xff]  }
 0x910   : > { %12999 = vmatpush1.bf16.msra.mxu1 %v17545_v57  ;;  %v9572_v57 = vrot.slane %v14759_v1, 1  ;;  %v17553_v1 = vld [vmem:[#allocation13 + $0x714] ss:$8 sps:$4 sm:$0xff]  }
 0x911   : > { %13161 = vmatprep.subr.bf16.mxu1 %v17550_v3  ;;  %v14756_v3 = vcombine.low %v9232_v63, %v20493_v24  ;;  %v17551_v24 = vld [vmem:[#allocation13 + $0x710] ss:$8 sps:$4 sm:$0xff]   ;;  %v17554_v63 = vld [vmem:[#allocation13 + $0x720] ss:$8 sps:$4 sm:$0xff]  }
 0x913   : > { %12151 = vmatmul.mubr.bf16.gmra.mrb[68].mxu1 %v20402_v8 }
 0x914   : > { %12160 = vmatprep.mubr.bf16.mxu1 %v20407_v55 }
 0x91b   : > { %12161 = vmatmul.mubr.bf16.gmra.mrb[72].mxu1 %v20412_v50 }
 0x91c   : > { %12170 = vmatprep.mubr.bf16.mxu1 %v21508_v33 }
 0x923   : > { %12171 = vmatmul.mubr.bf16.gmra.mrb[76].mxu1 %v20422_v48 }
 0x924   : > { %12180 = vmatprep.mubr.bf16.mxu1 %v21509_v4 }
 0x92b   : > { %12181 = vmatmul.mubr.bf16.gmra.mrb[80].mxu1 %v20432_v40  ;;  %v14758_v40 = vcombine.low %v9234_v30, %v9234_v30  ;;  %v17556_v30 = vld [vmem:[#allocation13 + $0x724] ss:$8 sps:$4 sm:$0xff]  }
 0x92c   : > { %12190 = vmatprep.mubr.bf16.mxu1 %v21510_v52 }
 0x92d   : > { %v9569_v52 = vrot.slane %v14758_v40, 1  ;;  %v17559_v40 = vld [vmem:[#allocation13 + $0x734] ss:$8 sps:$4 sm:$0xff]  }
 0x933   : > { %12191 = vmatmul.mubr.bf16.gmra.mrb[84].mxu1 %v20442_v18  ;;  %v20579_v18 = vsel %vm2981_vm1, %v9571_v13, %v9572_v57  ;;  %v21512_v13 = vld [vmem:[#allocation30_spill] sm:$0xff] }
 0x934   : > { %12200 = vmatprep.mubr.bf16.mxu1 %v20447_v28  ;;  %v9568_v28 = vrot.slane %v14756_v3, 1  ;;  %v17563_v57 = vld [vmem:[#allocation13 + $0x750] ss:$8 sps:$4 sm:$0xff]   ;;  %v17568_v3 = vld [vmem:[#allocation13 + $0x764] ss:$8 sps:$4 sm:$0xff]  }
 0x93b   : > { %12201 = vmatmul.mubr.bf16.gmra.mrb[88].mxu1 %v20452_v22  ;;  %v20583_v22 = vsel %vm2981_vm1, %v9568_v28, %v9569_v52  ;;  %v21511_v28 = vld [vmem:[#allocation75_spill] sm:$0xff]  ;;  %v17562_v52 = vld [vmem:[#allocation13 + $0x744] ss:$8 sps:$4 sm:$0xff]  }
 0x93c   : > { %12210 = vmatprep.mubr.bf16.mxu1 %v20457_v23 }
 0x943   : > { %12211 = vmatmul.mubr.bf16.gmra.mrb[92].mxu1 %v20461_v10 }
 0x944   : > { %12220 = vmatprep.mubr.bf16.mxu1 %v20579_v18 }
 0x94b   : > { %12221 = vmatmul.mubr.bf16.gmra.mrb[96].mxu1 %v20583_v22 }
 0x94c   : > { %13000 = vmatprep.mubr.bf16.mxu1 %v21472_v45  ;;  %v17557_v45 = vld [vmem:[#allocation13 + $0x730] ss:$8 sps:$4 sm:$0xff]  }
 0x953   : > { %13001 = vmatmul.mubr.bf16.vlgmr.msra.gmra.mrb[36].mxu1 %v21473_v34  ;;  %v17560_v34 = vld [vmem:[#allocation13 + $0x740] ss:$8 sps:$4 sm:$0xff]  }
 0x954   : > { %13010 = vmatprep.mubr.bf16.mxu1 %v21474_v58  ;;  %13162 = vmatpush1.bf16.msra.mxu1 %v17548_v53  ;;  %v17565_v58 = vld [vmem:[#allocation13 + $0x754] ss:$8 sps:$4 sm:$0xff]  }
 0x955   : > { %13163 = vmatprep.subr.bf16.mxu1 %v17553_v1  ;;  %v17571_v53 = vld [vmem:[#allocation13 + $0x774] ss:$8 sps:$4 sm:$0xff]   ;;  %v17569_v1 = vld [vmem:[#allocation13 + $0x770] ss:$8 sps:$4 sm:$0xff]  }
 0x958   : > { %13164 = vmatpush1.bf16.msra.mxu1 %v17551_v24  ;;  %v17574_v24 = vld [vmem:[#allocation13 + $0x784] ss:$8 sps:$4 sm:$0xff]  }
 0x959   : > { %13165 = vmatprep.subr.bf16.mxu1 %v17556_v30  ;;  %v17577_v30 = vld [vmem:[#allocation13 + $0x794] ss:$8 sps:$4 sm:$0xff]  }
 0x95b   : > { %13011 = vmatmul.mubr.bf16.gmra.mrb[40].mxu1 %v21475_v59  ;;  %v17566_v59 = vld [vmem:[#allocation13 + $0x760] ss:$8 sps:$4 sm:$0xff]  }
 0x95c   : > { %13020 = vmatprep.mubr.bf16.mxu1 %v21511_v28  ;;  %13166 = vmatpush1.bf16.msra.mxu1 %v17554_v63  ;;  %v17575_v63 = vld [vmem:[#allocation13 + $0x790] ss:$8 sps:$4 sm:$0xff]  }
 0x95d   : > { %13167 = vmatprep.subr.bf16.mxu1 %v17559_v40  ;;  %v17580_v40 = vld [vmem:[#allocation13 + $0x7a4] ss:$8 sps:$4 sm:$0xff]   ;;  %v17581_v28 = vld [vmem:[#allocation13 + $0x7b0] ss:$8 sps:$4 sm:$0xff]  }
 0x960   : > { %13168 = vmatpush1.bf16.msra.mxu1 %v17557_v45  ;;  %v17586_v45 = vld [vmem:[#allocation13 + $0x7c4] ss:$8 sps:$4 sm:$0xff]  }
 0x961   : > { %13169 = vmatprep.subr.bf16.mxu1 %v17562_v52  ;;  %v17587_v52 = vld [vmem:[#allocation13 + $0x7d0] ss:$8 sps:$4 sm:$0xff]  }
 0x963   : > { %13021 = vmatmul.mubr.bf16.gmra.mrb[44].mxu1 %v21476_v7  ;;  %v17572_v7 = vld [vmem:[#allocation13 + $0x780] ss:$8 sps:$4 sm:$0xff]  }
 0x964   : > { %13030 = vmatprep.mubr.bf16.mxu1 %v21512_v13  ;;  %13170 = vmatpush1.bf16.msra.mxu1 %v17560_v34  ;;  %v17592_v34 = vld [vmem:[#allocation13 + $0x7e4] ss:$8 sps:$4 sm:$0xff]  }
 0x965   : > { %13171 = vmatprep.subr.bf16.mxu1 %v17565_v58  ;;  %v17593_v58 = vld [vmem:[#allocation13 + $0x7f0] ss:$8 sps:$4 sm:$0xff]   ;;  %v17598_v13 = vld [vmem:[#allocation13 + $0x804] ss:$8 sps:$4 sm:$0xff]  }
 0x968   : > { %13172 = vmatpush1.bf16.msra.mxu1 %v17563_v57  ;;  %v17604_v57 = vld [vmem:[#allocation13 + $0x824] ss:$8 sps:$4 sm:$0xff]  }
 0x969   : > { %13173 = vmatprep.subr.bf16.mxu1 %v17568_v3  ;;  %v17607_v3 = vld [vmem:[#allocation13 + $0x834] ss:$8 sps:$4 sm:$0xff]  }
 0x96b   : > { %13031 = vmatmul.mubr.bf16.gmra.mrb[48].mxu1 %v21478_v11  ;;  %v17578_v11 = vld [vmem:[#allocation13 + $0x7a0] ss:$8 sps:$4 sm:$0xff]  }
 0x96c   : > { %13040 = vmatprep.mubr.bf16.mxu1 %v19847_v12  ;;  %13174 = vmatpush1.bf16.msra.mxu1 %v17566_v59  ;;  %v17583_v12 = vld [vmem:[#allocation13 + $0x7b4] ss:$8 sps:$4 sm:$0xff]   ;;  %v21519_v59 = vld [vmem:[#allocation38_spill] sm:$0xff] }
 0x96d   : > { %13175 = vmatprep.subr.bf16.mxu1 %v17571_v53  ;;  %v21520_v53 = vld [vmem:[#allocation39_spill] sm:$0xff] }
 0x970   : > { %13176 = vmatpush1.bf16.msra.mxu1 %v17569_v1  ;;  %v17605_v1 = vld [vmem:[#allocation13 + $0x830] ss:$8 sps:$4 sm:$0xff]  }
 0x971   : > { %13177 = vmatprep.subr.bf16.mxu1 %v17574_v24  ;;  %v17610_v24 = vld [vmem:[#allocation13 + $0x844] ss:$8 sps:$4 sm:$0xff]  }
 0x973   : > { %13041 = vmatmul.mubr.bf16.gmra.mrb[52].mxu1 %v19849_v49  ;;  %v17584_v49 = vld [vmem:[#allocation13 + $0x7c0] ss:$8 sps:$4 sm:$0xff]  }
 0x974   : > { %13050 = vmatprep.mubr.bf16.mxu1 %v19864_v60  ;;  %13178 = vmatpush1.bf16.msra.mxu1 %v17572_v7  ;;  %v17589_v60 = vld [vmem:[#allocation13 + $0x7d4] ss:$8 sps:$4 sm:$0xff]   ;;  %v17608_v7 = vld [vmem:[#allocation13 + $0x840] ss:$8 sps:$4 sm:$0xff]  }
 0x975   : > { %13179 = vmatprep.subr.bf16.mxu1 %v17577_v30  ;;  %v17613_v30 = vld [vmem:[#allocation13 + $0x854] ss:$8 sps:$4 sm:$0xff]  }
 0x978   : > { %13180 = vmatpush1.bf16.msra.mxu1 %v17575_v63  ;;  %v21521_v63 = vld [vmem:[#allocation42_spill] sm:$0xff] }
 0x979   : > { %13181 = vmatprep.subr.bf16.mxu1 %v17580_v40  ;;  %v21522_v40 = vld [vmem:[#allocation43_spill] sm:$0xff] }
 0x97b   : > { %13051 = vmatmul.mubr.bf16.gmra.mrb[56].mxu1 %v19866_v19  ;;  %v17590_v19 = vld [vmem:[#allocation13 + $0x7e0] ss:$8 sps:$4 sm:$0xff]  }
 0x97c   : > { %13060 = vmatprep.mubr.bf16.mxu1 %v19888_v5  ;;  %13182 = vmatpush1.bf16.msra.mxu1 %v17578_v11  ;;  %v17595_v5 = vld [vmem:[#allocation13 + $0x7f4] ss:$8 sps:$4 sm:$0xff]   ;;  %v17611_v11 = vld [vmem:[#allocation13 + $0x850] ss:$8 sps:$4 sm:$0xff]  }
 0x97d   : > { %13183 = vmatprep.subr.bf16.mxu1 %v17583_v12  ;;  %v17616_v12 = vld [vmem:[#allocation13 + $0x864] ss:$8 sps:$4 sm:$0xff]  }
 0x980   : > { %13184 = vmatpush1.bf16.msra.mxu1 %v17581_v28  ;;  %v17614_v28 = vld [vmem:[#allocation13 + $0x860] ss:$8 sps:$4 sm:$0xff]  }
 0x981   : > { %13185 = vmatprep.subr.bf16.mxu1 %v17586_v45  ;;  %v17619_v45 = vld [vmem:[#allocation13 + $0x874] ss:$8 sps:$4 sm:$0xff]  }
 0x983   : > { %13061 = vmatmul.mubr.bf16.gmra.mrb[60].mxu1 %v19890_v16  ;;  %v21513_v16 = vld [vmem:[#allocation32_spill] sm:$0xff] }
 0x984   : > { %13070 = vmatprep.mubr.bf16.mxu1 %v19904_v27  ;;  %13186 = vmatpush1.bf16.msra.mxu1 %v17584_v49  ;;  %v21514_v27 = vld [vmem:[#allocation90_spill] sm:$0xff]  ;;  %v21523_v49 = vld [vmem:[#allocation44_spill] sm:$0xff] }
 0x985   : > { %13187 = vmatprep.subr.bf16.mxu1 %v17589_v60  ;;  %v21524_v60 = vld [vmem:[#allocation45_spill] sm:$0xff] }
 0x988   : > { %13188 = vmatpush1.bf16.msra.mxu1 %v17587_v52  ;;  %v17617_v52 = vld [vmem:[#allocation13 + $0x870] ss:$8 sps:$4 sm:$0xff]  }
 0x989   : > { %13189 = vmatprep.subr.bf16.mxu1 %v17592_v34  ;;  %v17622_v34 = vld [vmem:[#allocation13 + $0x884] ss:$8 sps:$4 sm:$0xff]  }
 0x98b   : > { %13071 = vmatmul.mubr.bf16.gmra.mrb[64].mxu1 %v19906_v54  ;;  %v21515_v54 = vld [vmem:[#allocation91_spill] sm:$0xff] }
 0x98c   : > { %13080 = vmatprep.mubr.bf16.mxu1 %v19932_v32  ;;  %13190 = vmatpush1.bf16.msra.mxu1 %v17590_v19  ;;  %v8174_v32 = vld [vmem:[#allocation2 + $0x1b0] sm:$0xff]  ;;  %v17620_v19 = vld [vmem:[#allocation13 + $0x880] ss:$8 sps:$4 sm:$0xff]  }
 0x98d   : > { %13191 = vmatprep.subr.bf16.mxu1 %v17595_v5  ;;  %v17625_v5 = vld [vmem:[#allocation13 + $0x894] ss:$8 sps:$4 sm:$0xff]  }
 0x990   : > { %13192 = vmatpush1.bf16.msra.mxu1 %v17593_v58  ;;  %v21525_v58 = vld [vmem:[#allocation46_spill] sm:$0xff] }
 0x991   : > { %13354 = vmatprep.subr.bf16.mxu1 %v17598_v13  ;;  %v21526_v13 = vld [vmem:[#allocation47_spill] sm:$0xff] }
 0x993   : > { %13081 = vmatmul.mubr.bf16.gmra.mrb[68].mxu1 %v19934_v6  ;;  %v20615_v6 = vld [vmem:[#allocation2 + $0x8] sm:$0xff] }
 0x994   : > { %13090 = vmatprep.mubr.bf16.mxu1 %v19958_v62  ;;  %v20618_v62 = vcombine.high %v8174_v32, %v20615_v6 }
 0x99b   : > { %13091 = vmatmul.mubr.bf16.gmra.mrb[72].mxu1 %v19960_v15  ;;  %v20623_v15 = vcombine.low %v8174_v32, %v20615_v6  ;;  %v17631_v32 = vld [vmem:[#allocation13 + $0x8b4] ss:$8 sps:$4 sm:$0xff]  }
 0x99c   : > { %13100 = vmatprep.mubr.bf16.mxu1 %v20007_v9  ;;  %v21516_v9 = vld [vmem:[#allocation92_spill] sm:$0xff] }
 0x9a3   : > { %13101 = vmatmul.mubr.bf16.gmra.mrb[76].mxu1 %v20009_v29  ;;  %v17596_v29 = vld [vmem:[#allocation13 + $0x800] ss:$8 sps:$4 sm:$0xff]  }
 0x9a4   : > { %13110 = vmatprep.mubr.bf16.mxu1 %v20037_v2  ;;  %v17601_v2 = vld [vmem:[#allocation13 + $0x814] ss:$8 sps:$4 sm:$0xff]  }
 0x9ab   : > { %13111 = vmatmul.mubr.bf16.gmra.mrb[80].mxu1 %v20039_v38  ;;  %v21517_v38 = vld [vmem:[#allocation93_spill] sm:$0xff] }
 0x9ac   : > { %13120 = vmatprep.mubr.bf16.mxu1 %v20072_v41  ;;  %v21518_v41 = vld [vmem:[#allocation37_spill] sm:$0xff] }
 0x9b3   : > { %13121 = vmatmul.mubr.bf16.gmra.mrb[84].mxu1 %v21513_v16  ;;  %v17623_v16 = vld [vmem:[#allocation13 + $0x890] ss:$8 sps:$4 sm:$0xff]  }
 0x9b4   : > { %13130 = vmatprep.mubr.bf16.mxu1 %v21514_v27  ;;  %v17628_v27 = vld [vmem:[#allocation13 + $0x8a4] ss:$8 sps:$4 sm:$0xff]  }
 0x9bb   : > { %13131 = vmatmul.mubr.bf16.gmra.mrb[88].mxu1 %v21515_v54  ;;  %v17626_v54 = vld [vmem:[#allocation13 + $0x8a0] ss:$8 sps:$4 sm:$0xff]  }
 0x9bc   : > { %13140 = vmatprep.mubr.bf16.mxu1 %v20496_v44  ;;  %v17599_v44 = vld [vmem:[#allocation13 + $0x810] ss:$8 sps:$4 sm:$0xff]  }
 0x9c3   : > { %13141 = vmatmul.mubr.bf16.gmra.mrb[92].mxu1 %v20501_v47  ;;  %v17602_v47 = vld [vmem:[#allocation13 + $0x820] ss:$8 sps:$4 sm:$0xff]  }
 0x9c4   : > { %13150 = vmatprep.mubr.bf16.mxu1 %v20618_v62 }
 0x9cb   : > { %13151 = vmatmul.mubr.bf16.gmra.mrb[96].mxu1 %v20623_v15 }
 0x9cc   : > { %13193 = vmatprep.mubr.bf16.mxu1 %v21516_v9  ;;  %v21527_v9 = vld [vmem:[#allocation48_spill] sm:$0xff] }
 0x9d3   : > { %13194 = vmatmul.mubr.bf16.vlgmr.msra.gmra.mrb[36].mxu1 %v21517_v38  ;;  %v17634_v38 = vld [vmem:[#allocation13 + $0x8c4] ss:$8 sps:$4 sm:$0xff]  }
 0x9d4   : > { %13203 = vmatprep.mubr.bf16.mxu1 %v21518_v41  ;;  %13355 = vmatpush1.bf16.msra.mxu1 %v17596_v29  ;;  %v21528_v29 = vld [vmem:[#allocation49_spill] sm:$0xff] }
 0x9d5   : > { %13356 = vmatprep.subr.bf16.mxu1 %v17601_v2  ;;  %v17629_v2 = vld [vmem:[#allocation13 + $0x8b0] ss:$8 sps:$4 sm:$0xff]   ;;  %v17632_v41 = vld [vmem:[#allocation13 + $0x8c0] ss:$8 sps:$4 sm:$0xff]  }
 0x9d8   : > { %13357 = vmatpush1.bf16.msra.mxu1 %v17599_v44  ;;  %v17637_v44 = vld [vmem:[#allocation13 + $0x8d4] ss:$8 sps:$4 sm:$0xff]  }
 0x9d9   : > { %13358 = vmatprep.subr.bf16.mxu1 %v17604_v57  ;;  %v21529_v57 = vld [vmem:[#allocation50_spill] sm:$0xff] }
 0x9db   : > { %13204 = vmatmul.mubr.bf16.gmra.mrb[40].mxu1 %v21519_v59  ;;  %v17640_v59 = vld [vmem:[#allocation13 + $0x8e4] ss:$8 sps:$4 sm:$0xff]  }
 0x9dc   : > { %13213 = vmatprep.mubr.bf16.mxu1 %v21520_v53  ;;  %13359 = vmatpush1.bf16.msra.mxu1 %v17602_v47  ;;  %v21530_v47 = vld [vmem:[#allocation51_spill] sm:$0xff]  ;;  %v17638_v53 = vld [vmem:[#allocation13 + $0x8e0] ss:$8 sps:$4 sm:$0xff]  }
 0x9dd   : > { %13360 = vmatprep.subr.bf16.mxu1 %v17607_v3  ;;  %v17635_v3 = vld [vmem:[#allocation13 + $0x8d0] ss:$8 sps:$4 sm:$0xff]  }
 0x9e0   : > { %13361 = vmatpush1.bf16.msra.mxu1 %v17605_v1  ;;  %v17645_v1 = vld [vmem:[#allocation13 + $0x8f4] ss:$8 sps:$4 sm:$0xff]  }
 0x9e1   : > { %13362 = vmatprep.subr.bf16.mxu1 %v17610_v24  ;;  %v21531_v24 = vld [vmem:[#allocation52_spill] sm:$0xff] }
 0x9e3   : > { %13214 = vmatmul.mubr.bf16.gmra.mrb[44].mxu1 %v21521_v63  ;;  %v21533_v63 = vld [vmem:[#allocation54_spill] sm:$0xff] }
 0x9e4   : > { %13223 = vmatprep.mubr.bf16.mxu1 %v21522_v40  ;;  %13363 = vmatpush1.bf16.msra.mxu1 %v17608_v7  ;;  %v21532_v7 = vld [vmem:[#allocation53_spill] sm:$0xff]  ;;  %v21534_v40 = vld [vmem:[#allocation55_spill] sm:$0xff] }
 0x9e5   : > { %13364 = vmatprep.subr.bf16.mxu1 %v17613_v30  ;;  %v17643_v30 = vld [vmem:[#allocation13 + $0x8f0] ss:$8 sps:$4 sm:$0xff]  }
 0x9e8   : > { %13365 = vmatpush1.bf16.msra.mxu1 %v17611_v11  ;;  %v21535_v11 = vld [vmem:[#allocation57_spill] sm:$0xff] }
 0x9e9   : > { %13366 = vmatprep.subr.bf16.mxu1 %v17616_v12  ;;  %v21536_v12 = vld [vmem:[#allocation62_spill] sm:$0xff] }
 0x9eb   : > { %13224 = vmatmul.mubr.bf16.gmra.mrb[48].mxu1 %v21523_v49  ;;  %v21539_v49 = vld [vmem:[#allocation65_spill] sm:$0xff] }
 0x9ec   : > { %13233 = vmatprep.mubr.bf16.mxu1 %v21524_v60  ;;  %13367 = vmatpush1.bf16.msra.mxu1 %v17614_v28  ;;  %v21537_v28 = vld [vmem:[#allocation63_spill] sm:$0xff]  ;;  %v21540_v60 = vld [vmem:[#allocation66_spill] sm:$0xff] }
 0x9ed   : > { %13368 = vmatprep.subr.bf16.mxu1 %v17619_v45  ;;  %v21538_v45 = vld [vmem:[#allocation64_spill] sm:$0xff] }
 0x9f0   : > { %13369 = vmatpush1.bf16.msra.mxu1 %v17617_v52  ;;  %v21541_v52 = vld [vmem:[#allocation67_spill] sm:$0xff] }
 0x9f1   : > { %13370 = vmatprep.subr.bf16.mxu1 %v17622_v34  ;;  %v21542_v34 = vld [vmem:[#allocation68_spill] sm:$0xff] }
 0x9f3   : > { %13234 = vmatmul.mubr.bf16.gmra.mrb[52].mxu1 %v21525_v58  ;;  %v9103_v58 = vshll.u32 %v20618_v62, 16 }
 0x9f4   : > { %13243 = vmatprep.mubr.bf16.mxu1 %v21526_v13  ;;  %13371 = vmatpush1.bf16.msra.mxu1 %v17620_v19  ;;  %v8445_v19 = vld [vmem:[#allocation2 + $0x1c0] sm:$0x11] }
 0x9f5   : > { %13372 = vmatprep.subr.bf16.mxu1 %v17625_v5  ;;  %v14691_v5 = vcombine.high %v8445_v19, %v8445_v19 }
 0x9f7   : > { %v9108_v13 = vshll.u32 %v14691_v5, 16  ;;  %v17663_v5 = vld [vmem:[%s18387_s15 + $0x20] sm:$0xff] }
 0x9f8   : > { %13373 = vmatpush1.bf16.msra.mxu1 %v17623_v16  ;;  %v9105_v16 = vrot.slane %v9103_v58, 1 }
 0x9f9   : > { %13374 = vmatprep.subr.bf16.mxu1 %v17628_v27  ;;  %v14690_v27 = vcombine.low %v8445_v19, %v8445_v19 }
 0x9fb   : > { %13244 = vmatmul.mubr.bf16.gmra.mrb[56].mxu1 %v21527_v9  ;;  %v9091_v9 = vshll.u32 %v20623_v15, 16 }
 0x9fc   : > { %13253 = vmatprep.mubr.bf16.mxu1 %v21528_v29  ;;  %13375 = vmatpush1.bf16.msra.mxu1 %v17626_v54  ;;  %v9101_v54 = vshrl.u32 %v20618_v62, 16 }
 0x9fd   : > { %13376 = vmatprep.subr.bf16.mxu1 %v17631_v32  ;;  %v9110_v32 = vrot.slane %v9108_v13, 1 }
 0x9fe   : > { %v9106_v29 = vor.u32 %v9105_v16, %v9101_v54 }
 0xa00   : > { %13377 = vmatpush1.bf16.msra.mxu1 %v17629_v2  ;;  %v9096_v2 = vshll.u32 %v14690_v27, 16  ;;  %v17664_v27 = vld [vmem:[%s18387_s15 + $0x28] sm:$0xff] }
 0xa01   : > { %13378 = vmatprep.subr.bf16.mxu1 %v17634_v38  ;;  %v9111_v38 = vsel %vm2100_vm0, %v9106_v29, %v9110_v32  ;;  %v17665_v29 = vld [vmem:[%s18387_s15 + $0x30] sm:$0xff] }
 0xa03   : > { %13254 = vmatmul.mubr.bf16.gmra.mrb[60].mxu1 %v21529_v57 }
 0xa04   : > { %13263 = vmatprep.mubr.bf16.mxu1 %v21530_v47  ;;  %13379 = vmatpush1.bf16.msra.mxu1 %v17632_v41  ;;  %v9093_v41 = vrot.slane %v9091_v9, 1 }
 0xa05   : > { %13380 = vmatprep.subr.bf16.mxu1 %v17637_v44  ;;  %v9098_v44 = vrot.slane %v9096_v2, 1 }
 0xa08   : > { %13381 = vmatpush1.bf16.msra.mxu1 %v17635_v3 }
 0xa09   : > { %13382 = vmatprep.subr.bf16.mxu1 %v17640_v59 }
 0xa0b   : > { %13264 = vmatmul.mubr.bf16.gmra.mrb[64].mxu1 %v21531_v24 }
 0xa0c   : > { %13273 = vmatprep.mubr.bf16.mxu1 %v21532_v7  ;;  %13383 = vmatpush1.bf16.msra.mxu1 %v17638_v53  ;;  %v17660_v53 = vld [vmem:[%s18387_s15 + $0x8] sm:$0xff] }
 0xa0d   : > { %13384 = vmatprep.subr.bf16.mxu1 %v17645_v1 }
 0xa10   : > { %13385 = vmatpush1.bf16.msra.mxu1 %v17643_v30  ;;  %v17661_v30 = vld [vmem:[%s18387_s15 + $0x10] sm:$0xff] }
 0xa13   : > { %13274 = vmatmul.mubr.bf16.gmra.mrb[68].mxu1 %v21533_v63 }
 0xa14   : > { %13283 = vmatprep.mubr.bf16.mxu1 %v21534_v40 }
 0xa1b   : > { %13284 = vmatmul.mubr.bf16.gmra.mrb[72].mxu1 %v21535_v11  ;;  %v17662_v11 = vld [vmem:[%s18387_s15 + $0x18] sm:$0xff] }
 0xa1c   : > { %13293 = vmatprep.mubr.bf16.mxu1 %v21536_v12 }
 0xa23   : > { %13294 = vmatmul.mubr.bf16.gmra.mrb[76].mxu1 %v21537_v28 }
 0xa24   : > { %13303 = vmatprep.mubr.bf16.mxu1 %v21538_v45 }
 0xa2b   : > { %13304 = vmatmul.mubr.bf16.gmra.mrb[80].mxu1 %v21539_v49 }
 0xa2c   : > { %13313 = vmatprep.mubr.bf16.mxu1 %v21540_v60 }
 0xa33   : > { %13314 = vmatmul.mubr.bf16.gmra.mrb[84].mxu1 %v21541_v52 }
 0xa34   : > { %13323 = vmatprep.mubr.bf16.mxu1 %v21542_v34 }
 0xa3b   : > { %13324 = vmatmul.mubr.bf16.gmra.mrb[88].mxu1 %v20311_v51  ;;  %v9089_v51 = vshrl.u32 %v20623_v15, 16  ;;  %v17659_v15 = vld [vmem:[%s18387_s15] sm:$0xff] }
 0xa3c   : > { %13333 = vmatprep.mubr.bf16.mxu1 %v20538_v31 }
 0xa3d   : > { %v9094_v57 = vor.u32 %v9093_v41, %v9089_v51  ;;  %v17666_v41 = vld [vmem:[%s18387_s15 + $0x38] sm:$0xff] }
 0xa3f   : > { %v9099_v31 = vsel %vm2100_vm0, %v9094_v57, %v9098_v44 }
 0xa43   : > { %13334 = vmatmul.mubr.bf16.gmra.mrb[92].mxu1 %v20543_v42 }
 0xa44   : > { %13343 = vmatprep.mubr.bf16.mxu1 %v9111_v38 }
 0xa4b   : > { %13344 = vmatmul.mubr.bf16.gmra.mrb[96].mxu1 %v9099_v31 }
 0xa4c   : > { %13386 = vmatprep.mubr.bf16.mxu1 %v20327_v46  ;;  %v21543_v46 = vld [vmem:[#allocation78_spill] sm:$0xff] }
 0xa53   : > { %13387 = vmatmul.mubr.bf16.vlgmr.msra.gmra.mrb[36].mxu1 %v20332_v56  ;;  %v21544_v56 = vld [vmem:[#allocation79_spill] sm:$0xff] }
 0xa54   : > { %13396 = vmatprep.mubr.bf16.mxu1 %v21503_v43  ;;  %v21548_v43 = vld [vmem:[#allocation33_spill] sm:$0xff] }
 0xa5b   : > { %13397 = vmatmul.mubr.bf16.gmra.mrb[40].mxu1 %v20342_v20  ;;  %v21545_v20 = vld [vmem:[#allocation80_spill] sm:$0xff] }
 0xa5c   : > { %13406 = vmatprep.mubr.bf16.mxu1 %v21504_v26  ;;  %v21549_v26 = vsub.s32 0, %v21548_v43 }
 0xa63   : > { %13407 = vmatmul.mubr.bf16.gmra.mrb[44].mxu1 %v20352_v17  ;;  %v21546_v17 = vld [vmem:[#allocation81_spill] sm:$0xff] }
 0xa64   : > { %13416 = vmatprep.mubr.bf16.mxu1 %v21505_v14 }
 0xa6b   : > { %13417 = vmatmul.mubr.bf16.gmra.mrb[48].mxu1 %v20362_v21  ;;  %v21547_v21 = vld [vmem:[#allocation82_spill] sm:$0xff] }
 0xa6c   : > { %13426 = vmatprep.mubr.bf16.mxu1 %v21506_v61 }
 0xa73   : > { %13427 = vmatmul.mubr.bf16.gmra.mrb[52].mxu1 %v20372_v25  ;;  %v9237_v25 = vld [vmem:[#allocation2 + $0x1c0] sm:$0x11] }
 0xa74   : > { %13436 = vmatprep.mubr.bf16.mxu1 %v21507_v36 }
 0xa7b   : > { %13437 = vmatmul.mubr.bf16.gmra.mrb[56].mxu1 %v20382_v0  ;;  %v9235_v0 = vld [vmem:[#allocation2 + $0x1b0] sm:$0xee] }
 0xa7c   : > { %13446 = vmatprep.mubr.bf16.mxu1 %v20387_v39  ;;  %v14763_v39 = vcombine.high %v9237_v25, %v9237_v25 }
 0xa83   : > { %13447 = vmatmul.mubr.bf16.gmra.mrb[60].mxu1 %v20392_v35  ;;  %v14761_v35 = vcombine.high %v9235_v0, %v20615_v6 }
 0xa84   : > { %13456 = vmatprep.mubr.bf16.mxu1 %v20397_v37  ;;  %v9578_v37 = vrot.slane %v14763_v39, 1 }
 0xa8b   : > { %13457 = vmatmul.mubr.bf16.gmra.mrb[64].mxu1 %v20402_v8  ;;  %v9577_v8 = vrot.slane %v14761_v35, 1  ;;  %v17668_v35 = vld [vmem:[%s18387_s15 + $0x48] sm:$0xff] }
 0xa8c   : > { %13466 = vmatprep.mubr.bf16.mxu1 %v20407_v55  ;;  %v14762_v55 = vcombine.low %v9237_v25, %v9237_v25 }
 0xa93   : > { %13467 = vmatmul.mubr.bf16.gmra.mrb[68].mxu1 %v20412_v50  ;;  %v9579_v50 = vsel %vm2981_vm1, %v9577_v8, %v9578_v37 }
 0xa94   : > { %13476 = vmatprep.mubr.bf16.mxu1 %v21508_v33 }
 0xa9b   : > { %13477 = vmatmul.mubr.bf16.gmra.mrb[72].mxu1 %v20422_v48  ;;  %v14760_v48 = vcombine.low %v9235_v0, %v20615_v6 }
 0xa9c   : > { %13486 = vmatprep.mubr.bf16.mxu1 %v21509_v4 }
 0xa9d   : > { %v9574_v42 = vrot.slane %v14760_v48, 1 }
 0xaa3   : > { %13487 = vmatmul.mubr.bf16.gmra.mrb[76].mxu1 %v21543_v46 }
 0xaa4   : > { %13496 = vmatprep.mubr.bf16.mxu1 %v21544_v56 }
 0xaab   : > { %13497 = vmatmul.mubr.bf16.gmra.mrb[80].mxu1 %v21545_v20 }
 0xaac   : > { %13506 = vmatprep.mubr.bf16.mxu1 %v21546_v17 }
 0xab3   : > { %13507 = vmatmul.mubr.bf16.gmra.mrb[84].mxu1 %v21547_v21  ;;  %v17667_v21 = vld [vmem:[%s18387_s15 + $0x40] sm:$0xff] }
 0xab4   : > { %13516 = vmatprep.mubr.bf16.mxu1 %v20457_v23  ;;  %v9575_v23 = vrot.slane %v14762_v55, 1 }
 0xabb   : > { %13517 = vmatmul.mubr.bf16.gmra.mrb[88].mxu1 %v20461_v10  ;;  %v9576_v10 = vsel %vm2981_vm1, %v9574_v42, %v9575_v23  ;;  %v17670_v42 = vld [vmem:[%s18387_s15 + $0x58] sm:$0xff] }
 0xabc   : > { %13526 = vmatprep.mubr.bf16.mxu1 %v20579_v18  ;;  %v9652_v18 = vld [vmem:[#allocation15] sm:$0x3] }
 0xabd   : > { %v20698_v14 = vrot.slane %v9652_v18, %v21549_v26 }
 0xac3   : > { %13527 = vmatmul.mubr.bf16.gmra.mrb[92].mxu1 %v20583_v22  ;;  %v21550_v22 = vsub.s32 1, %v21548_v43 }
 0xac4   : > { %13536 = vmatprep.mubr.bf16.mxu1 %v9579_v50  ;;  %v17669_v50 = vld [vmem:[%s18387_s15 + $0x50] sm:$0xff] }
 0xac5   : > { %v20702_v61 = vrot.slane %v9652_v18, %v21550_v22 }
 0xacb   : > { %13537 = vmatmul.mubr.bf16.gmra.mrb[96].mxu1 %v9576_v10 }
 0xb26   : > { %v13388_v36 = vpop.f32.mrb[36].mxu1 }
 0xb27   : > { %v15279_v33 = vadd.f32 %v13388_v36, %v20698_v14  ;;  %v13390_v4 = vpop.f32.mrb[37].mxu1 }
 0xb28   : > { %v15280_v6 = vadd.f32 %v13390_v4, %v20702_v61  ;;  %v13392_v62 = vpop.f32.mrb[38].mxu1 }
 0xb29   : > { %v13611_v47 = vadd.f32 %v17659_v15, %v15279_v33  ;;  %v15281_v3 = vadd.f32 %v13392_v62, %v20698_v14  ;;  %v13394_v59 = vpop.f32.mrb[39].mxu1 }
 0xb2a   : > { %v13612_v1 = vadd.f32 %v17660_v53, %v15280_v6  ;;  %v15282_v24 = vadd.f32 %v13394_v59, %v20702_v61  ;;  %v17671_v6 = vld [vmem:[%s18387_s15 + $0x60] sm:$0xff] }
 0xb2b   : > { %v13675_v7 = vmax.f32 %v13611_v47, 0.0  ;;  %v13613_v63 = vadd.f32 %v17661_v30, %v15281_v3  ;;  %v17672_v3 = vld [vmem:[%s18387_s15 + $0x68] sm:$0xff] }
 0xb2c   : > { %v13676_v40 = vmax.f32 %v13612_v1, 0.0  ;;  %v13614_v12 = vadd.f32 %v17662_v11, %v15282_v24  ;;  %v17673_v24 = vld [vmem:[%s18387_s15 + $0x70] sm:$0xff] }
 0xb2d   : > { %13739 = vst [vmem:[%s20714_s30] sm:$0xff] %v13675_v7  ;;  %v13677_v28 = vmax.f32 %v13613_v63, 0.0  ;;  %v17674_v63 = vld [vmem:[%s18387_s15 + $0x78] sm:$0xff] }
 0xb2e   : > { %13740 = vst [vmem:[%s20714_s30 + $0x8] sm:$0xff] %v13676_v40  ;;  %v13678_v45 = vmax.f32 %v13614_v12, 0.0  ;;  %v13398_v49 = vpop.f32.mrb[40].mxu1 }
 0xb2f   : > { %13741 = vst [vmem:[%s20714_s30 + $0x10] sm:$0xff] %v13677_v28  ;;  %v15283_v60 = vadd.f32 %v13398_v49, %v20698_v14  ;;  %v13400_v52 = vpop.f32.mrb[41].mxu1 }
 0xb30   : > { %13742 = vst [vmem:[%s20714_s30 + $0x18] sm:$0xff] %v13678_v45  ;;  %v15284_v34 = vadd.f32 %v13400_v52, %v20702_v61  ;;  %v13402_v19 = vpop.f32.mrb[42].mxu1 }
 0xb31   : > { %v13615_v58 = vadd.f32 %v17663_v5, %v15283_v60  ;;  %v15285_v13 = vadd.f32 %v13402_v19, %v20698_v14  ;;  %v13404_v16 = vpop.f32.mrb[43].mxu1 }
 0xb32   : > { %v13616_v54 = vadd.f32 %v17664_v27, %v15284_v34  ;;  %v15286_v32 = vadd.f32 %v13404_v16, %v20702_v61  ;;  %v17675_v34 = vld [vmem:[%s18387_s15 + $0x80] sm:$0xff] }
 0xb33   : > { %v13679_v9 = vmax.f32 %v13615_v58, 0.0  ;;  %v13617_v2 = vadd.f32 %v17665_v29, %v15285_v13  ;;  %v17676_v13 = vld [vmem:[%s18387_s15 + $0x88] sm:$0xff] }
 0xb34   : > { %v13680_v38 = vmax.f32 %v13616_v54, 0.0  ;;  %v13618_v51 = vadd.f32 %v17666_v41, %v15286_v32  ;;  %v17677_v32 = vld [vmem:[%s18387_s15 + $0x90] sm:$0xff] }
 0xb35   : > { %13743 = vst [vmem:[%s20714_s30 + $0x20] sm:$0xff] %v13679_v9  ;;  %v13681_v44 = vmax.f32 %v13617_v2, 0.0  ;;  %v17678_v2 = vld [vmem:[%s18387_s15 + $0x98] sm:$0xff] }
 0xb36   : > { %13744 = vst [vmem:[%s20714_s30 + $0x28] sm:$0xff] %v13680_v38  ;;  %v13682_v57 = vmax.f32 %v13618_v51, 0.0  ;;  %v13408_v31 = vpop.f32.mrb[44].mxu1 }
 0xb37   : > { %13745 = vst [vmem:[%s20714_s30 + $0x30] sm:$0xff] %v13681_v44  ;;  %v15287_v46 = vadd.f32 %v13408_v31, %v20698_v14  ;;  %v13410_v56 = vpop.f32.mrb[45].mxu1 }
 0xb38   : > { %13746 = vst [vmem:[%s20714_s30 + $0x38] sm:$0xff] %v13682_v57  ;;  %v15288_v20 = vadd.f32 %v13410_v56, %v20702_v61  ;;  %v13412_v17 = vpop.f32.mrb[46].mxu1 }
 0xb39   : > { %v13619_v25 = vadd.f32 %v17667_v21, %v15287_v46  ;;  %v15289_v0 = vadd.f32 %v13412_v17, %v20698_v14  ;;  %v13414_v39 = vpop.f32.mrb[47].mxu1 }
 0xb3a   : > { %v13620_v37 = vadd.f32 %v17668_v35, %v15288_v20  ;;  %v15290_v8 = vadd.f32 %v13414_v39, %v20702_v61  ;;  %v17679_v20 = vld [vmem:[%s18387_s15 + $0xa0] sm:$0xff] }
 0xb3b   : > { %v13683_v55 = vmax.f32 %v13619_v25, 0.0  ;;  %v13621_v48 = vadd.f32 %v17669_v50, %v15289_v0  ;;  %v17680_v0 = vld [vmem:[%s18387_s15 + $0xa8] sm:$0xff] }
 0xb3c   : > { %v13684_v23 = vmax.f32 %v13620_v37, 0.0  ;;  %v13622_v10 = vadd.f32 %v17670_v42, %v15290_v8  ;;  %v17681_v8 = vld [vmem:[%s18387_s15 + $0xb0] sm:$0xff] }
 0xb3d   : > { %13747 = vst [vmem:[%s20714_s30 + $0x40] sm:$0xff] %v13683_v55  ;;  %v13685_v18 = vmax.f32 %v13621_v48, 0.0  ;;  %v17682_v48 = vld [vmem:[%s18387_s15 + $0xb8] sm:$0xff] }
 0xb3e   : > { %13748 = vst [vmem:[%s20714_s30 + $0x48] sm:$0xff] %v13684_v23  ;;  %v13686_v43 = vmax.f32 %v13622_v10, 0.0  ;;  %v13418_v26 = vpop.f32.mrb[48].mxu1 }
 0xb3f   : > { %13749 = vst [vmem:[%s20714_s30 + $0x50] sm:$0xff] %v13685_v18  ;;  %v15291_v22 = vadd.f32 %v13418_v26, %v20698_v14  ;;  %v13420_v36 = vpop.f32.mrb[49].mxu1 }
 0xb40   : > { %13750 = vst [vmem:[%s20714_s30 + $0x58] sm:$0xff] %v13686_v43  ;;  %v15292_v33 = vadd.f32 %v13420_v36, %v20702_v61  ;;  %v13422_v4 = vpop.f32.mrb[50].mxu1 }
 0xb41   : > { %v13623_v62 = vadd.f32 %v17671_v6, %v15291_v22  ;;  %v15293_v15 = vadd.f32 %v13422_v4, %v20698_v14  ;;  %v13424_v47 = vpop.f32.mrb[51].mxu1 }
 0xb42   : > { %v13624_v59 = vadd.f32 %v17672_v3, %v15292_v33  ;;  %v15294_v53 = vadd.f32 %v13424_v47, %v20702_v61  ;;  %v17683_v33 = vld [vmem:[%s18387_s15 + $0xc0] sm:$0xff] }
 0xb43   : > { %v13687_v1 = vmax.f32 %v13623_v62, 0.0  ;;  %v13625_v7 = vadd.f32 %v17673_v24, %v15293_v15  ;;  %v17684_v15 = vld [vmem:[%s18387_s15 + $0xc8] sm:$0xff] }
 0xb44   : > { %v13688_v30 = vmax.f32 %v13624_v59, 0.0  ;;  %v13626_v40 = vadd.f32 %v17674_v63, %v15294_v53  ;;  %v17685_v53 = vld [vmem:[%s18387_s15 + $0xd0] sm:$0xff] }
 0xb45   : > { %13751 = vst [vmem:[%s20714_s30 + $0x60] sm:$0xff] %v13687_v1  ;;  %v13689_v11 = vmax.f32 %v13625_v7, 0.0  ;;  %v17686_v7 = vld [vmem:[%s18387_s15 + $0xd8] sm:$0xff] }
 0xb46   : > { %13752 = vst [vmem:[%s20714_s30 + $0x68] sm:$0xff] %v13688_v30  ;;  %v13690_v12 = vmax.f32 %v13626_v40, 0.0  ;;  %v13428_v28 = vpop.f32.mrb[52].mxu1 }
 0xb47   : > { %13753 = vst [vmem:[%s20714_s30 + $0x70] sm:$0xff] %v13689_v11  ;;  %v15295_v45 = vadd.f32 %v13428_v28, %v20698_v14  ;;  %v13430_v49 = vpop.f32.mrb[53].mxu1 }
 0xb48   : > { %13754 = vst [vmem:[%s20714_s30 + $0x78] sm:$0xff] %v13690_v12  ;;  %v15296_v60 = vadd.f32 %v13430_v49, %v20702_v61  ;;  %v13432_v52 = vpop.f32.mrb[54].mxu1 }
 0xb49   : > { %v13627_v19 = vadd.f32 %v17675_v34, %v15295_v45  ;;  %v15297_v5 = vadd.f32 %v13432_v52, %v20698_v14  ;;  %v13434_v58 = vpop.f32.mrb[55].mxu1 }
 0xb4a   : > { %v13628_v16 = vadd.f32 %v17676_v13, %v15296_v60  ;;  %v15298_v27 = vadd.f32 %v13434_v58, %v20702_v61  ;;  %v17687_v60 = vld [vmem:[%s18387_s15 + $0xe0] sm:$0xff] }
 0xb4b   : > { %v13691_v54 = vmax.f32 %v13627_v19, 0.0  ;;  %v13629_v9 = vadd.f32 %v17677_v32, %v15297_v5  ;;  %v17688_v5 = vld [vmem:[%s18387_s15 + $0xe8] sm:$0xff] }
 0xb4c   : > { %v13692_v29 = vmax.f32 %v13628_v16, 0.0  ;;  %v13630_v38 = vadd.f32 %v17678_v2, %v15298_v27  ;;  %v17689_v27 = vld [vmem:[%s18387_s15 + $0xf0] sm:$0xff] }
 0xb4d   : > { %13755 = vst [vmem:[%s20714_s30 + $0x80] sm:$0xff] %v13691_v54  ;;  %v13693_v41 = vmax.f32 %v13629_v9, 0.0  ;;  %v17690_v9 = vld [vmem:[%s18387_s15 + $0xf8] sm:$0xff] }
 0xb4e   : > { %13756 = vst [vmem:[%s20714_s30 + $0x88] sm:$0xff] %v13692_v29  ;;  %v13694_v51 = vmax.f32 %v13630_v38, 0.0  ;;  %v13438_v44 = vpop.f32.mrb[56].mxu1 }
 0xb4f   : > { %13757 = vst [vmem:[%s20714_s30 + $0x90] sm:$0xff] %v13693_v41  ;;  %v15299_v57 = vadd.f32 %v13438_v44, %v20698_v14  ;;  %v13440_v31 = vpop.f32.mrb[57].mxu1 }
 0xb50   : > { %13758 = vst [vmem:[%s20714_s30 + $0x98] sm:$0xff] %v13694_v51  ;;  %v15300_v46 = vadd.f32 %v13440_v31, %v20702_v61  ;;  %v13442_v56 = vpop.f32.mrb[58].mxu1 }
 0xb51   : > { %v13631_v17 = vadd.f32 %v17679_v20, %v15299_v57  ;;  %v15301_v21 = vadd.f32 %v13442_v56, %v20698_v14  ;;  %v13444_v25 = vpop.f32.mrb[59].mxu1 }
 0xb52   : > { %v13632_v39 = vadd.f32 %v17680_v0, %v15300_v46  ;;  %v15302_v35 = vadd.f32 %v13444_v25, %v20702_v61  ;;  %v17691_v46 = vld [vmem:[%s18387_s15 + $0x100] sm:$0xff] }
 0xb53   : > { %v13695_v37 = vmax.f32 %v13631_v17, 0.0  ;;  %v13633_v55 = vadd.f32 %v17681_v8, %v15301_v21  ;;  %v17692_v21 = vld [vmem:[%s18387_s15 + $0x108] sm:$0xff] }
 0xb54   : > { %v13696_v50 = vmax.f32 %v13632_v39, 0.0  ;;  %v13634_v23 = vadd.f32 %v17682_v48, %v15302_v35  ;;  %v17693_v35 = vld [vmem:[%s18387_s15 + $0x110] sm:$0xff] }
 0xb55   : > { %13759 = vst [vmem:[%s20714_s30 + $0xa0] sm:$0xff] %v13695_v37  ;;  %v13697_v42 = vmax.f32 %v13633_v55, 0.0  ;;  %v17694_v55 = vld [vmem:[%s18387_s15 + $0x118] sm:$0xff] }
 0xb56   : > { %13760 = vst [vmem:[%s20714_s30 + $0xa8] sm:$0xff] %v13696_v50  ;;  %v13698_v10 = vmax.f32 %v13634_v23, 0.0  ;;  %v13448_v18 = vpop.f32.mrb[60].mxu1 }
 0xb57   : > { %13761 = vst [vmem:[%s20714_s30 + $0xb0] sm:$0xff] %v13697_v42  ;;  %v15303_v43 = vadd.f32 %v13448_v18, %v20698_v14  ;;  %v13450_v26 = vpop.f32.mrb[61].mxu1 }
 0xb58   : > { %13762 = vst [vmem:[%s20714_s30 + $0xb8] sm:$0xff] %v13698_v10  ;;  %v15304_v22 = vadd.f32 %v13450_v26, %v20702_v61  ;;  %v13452_v36 = vpop.f32.mrb[62].mxu1 }
 0xb59   : > { %v13635_v4 = vadd.f32 %v17683_v33, %v15303_v43  ;;  %v15305_v6 = vadd.f32 %v13452_v36, %v20698_v14  ;;  %v13454_v62 = vpop.f32.mrb[63].mxu1 }
 0xb5a   : > { %v13636_v47 = vadd.f32 %v17684_v15, %v15304_v22  ;;  %v15306_v3 = vadd.f32 %v13454_v62, %v20702_v61  ;;  %v17695_v22 = vld [vmem:[%s18387_s15 + $0x120] sm:$0xff] }
 0xb5b   : > { %v13699_v59 = vmax.f32 %v13635_v4, 0.0  ;;  %v13637_v1 = vadd.f32 %v17685_v53, %v15305_v6  ;;  %v17696_v6 = vld [vmem:[%s18387_s15 + $0x128] sm:$0xff] }
 0xb5c   : > { %v13700_v24 = vmax.f32 %v13636_v47, 0.0  ;;  %v13638_v30 = vadd.f32 %v17686_v7, %v15306_v3  ;;  %v17697_v3 = vld [vmem:[%s18387_s15 + $0x130] sm:$0xff] }
 0xb5d   : > { %13763 = vst [vmem:[%s20714_s30 + $0xc0] sm:$0xff] %v13699_v59  ;;  %v13701_v63 = vmax.f32 %v13637_v1, 0.0  ;;  %v17698_v1 = vld [vmem:[%s18387_s15 + $0x138] sm:$0xff] }
 0xb5e   : > { %13764 = vst [vmem:[%s20714_s30 + $0xc8] sm:$0xff] %v13700_v24  ;;  %v13702_v40 = vmax.f32 %v13638_v30, 0.0  ;;  %v13458_v11 = vpop.f32.mrb[64].mxu1 }
 0xb5f   : > { %13765 = vst [vmem:[%s20714_s30 + $0xd0] sm:$0xff] %v13701_v63  ;;  %v15307_v12 = vadd.f32 %v13458_v11, %v20698_v14  ;;  %v13460_v28 = vpop.f32.mrb[65].mxu1 }
 0xb60   : > { %13766 = vst [vmem:[%s20714_s30 + $0xd8] sm:$0xff] %v13702_v40  ;;  %v15308_v45 = vadd.f32 %v13460_v28, %v20702_v61  ;;  %v13462_v49 = vpop.f32.mrb[66].mxu1 }
 0xb61   : > { %v13639_v52 = vadd.f32 %v17687_v60, %v15307_v12  ;;  %v15309_v34 = vadd.f32 %v13462_v49, %v20698_v14  ;;  %v13464_v19 = vpop.f32.mrb[67].mxu1 }
 0xb62   : > { %v13640_v58 = vadd.f32 %v17688_v5, %v15308_v45  ;;  %v15310_v13 = vadd.f32 %v13464_v19, %v20702_v61  ;;  %v17699_v45 = vld [vmem:[%s18387_s15 + $0x140] sm:$0xff] }
 0xb63   : > { %v13703_v16 = vmax.f32 %v13639_v52, 0.0  ;;  %v13641_v54 = vadd.f32 %v17689_v27, %v15309_v34  ;;  %v17700_v34 = vld [vmem:[%s18387_s15 + $0x148] sm:$0xff] }
 0xb64   : > { %v13704_v32 = vmax.f32 %v13640_v58, 0.0  ;;  %v13642_v29 = vadd.f32 %v17690_v9, %v15310_v13  ;;  %v17701_v13 = vld [vmem:[%s18387_s15 + $0x150] sm:$0xff] }
 0xb65   : > { %13767 = vst [vmem:[%s20714_s30 + $0xe0] sm:$0xff] %v13703_v16  ;;  %v13705_v2 = vmax.f32 %v13641_v54, 0.0  ;;  %v17702_v54 = vld [vmem:[%s18387_s15 + $0x158] sm:$0xff] }
 0xb66   : > { %13768 = vst [vmem:[%s20714_s30 + $0xe8] sm:$0xff] %v13704_v32  ;;  %v13706_v38 = vmax.f32 %v13642_v29, 0.0  ;;  %v13468_v41 = vpop.f32.mrb[68].mxu1 }
 0xb67   : > { %13769 = vst [vmem:[%s20714_s30 + $0xf0] sm:$0xff] %v13705_v2  ;;  %v15311_v51 = vadd.f32 %v13468_v41, %v20698_v14  ;;  %v13470_v44 = vpop.f32.mrb[69].mxu1 }
 0xb68   : > { %13770 = vst [vmem:[%s20714_s30 + $0xf8] sm:$0xff] %v13706_v38  ;;  %v15312_v57 = vadd.f32 %v13470_v44, %v20702_v61  ;;  %v13472_v31 = vpop.f32.mrb[70].mxu1 }
 0xb69   : > { %v13643_v56 = vadd.f32 %v17691_v46, %v15311_v51  ;;  %v15313_v20 = vadd.f32 %v13472_v31, %v20698_v14  ;;  %v13474_v17 = vpop.f32.mrb[71].mxu1 }
 0xb6a   : > { %v13644_v25 = vadd.f32 %v17692_v21, %v15312_v57  ;;  %v15314_v0 = vadd.f32 %v13474_v17, %v20702_v61  ;;  %v17703_v57 = vld [vmem:[%s18387_s15 + $0x160] sm:$0xff] }
 0xb6b   : > { %v13707_v39 = vmax.f32 %v13643_v56, 0.0  ;;  %v13645_v37 = vadd.f32 %v17693_v35, %v15313_v20  ;;  %v17704_v20 = vld [vmem:[%s18387_s15 + $0x168] sm:$0xff] }
 0xb6c   : > { %v13708_v8 = vmax.f32 %v13644_v25, 0.0  ;;  %v13646_v50 = vadd.f32 %v17694_v55, %v15314_v0  ;;  %v17705_v0 = vld [vmem:[%s18387_s15 + $0x170] sm:$0xff] }
 0xb6d   : > { %13771 = vst [vmem:[%s20714_s30 + $0x100] sm:$0xff] %v13707_v39  ;;  %v13709_v48 = vmax.f32 %v13645_v37, 0.0  ;;  %v17706_v37 = vld [vmem:[%s18387_s15 + $0x178] sm:$0xff] }
 0xb6e   : > { %13772 = vst [vmem:[%s20714_s30 + $0x108] sm:$0xff] %v13708_v8  ;;  %v13710_v23 = vmax.f32 %v13646_v50, 0.0  ;;  %v13478_v42 = vpop.f32.mrb[72].mxu1 }
 0xb6f   : > { %13773 = vst [vmem:[%s20714_s30 + $0x110] sm:$0xff] %v13709_v48  ;;  %v15315_v10 = vadd.f32 %v13478_v42, %v20698_v14  ;;  %v13480_v18 = vpop.f32.mrb[73].mxu1 }
 0xb70   : > { %13774 = vst [vmem:[%s20714_s30 + $0x118] sm:$0xff] %v13710_v23  ;;  %v15316_v43 = vadd.f32 %v13480_v18, %v20702_v61  ;;  %v13482_v26 = vpop.f32.mrb[74].mxu1 }
 0xb71   : > { %v13647_v36 = vadd.f32 %v17695_v22, %v15315_v10  ;;  %v15317_v33 = vadd.f32 %v13482_v26, %v20698_v14  ;;  %v13484_v4 = vpop.f32.mrb[75].mxu1 }
 0xb72   : > { %v13648_v62 = vadd.f32 %v17696_v6, %v15316_v43  ;;  %v15318_v15 = vadd.f32 %v13484_v4, %v20702_v61  ;;  %v17707_v43 = vld [vmem:[%s18387_s15 + $0x180] sm:$0xff] }
 0xb73   : > { %v13711_v47 = vmax.f32 %v13647_v36, 0.0  ;;  %v13649_v59 = vadd.f32 %v17697_v3, %v15317_v33  ;;  %v17708_v33 = vld [vmem:[%s18387_s15 + $0x188] sm:$0xff] }
 0xb74   : > { %v13712_v53 = vmax.f32 %v13648_v62, 0.0  ;;  %v13650_v24 = vadd.f32 %v17698_v1, %v15318_v15  ;;  %v17709_v15 = vld [vmem:[%s18387_s15 + $0x190] sm:$0xff] }
 0xb75   : > { %13775 = vst [vmem:[%s20714_s30 + $0x120] sm:$0xff] %v13711_v47  ;;  %v13713_v7 = vmax.f32 %v13649_v59, 0.0  ;;  %v17710_v59 = vld [vmem:[%s18387_s15 + $0x198] sm:$0xff] }
 0xb76   : > { %13776 = vst [vmem:[%s20714_s30 + $0x128] sm:$0xff] %v13712_v53  ;;  %v13714_v30 = vmax.f32 %v13650_v24, 0.0  ;;  %v13488_v63 = vpop.f32.mrb[76].mxu1 }
 0xb77   : > { %13777 = vst [vmem:[%s20714_s30 + $0x130] sm:$0xff] %v13713_v7  ;;  %v15319_v40 = vadd.f32 %v13488_v63, %v20698_v14  ;;  %v13490_v11 = vpop.f32.mrb[77].mxu1 }
 0xb78   : > { %13778 = vst [vmem:[%s20714_s30 + $0x138] sm:$0xff] %v13714_v30  ;;  %v15320_v12 = vadd.f32 %v13490_v11, %v20702_v61  ;;  %v13492_v28 = vpop.f32.mrb[78].mxu1 }
 0xb79   : > { %v13651_v49 = vadd.f32 %v17699_v45, %v15319_v40  ;;  %v15321_v60 = vadd.f32 %v13492_v28, %v20698_v14  ;;  %v13494_v52 = vpop.f32.mrb[79].mxu1 }
 0xb7a   : > { %v13652_v19 = vadd.f32 %v17700_v34, %v15320_v12  ;;  %v15322_v5 = vadd.f32 %v13494_v52, %v20702_v61  ;;  %v17711_v12 = vld [vmem:[%s18387_s15 + $0x1a0] sm:$0xff] }
 0xb7b   : > { %v13715_v58 = vmax.f32 %v13651_v49, 0.0  ;;  %v13653_v16 = vadd.f32 %v17701_v13, %v15321_v60  ;;  %v17712_v60 = vld [vmem:[%s18387_s15 + $0x1a8] sm:$0xff] }
 0xb7c   : > { %v13716_v27 = vmax.f32 %v13652_v19, 0.0  ;;  %v13654_v32 = vadd.f32 %v17702_v54, %v15322_v5  ;;  %v17713_v5 = vld [vmem:[%s18387_s15 + $0x1b0] sm:$0xff] }
 0xb7d   : > { %13779 = vst [vmem:[%s20714_s30 + $0x140] sm:$0xff] %v13715_v58  ;;  %v13717_v9 = vmax.f32 %v13653_v16, 0.0  ;;  %v17714_v16 = vld [vmem:[%s18387_s15 + $0x1b8] sm:$0xff] }
 0xb7e   : > { %13780 = vst [vmem:[%s20714_s30 + $0x148] sm:$0xff] %v13716_v27  ;;  %v13718_v29 = vmax.f32 %v13654_v32, 0.0  ;;  %v13498_v2 = vpop.f32.mrb[80].mxu1 }
 0xb7f   : > { %13781 = vst [vmem:[%s20714_s30 + $0x150] sm:$0xff] %v13717_v9  ;;  %v15323_v38 = vadd.f32 %v13498_v2, %v20698_v14  ;;  %v13500_v41 = vpop.f32.mrb[81].mxu1 }
 0xb80   : > { %13782 = vst [vmem:[%s20714_s30 + $0x158] sm:$0xff] %v13718_v29  ;;  %v15324_v51 = vadd.f32 %v13500_v41, %v20702_v61  ;;  %v13502_v44 = vpop.f32.mrb[82].mxu1 }
 0xb81   : > { %v13655_v31 = vadd.f32 %v17703_v57, %v15323_v38  ;;  %v15325_v46 = vadd.f32 %v13502_v44, %v20698_v14  ;;  %v13504_v56 = vpop.f32.mrb[83].mxu1 }
 0xb82   : > { %v13656_v17 = vadd.f32 %v17704_v20, %v15324_v51  ;;  %v15326_v21 = vadd.f32 %v13504_v56, %v20702_v61  ;;  %v17715_v51 = vld [vmem:[%s18387_s15 + $0x1c0] sm:$0xff] }
 0xb83   : > { %v13719_v25 = vmax.f32 %v13655_v31, 0.0  ;;  %v13657_v39 = vadd.f32 %v17705_v0, %v15325_v46  ;;  %v17716_v46 = vld [vmem:[%s18387_s15 + $0x1c8] sm:$0xff] }
 0xb84   : > { %v13720_v35 = vmax.f32 %v13656_v17, 0.0  ;;  %v13658_v8 = vadd.f32 %v17706_v37, %v15326_v21  ;;  %v17717_v21 = vld [vmem:[%s18387_s15 + $0x1d0] sm:$0xff] }
 0xb85   : > { %13783 = vst [vmem:[%s20714_s30 + $0x160] sm:$0xff] %v13719_v25  ;;  %v13721_v55 = vmax.f32 %v13657_v39, 0.0  ;;  %v17718_v39 = vld [vmem:[%s18387_s15 + $0x1d8] sm:$0xff] }
 0xb86   : > { %13784 = vst [vmem:[%s20714_s30 + $0x168] sm:$0xff] %v13720_v35  ;;  %v13722_v50 = vmax.f32 %v13658_v8, 0.0  ;;  %v13508_v48 = vpop.f32.mrb[84].mxu1 }
 0xb87   : > { %13785 = vst [vmem:[%s20714_s30 + $0x170] sm:$0xff] %v13721_v55  ;;  %v15327_v23 = vadd.f32 %v13508_v48, %v20698_v14  ;;  %v13510_v42 = vpop.f32.mrb[85].mxu1 }
 0xb88   : > { %13786 = vst [vmem:[%s20714_s30 + $0x178] sm:$0xff] %v13722_v50  ;;  %v15328_v10 = vadd.f32 %v13510_v42, %v20702_v61  ;;  %v13512_v18 = vpop.f32.mrb[86].mxu1 }
 0xb89   : > { %v13659_v26 = vadd.f32 %v17707_v43, %v15327_v23  ;;  %v15329_v22 = vadd.f32 %v13512_v18, %v20698_v14  ;;  %v13514_v36 = vpop.f32.mrb[87].mxu1 }
 0xb8a   : > { %v13660_v4 = vadd.f32 %v17708_v33, %v15328_v10  ;;  %v15330_v6 = vadd.f32 %v13514_v36, %v20702_v61  ;;  %v17719_v10 = vld [vmem:[%s18387_s15 + $0x1e0] sm:$0xff] }
 0xb8b   : > { %v13723_v62 = vmax.f32 %v13659_v26, 0.0  ;;  %v13661_v47 = vadd.f32 %v17709_v15, %v15329_v22  ;;  %v17720_v22 = vld [vmem:[%s18387_s15 + $0x1e8] sm:$0xff] }
 0xb8c   : > { %v13724_v3 = vmax.f32 %v13660_v4, 0.0  ;;  %v13662_v53 = vadd.f32 %v17710_v59, %v15330_v6  ;;  %v17721_v6 = vld [vmem:[%s18387_s15 + $0x1f0] sm:$0xff] }
 0xb8d   : > { %13787 = vst [vmem:[%s20714_s30 + $0x180] sm:$0xff] %v13723_v62  ;;  %v13725_v1 = vmax.f32 %v13661_v47, 0.0  ;;  %v17722_v47 = vld [vmem:[%s18387_s15 + $0x1f8] sm:$0xff] }
 0xb8e   : > { %13788 = vst [vmem:[%s20714_s30 + $0x188] sm:$0xff] %v13724_v3  ;;  %v13726_v24 = vmax.f32 %v13662_v53, 0.0  ;;  %v13518_v7 = vpop.f32.mrb[88].mxu1 }
 0xb8f   : > { %13789 = vst [vmem:[%s20714_s30 + $0x190] sm:$0xff] %v13725_v1  ;;  %v15331_v30 = vadd.f32 %v13518_v7, %v20698_v14  ;;  %v13520_v63 = vpop.f32.mrb[89].mxu1 }
 0xb90   : > { %13790 = vst [vmem:[%s20714_s30 + $0x198] sm:$0xff] %v13726_v24  ;;  %v15332_v40 = vadd.f32 %v13520_v63, %v20702_v61  ;;  %v13522_v11 = vpop.f32.mrb[90].mxu1 }
 0xb91   : > { %v13663_v28 = vadd.f32 %v17711_v12, %v15331_v30  ;;  %v15333_v45 = vadd.f32 %v13522_v11, %v20698_v14  ;;  %v13524_v49 = vpop.f32.mrb[91].mxu1 }
 0xb92   : > { %v13664_v52 = vadd.f32 %v17712_v60, %v15332_v40  ;;  %v15334_v34 = vadd.f32 %v13524_v49, %v20702_v61 }
 0xb93   : > { %v13727_v19 = vmax.f32 %v13663_v28, 0.0  ;;  %v13665_v58 = vadd.f32 %v17713_v5, %v15333_v45 }
 0xb94   : > { %v13728_v13 = vmax.f32 %v13664_v52, 0.0  ;;  %v13666_v27 = vadd.f32 %v17714_v16, %v15334_v34 }
 0xb95   : > { %13791 = vst [vmem:[%s20714_s30 + $0x1a0] sm:$0xff] %v13727_v19  ;;  %v13729_v54 = vmax.f32 %v13665_v58, 0.0 }
 0xb96   : > { %13792 = vst [vmem:[%s20714_s30 + $0x1a8] sm:$0xff] %v13728_v13  ;;  %v13730_v32 = vmax.f32 %v13666_v27, 0.0  ;;  %v13528_v9 = vpop.f32.mrb[92].mxu1 }
 0xb97   : > { %13793 = vst [vmem:[%s20714_s30 + $0x1b0] sm:$0xff] %v13729_v54  ;;  %v15335_v29 = vadd.f32 %v13528_v9, %v20698_v14  ;;  %v13530_v2 = vpop.f32.mrb[93].mxu1 }
 0xb98   : > { %13794 = vst [vmem:[%s20714_s30 + $0x1b8] sm:$0xff] %v13730_v32  ;;  %v15336_v38 = vadd.f32 %v13530_v2, %v20702_v61  ;;  %v13532_v41 = vpop.f32.mrb[94].mxu1 }
 0xb99   : > { %v13667_v44 = vadd.f32 %v17715_v51, %v15335_v29  ;;  %v15337_v57 = vadd.f32 %v13532_v41, %v20698_v14  ;;  %v13534_v31 = vpop.f32.mrb[95].mxu1 }
 0xb9a   : > { %v13668_v56 = vadd.f32 %v17716_v46, %v15336_v38  ;;  %v15338_v20 = vadd.f32 %v13534_v31, %v20702_v61 }
 0xb9b   : > { %v13731_v17 = vmax.f32 %v13667_v44, 0.0  ;;  %v13669_v25 = vadd.f32 %v17717_v21, %v15337_v57 }
 0xb9c   : > { %v13732_v0 = vmax.f32 %v13668_v56, 0.0  ;;  %v13670_v35 = vadd.f32 %v17718_v39, %v15338_v20 }
 0xb9d   : > { %13795 = vst [vmem:[%s20714_s30 + $0x1c0] sm:$0xff] %v13731_v17  ;;  %v13733_v37 = vmax.f32 %v13669_v25, 0.0 }
 0xb9e   : > { %13796 = vst [vmem:[%s20714_s30 + $0x1c8] sm:$0xff] %v13732_v0  ;;  %v13734_v8 = vmax.f32 %v13670_v35, 0.0  ;;  %v13538_v55 = vpop.f32.mrb[96].mxu1 }
 0xb9f   : > { %13797 = vst [vmem:[%s20714_s30 + $0x1d0] sm:$0xff] %v13733_v37  ;;  %v15339_v50 = vadd.f32 %v13538_v55, %v20698_v14  ;;  %v13540_v48 = vpop.f32.mrb[97].mxu1 }
 0xba0   : > { %13798 = vst [vmem:[%s20714_s30 + $0x1d8] sm:$0xff] %v13734_v8  ;;  %v15340_v23 = vadd.f32 %v13540_v48, %v20702_v61  ;;  %v13542_v42 = vpop.f32.mrb[98].mxu1 }
 0xba1   : > { %v13671_v18 = vadd.f32 %v17719_v10, %v15339_v50  ;;  %v15341_v43 = vadd.f32 %v13542_v42, %v20698_v14  ;;  %v13544_v26 = vpop.f32.mrb[99].mxu1 }
 0xba2   : > { %v13672_v36 = vadd.f32 %v17720_v22, %v15340_v23  ;;  %v15342_v33 = vadd.f32 %v13544_v26, %v20702_v61 }
 0xba3   : > { %v13735_v4 = vmax.f32 %v13671_v18, 0.0  ;;  %v13673_v62 = vadd.f32 %v17721_v6, %v15341_v43 }
 0xba4   : > { %v13736_v15 = vmax.f32 %v13672_v36, 0.0  ;;  %v13674_v3 = vadd.f32 %v17722_v47, %v15342_v33 }
 0xba5   : > { %13799 = vst [vmem:[%s20714_s30 + $0x1e0] sm:$0xff] %v13735_v4  ;;  %v13737_v14 = vmax.f32 %v13673_v62, 0.0 }
 0xba6   : > { %13800 = vst [vmem:[%s20714_s30 + $0x1e8] sm:$0xff] %v13736_v15  ;;  %v13738_v61 = vmax.f32 %v13674_v3, 0.0 }
 0xba7   : > { %13801 = vst [vmem:[%s20714_s30 + $0x1f0] sm:$0xff] %v13737_v14 }
 0xba8   : > { %13802 = vst [vmem:[%s20714_s30 + $0x1f8] sm:$0xff] %v13738_v61 }
 0xba9   : > { %17940 = shalt.err (!%p17937_p0)
}
 0xbaa   : > { %s17941_s12 = scalar_lea.hbm %s20902_s10, 8192  ;;  %s17945_s23 = scalar_lea.hbm %s21551_s14, 16384 }
 0xbab   : > { %p17942_p8 = scmp.ne.s32.totalorder %s20902_s10, %s17941_s12  ;;  %p17946_p1 = scmp.lt.u32.totalorder %s20902_s10, %s21551_s14 }
 0xbac   : > { %p17947_p10 = scmp.lt.u32.totalorder %s17945_s23, %s17941_s12  ;;  %p17949_p7 = scmp.lt.u32.totalorder %s17941_s12, %s20902_s10 }
 0xbad   : > { %p17943_p3 = pnand %p17942_p8, %p21552_p6 }
 0xbae   : > { %p17948_p5 = por %p17947_p10, %p17946_p1 }
 0xbaf   : > { %p17944_p2 = pneg %p17943_p3 }
 0xbb0   : > { %p17950_p4 = por %p17949_p7, %p17948_p5 }
 0xbb2   : > { %p17951_p11 = pnand %p17950_p4, %p17944_p2 }
 0xbb4   : > { %17954 = shalt.err (!%p17951_p11)
}
 0xbb5   : > { %s18036_s29 = smov 256   ;;  %s18037_s16 = smov 16  }
 0xbb6   : > { %16417 = dma.vmem_to_hbm [thread:$0]  (%p21552_p6), %s20904_s19, 8192, %s20902_s10, %s13804_s27, %s18036_s29, %s18036_s29, %s18037_s16  }
 0xbb7 PF: > { %s21553_s8 = sld [smem:[#allocation22_spill]]  ;;  %s21554_s15 = sld [smem:[#allocation26_spill]] }
 0xbb8   : > { %s21555_s5 = sld [smem:[#allocation25_spill]] }
 0xbbd   : > { %s13835_s11 = sand.u32 1, %s21553_s8   ;;  %p21556_p13 = scmp.ne.s32.totalorder %s21554_s15, 0 }
 0xbbe   : > { %p21557_p12 = scmp.ge.s32.totalorder %s21555_s5, 2  ;;  %s13836_s30 = scalar_lea.sflag [#allocation6], %s13835_s11 }
 0xbc0   : > { %p16443_p9 = pnand %p21557_p12, %p21556_p13 }
 0xbc2   : > { %17996 = dma.done.wait (!%p16443_p9), %s13836_s30, 8192  }
 0xbc3   : > { %17998 = vsyncadd (!%p16443_p9), %s13836_s30, 4294959104  ;;  %s28_s29 = sadd.s32 1, %s21555_s5   ;;  %s21558_s9 = sld [smem:[#allocation23_spill]] }
 0xbc4   : > { %p25_p0 = scmp.ge.s32.totalorder %s28_s29, 4   ;;  %s21559_s26 = sld [smem:[#allocation28_spill]] }
 0xbc5   : > { %s21560_s27 = sld [smem:[#allocation24_spill]]  ;;  %s21561_s28 = sld [smem:[#allocation27_spill]] }
 0xbc6   : > { %s21562_s24 = smov %s18005_s25  ;;  %27 = sbr.rel (!%p25_p0) target bundleno = 15 (0xf), region = 164 }
 0xbc9   : > { %s21563_s25 = smov %s21558_s9 }
 0xbcd   :  { %13841 = vsyncpa [#allocation5], 1 }
 0xbce   :  { %13843 = vsyncpa [#allocation5 + $0x1], 1 }
 0xbcf   :  { %13844 = vsyncpa [#allocation8], 1 }
 0xbd0   :  { %13846 = vsyncpa [#allocation8 + $0x1], 1 }
 0xbd1   :  { %13847 = vsyncpa [#allocation11], 1 }
 0xbd2   :  { %13848 = vsyncpa [#allocation14], 1 }
 0xbd3   :  { %13849 = vsyncpa [#allocation6], 1 }
 0xbd4   :  { %13851 = vsyncpa [#allocation6 + $0x1], 1 }

</bundles_post_ra>
